<compile_context>
chip_gen: v7x
topology: tpu7x:2x2x1
jax: 0.10.0
libtpu: 0.0.40
codegen_flags: <defaults>
</compile_context>

<pallas_src>
import numpy as np
import jax
import jax.numpy as jnp
from jax.experimental import pallas as pl
from jax.experimental.pallas import tpu as pltpu

# Module-consistent sizes.
DK, DIN = 8, 32                 # sequence length, dim_in
DH, DE = 8, 32                  # dim_head, dim_emb  (2**3, 2**5)
DHDE = DH * DE                  # 256
BZ = 64                         # batch elements per grid step -> M = 512 rows


def _top_encoder_kernel(x_ref, x0_ref, mask_ref, wkvr_ref, bkvr_ref,
                        wq_ref, bq_ref, cos_ref, sin_ref, ggt_ref, o_ref):
    f32, bf16 = jnp.float32, jnp.bfloat16
    m, _ = x_ref.shape                    # m = bz * dk
    dk, dhde = cos_ref.shape
    bz = m // dk

    x = x_ref[...]                        # (m, din) f32, all (z, k) rows
    x0 = x0_ref[...]                      # (m, din) f32, k==0 row of each z repeated over k

    # --- projections: two independent MXU pushes (bf16 operands, f32 acc) ---
    # kvr = [ k | v | rotate_half(k) ]  (rotate_half folded into the weights)
    kvr = jnp.dot(x.astype(bf16), wkvr_ref[...],
                  preferred_element_type=f32) + bkvr_ref[...]          # (m, 3*dhde)
    q_b = jnp.dot(x0.astype(bf16), wq_ref[...],
                  preferred_element_type=f32) + bq_ref[...]            # (m, dhde)

    k_flat = kvr[:, :dhde]
    v_flat = kvr[:, dhde:2 * dhde]
    k_rh = kvr[:, 2 * dhde:]

    # --- rotary: k*cos + rotate_half(k)*sin ; cos/sin are (dk, dhde), bcast over z ---
    k_rot = (k_flat.reshape(bz, dk, dhde) * cos_ref[...][None]
             + k_rh.reshape(bz, dk, dhde) * sin_ref[...][None]).reshape(m, dhde)

    # --- per-head sums over emb (+ re-broadcast) for v^2 and q*k:
    #     one fused (2m, dhde) @ (dhde, dhde) block-diagonal-ones matmul ---
    v_sq = v_flat * v_flat
    qk = q_b * k_rot
    cat = jnp.concatenate([v_sq.astype(bf16), qk.astype(bf16)], axis=0)
    red = jnp.dot(cat, ggt_ref[...], preferred_element_type=f32)       # (2m, dhde)
    v_den = red[:m]
    sw = red[m:] * mask_ref[...]          # 0/1 mask commutes with the emb-sum

    # --- v = normed_square over emb of each head ---
    v_n = v_sq * pl.reciprocal(jnp.maximum(v_den, 1e-38), approx=True)

    # --- normed_square of seq weights over the sequence dim (sublane-group sum) ---
    sw2 = (sw * sw).reshape(bz, dk, dhde)
    den = jnp.maximum(jnp.sum(sw2, axis=1, keepdims=True), 1e-38)      # (bz, 1, dhde)
    w = sw2 * pl.reciprocal(den, approx=True)

    # --- out[z,h,e] = sum_k w[z,k,h] * v_n[z,k,h,e]; final normed over h*e ---
    wv = w * v_n.reshape(bz, dk, dhde)
    out = jnp.sum(wv, axis=1)                                          # (bz, dhde)
    o_ref[...] = out * pl.reciprocal(
        jnp.maximum(jnp.sum(out, axis=-1, keepdims=True), 1e-38), approx=True)


def init_params(key, din=DIN, dh=DH, de=DE, dk=DK):
    dhde = dh * de
    half = de // 2
    ks = jax.random.split(key, 4)
    bound = 1.0 / np.sqrt(din)
    wq = jax.random.uniform(ks[0], (din, dhde), jnp.float32, -bound, bound)
    bq = jax.random.uniform(ks[1], (1, dhde), jnp.float32, -bound, bound)
    wkv = jax.random.uniform(ks[2], (din, 2 * dhde), jnp.float32, -bound, bound)
    bkv = jax.random.uniform(ks[3], (1, 2 * dhde), jnp.float32, -bound, bound)
    wk, wv = wkv[:, :dhde], wkv[:, dhde:]
    bk, bv = bkv[:, :dhde], bkv[:, dhde:]

    # rotate_half folded into the k projection: exact signed column permutation
    # on the flat (head, emb) layout.
    def rot_half_cols(a):
        a3 = a.reshape(a.shape[0], dh, de)
        return jnp.concatenate([-a3[..., half:], a3[..., :half]],
                               axis=-1).reshape(a.shape[0], dhde)
    wk_rot, bk_rot = rot_half_cols(wk), rot_half_cols(bk)

    # fused [k | v | rotate_half(k)] projection weight / bias
    wkvr = jnp.concatenate([wk, wv, wk_rot], axis=1)        # (din, 3*dhde)
    bkvr = jnp.concatenate([bk, bv, bk_rot], axis=1)        # (1, 3*dhde)

    # rotate-half RoPE tables over dim_emb, positions = sequence index k,
    # tiled over heads -> a single (dk, dhde) block shared by every grid step.
    inv_freq = 1.0 / (10000.0 ** (np.arange(half, dtype=np.float64) / half))
    ang = np.arange(dk, dtype=np.float64)[:, None] * inv_freq[None, :]       # (dk, half)
    cos_de = np.concatenate([np.cos(ang), np.cos(ang)], -1).astype(np.float32)
    sin_de = np.concatenate([np.sin(ang), np.sin(ang)], -1).astype(np.float32)
    cos_hk = np.tile(cos_de, (1, dh))                        # (dk, dhde)
    sin_hk = np.tile(sin_de, (1, dh))

    # per-head sum-and-broadcast over emb: block-diagonal ones (exact in bf16)
    ggt = np.zeros((dhde, dhde), np.float32)
    for h in range(dh):
        ggt[h * de:(h + 1) * de, h * de:(h + 1) * de] = 1.0

    return dict(
        # f32 originals (used by the pure-JAX reference)
        wq=wq, bq=bq, wkv=wkv, bkv=bkv,
        cos_de=jnp.asarray(cos_de), sin_de=jnp.asarray(sin_de),
        # kernel operands
        wkvr=wkvr.astype(jnp.bfloat16), bkvr=bkvr,
        wq_bf=wq.astype(jnp.bfloat16),
        cos_hk=jnp.asarray(cos_hk), sin_hk=jnp.asarray(sin_hk),
        ggt=jnp.asarray(ggt, jnp.bfloat16),
    )


def top_encoder_forward(x, params, mask=None, bz=BZ):
    dz, dk, din = x.shape
    dhde = DH * DE
    m = bz * dk

    # mask -> multiplicative form (0.0 where masked, 1.0 otherwise)
    if mask is None:
        mask_mult = jnp.ones((dz, dk), jnp.float32)
    else:
        mask_mult = 1.0 - mask.reshape(dz, dk).astype(jnp.float32)

    # pad dz up to a multiple of bz (padded rows computed then dropped)
    dz_pad = ((dz + bz - 1) // bz) * bz
    if dz_pad != dz:
        x = jnp.pad(x, ((0, dz_pad - dz), (0, 0), (0, 0)))
        mask_mult = jnp.pad(mask_mult, ((0, dz_pad - dz), (0, 0)))
    nblk = dz_pad // bz

    x2 = x.reshape(dz_pad * dk, din)
    # q only needs the k==0 row of each z; repeat it over k host-side so the
    # kernel's q matmul directly produces the broadcast (m, dhde) tile.
    x0r = jnp.broadcast_to(x[:, 0:1, :], (dz_pad, dk, din)).reshape(dz_pad * dk, din)
    m2 = mask_mult.reshape(dz_pad * dk, 1)

    def const_spec(a):
        nd = a.ndim
        return pl.BlockSpec(a.shape, lambda z, _nd=nd: (0,) * _nd)

    in_specs = [
        pl.BlockSpec((m, din), lambda z: (z, 0)),   # x rows for this z-block
        pl.BlockSpec((m, din), lambda z: (z, 0)),   # k-broadcast x[:,0] rows
        pl.BlockSpec((m, 1), lambda z: (z, 0)),     # multiplicative mask
        const_spec(params["wkvr"]), const_spec(params["bkvr"]),
        const_spec(params["wq_bf"]), const_spec(params["bq"]),
        const_spec(params["cos_hk"]), const_spec(params["sin_hk"]),
        const_spec(params["ggt"]),
    ]

    out = pl.pallas_call(
        _top_encoder_kernel,
        out_shape=jax.ShapeDtypeStruct((dz_pad, dhde), jnp.float32),
        grid_spec=pltpu.PrefetchScalarGridSpec(
            num_scalar_prefetch=0,
            grid=(nblk,),
            in_specs=in_specs,
            out_specs=pl.BlockSpec((bz, dhde), lambda z: (z, 0)),
        ),
        compiler_params=pltpu.CompilerParams(
            dimension_semantics=("parallel",),
            vmem_limit_bytes=32 * 1024 * 1024),
    )(x2, x0r, m2, params["wkvr"], params["bkvr"], params["wq_bf"],
      params["bq"], params["cos_hk"], params["sin_hk"], params["ggt"])
    return out[:dz]


def reference_forward(x, params, mask=None):
    """Pure-JAX mirror of TopEncoderBase.forward (same rotary convention)."""
    dz, dk, din = x.shape
    dh, de = DH, DE
    with jax.default_matmul_precision("float32"):
        q = (x[:, 0] @ params["wq"] + params["bq"][0]).reshape(dz, dh, de)
        kv = (x @ params["wkv"] + params["bkv"][0]).reshape(dz, dk, 2, dh, de)
        k, v = kv[:, :, 0], kv[:, :, 1]
        cos = params["cos_de"][None, :, None, :]
        sin = params["sin_de"][None, :, None, :]
        half = de // 2
        k_rh = jnp.concatenate([-k[..., half:], k[..., :half]], axis=-1)
        k = k * cos + k_rh * sin
        v2 = v * v
        v_n = v2 / jnp.maximum(v2.sum(-1, keepdims=True), 1e-38)
        sw = jnp.einsum("zhe,zkhe->zkh", q, k)
        if mask is not None:
            sw = jnp.where(mask[:, :, None], 0.0, sw)
        sw2 = sw * sw
        w = sw2 / jnp.maximum(sw2.sum(axis=1, keepdims=True), 1e-38)
        out = jnp.einsum("zkh,zkhe->zhe", w, v_n).reshape(dz, dh * de)
        return out / jnp.maximum(out.sum(-1, keepdims=True), 1e-38)


if __name__ == "__main__":
    key = jax.random.PRNGKey(0)
    kx, km, kp = jax.random.split(key, 3)
    params = init_params(kp)

    dz = 200                              # pads to 256 -> 4 grid steps of BZ=64
    x = jax.random.normal(kx, (dz, DK, DIN), jnp.float32)
    mask = jax.random.uniform(km, (dz, DK)) < 0.25      # boolean "fill with 0" mask

    out = top_encoder_forward(x, params, mask)
    out = jax.block_until_ready(out)

    ref = reference_forward(x, params, mask)
    np.testing.assert_allclose(np.asarray(out), np.asarray(ref), rtol=5e-2, atol=2e-3)
    print("KERNEL_OK")
</pallas_src>

<mosaic_0001>
module attributes {stable_mosaic.version = 11 : i64} {
  func.func @_top_encoder_kernel(%arg0: i32, %arg1: memref<512x32xf32, #tpu.memory_space<vmem>>, %arg2: memref<512x32xf32, #tpu.memory_space<vmem>>, %arg3: memref<512x1xf32, #tpu.memory_space<vmem>>, %arg4: memref<32x768xbf16, #tpu.memory_space<vmem>>, %arg5: memref<1x768xf32, #tpu.memory_space<vmem>>, %arg6: memref<32x256xbf16, #tpu.memory_space<vmem>>, %arg7: memref<1x256xf32, #tpu.memory_space<vmem>>, %arg8: memref<8x256xf32, #tpu.memory_space<vmem>>, %arg9: memref<8x256xf32, #tpu.memory_space<vmem>>, %arg10: memref<256x256xbf16, #tpu.memory_space<vmem>>, %arg11: memref<64x256xf32, #tpu.memory_space<vmem>>) attributes {dimension_semantics = [#tpu.dimension_semantics<parallel>], iteration_bounds = array<i64: 4>, scalar_prefetch = 0 : i64, scratch_operands = 0 : i64, tpu.core_type = #tpu.core_type<tc>, window_params = [{transform_indices = @transform_0, window_bounds = array<i64: 512, 32>}, {transform_indices = @transform_1, window_bounds = array<i64: 512, 32>}, {transform_indices = @transform_2, window_bounds = array<i64: 512, 1>}, {pipeline_mode = #tpu.pipeline_mode<synchronous>, transform_indices = @transform_3, window_bounds = array<i64: 32, 768>}, {pipeline_mode = #tpu.pipeline_mode<synchronous>, transform_indices = @transform_4, window_bounds = array<i64: 1, 768>}, {pipeline_mode = #tpu.pipeline_mode<synchronous>, transform_indices = @transform_5, window_bounds = array<i64: 32, 256>}, {pipeline_mode = #tpu.pipeline_mode<synchronous>, transform_indices = @transform_6, window_bounds = array<i64: 1, 256>}, {pipeline_mode = #tpu.pipeline_mode<synchronous>, transform_indices = @transform_7, window_bounds = array<i64: 8, 256>}, {pipeline_mode = #tpu.pipeline_mode<synchronous>, transform_indices = @transform_8, window_bounds = array<i64: 8, 256>}, {pipeline_mode = #tpu.pipeline_mode<synchronous>, transform_indices = @transform_9, window_bounds = array<i64: 256, 256>}, {transform_indices = @transform_10, window_bounds = array<i64: 64, 256>}]} {
    %c0 = arith.constant 0 : index
    %c0_0 = arith.constant 0 : index
    %0 = vector.load %arg1[%c0, %c0_0] : memref<512x32xf32, #tpu.memory_space<vmem>>, vector<512x32xf32>
    %c0_1 = arith.constant 0 : index
    %c0_2 = arith.constant 0 : index
    %1 = vector.load %arg2[%c0_1, %c0_2] : memref<512x32xf32, #tpu.memory_space<vmem>>, vector<512x32xf32>
    %2 = arith.truncf %0 : vector<512x32xf32> to vector<512x32xbf16>
    %c0_3 = arith.constant 0 : index
    %c0_4 = arith.constant 0 : index
    %3 = vector.load %arg4[%c0_3, %c0_4] : memref<32x768xbf16, #tpu.memory_space<vmem>>, vector<32x768xbf16>
    %cst = arith.constant dense<0.000000e+00> : vector<512x768xf32>
    %4 = tpu.matmul %2, %3, %cst {dimension_numbers = #tpu.dot_dimension_numbers<[1], [0], [0], [1], [0, 0, 1, 1], [], []>} : vector<512x32xbf16>, vector<32x768xbf16>, vector<512x768xf32> -> vector<512x768xf32>
    %c0_5 = arith.constant 0 : index
    %c0_6 = arith.constant 0 : index
    %5 = vector.load %arg5[%c0_5, %c0_6] : memref<1x768xf32, #tpu.memory_space<vmem>>, vector<1x768xf32>
    %6 = vector.broadcast %5 : vector<1x768xf32> to vector<512x768xf32>
    %7 = arith.addf %4, %6 : vector<512x768xf32>
    %8 = arith.truncf %1 : vector<512x32xf32> to vector<512x32xbf16>
    %c0_7 = arith.constant 0 : index
    %c0_8 = arith.constant 0 : index
    %9 = vector.load %arg6[%c0_7, %c0_8] : memref<32x256xbf16, #tpu.memory_space<vmem>>, vector<32x256xbf16>
    %cst_9 = arith.constant dense<0.000000e+00> : vector<512x256xf32>
    %10 = tpu.matmul %8, %9, %cst_9 {dimension_numbers = #tpu.dot_dimension_numbers<[1], [0], [0], [1], [0, 0, 1, 1], [], []>} : vector<512x32xbf16>, vector<32x256xbf16>, vector<512x256xf32> -> vector<512x256xf32>
    %c0_10 = arith.constant 0 : index
    %c0_11 = arith.constant 0 : index
    %11 = vector.load %arg7[%c0_10, %c0_11] : memref<1x256xf32, #tpu.memory_space<vmem>>, vector<1x256xf32>
    %12 = vector.broadcast %11 : vector<1x256xf32> to vector<512x256xf32>
    %13 = arith.addf %10, %12 : vector<512x256xf32>
    %14 = vector.extract_strided_slice %7 {offsets = [0, 0], sizes = [512, 256], strides = [1, 1]} : vector<512x768xf32> to vector<512x256xf32>
    %15 = vector.extract_strided_slice %7 {offsets = [0, 256], sizes = [512, 256], strides = [1, 1]} : vector<512x768xf32> to vector<512x256xf32>
    %16 = vector.extract_strided_slice %7 {offsets = [0, 512], sizes = [512, 256], strides = [1, 1]} : vector<512x768xf32> to vector<512x256xf32>
    %17 = vector.shape_cast %14 : vector<512x256xf32> to vector<64x8x256xf32>
    %c0_12 = arith.constant 0 : index
    %c0_13 = arith.constant 0 : index
    %18 = vector.load %arg8[%c0_12, %c0_13] : memref<8x256xf32, #tpu.memory_space<vmem>>, vector<8x256xf32>
    %19 = vector.shape_cast %18 : vector<8x256xf32> to vector<1x8x256xf32>
    %20 = vector.broadcast %19 : vector<1x8x256xf32> to vector<64x8x256xf32>
    %21 = arith.mulf %17, %20 : vector<64x8x256xf32>
    %22 = vector.shape_cast %16 : vector<512x256xf32> to vector<64x8x256xf32>
    %c0_14 = arith.constant 0 : index
    %c0_15 = arith.constant 0 : index
    %23 = vector.load %arg9[%c0_14, %c0_15] : memref<8x256xf32, #tpu.memory_space<vmem>>, vector<8x256xf32>
    %24 = vector.shape_cast %23 : vector<8x256xf32> to vector<1x8x256xf32>
    %25 = vector.broadcast %24 : vector<1x8x256xf32> to vector<64x8x256xf32>
    %26 = arith.mulf %22, %25 : vector<64x8x256xf32>
    %27 = arith.addf %21, %26 : vector<64x8x256xf32>
    %28 = vector.shape_cast %27 : vector<64x8x256xf32> to vector<512x256xf32>
    %29 = arith.mulf %15, %15 : vector<512x256xf32>
    %30 = arith.mulf %13, %28 : vector<512x256xf32>
    %31 = arith.truncf %29 : vector<512x256xf32> to vector<512x256xbf16>
    %32 = arith.truncf %30 : vector<512x256xf32> to vector<512x256xbf16>
    %33 = tpu.concatenate %31, %32 in 0 : vector<512x256xbf16>, vector<512x256xbf16> -> vector<1024x256xbf16>
    %c0_16 = arith.constant 0 : index
    %c0_17 = arith.constant 0 : index
    %34 = vector.load %arg10[%c0_16, %c0_17] : memref<256x256xbf16, #tpu.memory_space<vmem>>, vector<256x256xbf16>
    %cst_18 = arith.constant dense<0.000000e+00> : vector<1024x256xf32>
    %35 = tpu.matmul %33, %34, %cst_18 {dimension_numbers = #tpu.dot_dimension_numbers<[1], [0], [0], [1], [0, 0, 1, 1], [], []>} : vector<1024x256xbf16>, vector<256x256xbf16>, vector<1024x256xf32> -> vector<1024x256xf32>
    %36 = vector.extract_strided_slice %35 {offsets = [0, 0], sizes = [512, 256], strides = [1, 1]} : vector<1024x256xf32> to vector<512x256xf32>
    %37 = vector.extract_strided_slice %35 {offsets = [512, 0], sizes = [512, 256], strides = [1, 1]} : vector<1024x256xf32> to vector<512x256xf32>
    %c0_19 = arith.constant 0 : index
    %c0_20 = arith.constant 0 : index
    %38 = vector.load %arg3[%c0_19, %c0_20] : memref<512x1xf32, #tpu.memory_space<vmem>>, vector<512x1xf32>
    %39 = vector.broadcast %38 : vector<512x1xf32> to vector<512x256xf32>
    %40 = arith.mulf %37, %39 : vector<512x256xf32>
    %cst_21 = arith.constant 9.99999935E-39 : f32
    %41 = vector.broadcast %cst_21 : f32 to vector<512x256xf32>
    %42 = arith.maximumf %36, %41 : vector<512x256xf32>
    %43 = tpu.reciprocal %42 {approx = true} : vector<512x256xf32> -> vector<512x256xf32>
    %44 = arith.mulf %29, %43 : vector<512x256xf32>
    %45 = arith.mulf %40, %40 : vector<512x256xf32>
    %46 = vector.shape_cast %45 : vector<512x256xf32> to vector<64x8x256xf32>
    %cst_22 = arith.constant dense<0.000000e+00> : vector<64x256xf32>
    %47 = vector.multi_reduction <add>, %46, %cst_22 [1] : vector<64x8x256xf32> to vector<64x256xf32>
    %48 = vector.shape_cast %47 : vector<64x256xf32> to vector<64x1x256xf32>
    %cst_23 = arith.constant 9.99999935E-39 : f32
    %49 = vector.broadcast %cst_23 : f32 to vector<64x1x256xf32>
    %50 = arith.maximumf %48, %49 : vector<64x1x256xf32>
    %51 = tpu.reciprocal %50 {approx = true} : vector<64x1x256xf32> -> vector<64x1x256xf32>
    %52 = vector.broadcast %51 : vector<64x1x256xf32> to vector<64x8x256xf32>
    %53 = arith.mulf %46, %52 : vector<64x8x256xf32>
    %54 = vector.shape_cast %44 : vector<512x256xf32> to vector<64x8x256xf32>
    %55 = arith.mulf %53, %54 : vector<64x8x256xf32>
    %cst_24 = arith.constant dense<0.000000e+00> : vector<64x256xf32>
    %56 = vector.multi_reduction <add>, %55, %cst_24 [1] : vector<64x8x256xf32> to vector<64x256xf32>
    %cst_25 = arith.constant dense<0.000000e+00> : vector<64xf32>
    %57 = vector.multi_reduction <add>, %56, %cst_25 [1] : vector<64x256xf32> to vector<64xf32>
    %58 = vector.shape_cast %57 : vector<64xf32> to vector<64x1xf32>
    %cst_26 = arith.constant 9.99999935E-39 : f32
    %59 = vector.broadcast %cst_26 : f32 to vector<64x1xf32>
    %60 = arith.maximumf %58, %59 : vector<64x1xf32>
    %61 = tpu.reciprocal %60 {approx = true} : vector<64x1xf32> -> vector<64x1xf32>
    %62 = vector.broadcast %61 : vector<64x1xf32> to vector<64x256xf32>
    %63 = arith.mulf %56, %62 : vector<64x256xf32>
    %c0_27 = arith.constant 0 : index
    %c0_28 = arith.constant 0 : index
    %64 = vector.load %arg11[%c0_27, %c0_28] : memref<64x256xf32, #tpu.memory_space<vmem>>, vector<64x256xf32>
    tpu.vector_store %arg11[%c0_27, %c0_28], %63 {strides = array<i32>} : memref<64x256xf32, #tpu.memory_space<vmem>>, vector<64x256xf32>,
    return
  }
  func.func @transform_0(%arg0: i32) -> (i32, i32) {
    %c0_i32 = arith.constant 0 : i32
    %c0_i32_0 = arith.constant 0 : i32
    return %arg0, %c0_i32 : i32, i32
  }
  func.func @transform_1(%arg0: i32) -> (i32, i32) {
    %c0_i32 = arith.constant 0 : i32
    %c0_i32_0 = arith.constant 0 : i32
    return %arg0, %c0_i32 : i32, i32
  }
  func.func @transform_2(%arg0: i32) -> (i32, i32) {
    %c0_i32 = arith.constant 0 : i32
    %c0_i32_0 = arith.constant 0 : i32
    return %arg0, %c0_i32 : i32, i32
  }
  func.func @transform_3(%arg0: i32) -> (i32, i32) {
    %c0_i32 = arith.constant 0 : i32
    %c0_i32_0 = arith.constant 0 : i32
    %c0_i32_1 = arith.constant 0 : i32
    return %c0_i32, %c0_i32_0 : i32, i32
  }
  func.func @transform_4(%arg0: i32) -> (i32, i32) {
    %c0_i32 = arith.constant 0 : i32
    %c0_i32_0 = arith.constant 0 : i32
    %c0_i32_1 = arith.constant 0 : i32
    return %c0_i32, %c0_i32_0 : i32, i32
  }
  func.func @transform_5(%arg0: i32) -> (i32, i32) {
    %c0_i32 = arith.constant 0 : i32
    %c0_i32_0 = arith.constant 0 : i32
    %c0_i32_1 = arith.constant 0 : i32
    return %c0_i32, %c0_i32_0 : i32, i32
  }
  func.func @transform_6(%arg0: i32) -> (i32, i32) {
    %c0_i32 = arith.constant 0 : i32
    %c0_i32_0 = arith.constant 0 : i32
    %c0_i32_1 = arith.constant 0 : i32
    return %c0_i32, %c0_i32_0 : i32, i32
  }
  func.func @transform_7(%arg0: i32) -> (i32, i32) {
    %c0_i32 = arith.constant 0 : i32
    %c0_i32_0 = arith.constant 0 : i32
    %c0_i32_1 = arith.constant 0 : i32
    return %c0_i32, %c0_i32_0 : i32, i32
  }
  func.func @transform_8(%arg0: i32) -> (i32, i32) {
    %c0_i32 = arith.constant 0 : i32
    %c0_i32_0 = arith.constant 0 : i32
    %c0_i32_1 = arith.constant 0 : i32
    return %c0_i32, %c0_i32_0 : i32, i32
  }
  func.func @transform_9(%arg0: i32) -> (i32, i32) {
    %c0_i32 = arith.constant 0 : i32
    %c0_i32_0 = arith.constant 0 : i32
    %c0_i32_1 = arith.constant 0 : i32
    return %c0_i32, %c0_i32_0 : i32, i32
  }
  func.func @transform_10(%arg0: i32) -> (i32, i32) {
    %c0_i32 = arith.constant 0 : i32
    %c0_i32_0 = arith.constant 0 : i32
    return %arg0, %c0_i32 : i32, i32
  }
}

</mosaic_0001>

<bundles_post_ra>
// kernel: tpu_custom_call.1
= control target key start
LH: loop header
LB: loop body
LE: loop exit
PB: predicated region body
PF: predicated region fallthrough
CT: control target
= control target key end

     0   :  { %15 = vsyncpa [#allocation3], 0  ;;  %s15766_s0 = inlined_call_operand.vmem [shape: f32[2048,32], index: 0, kind: input, shape index: {}]   ;;  %s15767_s1 = inlined_call_operand.vmem [shape: f32[2048,32], index: 1, kind: input, shape index: {}]   ;;  %s15768_s2 = inlined_call_operand.vmem [shape: f32[2048,1], index: 2, kind: input, shape index: {}]   ;;  %s15769_s3 = inlined_call_operand.vmem [shape: bf16[32,768], index: 3, kind: input, shape index: {}]   ;;  %s15770_s4 = inlined_call_operand.vmem [shape: f32[1,768], index: 4, kind: input, shape index: {}]   ;;  %s15771_s5 = inlined_call_operand.vmem [shape: bf16[32,256], index: 5, kind: input, shape index: {}]   ;;  %s15772_s6 = inlined_call_operand.vmem [shape: f32[1,256], index: 6, kind: input, shape index: {}]   ;;  %s15773_s7 = inlined_call_operand.vmem [shape: f32[8,256], index: 7, kind: input, shape index: {}]   ;;  %s15774_s8 = inlined_call_operand.vmem [shape: f32[8,256], index: 8, kind: input, shape index: {}]   ;;  %s15775_s9 = inlined_call_operand.vmem [shape: bf16[256,256], index: 9, kind: input, shape index: {}]   ;;  %s15776_s10 = inlined_call_operand.hbm [shape: f32[256,256], index: 10, kind: output, shape index: {}]  }
   0x1   :  { %17 = vsyncpa [#allocation3 + $0x1], 0  ;;  %s9063_s13 = smov 0   ;;  %s9065_s14 = smov 0  }
   0x2   :  { %s9067_s15 = smov 0   ;;  %s9069_s16 = smov 0  }
   0x3 LB: > { %s9084_s17 = sadd.s32 4294967295, %s9002_s16   ;;  %s8096_s18 = sadd.s32 4294967294, %s9002_s16   ;;  %s9002_s16 = sphi %s9069_s16, %s17507_s16   ;;  %s8998_s15 = sphi %s9067_s15, %s17506_s15   ;;  %s8994_s14 = sphi %s9065_s14, %s17505_s14   ;;  %s8990_s13 = sphi %s9063_s13, %s17504_s13  }
   0x4   : > { %s9088_s19 = sadd.s32 1, %s9002_s16   ;;  %s255_s20 = sadd.s32 1, %s8998_s15 }
   0x5   : > { %s252_s21 = ssub.s32 %s9002_s16, %s9088_s19  ;;  %p265_p0 = scmp.ne.s32.totalorder %s8998_s15, %s8994_s14 }
   0x6   : > { %p253_p1 = scmp.eq.s32.totalorder %s252_s21, 0  ;;  %p266_p2 = scmp.eq.s32.totalorder %s9084_s17, 3 }
   0x7   : > { %p271_p3 = scmp.ne.s32.totalorder %s8994_s14, %s8990_s13  ;;  %p272_p4 = scmp.eq.s32.totalorder %s8096_s18, 3 }
   0x8   : > { %s9099_s22 = scalar_select %p253_p1, %s8998_s15, %s255_s20  }
   0x9   : > { %p9101_p5 = por %p266_p2, %p265_p0  ;;  %p9105_p6 = por %p272_p4, %p271_p3 }
   0xa   : > { %p8099_p7 = scmp.ge.s32.totalorder %s9002_s16, 1  ;;  %p338_p8 = scmp.lt.s32.totalorder %s9002_s16, 5 }
   0xc   : > { %p339_p9 = pnand %p8099_p7, %p338_p8 }
   0xe   : > { %342 = sbr.rel (%p339_p9) target bundleno = 1816 (0x718), region = 60 }
  0x15   : > { %v8335_v0 = vld [vmem:[%s15769_s3 + $0x4] ss:$24 sps:$4 sm:$0xff]   ;;  %s8101_s27 = sshll.u32 %s9084_s17, 6  ;;  %v8337_v1 = vld [vmem:[%s15769_s3 + $0x14] ss:$24 sps:$4 sm:$0xff]   ;;  %v15779_v2 = vmov 0  }
  0x16   : > { %799 = vmatprep.mubr.bf16.mxu1 %v15779_v2  ;;  %1505 = vmatprep.mubr.bf16.mxu0 %v15779_v2  ;;  %p387_p10 = scmp.lt.s32.totalorder %s8101_s27, 255  ;;  %v8339_v3 = vld [vmem:[%s15769_s3] ss:$24 sps:$4 sm:$0xff]   ;;  %v8340_v4 = vld [vmem:[%s15769_s3 + $0x10] ss:$24 sps:$4 sm:$0xff]   ;;  %vm670_vm0 = vcmask 261120  }
  0x17   : > { %767 = vmatprep.subr.bf16.mxu1 %v8335_v0  ;;  %8333 = vset.pattern.permute.xlu0 %v15779_v2  ;;  %v8341_v5 = vld [vmem:[%s15769_s3 + $0x34] ss:$24 sps:$4 sm:$0xff]   ;;  %v8343_v6 = vld [vmem:[%s15769_s3 + $0x44] ss:$24 sps:$4 sm:$0xff]   ;;  %v8345_v7 = vld [vmem:[%s15769_s3 + $0x30] ss:$24 sps:$4 sm:$0xff]  }
  0x18   : > { %1473 = vmatprep.subr.bf16.mxu0 %v8337_v1  ;;  %s17509_s27 = smov (!%p387_p10, %s8101_s27), 255  ;;  %8334 = vset.pattern.permute.xlu1 %v15779_v2  ;;  %v8346_v8 = vld [vmem:[%s15769_s3 + $0x40] ss:$24 sps:$4 sm:$0xff]   ;;  %v8349_v9 = vld [vmem:[%s15769_s3 + $0xc] ss:$24 sps:$4 sm:$0xff]   ;;  %vm7180_vm1 = vcmask 1041409  }
  0x19   : > { %768 = vmatpush1.bf16.msra.mxu1 %v8339_v3  ;;  %1474 = vmatpush1.bf16.msra.mxu0 %v8340_v4  ;;  %s9140_s12 = sshll.u32 %s17509_s27, 3  ;;  %v8347_v13 = vld [vmem:[%s15769_s3 + $0x8] ss:$24 sps:$4 sm:$0xff]   ;;  %v8350_v17 = vld [vmem:[%s15769_s3 + $0x38] ss:$24 sps:$4 sm:$0xff]   ;;  %vm7182_vm2 = vcmask 1042434  }
  0x1a   : > { %769 = vmatprep.subr.bf16.mxu1 %v8341_v5  ;;  %1475 = vmatprep.subr.bf16.mxu0 %v8343_v6  ;;  %s9146_s21 = scalar_lea.vmem %s15766_s0, %s9140_s12  ;;  %v8352_v18 = vld [vmem:[%s15769_s3 + $0x3c] ss:$24 sps:$4 sm:$0xff]   ;;  %v8353_v54 = vld [vmem:[%s15775_s9] ss:$8 sps:$4 sm:$0xff]   ;;  %v8355_v55 = vld [vmem:[%s15775_s9 + $0x4] ss:$8 sps:$4 sm:$0xff]   ;;  %s10587_s18 = scalar_lea.vmem %s15767_s1, %s9140_s12 }
  0x1b   : > { %v406_v10 = vld [vmem:[%s9146_s21] sm:$0xff]  ;;  %v407_v11 = vld [vmem:[%s9146_s21 + $0x8] sm:$0xff]  ;;  %v408_v14 = vld [vmem:[%s9146_s21 + $0x10] sm:$0xff]  ;;  %s10996_s26 = scalar_lea.vmem %s15768_s2, %s9140_s12  ;;  %vm7184_vm3 = vcmask 1043459   ;;  %vm7186_vm4 = vcmask 1044484   ;;  %vm7188_vm5 = vcmask 1045509  }
  0x1c   : > { %v9153_v12 = vpack.c.bf16 %v407_v11, %v406_v10  ;;  %v409_v15 = vld [vmem:[%s9146_s21 + $0x18] sm:$0xff]  ;;  %v410_v19 = vld [vmem:[%s9146_s21 + $0x20] sm:$0xff]  ;;  %v411_v20 = vld [vmem:[%s9146_s21 + $0x28] sm:$0xff]  ;;  %vm7190_vm6 = vcmask 1046534   ;;  %vm7192_vm7 = vcmask 1047559   ;;  %s383_s28 = sand.u32 1, %s8994_s14  }
  0x1d   : > { %770 = vmatpush1.bf16.msra.mxu1 %v8345_v7  ;;  %1476 = vmatpush1.bf16.msra.mxu0 %v8346_v8  ;;  %v9166_v16 = vpack.c.bf16 %v409_v15, %v408_v14  ;;  %v9182_v21 = vpack.c.bf16 %v411_v20, %v410_v19  ;;  %v412_v22 = vld [vmem:[%s9146_s21 + $0x30] sm:$0xff]  ;;  %v413_v23 = vld [vmem:[%s9146_s21 + $0x38] sm:$0xff]  ;;  %v414_v25 = vld [vmem:[%s9146_s21 + $0x40] sm:$0xff]  ;;  %s8100_s29 = sshll.u32 %s383_s28, 7  ;;  %s15725_s25 = scalar_lea.sflag [#allocation3], %s383_s28 }
  0x1e   : > { %1120 = vmatprep.subr.bf16.mxu1 %v8349_v9  ;;  %v9192_v24 = vpack.c.bf16 %v413_v23, %v412_v22  ;;  %v415_v26 = vld [vmem:[%s9146_s21 + $0x48] sm:$0xff]  ;;  %v416_v28 = vld [vmem:[%s9146_s21 + $0x50] sm:$0xff]  ;;  %v417_v29 = vld [vmem:[%s9146_s21 + $0x58] sm:$0xff]  ;;  %3307 = vmatprep.subr.bf16.mxu0 %v8355_v55  ;;  %s15493_s30 = scalar_lea.vmem [#allocation2], %s8100_s29  ;;  %s9005_s12 = smov [#allocation2]  }
  0x1f   : > { %v9202_v27 = vpack.c.bf16 %v415_v26, %v414_v25  ;;  %v9212_v30 = vpack.c.bf16 %v417_v29, %v416_v28  ;;  %v418_v31 = vld [vmem:[%s9146_s21 + $0x60] sm:$0xff]  ;;  %v419_v32 = vld [vmem:[%s9146_s21 + $0x68] sm:$0xff]  ;;  %v420_v34 = vld [vmem:[%s9146_s21 + $0x70] sm:$0xff]  ;;  %s8010_s11 = sshll.u32 %s15493_s30, 4  ;;  %s8944_s27 = sshll.u32 %s9005_s12, 4  ;;  %s15717_s11 = int_to_ptr.vmem [resolvable:$true] %s8010_s11  ;;  %s8945_s27 = int_to_ptr.vmem [resolvable:$false] %s8944_s27 }
  0x20   : > { %8119 = vmatmul.mubr.msk.bf16.vlgmr.msra.gmra.mrb[0].mxu1 %vm670_vm0, %v9153_v12  ;;  %8183 = vmatmul.mubr.msk.bf16.vlgmr.msra.gmra.mrb[0].mxu0 %vm670_vm0, %v9153_v12  ;;  %v9222_v33 = vpack.c.bf16 %v419_v32, %v418_v31  ;;  %v421_v35 = vld [vmem:[%s9146_s21 + $0x78] sm:$0xff]  ;;  %v422_v37 = vld [vmem:[%s9146_s21 + $0x80] sm:$0xff]  ;;  %v423_v38 = vld [vmem:[%s9146_s21 + $0x88] sm:$0xff]  ;;  %s8946_s29 = scalar_lea.vmem %s8945_s27, 4096  ;;  %p8947_p0 = scmp.lt.s32.totalorder %s15717_s11, %s8945_s27 }
  0x21   : > { %1121 = vmatpush1.bf16.msra.mxu1 %v8347_v13  ;;  %809 = vmatprep.mubr.bf16.mxu1 %v15779_v2  ;;  %v9232_v36 = vpack.c.bf16 %v421_v35, %v420_v34  ;;  %v9242_v39 = vpack.c.bf16 %v423_v38, %v422_v37  ;;  %v424_v40 = vld [vmem:[%s9146_s21 + $0x90] sm:$0xff]  ;;  %v425_v41 = vld [vmem:[%s9146_s21 + $0x98] sm:$0xff]  ;;  %v426_v43 = vld [vmem:[%s9146_s21 + $0xa0] sm:$0xff] }
  0x22   : > { %1515 = vmatprep.mubr.bf16.mxu0 %v15779_v2  ;;  %1122 = vmatprep.subr.bf16.mxu1 %v8352_v18  ;;  %v9252_v42 = vpack.c.bf16 %v425_v41, %v424_v40  ;;  %v427_v44 = vld [vmem:[%s9146_s21 + $0xa8] sm:$0xff]  ;;  %v428_v46 = vld [vmem:[%s9146_s21 + $0xb0] sm:$0xff]  ;;  %v429_v47 = vld [vmem:[%s9146_s21 + $0xb8] sm:$0xff] }
  0x23   : > { %v9262_v45 = vpack.c.bf16 %v427_v44, %v426_v43  ;;  %v9272_v48 = vpack.c.bf16 %v429_v47, %v428_v46  ;;  %v430_v49 = vld [vmem:[%s9146_s21 + $0xc0] sm:$0xff]  ;;  %v431_v50 = vld [vmem:[%s9146_s21 + $0xc8] sm:$0xff]  ;;  %v432_v52 = vld [vmem:[%s9146_s21 + $0xd0] sm:$0xff]  ;;  %3308 = vmatpush1.bf16.msra.mxu0 %v8353_v54 }
  0x24   : > { %v9282_v51 = vpack.c.bf16 %v431_v50, %v430_v49  ;;  %v433_v53 = vld [vmem:[%s9146_s21 + $0xd8] sm:$0xff]  ;;  %v434_v57 = vld [vmem:[%s9146_s21 + $0xe0] sm:$0xff]  ;;  %v435_v58 = vld [vmem:[%s9146_s21 + $0xe8] sm:$0xff] }
  0x25   : > { %1123 = vmatpush1.bf16.msra.mxu1 %v8350_v17  ;;  %v9298_v56 = vpack.c.bf16 %v433_v53, %v432_v52  ;;  %v9308_v59 = vpack.c.bf16 %v435_v58, %v434_v57  ;;  %v436_v60 = vld [vmem:[%s9146_s21 + $0xf0] sm:$0xff]  ;;  %v437_v61 = vld [vmem:[%s9146_s21 + $0xf8] sm:$0xff]  ;;  %v438_v1 = vld [vmem:[%s9146_s21 + $0x100] sm:$0xff]  ;;  %v580_v57 = vlaneseq }
  0x26   : > { %v8356_v62 = vld [vmem:[%s15775_s9 + $0x10] ss:$8 sps:$4 sm:$0xff]   ;;  %v8358_v63 = vld [vmem:[%s15775_s9 + $0x14] ss:$8 sps:$4 sm:$0xff]   ;;  %v9324_v0 = vpack.c.bf16 %v437_v61, %v436_v60  ;;  %v439_v3 = vld [vmem:[%s9146_s21 + $0x108] sm:$0xff] }
  0x27   : > { %3309 = vmatprep.subr.bf16.mxu0 %v8358_v63  ;;  %v9334_v4 = vpack.c.bf16 %v439_v3, %v438_v1  ;;  %v440_v5 = vld [vmem:[%s9146_s21 + $0x110] sm:$0xff]  ;;  %v441_v6 = vld [vmem:[%s9146_s21 + $0x118] sm:$0xff]  ;;  %v8359_v7 = vld [vmem:[%s15775_s9 + $0x20] ss:$8 sps:$4 sm:$0xff]   ;;  %v9463_v58 = vshrl.u32 %v580_v57, 7 }
  0x28   : > { %8120 = vmatmul.mubr.msk.bf16.gmra.mrb[4].mxu1 %vm670_vm0, %v9166_v16  ;;  %8184 = vmatmul.mubr.msk.bf16.gmra.mrb[4].mxu0 %vm670_vm0, %v9166_v16  ;;  %v8361_v8 = vld [vmem:[%s15775_s9 + $0x24] ss:$8 sps:$4 sm:$0xff]   ;;  %v9353_v10 = vpack.c.bf16 %v441_v6, %v440_v5  ;;  %v444_v15 = vld [vmem:[%s9146_s21 + $0x130] sm:$0xff]  ;;  %v445_v17 = vld [vmem:[%s9146_s21 + $0x138] sm:$0xff] }
  0x29   : > { %819 = vmatprep.mubr.bf16.mxu1 %v15779_v2  ;;  %1525 = vmatprep.mubr.bf16.mxu0 %v15779_v2  ;;  %v8364_v9 = vld [vmem:[%s15771_s5 + $0x4] ss:$8 sps:$4 sm:$0xff]   ;;  %v8365_v18 = vld [vmem:[%s15775_s9 + $0x30] ss:$8 sps:$4 sm:$0xff]   ;;  %v8367_v19 = vld [vmem:[%s15775_s9 + $0x34] ss:$8 sps:$4 sm:$0xff]   ;;  %v9379_v20 = vpack.c.bf16 %v445_v17, %v444_v15 }
  0x2a   : > { %3310 = vmatpush1.bf16.msra.mxu0 %v8356_v62  ;;  %1990 = vmatprep.subr.bf16.mxu1 %v8364_v9  ;;  %v442_v11 = vld [vmem:[%s9146_s21 + $0x120] sm:$0xff]  ;;  %v443_v13 = vld [vmem:[%s9146_s21 + $0x128] sm:$0xff]  ;;  %v448_v26 = vld [vmem:[%s9146_s21 + $0x150] sm:$0xff]  ;;  %v15778_v63 = vsub.s32 0, %v9463_v58  ;;  %v598_v1 = vsub.s32 4, %v9463_v58  ;;  %v15777_v5 = vsub.s32 1, %v9463_v58 }
  0x2b   : > { %3311 = vmatprep.subr.bf16.mxu0 %v8361_v8  ;;  %v9363_v14 = vpack.c.bf16 %v443_v13, %v442_v11  ;;  %v446_v22 = vld [vmem:[%s9146_s21 + $0x140] sm:$0xff]  ;;  %v447_v23 = vld [vmem:[%s9146_s21 + $0x148] sm:$0xff]  ;;  %v449_v28 = vld [vmem:[%s9146_s21 + $0x158] sm:$0xff]  ;;  %v602_v6 = vsub.s32 5, %v9463_v58 }
  0x2c   : > { %v9389_v25 = vpack.c.bf16 %v447_v23, %v446_v22  ;;  %v8368_v29 = vld [vmem:[%s15775_s9 + $0x40] ss:$8 sps:$4 sm:$0xff]   ;;  %v8370_v31 = vld [vmem:[%s15775_s9 + $0x44] ss:$8 sps:$4 sm:$0xff]   ;;  %v9405_v32 = vpack.c.bf16 %v449_v28, %v448_v26  ;;  %v452_v38 = vld [vmem:[%s9146_s21 + $0x170] sm:$0xff] }
  0x2d   : > { %v450_v34 = vld [vmem:[%s9146_s21 + $0x160] sm:$0xff]  ;;  %v451_v35 = vld [vmem:[%s9146_s21 + $0x168] sm:$0xff]  ;;  %v453_v40 = vld [vmem:[%s9146_s21 + $0x178] sm:$0xff] }
  0x2e   : > { %3312 = vmatpush1.bf16.msra.mxu0 %v8359_v7  ;;  %v9415_v37 = vpack.c.bf16 %v451_v35, %v450_v34  ;;  %v8371_v41 = vld [vmem:[%s15775_s9 + $0x50] ss:$8 sps:$4 sm:$0xff]   ;;  %v8373_v43 = vld [vmem:[%s15775_s9 + $0x54] ss:$8 sps:$4 sm:$0xff]   ;;  %v9431_v44 = vpack.c.bf16 %v453_v40, %v452_v38  ;;  %v454_v46 = vld [vmem:[%s9146_s21 + $0x180] sm:$0xff] }
  0x2f   : > { %3313 = vmatprep.subr.bf16.mxu0 %v8367_v19  ;;  %v455_v47 = vld [vmem:[%s9146_s21 + $0x188] sm:$0xff]  ;;  %v456_v50 = vld [vmem:[%s9146_s21 + $0x190] sm:$0xff]  ;;  %v457_v52 = vld [vmem:[%s9146_s21 + $0x198] sm:$0xff] }
  0x30   : > { %8121 = vmatmul.mubr.msk.bf16.gmra.mrb[8].mxu1 %vm670_vm0, %v9182_v21  ;;  %8185 = vmatmul.mubr.msk.bf16.gmra.mrb[8].mxu0 %vm670_vm0, %v9182_v21  ;;  %v9441_v49 = vpack.c.bf16 %v455_v47, %v454_v46  ;;  %v8374_v53 = vld [vmem:[%s15775_s9 + $0x60] ss:$8 sps:$4 sm:$0xff]   ;;  %v8376_v54 = vld [vmem:[%s15775_s9 + $0x64] ss:$8 sps:$4 sm:$0xff]   ;;  %v9457_v55 = vpack.c.bf16 %v457_v52, %v456_v50  ;;  %v460_v9 = vld [vmem:[%s9146_s21 + $0x1b0] sm:$0xff] }
  0x31   : > { %829 = vmatprep.mubr.bf16.mxu1 %v15779_v2  ;;  %1535 = vmatprep.mubr.bf16.mxu0 %v15779_v2  ;;  %v458_v60 = vld [vmem:[%s9146_s21 + $0x1a0] sm:$0xff]  ;;  %v459_v61 = vld [vmem:[%s9146_s21 + $0x1a8] sm:$0xff]  ;;  %v461_v15 = vld [vmem:[%s9146_s21 + $0x1b8] sm:$0xff] }
  0x32   : > { %3314 = vmatpush1.bf16.msra.mxu0 %v8365_v18  ;;  %v9469_v62 = vpack.c.bf16 %v459_v61, %v458_v60  ;;  %v578_v3 = vld [vmem:[%s15770_s4] sm:$0x3f]  ;;  %v8377_v17 = vld [vmem:[%s15775_s9 + $0x70] ss:$8 sps:$4 sm:$0xff]   ;;  %v8379_v18 = vld [vmem:[%s15775_s9 + $0x74] ss:$8 sps:$4 sm:$0xff]   ;;  %v9526_v40 = vpack.c.bf16 %v461_v15, %v460_v9 }
  0x33   : > { %3315 = vmatprep.subr.bf16.mxu0 %v8370_v31  ;;  %v9484_v7 = vrot.slane %v578_v3, %v15778_v63  ;;  %v9486_v8 = vrot.slane %v578_v3, %v598_v1  ;;  %v9491_v11 = vrot.slane %v578_v3, %v15777_v5  ;;  %v9493_v13 = vrot.slane %v578_v3, %v602_v6  ;;  %v9507_v22 = vld [vmem:[%s15773_s7] sm:$0xff]  ;;  %v9519_v34 = vld [vmem:[%s15773_s7 + $0x8] sm:$0xff] }
  0x34   : > { %v9512_v26 = vld [vmem:[%s15774_s8] sm:$0xff]  ;;  %v9524_v38 = vld [vmem:[%s15774_s8 + $0x8] sm:$0xff] }
  0x36   : > { %3316 = vmatpush1.bf16.msra.mxu0 %v8368_v29 }
  0x37   : > { %3317 = vmatprep.subr.bf16.mxu0 %v8373_v43 }
  0x38   : > { %8122 = vmatmul.mubr.msk.bf16.gmra.mrb[12].mxu1 %vm670_vm0, %v9192_v24  ;;  %8186 = vmatmul.mubr.msk.bf16.gmra.mrb[12].mxu0 %vm670_vm0, %v9192_v24 }
  0x39   : > { %839 = vmatprep.mubr.bf16.mxu1 %v15779_v2  ;;  %1545 = vmatprep.mubr.bf16.mxu0 %v15779_v2 }
  0x3a   : > { %3318 = vmatpush1.bf16.msra.mxu0 %v8371_v41 }
  0x3b   : > { %3319 = vmatprep.subr.bf16.mxu0 %v8376_v54 }
  0x3e   : > { %3320 = vmatpush1.bf16.msra.mxu0 %v8374_v53 }
  0x3f   : > { %3321 = vmatprep.subr.bf16.mxu0 %v8379_v18 }
  0x40   : > { %8123 = vmatmul.mubr.msk.bf16.gmra.mrb[16].mxu1 %vm670_vm0, %v9202_v27  ;;  %8187 = vmatmul.mubr.msk.bf16.gmra.mrb[16].mxu0 %vm670_vm0, %v9202_v27 }
  0x41   : > { %849 = vmatprep.mubr.bf16.mxu1 %v15779_v2  ;;  %1555 = vmatprep.mubr.bf16.mxu0 %v15779_v2 }
  0x42   : > { %3322 = vmatpush1.bf16.msra.mxu0 %v8377_v17 }
  0x48   : > { %8124 = vmatmul.mubr.msk.bf16.gmra.mrb[20].mxu1 %vm670_vm0, %v9212_v30  ;;  %8188 = vmatmul.mubr.msk.bf16.gmra.mrb[20].mxu0 %vm670_vm0, %v9212_v30 }
  0x49   : > { %859 = vmatprep.mubr.bf16.mxu1 %v15779_v2  ;;  %1565 = vmatprep.mubr.bf16.mxu0 %v15779_v2 }
  0x50   : > { %8125 = vmatmul.mubr.msk.bf16.gmra.mrb[24].mxu1 %vm670_vm0, %v9222_v33  ;;  %8189 = vmatmul.mubr.msk.bf16.gmra.mrb[24].mxu0 %vm670_vm0, %v9222_v33 }
  0x51   : > { %869 = vmatprep.mubr.bf16.mxu1 %v15779_v2  ;;  %1575 = vmatprep.mubr.bf16.mxu0 %v15779_v2 }
  0x58   : > { %8126 = vmatmul.mubr.msk.bf16.gmra.mrb[28].mxu1 %vm670_vm0, %v9232_v36  ;;  %8190 = vmatmul.mubr.msk.bf16.gmra.mrb[28].mxu0 %vm670_vm0, %v9232_v36 }
  0x59   : > { %879 = vmatprep.mubr.bf16.mxu1 %v15779_v2  ;;  %1585 = vmatprep.mubr.bf16.mxu0 %v15779_v2 }
  0x60   : > { %8127 = vmatmul.mubr.msk.bf16.gmra.mrb[32].mxu1 %vm670_vm0, %v9242_v39  ;;  %8191 = vmatmul.mubr.msk.bf16.gmra.mrb[32].mxu0 %vm670_vm0, %v9242_v39 }
  0x61   : > { %889 = vmatprep.mubr.bf16.mxu1 %v15779_v2  ;;  %1595 = vmatprep.mubr.bf16.mxu0 %v15779_v2 }
  0x68   : > { %8128 = vmatmul.mubr.msk.bf16.gmra.mrb[36].mxu1 %vm670_vm0, %v9252_v42  ;;  %8192 = vmatmul.mubr.msk.bf16.gmra.mrb[36].mxu0 %vm670_vm0, %v9252_v42 }
  0x69   : > { %899 = vmatprep.mubr.bf16.mxu1 %v15779_v2  ;;  %1605 = vmatprep.mubr.bf16.mxu0 %v15779_v2 }
  0x70   : > { %8129 = vmatmul.mubr.msk.bf16.gmra.mrb[40].mxu1 %vm670_vm0, %v9262_v45  ;;  %8193 = vmatmul.mubr.msk.bf16.gmra.mrb[40].mxu0 %vm670_vm0, %v9262_v45 }
  0x71   : > { %909 = vmatprep.mubr.bf16.mxu1 %v15779_v2  ;;  %1615 = vmatprep.mubr.bf16.mxu0 %v15779_v2 }
  0x78   : > { %8130 = vmatmul.mubr.msk.bf16.gmra.mrb[44].mxu1 %vm670_vm0, %v9272_v48  ;;  %8194 = vmatmul.mubr.msk.bf16.gmra.mrb[44].mxu0 %vm670_vm0, %v9272_v48 }
  0x79   : > { %919 = vmatprep.mubr.bf16.mxu1 %v15779_v2  ;;  %1625 = vmatprep.mubr.bf16.mxu0 %v15779_v2 }
  0x80   : > { %8131 = vmatmul.mubr.msk.bf16.gmra.mrb[48].mxu1 %vm670_vm0, %v9282_v51  ;;  %8195 = vmatmul.mubr.msk.bf16.gmra.mrb[48].mxu0 %vm670_vm0, %v9282_v51 }
  0x81   : > { %929 = vmatprep.mubr.bf16.mxu1 %v15779_v2  ;;  %1635 = vmatprep.mubr.bf16.mxu0 %v15779_v2 }
  0x88   : > { %8132 = vmatmul.mubr.msk.bf16.gmra.mrb[52].mxu1 %vm670_vm0, %v9298_v56  ;;  %8196 = vmatmul.mubr.msk.bf16.gmra.mrb[52].mxu0 %vm670_vm0, %v9298_v56 }
  0x89   : > { %939 = vmatprep.mubr.bf16.mxu1 %v15779_v2  ;;  %1645 = vmatprep.mubr.bf16.mxu0 %v15779_v2 }
  0x90   : > { %8133 = vmatmul.mubr.msk.bf16.gmra.mrb[56].mxu1 %vm670_vm0, %v9308_v59  ;;  %8197 = vmatmul.mubr.msk.bf16.gmra.mrb[56].mxu0 %vm670_vm0, %v9308_v59 }
  0x91   : > { %949 = vmatprep.mubr.bf16.mxu1 %v15779_v2  ;;  %1655 = vmatprep.mubr.bf16.mxu0 %v15779_v2 }
  0x98   : > { %8134 = vmatmul.mubr.msk.bf16.gmra.mrb[60].mxu1 %vm670_vm0, %v9324_v0  ;;  %8198 = vmatmul.mubr.msk.bf16.gmra.mrb[60].mxu0 %vm670_vm0, %v9324_v0 }
  0x99   : > { %959 = vmatprep.mubr.bf16.mxu1 %v15779_v2  ;;  %1665 = vmatprep.mubr.bf16.mxu0 %v15779_v2 }
  0xa0   : > { %8135 = vmatmul.mubr.msk.bf16.gmra.mrb[64].mxu1 %vm670_vm0, %v9334_v4  ;;  %8199 = vmatmul.mubr.msk.bf16.gmra.mrb[64].mxu0 %vm670_vm0, %v9334_v4 }
  0xa1   : > { %969 = vmatprep.mubr.bf16.mxu1 %v15779_v2  ;;  %1675 = vmatprep.mubr.bf16.mxu0 %v15779_v2 }
  0xa8   : > { %8136 = vmatmul.mubr.msk.bf16.gmra.mrb[68].mxu1 %vm670_vm0, %v9353_v10  ;;  %8200 = vmatmul.mubr.msk.bf16.gmra.mrb[68].mxu0 %vm670_vm0, %v9353_v10 }
  0xa9   : > { %979 = vmatprep.mubr.bf16.mxu1 %v15779_v2  ;;  %1685 = vmatprep.mubr.bf16.mxu0 %v15779_v2 }
  0xb0   : > { %8137 = vmatmul.mubr.msk.bf16.gmra.mrb[72].mxu1 %vm670_vm0, %v9363_v14  ;;  %8201 = vmatmul.mubr.msk.bf16.gmra.mrb[72].mxu0 %vm670_vm0, %v9363_v14 }
  0xb1   : > { %989 = vmatprep.mubr.bf16.mxu1 %v15779_v2  ;;  %1695 = vmatprep.mubr.bf16.mxu0 %v15779_v2 }
  0xb8   : > { %8138 = vmatmul.mubr.msk.bf16.gmra.mrb[76].mxu1 %vm670_vm0, %v9379_v20  ;;  %8202 = vmatmul.mubr.msk.bf16.gmra.mrb[76].mxu0 %vm670_vm0, %v9379_v20 }
  0xb9   : > { %999 = vmatprep.mubr.bf16.mxu1 %v15779_v2  ;;  %1705 = vmatprep.mubr.bf16.mxu0 %v15779_v2 }
  0xc0   : > { %8139 = vmatmul.mubr.msk.bf16.gmra.mrb[80].mxu1 %vm670_vm0, %v9389_v25  ;;  %8203 = vmatmul.mubr.msk.bf16.gmra.mrb[80].mxu0 %vm670_vm0, %v9389_v25 }
  0xc1   : > { %1009 = vmatprep.mubr.bf16.mxu1 %v15779_v2  ;;  %1715 = vmatprep.mubr.bf16.mxu0 %v15779_v2 }
  0xc8   : > { %8140 = vmatmul.mubr.msk.bf16.gmra.mrb[84].mxu1 %vm670_vm0, %v9405_v32  ;;  %8204 = vmatmul.mubr.msk.bf16.gmra.mrb[84].mxu0 %vm670_vm0, %v9405_v32 }
  0xc9   : > { %1019 = vmatprep.mubr.bf16.mxu1 %v15779_v2  ;;  %1725 = vmatprep.mubr.bf16.mxu0 %v15779_v2 }
  0xd0   : > { %8141 = vmatmul.mubr.msk.bf16.gmra.mrb[88].mxu1 %vm670_vm0, %v9415_v37  ;;  %8205 = vmatmul.mubr.msk.bf16.gmra.mrb[88].mxu0 %vm670_vm0, %v9415_v37 }
  0xd1   : > { %1029 = vmatprep.mubr.bf16.mxu1 %v15779_v2  ;;  %1735 = vmatprep.mubr.bf16.mxu0 %v15779_v2 }
  0xd8   : > { %8142 = vmatmul.mubr.msk.bf16.gmra.mrb[92].mxu1 %vm670_vm0, %v9431_v44  ;;  %8206 = vmatmul.mubr.msk.bf16.gmra.mrb[92].mxu0 %vm670_vm0, %v9431_v44 }
  0xd9   : > { %1039 = vmatprep.mubr.bf16.mxu1 %v15779_v2  ;;  %1745 = vmatprep.mubr.bf16.mxu0 %v15779_v2 }
  0xe0   : > { %8143 = vmatmul.mubr.msk.bf16.gmra.mrb[96].mxu1 %vm670_vm0, %v9441_v49  ;;  %8207 = vmatmul.mubr.msk.bf16.gmra.mrb[96].mxu0 %vm670_vm0, %v9441_v49 }
  0xe1   : > { %1049 = vmatprep.mubr.bf16.mxu1 %v15779_v2  ;;  %1755 = vmatprep.mubr.bf16.mxu0 %v15779_v2 }
  0xe8   : > { %8144 = vmatmul.mubr.msk.bf16.gmra.mrb[100].mxu1 %vm670_vm0, %v9457_v55  ;;  %8208 = vmatmul.mubr.msk.bf16.gmra.mrb[100].mxu0 %vm670_vm0, %v9457_v55 }
  0xe9   : > { %1059 = vmatprep.mubr.bf16.mxu1 %v15779_v2  ;;  %1765 = vmatprep.mubr.bf16.mxu0 %v15779_v2 }
  0xf0   : > { %8145 = vmatmul.mubr.msk.bf16.gmra.mrb[104].mxu1 %vm670_vm0, %v9469_v62  ;;  %8209 = vmatmul.mubr.msk.bf16.gmra.mrb[104].mxu0 %vm670_vm0, %v9469_v62 }
  0xf1   : > { %1069 = vmatprep.mubr.bf16.mxu1 %v15779_v2  ;;  %1775 = vmatprep.mubr.bf16.mxu0 %v15779_v2 }
  0xf3   : > { %v801_v19 = vpop.f32.mrb[0].mxu1  ;;  %v1507_v23 = vpop.f32.mrb[0].mxu0 }
  0xf4   : > { %v802_v28 = vadd.f32 %v801_v19, %v9484_v7  ;;  %v1508_v29 = vadd.f32 %v1507_v23, %v9486_v8  ;;  %v803_v31 = vpop.f32.mrb[1].mxu1  ;;  %v1509_v35 = vpop.f32.mrb[1].mxu0  ;;  %v462_v23 = vld [vmem:[%s9146_s21 + $0x1c0] sm:$0xff] }
  0xf5   : > { %v804_v41 = vadd.f32 %v803_v31, %v9491_v11  ;;  %v1510_v43 = vadd.f32 %v1509_v35, %v9493_v13  ;;  %v805_v46 = vpop.f32.mrb[2].mxu1  ;;  %v1511_v47 = vpop.f32.mrb[2].mxu0 }
  0xf6   : > { %v2345_v50 = vmul.f32 %v9507_v22, %v802_v28  ;;  %v2475_v52 = vmul.f32 %v9512_v26, %v1508_v29  ;;  %v806_v53 = vadd.f32 %v805_v46, %v9484_v7  ;;  %v1512_v54 = vadd.f32 %v1511_v47, %v9486_v8  ;;  %v807_v57 = vpop.f32.mrb[3].mxu1  ;;  %v1513_v60 = vpop.f32.mrb[3].mxu0  ;;  %v463_v28 = vld [vmem:[%s9146_s21 + $0x1c8] sm:$0xff] }
  0xf7   : > { %v2346_v61 = vmul.f32 %v9519_v34, %v804_v41  ;;  %v2476_v1 = vmul.f32 %v9524_v38, %v1510_v43  ;;  %v808_v3 = vadd.f32 %v807_v57, %v9491_v11  ;;  %v1514_v6 = vadd.f32 %v1513_v60, %v9493_v13 }
  0xf8   : > { %v2347_v9 = vmul.f32 %v9507_v22, %v806_v53  ;;  %v2477_v15 = vmul.f32 %v9512_v26, %v1512_v54  ;;  %8146 = vmatmul.mubr.msk.bf16.gmra.mrb[108].mxu1 %vm670_vm0, %v9526_v40  ;;  %8210 = vmatmul.mubr.msk.bf16.gmra.mrb[108].mxu0 %vm670_vm0, %v9526_v40  ;;  %v9544_v17 = vadd.f32 %v2475_v52, %v2345_v50 }
  0xf9   : > { %v2348_v18 = vmul.f32 %v9519_v34, %v808_v3  ;;  %v2478_v19 = vmul.f32 %v9524_v38, %v1514_v6  ;;  %1079 = vmatprep.mubr.bf16.mxu1 %v15779_v2  ;;  %1785 = vmatprep.mubr.bf16.mxu0 %v15779_v2  ;;  %v9552_v29 = vadd.f32 %v2476_v1, %v2346_v61 }
  0xfa   : > { %v9554_v31 = vadd.f32 %v2477_v15, %v2347_v9  ;;  %v9560_v53 = vpack.c.bf16 %v463_v28, %v462_v23 }
  0xfb   : > { %v811_v35 = vpop.f32.mrb[4].mxu1  ;;  %v1517_v41 = vpop.f32.mrb[4].mxu0  ;;  %v9556_v43 = vadd.f32 %v2478_v19, %v2348_v18 }
  0xfc   : > { %16068 = vst [vmem:[#allocation5_spill] sm:$0xff] %v9554_v31  ;;  %v812_v46 = vadd.f32 %v811_v35, %v9484_v7  ;;  %v1518_v47 = vadd.f32 %v1517_v41, %v9486_v8  ;;  %v813_v50 = vpop.f32.mrb[5].mxu1  ;;  %v1519_v52 = vpop.f32.mrb[5].mxu0 }
  0xfd   : > { %16069 = vst [vmem:[#allocation6_spill] sm:$0xff] %v9556_v43  ;;  %v814_v54 = vadd.f32 %v813_v50, %v9491_v11  ;;  %v1520_v57 = vadd.f32 %v1519_v52, %v9493_v13  ;;  %v815_v60 = vpop.f32.mrb[6].mxu1  ;;  %v1521_v61 = vpop.f32.mrb[6].mxu0 }
  0xfe   : > { %v2349_v1 = vmul.f32 %v9507_v22, %v812_v46  ;;  %v2479_v3 = vmul.f32 %v9512_v26, %v1518_v47  ;;  %v816_v6 = vadd.f32 %v815_v60, %v9484_v7  ;;  %v1522_v9 = vadd.f32 %v1521_v61, %v9486_v8  ;;  %v817_v15 = vpop.f32.mrb[7].mxu1  ;;  %v1523_v18 = vpop.f32.mrb[7].mxu0  ;;  %v464_v47 = vld [vmem:[%s9146_s21 + $0x1d0] sm:$0xff]  ;;  %v8380_v60 = vld [vmem:[%s15775_s9 + $0x80] ss:$8 sps:$4 sm:$0xff]  }
  0xff   : > { %v2350_v19 = vmul.f32 %v9519_v34, %v814_v54  ;;  %v2480_v23 = vmul.f32 %v9524_v38, %v1520_v57  ;;  %v818_v28 = vadd.f32 %v817_v15, %v9491_v11  ;;  %v1524_v35 = vadd.f32 %v1523_v18, %v9493_v13  ;;  %v465_v57 = vld [vmem:[%s9146_s21 + $0x1d8] sm:$0xff]  ;;  %v8382_v61 = vld [vmem:[%s15775_s9 + $0x84] ss:$8 sps:$4 sm:$0xff]  }
 0x100   : > { %v2351_v41 = vmul.f32 %v9507_v22, %v816_v6  ;;  %v2481_v46 = vmul.f32 %v9512_v26, %v1522_v9  ;;  %8147 = vmatmul.mubr.msk.bf16.gmra.mrb[112].mxu1 %vm670_vm0, %v9560_v53  ;;  %8211 = vmatmul.mubr.msk.bf16.gmra.mrb[112].mxu0 %vm670_vm0, %v9560_v53  ;;  %v9579_v50 = vadd.f32 %v2479_v3, %v2349_v1 }
 0x101   : > { %v2352_v52 = vmul.f32 %v9519_v34, %v818_v28  ;;  %v2482_v54 = vmul.f32 %v9524_v38, %v1524_v35  ;;  %1089 = vmatprep.mubr.bf16.mxu1 %v15779_v2  ;;  %1795 = vmatprep.mubr.bf16.mxu0 %v15779_v2  ;;  %v9592_v6 = vadd.f32 %v2480_v23, %v2350_v19 }
 0x102   : > { %16070 = vst [vmem:[#allocation7_spill] sm:$0xff] %v9579_v50  ;;  %v9594_v1 = vadd.f32 %v2481_v46, %v2351_v41  ;;  %3323 = vmatprep.subr.bf16.mxu0 %v8382_v61  ;;  %v9600_v63 = vpack.c.bf16 %v465_v57, %v464_v47 }
 0x103   : > { %16071 = vst [vmem:[#allocation8_spill] sm:$0xff] %v9592_v6  ;;  %v821_v3 = vpop.f32.mrb[8].mxu1  ;;  %v1527_v9 = vpop.f32.mrb[8].mxu0  ;;  %v9596_v15 = vadd.f32 %v2482_v54, %v2352_v52  ;;  %3324 = vmatpush1.bf16.msra.mxu0 %v8380_v60 }
 0x104   : > { %16072 = vst [vmem:[#allocation9_spill] sm:$0xff] %v9594_v1  ;;  %v822_v18 = vadd.f32 %v821_v3, %v9484_v7  ;;  %v1528_v28 = vadd.f32 %v1527_v9, %v9486_v8  ;;  %v823_v35 = vpop.f32.mrb[9].mxu1  ;;  %v1529_v5 = vpop.f32.mrb[9].mxu0 }
 0x105   : > { %16073 = vst [vmem:[#allocation10_spill] sm:$0xff] %v9596_v15  ;;  %v824_v2 = vadd.f32 %v823_v35, %v9491_v11  ;;  %v1530_v19 = vadd.f32 %v1529_v5, %v9493_v13  ;;  %v825_v23 = vpop.f32.mrb[10].mxu1  ;;  %v1531_v41 = vpop.f32.mrb[10].mxu0 }
 0x106   : > { %v2353_v46 = vmul.f32 %v9507_v22, %v822_v18  ;;  %v2483_v52 = vmul.f32 %v9512_v26, %v1528_v28  ;;  %v826_v54 = vadd.f32 %v825_v23, %v9484_v7  ;;  %v1532_v61 = vadd.f32 %v1531_v41, %v9486_v8  ;;  %v827_v3 = vpop.f32.mrb[11].mxu1  ;;  %v1533_v47 = vpop.f32.mrb[11].mxu0  ;;  %v466_v41 = vld [vmem:[%s9146_s21 + $0x1e0] sm:$0xff] }
 0x107   : > { %v2354_v57 = vmul.f32 %v9519_v34, %v824_v2  ;;  %v2484_v60 = vmul.f32 %v9524_v38, %v1530_v19  ;;  %v828_v5 = vadd.f32 %v827_v3, %v9491_v11  ;;  %v1534_v9 = vadd.f32 %v1533_v47, %v9493_v13 }
 0x108   : > { %v2355_v18 = vmul.f32 %v9507_v22, %v826_v54  ;;  %v2485_v28 = vmul.f32 %v9512_v26, %v1532_v61  ;;  %8148 = vmatmul.mubr.msk.bf16.gmra.mrb[116].mxu1 %vm670_vm0, %v9600_v63  ;;  %8212 = vmatmul.mubr.msk.bf16.gmra.mrb[116].mxu0 %vm670_vm0, %v9600_v63  ;;  %v9618_v35 = vadd.f32 %v2483_v52, %v2353_v46  ;;  %v16075_v23 = vmov 0   ;;  %v467_v54 = vld [vmem:[%s9146_s21 + $0x1e8] sm:$0xff] }
 0x109   : > { %v2356_v2 = vmul.f32 %v9519_v34, %v828_v5  ;;  %v2486_v19 = vmul.f32 %v9524_v38, %v1534_v9  ;;  %1099 = vmatprep.mubr.bf16.mxu1 %v16075_v23  ;;  %1805 = vmatprep.mubr.bf16.mxu0 %v16075_v23  ;;  %v9626_v3 = vadd.f32 %v2484_v60, %v2354_v57 }
 0x10a   : > { %16074 = vst [vmem:[#allocation11_spill] sm:$0xff] %v9618_v35  ;;  %v9628_v61 = vadd.f32 %v2485_v28, %v2355_v18  ;;  %v9634_v35 = vpack.c.bf16 %v467_v54, %v466_v41 }
 0x10b   : > { %16076 = vst [vmem:[#allocation12_spill] sm:$0xff] %v9626_v3  ;;  %v831_v47 = vpop.f32.mrb[12].mxu1  ;;  %v1537_v15 = vpop.f32.mrb[12].mxu0  ;;  %v9630_v1 = vadd.f32 %v2486_v19, %v2356_v2 }
 0x10c   : > { %16077 = vst [vmem:[#allocation13_spill] sm:$0xff] %v9628_v61  ;;  %v832_v46 = vadd.f32 %v831_v47, %v9484_v7  ;;  %v1538_v52 = vadd.f32 %v1537_v15, %v9486_v8  ;;  %v833_v5 = vpop.f32.mrb[13].mxu1  ;;  %v1539_v9 = vpop.f32.mrb[13].mxu0 }
 0x10d   : > { %16078 = vst [vmem:[#allocation14_spill] sm:$0xff] %v9630_v1  ;;  %v834_v6 = vadd.f32 %v833_v5, %v9491_v11  ;;  %v1540_v50 = vadd.f32 %v1539_v9, %v9493_v13  ;;  %v835_v57 = vpop.f32.mrb[14].mxu1  ;;  %v1541_v60 = vpop.f32.mrb[14].mxu0 }
 0x10e   : > { %v2357_v18 = vmul.f32 %v9507_v22, %v832_v46  ;;  %v2487_v28 = vmul.f32 %v9512_v26, %v1538_v52  ;;  %v836_v2 = vadd.f32 %v835_v57, %v9484_v7  ;;  %v1542_v19 = vadd.f32 %v1541_v60, %v9486_v8  ;;  %v837_v15 = vpop.f32.mrb[15].mxu1  ;;  %v1543_v47 = vpop.f32.mrb[15].mxu0  ;;  %v468_v52 = vld [vmem:[%s9146_s21 + $0x1f0] sm:$0xff]  ;;  %v469_v60 = vld [vmem:[%s9146_s21 + $0x1f8] sm:$0xff]  ;;  %s8290_s21 = sshll.u32 %s9084_s17, 11 }
 0x10f   : > { %v2358_v41 = vmul.f32 %v9519_v34, %v834_v6  ;;  %v2488_v54 = vmul.f32 %v9524_v38, %v1540_v50  ;;  %v838_v5 = vadd.f32 %v837_v15, %v9491_v11  ;;  %v1544_v9 = vadd.f32 %v1543_v47, %v9493_v13  ;;  %s15715_s20 = scalar_lea.hbm %s15776_s10, %s8290_s21 }
 0x110   : > { %v2359_v1 = vmul.f32 %v9507_v22, %v836_v2  ;;  %v2489_v46 = vmul.f32 %v9512_v26, %v1542_v19  ;;  %8149 = vmatmul.mubr.msk.bf16.gmra.mrb[120].mxu1 %vm670_vm0, %v9634_v35  ;;  %8213 = vmatmul.mubr.msk.bf16.gmra.mrb[120].mxu0 %vm670_vm0, %v9634_v35  ;;  %v9653_v57 = vadd.f32 %v2487_v28, %v2357_v18  ;;  %v8383_v2 = vld [vmem:[%s15775_s9 + $0x90] ss:$8 sps:$4 sm:$0xff]   ;;  %v8385_v19 = vld [vmem:[%s15775_s9 + $0x94] ss:$8 sps:$4 sm:$0xff]  }
 0x111   : > { %v2360_v6 = vmul.f32 %v9519_v34, %v838_v5  ;;  %v2490_v50 = vmul.f32 %v9524_v38, %v1544_v9  ;;  %1109 = vmatprep.mubr.bf16.mxu1 %v16075_v23  ;;  %1815 = vmatprep.mubr.bf16.mxu0 %v16075_v23  ;;  %v9666_v15 = vadd.f32 %v2488_v54, %v2358_v41 }
 0x112   : > { %16079 = vst [vmem:[#allocation15_spill] sm:$0xff] %v9653_v57  ;;  %v9668_v18 = vadd.f32 %v2489_v46, %v2359_v1  ;;  %3325 = vmatprep.subr.bf16.mxu0 %v8385_v19  ;;  %v9674_v43 = vpack.c.bf16 %v469_v60, %v468_v52 }
 0x113   : > { %v841_v28 = vpop.f32.mrb[16].mxu1  ;;  %v1547_v47 = vpop.f32.mrb[16].mxu0  ;;  %v9670_v5 = vadd.f32 %v2490_v50, %v2360_v6  ;;  %3326 = vmatpush1.bf16.msra.mxu0 %v8383_v2 }
 0x114   : > { %16080 = vst [vmem:[#allocation16_spill] sm:$0xff] %v9668_v18  ;;  %v842_v9 = vadd.f32 %v841_v28, %v9484_v7  ;;  %v1548_v57 = vadd.f32 %v1547_v47, %v9486_v8  ;;  %v843_v61 = vpop.f32.mrb[17].mxu1  ;;  %v1549_v3 = vpop.f32.mrb[17].mxu0 }
 0x115   : > { %16081 = vst [vmem:[#allocation17_spill] sm:$0xff] %v9670_v5  ;;  %v844_v31 = vadd.f32 %v843_v61, %v9491_v11  ;;  %v1550_v41 = vadd.f32 %v1549_v3, %v9493_v13  ;;  %v845_v1 = vpop.f32.mrb[18].mxu1  ;;  %v1551_v54 = vpop.f32.mrb[18].mxu0 }
 0x116   : > { %v2361_v46 = vmul.f32 %v9507_v22, %v842_v9  ;;  %v2491_v6 = vmul.f32 %v9512_v26, %v1548_v57  ;;  %v846_v50 = vadd.f32 %v845_v1, %v9484_v7  ;;  %v1552_v19 = vadd.f32 %v1551_v54, %v9486_v8  ;;  %v847_v28 = vpop.f32.mrb[19].mxu1  ;;  %v1553_v47 = vpop.f32.mrb[19].mxu0 }
 0x117   : > { %v2362_v52 = vmul.f32 %v9519_v34, %v844_v31  ;;  %v2492_v60 = vmul.f32 %v9524_v38, %v1550_v41  ;;  %v848_v61 = vadd.f32 %v847_v28, %v9491_v11  ;;  %v1554_v3 = vadd.f32 %v1553_v47, %v9493_v13 }
 0x118   : > { %v2363_v2 = vmul.f32 %v9507_v22, %v846_v50  ;;  %v2493_v9 = vmul.f32 %v9512_v26, %v1552_v19  ;;  %8150 = vmatmul.mubr.msk.bf16.gmra.mrb[124].mxu1 %vm670_vm0, %v9674_v43  ;;  %8214 = vmatmul.mubr.msk.bf16.gmra.mrb[124].mxu0 %vm670_vm0, %v9674_v43  ;;  %v9692_v57 = vadd.f32 %v2491_v6, %v2361_v46 }
 0x119   : > { %v2364_v31 = vmul.f32 %v9519_v34, %v848_v61  ;;  %v2494_v41 = vmul.f32 %v9524_v38, %v1554_v3  ;;  %1152 = vmatprep.mubr.bf16.mxu1 %v16075_v23  ;;  %v9697_v1 = vadd.f32 %v2492_v60, %v2362_v52  ;;  %v8362_v52 = vld [vmem:[%s15771_s5] ss:$8 sps:$4 sm:$0xff]  }
 0x11a   : > { %16082 = vst [vmem:[#allocation18_spill] sm:$0xff] %v9692_v57  ;;  %v9699_v54 = vadd.f32 %v2493_v9, %v2363_v2 }
 0x11b   : > { %v851_v50 = vpop.f32.mrb[20].mxu1  ;;  %v1557_v19 = vpop.f32.mrb[20].mxu0  ;;  %v9701_v28 = vadd.f32 %v2494_v41, %v2364_v31 }
 0x11c   : > { %16083 = vst [vmem:[#allocation19_spill] sm:$0xff] %v9699_v54  ;;  %v852_v47 = vadd.f32 %v851_v50, %v9484_v7  ;;  %v1558_v5 = vadd.f32 %v1557_v19, %v9486_v8  ;;  %v853_v46 = vpop.f32.mrb[21].mxu1  ;;  %v1559_v6 = vpop.f32.mrb[21].mxu0 }
 0x11d   : > { %16084 = vst [vmem:[#allocation20_spill] sm:$0xff] %v9701_v28  ;;  %v854_v61 = vadd.f32 %v853_v46, %v9491_v11  ;;  %v1560_v3 = vadd.f32 %v1559_v6, %v9493_v13  ;;  %v855_v57 = vpop.f32.mrb[22].mxu1  ;;  %v1561_v18 = vpop.f32.mrb[22].mxu0 }
 0x11e   : > { %v2365_v60 = vmul.f32 %v9507_v22, %v852_v47  ;;  %v2495_v2 = vmul.f32 %v9512_v26, %v1558_v5  ;;  %v856_v9 = vadd.f32 %v855_v57, %v9484_v7  ;;  %v1562_v31 = vadd.f32 %v1561_v18, %v9486_v8  ;;  %v857_v41 = vpop.f32.mrb[23].mxu1  ;;  %v1563_v50 = vpop.f32.mrb[23].mxu0 }
 0x11f   : > { %v2366_v19 = vmul.f32 %v9519_v34, %v854_v61  ;;  %v2496_v46 = vmul.f32 %v9524_v38, %v1560_v3  ;;  %v858_v6 = vadd.f32 %v857_v41, %v9491_v11  ;;  %v1564_v28 = vadd.f32 %v1563_v50, %v9493_v13  ;;  %v8386_v61 = vld [vmem:[%s15775_s9 + $0xa0] ss:$8 sps:$4 sm:$0xff]   ;;  %v8388_v3 = vld [vmem:[%s15775_s9 + $0xa4] ss:$8 sps:$4 sm:$0xff]  }
 0x120   : > { %v2367_v54 = vmul.f32 %v9507_v22, %v856_v9  ;;  %v2497_v47 = vmul.f32 %v9512_v26, %v1562_v31  ;;  %8151 = vmatmul.mubr.msk.bf16.vlgmr.msra.gmra.mrb[128].mxu1 %vm670_vm0, %v9153_v12  ;;  %v9722_v5 = vadd.f32 %v2495_v2, %v2365_v60  ;;  %v8389_v12 = vld [vmem:[%s15771_s5 + $0x10] ss:$8 sps:$4 sm:$0xff]   ;;  %3327 = vmatprep.subr.bf16.mxu0 %v8388_v3 }
 0x121   : > { %v2368_v18 = vmul.f32 %v9519_v34, %v858_v6  ;;  %v2498_v57 = vmul.f32 %v9524_v38, %v1564_v28  ;;  %1991 = vmatpush1.bf16.msra.mxu1 %v8362_v52  ;;  %1162 = vmatprep.mubr.bf16.mxu1 %v16075_v23  ;;  %v9736_v60 = vadd.f32 %v2496_v46, %v2366_v19  ;;  %v8391_v28 = vld [vmem:[%s15771_s5 + $0x14] ss:$8 sps:$4 sm:$0xff]  }
 0x122   : > { %16085 = vst [vmem:[#allocation21_spill] sm:$0xff] %v9722_v5  ;;  %v9741_v52 = vadd.f32 %v2497_v47, %v2367_v54  ;;  %3328 = vmatpush1.bf16.msra.mxu0 %v8386_v61  ;;  %1992 = vmatprep.subr.bf16.mxu1 %v8391_v28 }
 0x123   : > { %16086 = vst [vmem:[#allocation22_spill] sm:$0xff] %v9736_v60  ;;  %v861_v2 = vpop.f32.mrb[24].mxu1  ;;  %v1567_v9 = vpop.f32.mrb[24].mxu0  ;;  %v9743_v31 = vadd.f32 %v2498_v57, %v2368_v18 }
 0x124   : > { %v862_v41 = vadd.f32 %v861_v2, %v9484_v7  ;;  %v1568_v50 = vadd.f32 %v1567_v9, %v9486_v8  ;;  %v863_v6 = vpop.f32.mrb[25].mxu1  ;;  %v1569_v5 = vpop.f32.mrb[25].mxu0 }
 0x125   : > { %16087 = vst [vmem:[#allocation23_spill] sm:$0xff] %v9743_v31  ;;  %v864_v19 = vadd.f32 %v863_v6, %v9491_v11  ;;  %v1570_v46 = vadd.f32 %v1569_v5, %v9493_v13  ;;  %v865_v60 = vpop.f32.mrb[26].mxu1  ;;  %v1571_v54 = vpop.f32.mrb[26].mxu0  ;;  %1993 = vmatpush1.bf16.msra.mxu1 %v8389_v12 }
 0x126   : > { %v2369_v47 = vmul.f32 %v9507_v22, %v862_v41  ;;  %v2499_v18 = vmul.f32 %v9512_v26, %v1568_v50  ;;  %v866_v57 = vadd.f32 %v865_v60, %v9484_v7  ;;  %v1572_v3 = vadd.f32 %v1571_v54, %v9486_v8  ;;  %v867_v2 = vpop.f32.mrb[27].mxu1  ;;  %v1573_v9 = vpop.f32.mrb[27].mxu0 }
 0x127   : > { %v2370_v61 = vmul.f32 %v9519_v34, %v864_v19  ;;  %v2500_v28 = vmul.f32 %v9524_v38, %v1570_v46  ;;  %v868_v6 = vadd.f32 %v867_v2, %v9491_v11  ;;  %v1574_v5 = vadd.f32 %v1573_v9, %v9493_v13 }
 0x128   : > { %v2371_v12 = vmul.f32 %v9507_v22, %v866_v57  ;;  %v2501_v41 = vmul.f32 %v9512_v26, %v1572_v3  ;;  %8152 = vmatmul.mubr.msk.bf16.gmra.mrb[132].mxu1 %vm670_vm0, %v9166_v16  ;;  %v9761_v60 = vadd.f32 %v2499_v18, %v2369_v47 }
 0x129   : > { %v2372_v50 = vmul.f32 %v9519_v34, %v868_v6  ;;  %v2502_v54 = vmul.f32 %v9524_v38, %v1574_v5  ;;  %1172 = vmatprep.mubr.bf16.mxu1 %v16075_v23  ;;  %v9766_v19 = vadd.f32 %v2500_v28, %v2370_v61 }
 0x12a   : > { %16088 = vst [vmem:[#allocation24_spill] sm:$0xff] %v9761_v60  ;;  %v9768_v46 = vadd.f32 %v2501_v41, %v2371_v12 }
 0x12b   : > { %v871_v2 = vpop.f32.mrb[28].mxu1  ;;  %v1577_v9 = vpop.f32.mrb[28].mxu0  ;;  %v9770_v57 = vadd.f32 %v2502_v54, %v2372_v50 }
 0x12c   : > { %16089 = vst [vmem:[#allocation25_spill] sm:$0xff] %v9768_v46  ;;  %v872_v3 = vadd.f32 %v871_v2, %v9484_v7  ;;  %v1578_v16 = vadd.f32 %v1577_v9, %v9486_v8  ;;  %v873_v47 = vpop.f32.mrb[29].mxu1  ;;  %v1579_v18 = vpop.f32.mrb[29].mxu0 }
 0x12d   : > { %16090 = vst [vmem:[#allocation26_spill] sm:$0xff] %v9770_v57  ;;  %v874_v6 = vadd.f32 %v873_v47, %v9491_v11  ;;  %v1580_v5 = vadd.f32 %v1579_v18, %v9493_v13  ;;  %v875_v60 = vpop.f32.mrb[30].mxu1  ;;  %v1581_v31 = vpop.f32.mrb[30].mxu0 }
 0x12e   : > { %v2373_v61 = vmul.f32 %v9507_v22, %v872_v3  ;;  %v2503_v28 = vmul.f32 %v9512_v26, %v1578_v16  ;;  %v876_v12 = vadd.f32 %v875_v60, %v9484_v7  ;;  %v1582_v41 = vadd.f32 %v1581_v31, %v9486_v8  ;;  %v877_v50 = vpop.f32.mrb[31].mxu1  ;;  %v1583_v54 = vpop.f32.mrb[31].mxu0 }
 0x12f   : > { %v2374_v2 = vmul.f32 %v9519_v34, %v874_v6  ;;  %v2504_v9 = vmul.f32 %v9524_v38, %v1580_v5  ;;  %v878_v47 = vadd.f32 %v877_v50, %v9491_v11  ;;  %v1584_v18 = vadd.f32 %v1583_v54, %v9493_v13  ;;  %v8392_v6 = vld [vmem:[%s15775_s9 + $0xb0] ss:$8 sps:$4 sm:$0xff]   ;;  %v8394_v5 = vld [vmem:[%s15775_s9 + $0xb4] ss:$8 sps:$4 sm:$0xff]  }
 0x130   : > { %v2375_v57 = vmul.f32 %v9507_v22, %v876_v12  ;;  %v2505_v3 = vmul.f32 %v9512_v26, %v1582_v41  ;;  %8153 = vmatmul.mubr.msk.bf16.gmra.mrb[136].mxu1 %vm670_vm0, %v9182_v21  ;;  %v9788_v60 = vadd.f32 %v2503_v28, %v2373_v61  ;;  %3329 = vmatprep.subr.bf16.mxu0 %v8394_v5 }
 0x131   : > { %v2376_v31 = vmul.f32 %v9519_v34, %v878_v47  ;;  %v2506_v16 = vmul.f32 %v9524_v38, %v1584_v18  ;;  %1182 = vmatprep.mubr.bf16.mxu1 %v16075_v23  ;;  %v9799_v12 = vadd.f32 %v2504_v9, %v2374_v2  ;;  %3330 = vmatpush1.bf16.msra.mxu0 %v8392_v6 }
 0x132   : > { %16091 = vst [vmem:[#allocation27_spill] sm:$0xff] %v9788_v60  ;;  %v9801_v41 = vadd.f32 %v2505_v3, %v2375_v57 }
 0x133   : > { %v881_v21 = vpop.f32.mrb[32].mxu1  ;;  %v1587_v61 = vpop.f32.mrb[32].mxu0  ;;  %v9803_v28 = vadd.f32 %v2506_v16, %v2376_v31 }
 0x134   : > { %16092 = vst [vmem:[#allocation28_spill] sm:$0xff] %v9801_v41  ;;  %v882_v50 = vadd.f32 %v881_v21, %v9484_v7  ;;  %v1588_v54 = vadd.f32 %v1587_v61, %v9486_v8  ;;  %v883_v47 = vpop.f32.mrb[33].mxu1  ;;  %v1589_v18 = vpop.f32.mrb[33].mxu0 }
 0x135   : > { %16093 = vst [vmem:[#allocation29_spill] sm:$0xff] %v9803_v28  ;;  %v884_v60 = vadd.f32 %v883_v47, %v9491_v11  ;;  %v1590_v46 = vadd.f32 %v1589_v18, %v9493_v13  ;;  %v885_v2 = vpop.f32.mrb[34].mxu1  ;;  %v1591_v9 = vpop.f32.mrb[34].mxu0 }
 0x136   : > { %v2377_v57 = vmul.f32 %v9507_v22, %v882_v50  ;;  %v2507_v3 = vmul.f32 %v9512_v26, %v1588_v54  ;;  %v886_v31 = vadd.f32 %v885_v2, %v9484_v7  ;;  %v1592_v16 = vadd.f32 %v1591_v9, %v9486_v8  ;;  %v887_v5 = vpop.f32.mrb[35].mxu1  ;;  %v1593_v21 = vpop.f32.mrb[35].mxu0 }
 0x137   : > { %v2378_v61 = vmul.f32 %v9519_v34, %v884_v60  ;;  %v2508_v6 = vmul.f32 %v9524_v38, %v1590_v46  ;;  %v888_v47 = vadd.f32 %v887_v5, %v9491_v11  ;;  %v1594_v18 = vadd.f32 %v1593_v21, %v9493_v13 }
 0x138   : > { %v2379_v28 = vmul.f32 %v9507_v22, %v886_v31  ;;  %v2509_v50 = vmul.f32 %v9512_v26, %v1592_v16  ;;  %8154 = vmatmul.mubr.msk.bf16.gmra.mrb[140].mxu1 %vm670_vm0, %v9192_v24  ;;  %v9821_v54 = vadd.f32 %v2507_v3, %v2377_v57 }
 0x139   : > { %v2380_v2 = vmul.f32 %v9519_v34, %v888_v47  ;;  %v2510_v9 = vmul.f32 %v9524_v38, %v1594_v18  ;;  %1192 = vmatprep.mubr.bf16.mxu1 %v16075_v23  ;;  %v9826_v46 = vadd.f32 %v2508_v6, %v2378_v61 }
 0x13a   : > { %16094 = vst [vmem:[#allocation30_spill] sm:$0xff] %v9821_v54  ;;  %v9828_v60 = vadd.f32 %v2509_v50, %v2379_v28 }
 0x13b   : > { %v891_v5 = vpop.f32.mrb[36].mxu1  ;;  %v1597_v21 = vpop.f32.mrb[36].mxu0  ;;  %v9830_v31 = vadd.f32 %v2510_v9, %v2380_v2 }
 0x13c   : > { %16095 = vst [vmem:[#allocation31_spill] sm:$0xff] %v9828_v60  ;;  %v892_v16 = vadd.f32 %v891_v5, %v9484_v7  ;;  %v1598_v24 = vadd.f32 %v1597_v21, %v9486_v8  ;;  %v893_v57 = vpop.f32.mrb[37].mxu1  ;;  %v1599_v3 = vpop.f32.mrb[37].mxu0 }
 0x13d   : > { %16096 = vst [vmem:[#allocation32_spill] sm:$0xff] %v9830_v31  ;;  %v894_v47 = vadd.f32 %v893_v57, %v9491_v11  ;;  %v1600_v18 = vadd.f32 %v1599_v3, %v9493_v13  ;;  %v895_v54 = vpop.f32.mrb[38].mxu1  ;;  %v1601_v41 = vpop.f32.mrb[38].mxu0 }
 0x13e   : > { %v2381_v61 = vmul.f32 %v9507_v22, %v892_v16  ;;  %v2511_v28 = vmul.f32 %v9512_v26, %v1598_v24  ;;  %v896_v6 = vadd.f32 %v895_v54, %v9484_v7  ;;  %v1602_v50 = vadd.f32 %v1601_v41, %v9486_v8  ;;  %v897_v2 = vpop.f32.mrb[39].mxu1  ;;  %v1603_v9 = vpop.f32.mrb[39].mxu0 }
 0x13f   : > { %v2382_v5 = vmul.f32 %v9519_v34, %v894_v47  ;;  %v2512_v21 = vmul.f32 %v9524_v38, %v1600_v18  ;;  %v898_v57 = vadd.f32 %v897_v2, %v9491_v11  ;;  %v1604_v3 = vadd.f32 %v1603_v9, %v9493_v13  ;;  %v8395_v47 = vld [vmem:[%s15775_s9 + $0xc0] ss:$8 sps:$4 sm:$0xff]   ;;  %v8397_v18 = vld [vmem:[%s15775_s9 + $0xc4] ss:$8 sps:$4 sm:$0xff]  }
 0x140   : > { %v2383_v31 = vmul.f32 %v9507_v22, %v896_v6  ;;  %v2513_v16 = vmul.f32 %v9512_v26, %v1602_v50  ;;  %8155 = vmatmul.mubr.msk.bf16.gmra.mrb[144].mxu1 %vm670_vm0, %v9202_v27  ;;  %v9848_v54 = vadd.f32 %v2511_v28, %v2381_v61  ;;  %3331 = vmatprep.subr.bf16.mxu0 %v8397_v18 }
 0x141   : > { %v2384_v41 = vmul.f32 %v9519_v34, %v898_v57  ;;  %v2514_v24 = vmul.f32 %v9524_v38, %v1604_v3  ;;  %1202 = vmatprep.mubr.bf16.mxu1 %v16075_v23  ;;  %v9859_v6 = vadd.f32 %v2512_v21, %v2382_v5  ;;  %3332 = vmatpush1.bf16.msra.mxu0 %v8395_v47 }
 0x142   : > { %16097 = vst [vmem:[#allocation33_spill] sm:$0xff] %v9848_v54  ;;  %v9861_v50 = vadd.f32 %v2513_v16, %v2383_v31 }
 0x143   : > { %v901_v27 = vpop.f32.mrb[40].mxu1  ;;  %v1607_v61 = vpop.f32.mrb[40].mxu0  ;;  %v9863_v28 = vadd.f32 %v2514_v24, %v2384_v41 }
 0x144   : > { %16098 = vst [vmem:[#allocation34_spill] sm:$0xff] %v9861_v50  ;;  %v902_v2 = vadd.f32 %v901_v27, %v9484_v7  ;;  %v1608_v9 = vadd.f32 %v1607_v61, %v9486_v8  ;;  %v903_v57 = vpop.f32.mrb[41].mxu1  ;;  %v1609_v3 = vpop.f32.mrb[41].mxu0 }
 0x145   : > { %16099 = vst [vmem:[#allocation35_spill] sm:$0xff] %v9863_v28  ;;  %v904_v54 = vadd.f32 %v903_v57, %v9491_v11  ;;  %v1610_v60 = vadd.f32 %v1609_v3, %v9493_v13  ;;  %v905_v5 = vpop.f32.mrb[42].mxu1  ;;  %v1611_v21 = vpop.f32.mrb[42].mxu0 }
 0x146   : > { %v2385_v31 = vmul.f32 %v9507_v22, %v902_v2  ;;  %v2515_v16 = vmul.f32 %v9512_v26, %v1608_v9  ;;  %v906_v41 = vadd.f32 %v905_v5, %v9484_v7  ;;  %v1612_v24 = vadd.f32 %v1611_v21, %v9486_v8  ;;  %v907_v18 = vpop.f32.mrb[43].mxu1  ;;  %v1613_v27 = vpop.f32.mrb[43].mxu0 }
 0x147   : > { %v2386_v61 = vmul.f32 %v9519_v34, %v904_v54  ;;  %v2516_v47 = vmul.f32 %v9524_v38, %v1610_v60  ;;  %v908_v57 = vadd.f32 %v907_v18, %v9491_v11  ;;  %v1614_v3 = vadd.f32 %v1613_v27, %v9493_v13 }
 0x148   : > { %v2387_v28 = vmul.f32 %v9507_v22, %v906_v41  ;;  %v2517_v2 = vmul.f32 %v9512_v26, %v1612_v24  ;;  %8156 = vmatmul.mubr.msk.bf16.gmra.mrb[148].mxu1 %vm670_vm0, %v9212_v30  ;;  %v9881_v9 = vadd.f32 %v2515_v16, %v2385_v31 }
 0x149   : > { %v2388_v5 = vmul.f32 %v9519_v34, %v908_v57  ;;  %v2518_v21 = vmul.f32 %v9524_v38, %v1614_v3  ;;  %1212 = vmatprep.mubr.bf16.mxu1 %v16075_v23  ;;  %v9886_v60 = vadd.f32 %v2516_v47, %v2386_v61 }
 0x14a   : > { %16100 = vst [vmem:[#allocation36_spill] sm:$0xff] %v9881_v9  ;;  %v9888_v54 = vadd.f32 %v2517_v2, %v2387_v28 }
 0x14b   : > { %v911_v18 = vpop.f32.mrb[44].mxu1  ;;  %v1617_v27 = vpop.f32.mrb[44].mxu0  ;;  %v9890_v41 = vadd.f32 %v2518_v21, %v2388_v5 }
 0x14c   : > { %16101 = vst [vmem:[#allocation37_spill] sm:$0xff] %v9888_v54  ;;  %v912_v24 = vadd.f32 %v911_v18, %v9484_v7  ;;  %v1618_v30 = vadd.f32 %v1617_v27, %v9486_v8  ;;  %v913_v31 = vpop.f32.mrb[45].mxu1  ;;  %v1619_v16 = vpop.f32.mrb[45].mxu0 }
 0x14d   : > { %16102 = vst [vmem:[#allocation38_spill] sm:$0xff] %v9890_v41  ;;  %v914_v57 = vadd.f32 %v913_v31, %v9491_v11  ;;  %v1620_v3 = vadd.f32 %v1619_v16, %v9493_v13  ;;  %v915_v9 = vpop.f32.mrb[46].mxu1  ;;  %v1621_v50 = vpop.f32.mrb[46].mxu0 }
 0x14e   : > { %v2389_v61 = vmul.f32 %v9507_v22, %v912_v24  ;;  %v2519_v28 = vmul.f32 %v9512_v26, %v1618_v30  ;;  %v916_v47 = vadd.f32 %v915_v9, %v9484_v7  ;;  %v1622_v2 = vadd.f32 %v1621_v50, %v9486_v8  ;;  %v917_v5 = vpop.f32.mrb[47].mxu1  ;;  %v1623_v21 = vpop.f32.mrb[47].mxu0 }
 0x14f   : > { %v2390_v18 = vmul.f32 %v9519_v34, %v914_v57  ;;  %v2520_v27 = vmul.f32 %v9524_v38, %v1620_v3  ;;  %v918_v31 = vadd.f32 %v917_v5, %v9491_v11  ;;  %v1624_v16 = vadd.f32 %v1623_v21, %v9493_v13  ;;  %v8398_v57 = vld [vmem:[%s15775_s9 + $0xd0] ss:$8 sps:$4 sm:$0xff]   ;;  %v8400_v3 = vld [vmem:[%s15775_s9 + $0xd4] ss:$8 sps:$4 sm:$0xff]  }
 0x150   : > { %v2391_v41 = vmul.f32 %v9507_v22, %v916_v47  ;;  %v2521_v24 = vmul.f32 %v9512_v26, %v1622_v2  ;;  %8157 = vmatmul.mubr.msk.bf16.gmra.mrb[152].mxu1 %vm670_vm0, %v9222_v33  ;;  %v9908_v9 = vadd.f32 %v2519_v28, %v2389_v61  ;;  %3333 = vmatprep.subr.bf16.mxu0 %v8400_v3 }
 0x151   : > { %v2392_v50 = vmul.f32 %v9519_v34, %v918_v31  ;;  %v2522_v30 = vmul.f32 %v9524_v38, %v1624_v16  ;;  %1222 = vmatprep.mubr.bf16.mxu1 %v16075_v23  ;;  %v9919_v47 = vadd.f32 %v2520_v27, %v2390_v18  ;;  %3334 = vmatpush1.bf16.msra.mxu0 %v8398_v57 }
 0x152   : > { %16103 = vst [vmem:[#allocation39_spill] sm:$0xff] %v9908_v9  ;;  %v9921_v2 = vadd.f32 %v2521_v24, %v2391_v41 }
 0x153   : > { %v921_v33 = vpop.f32.mrb[48].mxu1  ;;  %v1627_v61 = vpop.f32.mrb[48].mxu0  ;;  %v9923_v28 = vadd.f32 %v2522_v30, %v2392_v50 }
 0x154   : > { %16104 = vst [vmem:[#allocation40_spill] sm:$0xff] %v9921_v2  ;;  %v922_v5 = vadd.f32 %v921_v33, %v9484_v7  ;;  %v1628_v21 = vadd.f32 %v1627_v61, %v9486_v8  ;;  %v923_v31 = vpop.f32.mrb[49].mxu1  ;;  %v1629_v16 = vpop.f32.mrb[49].mxu0 }
 0x155   : > { %16105 = vst [vmem:[#allocation41_spill] sm:$0xff] %v9923_v28  ;;  %v924_v9 = vadd.f32 %v923_v31, %v9491_v11  ;;  %v1630_v54 = vadd.f32 %v1629_v16, %v9493_v13  ;;  %v925_v18 = vpop.f32.mrb[50].mxu1  ;;  %v1631_v27 = vpop.f32.mrb[50].mxu0 }
 0x156   : > { %v2393_v41 = vmul.f32 %v9507_v22, %v922_v5  ;;  %v2523_v24 = vmul.f32 %v9512_v26, %v1628_v21  ;;  %v926_v50 = vadd.f32 %v925_v18, %v9484_v7  ;;  %v1632_v30 = vadd.f32 %v1631_v27, %v9486_v8  ;;  %v927_v3 = vpop.f32.mrb[51].mxu1  ;;  %v1633_v33 = vpop.f32.mrb[51].mxu0 }
 0x157   : > { %v2394_v61 = vmul.f32 %v9519_v34, %v924_v9  ;;  %v2524_v57 = vmul.f32 %v9524_v38, %v1630_v54  ;;  %v928_v31 = vadd.f32 %v927_v3, %v9491_v11  ;;  %v1634_v16 = vadd.f32 %v1633_v33, %v9493_v13 }
 0x158   : > { %v2395_v28 = vmul.f32 %v9507_v22, %v926_v50  ;;  %v2525_v5 = vmul.f32 %v9512_v26, %v1632_v30  ;;  %8158 = vmatmul.mubr.msk.bf16.gmra.mrb[156].mxu1 %vm670_vm0, %v9232_v36  ;;  %v9941_v21 = vadd.f32 %v2523_v24, %v2393_v41 }
 0x159   : > { %v2396_v18 = vmul.f32 %v9519_v34, %v928_v31  ;;  %v2526_v27 = vmul.f32 %v9524_v38, %v1634_v16  ;;  %1232 = vmatprep.mubr.bf16.mxu1 %v16075_v23  ;;  %v9946_v54 = vadd.f32 %v2524_v57, %v2394_v61 }
 0x15a   : > { %16106 = vst [vmem:[#allocation42_spill] sm:$0xff] %v9941_v21  ;;  %v9948_v9 = vadd.f32 %v2525_v5, %v2395_v28 }
 0x15b   : > { %v931_v3 = vpop.f32.mrb[52].mxu1  ;;  %v1637_v33 = vpop.f32.mrb[52].mxu0  ;;  %v9950_v50 = vadd.f32 %v2526_v27, %v2396_v18 }
 0x15c   : > { %16107 = vst [vmem:[#allocation43_spill] sm:$0xff] %v9948_v9  ;;  %v932_v30 = vadd.f32 %v931_v3, %v9484_v7  ;;  %v1638_v36 = vadd.f32 %v1637_v33, %v9486_v8  ;;  %v933_v41 = vpop.f32.mrb[53].mxu1  ;;  %v1639_v24 = vpop.f32.mrb[53].mxu0 }
 0x15d   : > { %16108 = vst [vmem:[#allocation44_spill] sm:$0xff] %v9950_v50  ;;  %v934_v31 = vadd.f32 %v933_v41, %v9491_v11  ;;  %v1640_v16 = vadd.f32 %v1639_v24, %v9493_v13  ;;  %v935_v21 = vpop.f32.mrb[54].mxu1  ;;  %v1641_v2 = vpop.f32.mrb[54].mxu0 }
 0x15e   : > { %v2397_v61 = vmul.f32 %v9507_v22, %v932_v30  ;;  %v2527_v28 = vmul.f32 %v9512_v26, %v1638_v36  ;;  %v936_v57 = vadd.f32 %v935_v21, %v9484_v7  ;;  %v1642_v5 = vadd.f32 %v1641_v2, %v9486_v8  ;;  %v937_v18 = vpop.f32.mrb[55].mxu1  ;;  %v1643_v27 = vpop.f32.mrb[55].mxu0 }
 0x15f   : > { %v2398_v3 = vmul.f32 %v9519_v34, %v934_v31  ;;  %v2528_v33 = vmul.f32 %v9524_v38, %v1640_v16  ;;  %v938_v41 = vadd.f32 %v937_v18, %v9491_v11  ;;  %v1644_v24 = vadd.f32 %v1643_v27, %v9493_v13  ;;  %v8401_v31 = vld [vmem:[%s15775_s9 + $0xe0] ss:$8 sps:$4 sm:$0xff]   ;;  %v8403_v16 = vld [vmem:[%s15775_s9 + $0xe4] ss:$8 sps:$4 sm:$0xff]  }
 0x160   : > { %v2399_v50 = vmul.f32 %v9507_v22, %v936_v57  ;;  %v2529_v30 = vmul.f32 %v9512_v26, %v1642_v5  ;;  %8159 = vmatmul.mubr.msk.bf16.gmra.mrb[160].mxu1 %vm670_vm0, %v9242_v39  ;;  %v9968_v21 = vadd.f32 %v2527_v28, %v2397_v61  ;;  %3335 = vmatprep.subr.bf16.mxu0 %v8403_v16 }
 0x161   : > { %v2400_v2 = vmul.f32 %v9519_v34, %v938_v41  ;;  %v2530_v36 = vmul.f32 %v9524_v38, %v1644_v24  ;;  %1242 = vmatprep.mubr.bf16.mxu1 %v16075_v23  ;;  %v9979_v57 = vadd.f32 %v2528_v33, %v2398_v3  ;;  %3336 = vmatpush1.bf16.msra.mxu0 %v8401_v31 }
 0x162   : > { %16109 = vst [vmem:[#allocation45_spill] sm:$0xff] %v9968_v21  ;;  %v9981_v5 = vadd.f32 %v2529_v30, %v2399_v50 }
 0x163   : > { %v941_v39 = vpop.f32.mrb[56].mxu1  ;;  %v1647_v61 = vpop.f32.mrb[56].mxu0  ;;  %v9983_v28 = vadd.f32 %v2530_v36, %v2400_v2 }
 0x164   : > { %v942_v18 = vadd.f32 %v941_v39, %v9484_v7  ;;  %v1648_v27 = vadd.f32 %v1647_v61, %v9486_v8  ;;  %v943_v41 = vpop.f32.mrb[57].mxu1  ;;  %v1649_v24 = vpop.f32.mrb[57].mxu0 }
 0x165   : > { %16110 = vst [vmem:[#allocation46_spill] sm:$0xff] %v9983_v28  ;;  %v944_v21 = vadd.f32 %v943_v41, %v9491_v11  ;;  %v1650_v9 = vadd.f32 %v1649_v24, %v9493_v13  ;;  %v945_v3 = vpop.f32.mrb[58].mxu1  ;;  %v1651_v33 = vpop.f32.mrb[58].mxu0 }
 0x166   : > { %v2401_v50 = vmul.f32 %v9507_v22, %v942_v18  ;;  %v2531_v30 = vmul.f32 %v9512_v26, %v1648_v27  ;;  %v946_v2 = vadd.f32 %v945_v3, %v9484_v7  ;;  %v1652_v36 = vadd.f32 %v1651_v33, %v9486_v8  ;;  %v947_v16 = vpop.f32.mrb[59].mxu1  ;;  %v1653_v39 = vpop.f32.mrb[59].mxu0 }
 0x167   : > { %v2402_v61 = vmul.f32 %v9519_v34, %v944_v21  ;;  %v2532_v31 = vmul.f32 %v9524_v38, %v1650_v9  ;;  %v948_v41 = vadd.f32 %v947_v16, %v9491_v11  ;;  %v1654_v24 = vadd.f32 %v1653_v39, %v9493_v13 }
 0x168   : > { %v2403_v28 = vmul.f32 %v9507_v22, %v946_v2  ;;  %v2533_v18 = vmul.f32 %v9512_v26, %v1652_v36  ;;  %8160 = vmatmul.mubr.msk.bf16.gmra.mrb[164].mxu1 %vm670_vm0, %v9252_v42  ;;  %v10001_v27 = vadd.f32 %v2531_v30, %v2401_v50 }
 0x169   : > { %v2404_v3 = vmul.f32 %v9519_v34, %v948_v41  ;;  %v2534_v33 = vmul.f32 %v9524_v38, %v1654_v24  ;;  %1252 = vmatprep.mubr.bf16.mxu1 %v16075_v23  ;;  %v10006_v9 = vadd.f32 %v2532_v31, %v2402_v61  ;;  %v10025_v31 = vld [vmem:[%s15774_s8] sm:$0xff] }
 0x16a   : > { %16111 = vst [vmem:[#allocation47_spill] sm:$0xff] %v10001_v27  ;;  %v10008_v21 = vadd.f32 %v2533_v18, %v2403_v28  ;;  %v10019_v28 = vld [vmem:[%s15773_s7] sm:$0xff] }
 0x16b   : > { %16112 = vst [vmem:[#allocation48_spill] sm:$0xff] %v10006_v9  ;;  %v951_v16 = vpop.f32.mrb[60].mxu1  ;;  %v1657_v39 = vpop.f32.mrb[60].mxu0  ;;  %v10010_v22 = vadd.f32 %v2534_v33, %v2404_v3 }
 0x16c   : > { %16113 = vst [vmem:[#allocation49_spill] sm:$0xff] %v10008_v21  ;;  %v952_v26 = vadd.f32 %v951_v16, %v9484_v7  ;;  %v1658_v42 = vadd.f32 %v1657_v39, %v9486_v8  ;;  %v953_v50 = vpop.f32.mrb[61].mxu1  ;;  %v1659_v30 = vpop.f32.mrb[61].mxu0  ;;  %v10033_v16 = vld [vmem:[%s15773_s7 + $0x8] sm:$0xff] }
 0x16d   : > { %16114 = vst [vmem:[#allocation50_spill] sm:$0xff] %v10010_v22  ;;  %v954_v34 = vadd.f32 %v953_v50, %v9491_v11  ;;  %v1660_v38 = vadd.f32 %v1659_v30, %v9493_v13  ;;  %v955_v2 = vpop.f32.mrb[62].mxu1  ;;  %v1661_v36 = vpop.f32.mrb[62].mxu0 }
 0x16e   : > { %v2405_v61 = vmul.f32 %v10019_v28, %v952_v26  ;;  %v2535_v41 = vmul.f32 %v10025_v31, %v1658_v42  ;;  %v956_v24 = vadd.f32 %v955_v2, %v9484_v7  ;;  %v1662_v18 = vadd.f32 %v1661_v36, %v9486_v8  ;;  %v957_v3 = vpop.f32.mrb[63].mxu1  ;;  %v1663_v33 = vpop.f32.mrb[63].mxu0  ;;  %v10039_v26 = vld [vmem:[%s15774_s8 + $0x8] sm:$0xff] }
 0x16f   : > { %v2406_v39 = vmul.f32 %v10033_v16, %v954_v34  ;;  %v2536_v42 = vmul.f32 %v10039_v26, %v1660_v38  ;;  %v958_v50 = vadd.f32 %v957_v3, %v9491_v11  ;;  %v1664_v30 = vadd.f32 %v1663_v33, %v9493_v13  ;;  %v8404_v38 = vld [vmem:[%s15775_s9 + $0xf0] ss:$8 sps:$4 sm:$0xff]  }
 0x170   : > { %v2407_v2 = vmul.f32 %v10019_v28, %v956_v24  ;;  %v2537_v36 = vmul.f32 %v10025_v31, %v1662_v18  ;;  %8161 = vmatmul.mubr.msk.bf16.gmra.mrb[168].mxu1 %vm670_vm0, %v9262_v45  ;;  %v10048_v22 = vadd.f32 %v2535_v41, %v2405_v61  ;;  %v8406_v24 = vld [vmem:[%s15775_s9 + $0xf4] ss:$8 sps:$4 sm:$0xff]  }
 0x171   : > { %v2408_v34 = vmul.f32 %v10033_v16, %v958_v50  ;;  %v2538_v21 = vmul.f32 %v10039_v26, %v1664_v30  ;;  %1262 = vmatprep.mubr.bf16.mxu1 %v16075_v23  ;;  %v10059_v18 = vadd.f32 %v2536_v42, %v2406_v39  ;;  %3337 = vmatprep.subr.bf16.mxu0 %v8406_v24 }
 0x172   : > { %16115 = vst [vmem:[#allocation51_spill] sm:$0xff] %v10048_v22  ;;  %v10061_v3 = vadd.f32 %v2537_v36, %v2407_v2  ;;  %3338 = vmatpush1.bf16.msra.mxu0 %v8404_v38 }
 0x173   : > { %v961_v45 = vpop.f32.mrb[64].mxu1  ;;  %v1667_v61 = vpop.f32.mrb[64].mxu0  ;;  %v10063_v41 = vadd.f32 %v2538_v21, %v2408_v34 }
 0x174   : > { %16116 = vst [vmem:[#allocation52_spill] sm:$0xff] %v10061_v3  ;;  %v962_v33 = vadd.f32 %v961_v45, %v9484_v7  ;;  %v1668_v50 = vadd.f32 %v1667_v61, %v9486_v8  ;;  %v963_v30 = vpop.f32.mrb[65].mxu1  ;;  %v1669_v22 = vpop.f32.mrb[65].mxu0 }
 0x175   : > { %16117 = vst [vmem:[#allocation53_spill] sm:$0xff] %v10063_v41  ;;  %v964_v9 = vadd.f32 %v963_v30, %v9491_v11  ;;  %v1670_v27 = vadd.f32 %v1669_v22, %v9493_v13  ;;  %v965_v39 = vpop.f32.mrb[66].mxu1  ;;  %v1671_v42 = vpop.f32.mrb[66].mxu0 }
 0x176   : > { %v2409_v2 = vmul.f32 %v10019_v28, %v962_v33  ;;  %v2539_v36 = vmul.f32 %v10025_v31, %v1668_v50  ;;  %v966_v21 = vadd.f32 %v965_v39, %v9484_v7  ;;  %v1672_v34 = vadd.f32 %v1671_v42, %v9486_v8  ;;  %v967_v24 = vpop.f32.mrb[67].mxu1  ;;  %v1673_v45 = vpop.f32.mrb[67].mxu0 }
 0x177   : > { %v2410_v61 = vmul.f32 %v10033_v16, %v964_v9  ;;  %v2540_v38 = vmul.f32 %v10039_v26, %v1670_v27  ;;  %v968_v30 = vadd.f32 %v967_v24, %v9491_v11  ;;  %v1674_v22 = vadd.f32 %v1673_v45, %v9493_v13 }
 0x178   : > { %v2411_v41 = vmul.f32 %v10019_v28, %v966_v21  ;;  %v2541_v33 = vmul.f32 %v10025_v31, %v1672_v34  ;;  %8162 = vmatmul.mubr.msk.bf16.gmra.mrb[172].mxu1 %vm670_vm0, %v9272_v48  ;;  %v10081_v50 = vadd.f32 %v2539_v36, %v2409_v2 }
 0x179   : > { %v2412_v39 = vmul.f32 %v10033_v16, %v968_v30  ;;  %v2542_v42 = vmul.f32 %v10039_v26, %v1674_v22  ;;  %1272 = vmatprep.mubr.bf16.mxu1 %v16075_v23  ;;  %v10086_v27 = vadd.f32 %v2540_v38, %v2410_v61 }
 0x17a   : > { %16118 = vst [vmem:[#allocation54_spill] sm:$0xff] %v10081_v50  ;;  %v10088_v9 = vadd.f32 %v2541_v33, %v2411_v41 }
 0x17b   : > { %16119 = vst [vmem:[#allocation55_spill] sm:$0xff] %v10086_v27  ;;  %v971_v24 = vpop.f32.mrb[68].mxu1  ;;  %v1677_v45 = vpop.f32.mrb[68].mxu0  ;;  %v10090_v21 = vadd.f32 %v2542_v42, %v2412_v39 }
 0x17c   : > { %16120 = vst [vmem:[#allocation56_spill] sm:$0xff] %v10088_v9  ;;  %v972_v34 = vadd.f32 %v971_v24, %v9484_v7  ;;  %v1678_v48 = vadd.f32 %v1677_v45, %v9486_v8  ;;  %v973_v2 = vpop.f32.mrb[69].mxu1  ;;  %v1679_v36 = vpop.f32.mrb[69].mxu0 }
 0x17d   : > { %16121 = vst [vmem:[#allocation57_spill] sm:$0xff] %v10090_v21  ;;  %v974_v30 = vadd.f32 %v973_v2, %v9491_v11  ;;  %v1680_v22 = vadd.f32 %v1679_v36, %v9493_v13  ;;  %v975_v50 = vpop.f32.mrb[70].mxu1  ;;  %v1681_v3 = vpop.f32.mrb[70].mxu0 }
 0x17e   : > { %v2413_v61 = vmul.f32 %v10019_v28, %v972_v34  ;;  %v2543_v41 = vmul.f32 %v10025_v31, %v1678_v48  ;;  %v976_v38 = vadd.f32 %v975_v50, %v9484_v7  ;;  %v1682_v33 = vadd.f32 %v1681_v3, %v9486_v8  ;;  %v977_v39 = vpop.f32.mrb[71].mxu1  ;;  %v1683_v42 = vpop.f32.mrb[71].mxu0 }
 0x17f   : > { %v2414_v24 = vmul.f32 %v10033_v16, %v974_v30  ;;  %v2544_v45 = vmul.f32 %v10039_v26, %v1680_v22  ;;  %v978_v2 = vadd.f32 %v977_v39, %v9491_v11  ;;  %v1684_v36 = vadd.f32 %v1683_v42, %v9493_v13 }
 0x180   : > { %v2415_v21 = vmul.f32 %v10019_v28, %v976_v38  ;;  %v2545_v34 = vmul.f32 %v10025_v31, %v1682_v33  ;;  %8163 = vmatmul.mubr.msk.bf16.gmra.mrb[176].mxu1 %vm670_vm0, %v9282_v51  ;;  %v10108_v50 = vadd.f32 %v2543_v41, %v2413_v61 }
 0x181   : > { %v2416_v3 = vmul.f32 %v10033_v16, %v978_v2  ;;  %v2546_v48 = vmul.f32 %v10039_v26, %v1684_v36  ;;  %1282 = vmatprep.mubr.bf16.mxu1 %v16075_v23  ;;  %v10113_v30 = vadd.f32 %v2544_v45, %v2414_v24 }
 0x182   : > { %16122 = vst [vmem:[#allocation58_spill] sm:$0xff] %v10108_v50  ;;  %v10115_v22 = vadd.f32 %v2545_v34, %v2415_v21 }
 0x183   : > { %16123 = vst [vmem:[#allocation59_spill] sm:$0xff] %v10113_v30  ;;  %v981_v39 = vpop.f32.mrb[72].mxu1  ;;  %v1687_v42 = vpop.f32.mrb[72].mxu0  ;;  %v10117_v38 = vadd.f32 %v2546_v48, %v2416_v3 }
 0x184   : > { %16124 = vst [vmem:[#allocation60_spill] sm:$0xff] %v10115_v22  ;;  %v982_v33 = vadd.f32 %v981_v39, %v9484_v7  ;;  %v1688_v51 = vadd.f32 %v1687_v42, %v9486_v8  ;;  %v983_v61 = vpop.f32.mrb[73].mxu1  ;;  %v1689_v41 = vpop.f32.mrb[73].mxu0 }
 0x185   : > { %16125 = vst [vmem:[#allocation61_spill] sm:$0xff] %v10117_v38  ;;  %v984_v2 = vadd.f32 %v983_v61, %v9491_v11  ;;  %v1690_v36 = vadd.f32 %v1689_v41, %v9493_v13  ;;  %v985_v50 = vpop.f32.mrb[74].mxu1  ;;  %v1691_v9 = vpop.f32.mrb[74].mxu0 }
 0x186   : > { %v2417_v24 = vmul.f32 %v10019_v28, %v982_v33  ;;  %v2547_v21 = vmul.f32 %v10025_v31, %v1688_v51  ;;  %v986_v45 = vadd.f32 %v985_v50, %v9484_v7  ;;  %v1692_v34 = vadd.f32 %v1691_v9, %v9486_v8  ;;  %v987_v3 = vpop.f32.mrb[75].mxu1  ;;  %v1693_v48 = vpop.f32.mrb[75].mxu0 }
 0x187   : > { %v2418_v39 = vmul.f32 %v10033_v16, %v984_v2  ;;  %v2548_v42 = vmul.f32 %v10039_v26, %v1690_v36  ;;  %v988_v61 = vadd.f32 %v987_v3, %v9491_v11  ;;  %v1694_v41 = vadd.f32 %v1693_v48, %v9493_v13 }
 0x188   : > { %v2419_v38 = vmul.f32 %v10019_v28, %v986_v45  ;;  %v2549_v33 = vmul.f32 %v10025_v31, %v1692_v34  ;;  %8164 = vmatmul.mubr.msk.bf16.gmra.mrb[180].mxu1 %vm670_vm0, %v9298_v56  ;;  %v10135_v50 = vadd.f32 %v2547_v21, %v2417_v24 }
 0x189   : > { %v2420_v9 = vmul.f32 %v10033_v16, %v988_v61  ;;  %v2550_v51 = vmul.f32 %v10039_v26, %v1694_v41  ;;  %1292 = vmatprep.mubr.bf16.mxu1 %v16075_v23  ;;  %v10140_v2 = vadd.f32 %v2548_v42, %v2418_v39 }
 0x18a   : > { %16126 = vst [vmem:[#allocation62_spill] sm:$0xff] %v10135_v50  ;;  %v10142_v36 = vadd.f32 %v2549_v33, %v2419_v38 }
 0x18b   : > { %16127 = vst [vmem:[#allocation63_spill] sm:$0xff] %v10140_v2  ;;  %v991_v3 = vpop.f32.mrb[76].mxu1  ;;  %v1697_v48 = vpop.f32.mrb[76].mxu0  ;;  %v10144_v45 = vadd.f32 %v2550_v51, %v2420_v9  ;;  %v4014_v2 = vld [vmem:[%s10996_s26 + $0x110] sm:$0xff] }
 0x18c   : > { %16128 = vst [vmem:[#allocation64_spill] sm:$0xff] %v10142_v36  ;;  %v992_v34 = vadd.f32 %v991_v3, %v9484_v7  ;;  %v1698_v56 = vadd.f32 %v1697_v48, %v9486_v8  ;;  %v993_v24 = vpop.f32.mrb[77].mxu1  ;;  %v1699_v21 = vpop.f32.mrb[77].mxu0 }
 0x18d   : > { %16129 = vst [vmem:[#allocation65_spill] sm:$0xff] %v10144_v45  ;;  %v994_v61 = vadd.f32 %v993_v24, %v9491_v11  ;;  %v1700_v41 = vadd.f32 %v1699_v21, %v9493_v13  ;;  %v995_v50 = vpop.f32.mrb[78].mxu1  ;;  %v1701_v22 = vpop.f32.mrb[78].mxu0 }
 0x18e   : > { %v2421_v39 = vmul.f32 %v10019_v28, %v992_v34  ;;  %v2551_v38 = vmul.f32 %v10025_v31, %v1698_v56  ;;  %v996_v42 = vadd.f32 %v995_v50, %v9484_v7  ;;  %v1702_v33 = vadd.f32 %v1701_v22, %v9486_v8  ;;  %v997_v9 = vpop.f32.mrb[79].mxu1  ;;  %v1703_v51 = vpop.f32.mrb[79].mxu0 }
 0x18f   : > { %v2422_v3 = vmul.f32 %v10033_v16, %v994_v61  ;;  %v2552_v48 = vmul.f32 %v10039_v26, %v1700_v41  ;;  %v998_v24 = vadd.f32 %v997_v9, %v9491_v11  ;;  %v1704_v21 = vadd.f32 %v1703_v51, %v9493_v13 }
 0x190   : > { %v2423_v45 = vmul.f32 %v10019_v28, %v996_v42  ;;  %v2553_v34 = vmul.f32 %v10025_v31, %v1702_v33  ;;  %8165 = vmatmul.mubr.msk.bf16.gmra.mrb[184].mxu1 %vm670_vm0, %v9308_v59  ;;  %v10162_v50 = vadd.f32 %v2551_v38, %v2421_v39 }
 0x191   : > { %v2424_v22 = vmul.f32 %v10033_v16, %v998_v24  ;;  %v2554_v56 = vmul.f32 %v10039_v26, %v1704_v21  ;;  %1302 = vmatprep.mubr.bf16.mxu1 %v16075_v23  ;;  %v10167_v61 = vadd.f32 %v2552_v48, %v2422_v3 }
 0x192   : > { %16130 = vst [vmem:[#allocation66_spill] sm:$0xff] %v10162_v50  ;;  %v10169_v41 = vadd.f32 %v2553_v34, %v2423_v45 }
 0x193   : > { %16131 = vst [vmem:[#allocation67_spill] sm:$0xff] %v10167_v61  ;;  %v1001_v9 = vpop.f32.mrb[80].mxu1  ;;  %v1707_v51 = vpop.f32.mrb[80].mxu0  ;;  %v10171_v42 = vadd.f32 %v2554_v56, %v2424_v22 }
 0x194   : > { %16132 = vst [vmem:[#allocation68_spill] sm:$0xff] %v10169_v41  ;;  %v1002_v33 = vadd.f32 %v1001_v9, %v9484_v7  ;;  %v1708_v59 = vadd.f32 %v1707_v51, %v9486_v8  ;;  %v1003_v39 = vpop.f32.mrb[81].mxu1  ;;  %v1709_v38 = vpop.f32.mrb[81].mxu0 }
 0x195   : > { %16133 = vst [vmem:[#allocation69_spill] sm:$0xff] %v10171_v42  ;;  %v1004_v24 = vadd.f32 %v1003_v39, %v9491_v11  ;;  %v1710_v21 = vadd.f32 %v1709_v38, %v9493_v13  ;;  %v1005_v50 = vpop.f32.mrb[82].mxu1  ;;  %v1711_v36 = vpop.f32.mrb[82].mxu0 }
 0x196   : > { %v2425_v3 = vmul.f32 %v10019_v28, %v1002_v33  ;;  %v2555_v45 = vmul.f32 %v10025_v31, %v1708_v59  ;;  %v1006_v48 = vadd.f32 %v1005_v50, %v9484_v7  ;;  %v1712_v34 = vadd.f32 %v1711_v36, %v9486_v8  ;;  %v1007_v22 = vpop.f32.mrb[83].mxu1  ;;  %v1713_v56 = vpop.f32.mrb[83].mxu0 }
 0x197   : > { %v2426_v9 = vmul.f32 %v10033_v16, %v1004_v24  ;;  %v2556_v51 = vmul.f32 %v10039_v26, %v1710_v21  ;;  %v1008_v39 = vadd.f32 %v1007_v22, %v9491_v11  ;;  %v1714_v38 = vadd.f32 %v1713_v56, %v9493_v13 }
 0x198   : > { %v2427_v42 = vmul.f32 %v10019_v28, %v1006_v48  ;;  %v2557_v33 = vmul.f32 %v10025_v31, %v1712_v34  ;;  %8166 = vmatmul.mubr.msk.bf16.gmra.mrb[188].mxu1 %vm670_vm0, %v9324_v0  ;;  %v10189_v50 = vadd.f32 %v2555_v45, %v2425_v3 }
 0x199   : > { %v2428_v36 = vmul.f32 %v10033_v16, %v1008_v39  ;;  %v2558_v59 = vmul.f32 %v10039_v26, %v1714_v38  ;;  %1312 = vmatprep.mubr.bf16.mxu1 %v16075_v23  ;;  %v10194_v24 = vadd.f32 %v2556_v51, %v2426_v9 }
 0x19a   : > { %16134 = vst [vmem:[#allocation70_spill] sm:$0xff] %v10189_v50  ;;  %v10196_v21 = vadd.f32 %v2557_v33, %v2427_v42 }
 0x19b   : > { %16135 = vst [vmem:[#allocation71_spill] sm:$0xff] %v10194_v24  ;;  %v1011_v22 = vpop.f32.mrb[84].mxu1  ;;  %v1717_v56 = vpop.f32.mrb[84].mxu0  ;;  %v10198_v48 = vadd.f32 %v2558_v59, %v2428_v36 }
 0x19c   : > { %16136 = vst [vmem:[#allocation72_spill] sm:$0xff] %v10196_v21  ;;  %v1012_v34 = vadd.f32 %v1011_v22, %v9484_v7  ;;  %v1718_v0 = vadd.f32 %v1717_v56, %v9486_v8  ;;  %v1013_v3 = vpop.f32.mrb[85].mxu1  ;;  %v1719_v45 = vpop.f32.mrb[85].mxu0 }
 0x19d   : > { %16137 = vst [vmem:[#allocation73_spill] sm:$0xff] %v10198_v48  ;;  %v1014_v39 = vadd.f32 %v1013_v3, %v9491_v11  ;;  %v1720_v38 = vadd.f32 %v1719_v45, %v9493_v13  ;;  %v1015_v50 = vpop.f32.mrb[86].mxu1  ;;  %v1721_v41 = vpop.f32.mrb[86].mxu0 }
 0x19e   : > { %v2429_v9 = vmul.f32 %v10019_v28, %v1012_v34  ;;  %v2559_v42 = vmul.f32 %v10025_v31, %v1718_v0  ;;  %v1016_v51 = vadd.f32 %v1015_v50, %v9484_v7  ;;  %v1722_v33 = vadd.f32 %v1721_v41, %v9486_v8  ;;  %v1017_v36 = vpop.f32.mrb[87].mxu1  ;;  %v1723_v59 = vpop.f32.mrb[87].mxu0 }
 0x19f   : > { %v2430_v22 = vmul.f32 %v10033_v16, %v1014_v39  ;;  %v2560_v56 = vmul.f32 %v10039_v26, %v1720_v38  ;;  %v1018_v3 = vadd.f32 %v1017_v36, %v9491_v11  ;;  %v1724_v45 = vadd.f32 %v1723_v59, %v9493_v13 }
 0x1a0   : > { %v2431_v48 = vmul.f32 %v10019_v28, %v1016_v51  ;;  %v2561_v34 = vmul.f32 %v10025_v31, %v1722_v33  ;;  %8167 = vmatmul.mubr.msk.bf16.gmra.mrb[192].mxu1 %vm670_vm0, %v9334_v4  ;;  %v10216_v50 = vadd.f32 %v2559_v42, %v2429_v9 }
 0x1a1   : > { %v2432_v41 = vmul.f32 %v10033_v16, %v1018_v3  ;;  %v2562_v0 = vmul.f32 %v10039_v26, %v1724_v45  ;;  %1322 = vmatprep.mubr.bf16.mxu1 %v16075_v23  ;;  %v10221_v39 = vadd.f32 %v2560_v56, %v2430_v22 }
 0x1a2   : > { %16138 = vst [vmem:[#allocation74_spill] sm:$0xff] %v10216_v50  ;;  %v10223_v38 = vadd.f32 %v2561_v34, %v2431_v48 }
 0x1a3   : > { %16139 = vst [vmem:[#allocation75_spill] sm:$0xff] %v10221_v39  ;;  %v1021_v36 = vpop.f32.mrb[88].mxu1  ;;  %v1727_v59 = vpop.f32.mrb[88].mxu0  ;;  %v10225_v51 = vadd.f32 %v2562_v0, %v2432_v41 }
 0x1a4   : > { %16140 = vst [vmem:[#allocation76_spill] sm:$0xff] %v10223_v38  ;;  %v1022_v33 = vadd.f32 %v1021_v36, %v9484_v7  ;;  %v1728_v4 = vadd.f32 %v1727_v59, %v9486_v8  ;;  %v1023_v9 = vpop.f32.mrb[89].mxu1  ;;  %v1729_v42 = vpop.f32.mrb[89].mxu0 }
 0x1a5   : > { %16141 = vst [vmem:[#allocation77_spill] sm:$0xff] %v10225_v51  ;;  %v1024_v3 = vadd.f32 %v1023_v9, %v9491_v11  ;;  %v1730_v45 = vadd.f32 %v1729_v42, %v9493_v13  ;;  %v1025_v50 = vpop.f32.mrb[90].mxu1  ;;  %v1731_v21 = vpop.f32.mrb[90].mxu0 }
 0x1a6   : > { %v2433_v22 = vmul.f32 %v10019_v28, %v1022_v33  ;;  %v2563_v48 = vmul.f32 %v10025_v31, %v1728_v4  ;;  %v1026_v56 = vadd.f32 %v1025_v50, %v9484_v7  ;;  %v1732_v34 = vadd.f32 %v1731_v21, %v9486_v8  ;;  %v1027_v41 = vpop.f32.mrb[91].mxu1  ;;  %v1733_v0 = vpop.f32.mrb[91].mxu0 }
 0x1a7   : > { %v2434_v36 = vmul.f32 %v10033_v16, %v1024_v3  ;;  %v2564_v59 = vmul.f32 %v10039_v26, %v1730_v45  ;;  %v1028_v9 = vadd.f32 %v1027_v41, %v9491_v11  ;;  %v1734_v42 = vadd.f32 %v1733_v0, %v9493_v13 }
 0x1a8   : > { %v2435_v51 = vmul.f32 %v10019_v28, %v1026_v56  ;;  %v2565_v33 = vmul.f32 %v10025_v31, %v1732_v34  ;;  %8168 = vmatmul.mubr.msk.bf16.gmra.mrb[196].mxu1 %vm670_vm0, %v9353_v10  ;;  %v10243_v50 = vadd.f32 %v2563_v48, %v2433_v22 }
 0x1a9   : > { %v2436_v21 = vmul.f32 %v10033_v16, %v1028_v9  ;;  %v2566_v4 = vmul.f32 %v10039_v26, %v1734_v42  ;;  %1332 = vmatprep.mubr.bf16.mxu1 %v16075_v23  ;;  %v10248_v3 = vadd.f32 %v2564_v59, %v2434_v36 }
 0x1aa   : > { %16142 = vst [vmem:[#allocation78_spill] sm:$0xff] %v10243_v50  ;;  %v10250_v45 = vadd.f32 %v2565_v33, %v2435_v51 }
 0x1ab   : > { %16143 = vst [vmem:[#allocation79_spill] sm:$0xff] %v10248_v3  ;;  %v1031_v41 = vpop.f32.mrb[92].mxu1  ;;  %v1737_v0 = vpop.f32.mrb[92].mxu0  ;;  %v10252_v56 = vadd.f32 %v2566_v4, %v2436_v21 }
 0x1ac   : > { %16144 = vst [vmem:[#allocation80_spill] sm:$0xff] %v10250_v45  ;;  %v1032_v34 = vadd.f32 %v1031_v41, %v9484_v7  ;;  %v1738_v10 = vadd.f32 %v1737_v0, %v9486_v8  ;;  %v1033_v22 = vpop.f32.mrb[93].mxu1  ;;  %v1739_v48 = vpop.f32.mrb[93].mxu0 }
 0x1ad   : > { %16145 = vst [vmem:[#allocation81_spill] sm:$0xff] %v10252_v56  ;;  %v1034_v9 = vadd.f32 %v1033_v22, %v9491_v11  ;;  %v1740_v42 = vadd.f32 %v1739_v48, %v9493_v13  ;;  %v1035_v50 = vpop.f32.mrb[94].mxu1  ;;  %v1741_v38 = vpop.f32.mrb[94].mxu0 }
 0x1ae   : > { %v2437_v36 = vmul.f32 %v10019_v28, %v1032_v34  ;;  %v2567_v51 = vmul.f32 %v10025_v31, %v1738_v10  ;;  %v1036_v59 = vadd.f32 %v1035_v50, %v9484_v7  ;;  %v1742_v33 = vadd.f32 %v1741_v38, %v9486_v8  ;;  %v1037_v21 = vpop.f32.mrb[95].mxu1  ;;  %v1743_v4 = vpop.f32.mrb[95].mxu0 }
 0x1af   : > { %v2438_v41 = vmul.f32 %v10033_v16, %v1034_v9  ;;  %v2568_v0 = vmul.f32 %v10039_v26, %v1740_v42  ;;  %v1038_v22 = vadd.f32 %v1037_v21, %v9491_v11  ;;  %v1744_v48 = vadd.f32 %v1743_v4, %v9493_v13 }
 0x1b0   : > { %v2439_v56 = vmul.f32 %v10019_v28, %v1036_v59  ;;  %v2569_v34 = vmul.f32 %v10025_v31, %v1742_v33  ;;  %8169 = vmatmul.mubr.msk.bf16.gmra.mrb[200].mxu1 %vm670_vm0, %v9363_v14  ;;  %v10270_v50 = vadd.f32 %v2567_v51, %v2437_v36 }
 0x1b1   : > { %v2440_v38 = vmul.f32 %v10033_v16, %v1038_v22  ;;  %v2570_v10 = vmul.f32 %v10039_v26, %v1744_v48  ;;  %1342 = vmatprep.mubr.bf16.mxu1 %v16075_v23  ;;  %v10275_v9 = vadd.f32 %v2568_v0, %v2438_v41 }
 0x1b2   : > { %16146 = vst [vmem:[#allocation82_spill] sm:$0xff] %v10270_v50  ;;  %v10277_v42 = vadd.f32 %v2569_v34, %v2439_v56 }
 0x1b3   : > { %16147 = vst [vmem:[#allocation83_spill] sm:$0xff] %v10275_v9  ;;  %v1041_v21 = vpop.f32.mrb[96].mxu1  ;;  %v1747_v4 = vpop.f32.mrb[96].mxu0  ;;  %v10279_v59 = vadd.f32 %v2570_v10, %v2440_v38 }
 0x1b4   : > { %16148 = vst [vmem:[#allocation84_spill] sm:$0xff] %v10277_v42  ;;  %v1042_v33 = vadd.f32 %v1041_v21, %v9484_v7  ;;  %v1748_v14 = vadd.f32 %v1747_v4, %v9486_v8  ;;  %v1043_v36 = vpop.f32.mrb[97].mxu1  ;;  %v1749_v51 = vpop.f32.mrb[97].mxu0 }
 0x1b5   : > { %16149 = vst [vmem:[#allocation85_spill] sm:$0xff] %v10279_v59  ;;  %v1044_v22 = vadd.f32 %v1043_v36, %v9491_v11  ;;  %v1750_v48 = vadd.f32 %v1749_v51, %v9493_v13  ;;  %v1045_v50 = vpop.f32.mrb[98].mxu1  ;;  %v1751_v45 = vpop.f32.mrb[98].mxu0 }
 0x1b6   : > { %v2441_v41 = vmul.f32 %v10019_v28, %v1042_v33  ;;  %v2571_v56 = vmul.f32 %v10025_v31, %v1748_v14  ;;  %v1046_v0 = vadd.f32 %v1045_v50, %v9484_v7  ;;  %v1752_v34 = vadd.f32 %v1751_v45, %v9486_v8  ;;  %v1047_v38 = vpop.f32.mrb[99].mxu1  ;;  %v1753_v10 = vpop.f32.mrb[99].mxu0 }
 0x1b7   : > { %v2442_v21 = vmul.f32 %v10033_v16, %v1044_v22  ;;  %v2572_v4 = vmul.f32 %v10039_v26, %v1750_v48  ;;  %v1048_v36 = vadd.f32 %v1047_v38, %v9491_v11  ;;  %v1754_v51 = vadd.f32 %v1753_v10, %v9493_v13 }
 0x1b8   : > { %v2443_v59 = vmul.f32 %v10019_v28, %v1046_v0  ;;  %v2573_v33 = vmul.f32 %v10025_v31, %v1752_v34  ;;  %8170 = vmatmul.mubr.msk.bf16.gmra.mrb[204].mxu1 %vm670_vm0, %v9379_v20  ;;  %v10297_v50 = vadd.f32 %v2571_v56, %v2441_v41 }
 0x1b9   : > { %v2444_v45 = vmul.f32 %v10033_v16, %v1048_v36  ;;  %v2574_v14 = vmul.f32 %v10039_v26, %v1754_v51  ;;  %1352 = vmatprep.mubr.bf16.mxu1 %v16075_v23  ;;  %v10302_v22 = vadd.f32 %v2572_v4, %v2442_v21 }
 0x1ba   : > { %16150 = vst [vmem:[#allocation86_spill] sm:$0xff] %v10297_v50  ;;  %v10304_v48 = vadd.f32 %v2573_v33, %v2443_v59 }
 0x1bb   : > { %16151 = vst [vmem:[#allocation87_spill] sm:$0xff] %v10302_v22  ;;  %v1051_v38 = vpop.f32.mrb[100].mxu1  ;;  %v1757_v10 = vpop.f32.mrb[100].mxu0  ;;  %v10306_v0 = vadd.f32 %v2574_v14, %v2444_v45 }
 0x1bc   : > { %16152 = vst [vmem:[#allocation88_spill] sm:$0xff] %v10304_v48  ;;  %v1052_v34 = vadd.f32 %v1051_v38, %v9484_v7  ;;  %v1758_v20 = vadd.f32 %v1757_v10, %v9486_v8  ;;  %v1053_v41 = vpop.f32.mrb[101].mxu1  ;;  %v1759_v56 = vpop.f32.mrb[101].mxu0 }
 0x1bd   : > { %16153 = vst [vmem:[#allocation89_spill] sm:$0xff] %v10306_v0  ;;  %v1054_v36 = vadd.f32 %v1053_v41, %v9491_v11  ;;  %v1760_v51 = vadd.f32 %v1759_v56, %v9493_v13  ;;  %v1055_v50 = vpop.f32.mrb[102].mxu1  ;;  %v1761_v42 = vpop.f32.mrb[102].mxu0 }
 0x1be   : > { %v2445_v21 = vmul.f32 %v10019_v28, %v1052_v34  ;;  %v2575_v59 = vmul.f32 %v10025_v31, %v1758_v20  ;;  %v1056_v4 = vadd.f32 %v1055_v50, %v9484_v7  ;;  %v1762_v33 = vadd.f32 %v1761_v42, %v9486_v8  ;;  %v1057_v45 = vpop.f32.mrb[103].mxu1  ;;  %v1763_v14 = vpop.f32.mrb[103].mxu0 }
 0x1bf   : > { %v2446_v38 = vmul.f32 %v10033_v16, %v1054_v36  ;;  %v2576_v10 = vmul.f32 %v10039_v26, %v1760_v51  ;;  %v1058_v41 = vadd.f32 %v1057_v45, %v9491_v11  ;;  %v1764_v56 = vadd.f32 %v1763_v14, %v9493_v13 }
 0x1c0   : > { %v2447_v0 = vmul.f32 %v10019_v28, %v1056_v4  ;;  %v2577_v34 = vmul.f32 %v10025_v31, %v1762_v33  ;;  %8171 = vmatmul.mubr.msk.bf16.gmra.mrb[208].mxu1 %vm670_vm0, %v9389_v25  ;;  %v10324_v50 = vadd.f32 %v2575_v59, %v2445_v21 }
 0x1c1   : > { %v2448_v42 = vmul.f32 %v10033_v16, %v1058_v41  ;;  %v2578_v20 = vmul.f32 %v10039_v26, %v1764_v56  ;;  %1362 = vmatprep.mubr.bf16.mxu1 %v16075_v23  ;;  %v10329_v36 = vadd.f32 %v2576_v10, %v2446_v38 }
 0x1c2   : > { %16154 = vst [vmem:[#allocation90_spill] sm:$0xff] %v10324_v50  ;;  %v10331_v51 = vadd.f32 %v2577_v34, %v2447_v0 }
 0x1c3   : > { %16155 = vst [vmem:[#allocation91_spill] sm:$0xff] %v10329_v36  ;;  %v1061_v45 = vpop.f32.mrb[104].mxu1  ;;  %v1767_v14 = vpop.f32.mrb[104].mxu0  ;;  %v10333_v4 = vadd.f32 %v2578_v20, %v2448_v42 }
 0x1c4   : > { %16156 = vst [vmem:[#allocation92_spill] sm:$0xff] %v10331_v51  ;;  %v1062_v33 = vadd.f32 %v1061_v45, %v9484_v7  ;;  %v1768_v25 = vadd.f32 %v1767_v14, %v9486_v8  ;;  %v1063_v21 = vpop.f32.mrb[105].mxu1  ;;  %v1769_v59 = vpop.f32.mrb[105].mxu0 }
 0x1c5   : > { %16157 = vst [vmem:[#allocation93_spill] sm:$0xff] %v10333_v4  ;;  %v1064_v41 = vadd.f32 %v1063_v21, %v9491_v11  ;;  %v1770_v56 = vadd.f32 %v1769_v59, %v9493_v13  ;;  %v1065_v50 = vpop.f32.mrb[106].mxu1  ;;  %v1771_v48 = vpop.f32.mrb[106].mxu0 }
 0x1c6   : > { %v2449_v38 = vmul.f32 %v10019_v28, %v1062_v33  ;;  %v2579_v0 = vmul.f32 %v10025_v31, %v1768_v25  ;;  %v1066_v10 = vadd.f32 %v1065_v50, %v9484_v7  ;;  %v1772_v34 = vadd.f32 %v1771_v48, %v9486_v8  ;;  %v1067_v42 = vpop.f32.mrb[107].mxu1  ;;  %v1773_v20 = vpop.f32.mrb[107].mxu0 }
 0x1c7   : > { %v2450_v45 = vmul.f32 %v10033_v16, %v1064_v41  ;;  %v2580_v14 = vmul.f32 %v10039_v26, %v1770_v56  ;;  %v1068_v21 = vadd.f32 %v1067_v42, %v9491_v11  ;;  %v1774_v59 = vadd.f32 %v1773_v20, %v9493_v13 }
 0x1c8   : > { %v2451_v4 = vmul.f32 %v10019_v28, %v1066_v10  ;;  %v2581_v33 = vmul.f32 %v10025_v31, %v1772_v34  ;;  %8172 = vmatmul.mubr.msk.bf16.gmra.mrb[212].mxu1 %vm670_vm0, %v9405_v32  ;;  %v10351_v50 = vadd.f32 %v2579_v0, %v2449_v38 }
 0x1c9   : > { %v2452_v48 = vmul.f32 %v10033_v16, %v1068_v21  ;;  %v2582_v25 = vmul.f32 %v10039_v26, %v1774_v59  ;;  %1372 = vmatprep.mubr.bf16.mxu1 %v16075_v23  ;;  %v10356_v41 = vadd.f32 %v2580_v14, %v2450_v45 }
 0x1ca   : > { %16158 = vst [vmem:[#allocation94_spill] sm:$0xff] %v10351_v50  ;;  %v10358_v56 = vadd.f32 %v2581_v33, %v2451_v4 }
 0x1cb   : > { %16159 = vst [vmem:[#allocation95_spill] sm:$0xff] %v10356_v41  ;;  %v1071_v42 = vpop.f32.mrb[108].mxu1  ;;  %v1777_v20 = vpop.f32.mrb[108].mxu0  ;;  %v10360_v10 = vadd.f32 %v2582_v25, %v2452_v48 }
 0x1cc   : > { %16160 = vst [vmem:[#allocation96_spill] sm:$0xff] %v10358_v56  ;;  %v1072_v34 = vadd.f32 %v1071_v42, %v9484_v7  ;;  %v1778_v32 = vadd.f32 %v1777_v20, %v9486_v8  ;;  %v1073_v38 = vpop.f32.mrb[109].mxu1  ;;  %v1779_v0 = vpop.f32.mrb[109].mxu0 }
 0x1cd   : > { %16161 = vst [vmem:[#allocation97_spill] sm:$0xff] %v10360_v10  ;;  %v1074_v21 = vadd.f32 %v1073_v38, %v9491_v11  ;;  %v1780_v59 = vadd.f32 %v1779_v0, %v9493_v13  ;;  %v1075_v50 = vpop.f32.mrb[110].mxu1  ;;  %v1781_v51 = vpop.f32.mrb[110].mxu0 }
 0x1ce   : > { %v2453_v45 = vmul.f32 %v10019_v28, %v1072_v34  ;;  %v2583_v4 = vmul.f32 %v10025_v31, %v1778_v32  ;;  %v1076_v14 = vadd.f32 %v1075_v50, %v9484_v7  ;;  %v1782_v33 = vadd.f32 %v1781_v51, %v9486_v8  ;;  %v1077_v48 = vpop.f32.mrb[111].mxu1  ;;  %v1783_v25 = vpop.f32.mrb[111].mxu0 }
 0x1cf   : > { %v2454_v42 = vmul.f32 %v10033_v16, %v1074_v21  ;;  %v2584_v20 = vmul.f32 %v10039_v26, %v1780_v59  ;;  %v1078_v38 = vadd.f32 %v1077_v48, %v9491_v11  ;;  %v1784_v0 = vadd.f32 %v1783_v25, %v9493_v13 }
 0x1d0   : > { %v2455_v10 = vmul.f32 %v10019_v28, %v1076_v14  ;;  %v2585_v34 = vmul.f32 %v10025_v31, %v1782_v33  ;;  %8173 = vmatmul.mubr.msk.bf16.gmra.mrb[216].mxu1 %vm670_vm0, %v9415_v37  ;;  %v10378_v50 = vadd.f32 %v2583_v4, %v2453_v45 }
 0x1d1   : > { %v2456_v51 = vmul.f32 %v10033_v16, %v1078_v38  ;;  %v2586_v32 = vmul.f32 %v10039_v26, %v1784_v0  ;;  %1382 = vmatprep.mubr.bf16.mxu1 %v16075_v23  ;;  %v10383_v21 = vadd.f32 %v2584_v20, %v2454_v42 }
 0x1d2   : > { %16162 = vst [vmem:[#allocation98_spill] sm:$0xff] %v10378_v50  ;;  %v10385_v59 = vadd.f32 %v2585_v34, %v2455_v10 }
 0x1d3   : > { %16163 = vst [vmem:[#allocation99_spill] sm:$0xff] %v10383_v21  ;;  %v1081_v48 = vpop.f32.mrb[112].mxu1  ;;  %v1787_v25 = vpop.f32.mrb[112].mxu0  ;;  %v10387_v14 = vadd.f32 %v2586_v32, %v2456_v51 }
 0x1d4   : > { %16164 = vst [vmem:[#allocation100_spill] sm:$0xff] %v10385_v59  ;;  %v1082_v33 = vadd.f32 %v1081_v48, %v9484_v7  ;;  %v1788_v37 = vadd.f32 %v1787_v25, %v9486_v8  ;;  %v1083_v45 = vpop.f32.mrb[113].mxu1  ;;  %v1789_v4 = vpop.f32.mrb[113].mxu0 }
 0x1d5   : > { %16165 = vst [vmem:[#allocation101_spill] sm:$0xff] %v10387_v14  ;;  %v1084_v38 = vadd.f32 %v1083_v45, %v9491_v11  ;;  %v1790_v0 = vadd.f32 %v1789_v4, %v9493_v13  ;;  %v1085_v50 = vpop.f32.mrb[114].mxu1  ;;  %v1791_v56 = vpop.f32.mrb[114].mxu0 }
 0x1d6   : > { %v2457_v42 = vmul.f32 %v10019_v28, %v1082_v33  ;;  %v2587_v10 = vmul.f32 %v10025_v31, %v1788_v37  ;;  %v1086_v20 = vadd.f32 %v1085_v50, %v9484_v7  ;;  %v1792_v34 = vadd.f32 %v1791_v56, %v9486_v8  ;;  %v1087_v51 = vpop.f32.mrb[115].mxu1  ;;  %v1793_v32 = vpop.f32.mrb[115].mxu0 }
 0x1d7   : > { %v2458_v48 = vmul.f32 %v10033_v16, %v1084_v38  ;;  %v2588_v25 = vmul.f32 %v10039_v26, %v1790_v0  ;;  %v1088_v45 = vadd.f32 %v1087_v51, %v9491_v11  ;;  %v1794_v4 = vadd.f32 %v1793_v32, %v9493_v13 }
 0x1d8   : > { %v2459_v14 = vmul.f32 %v10019_v28, %v1086_v20  ;;  %v2589_v33 = vmul.f32 %v10025_v31, %v1792_v34  ;;  %8174 = vmatmul.mubr.msk.bf16.gmra.mrb[220].mxu1 %vm670_vm0, %v9431_v44  ;;  %v10405_v50 = vadd.f32 %v2587_v10, %v2457_v42 }
 0x1d9   : > { %v2460_v56 = vmul.f32 %v10033_v16, %v1088_v45  ;;  %v2590_v37 = vmul.f32 %v10039_v26, %v1794_v4  ;;  %1392 = vmatprep.mubr.bf16.mxu1 %v16075_v23  ;;  %v10410_v38 = vadd.f32 %v2588_v25, %v2458_v48 }
 0x1da   : > { %16166 = vst [vmem:[#allocation102_spill] sm:$0xff] %v10405_v50  ;;  %v10412_v0 = vadd.f32 %v2589_v33, %v2459_v14 }
 0x1db   : > { %16167 = vst [vmem:[#allocation103_spill] sm:$0xff] %v10410_v38  ;;  %v1091_v51 = vpop.f32.mrb[116].mxu1  ;;  %v1797_v32 = vpop.f32.mrb[116].mxu0  ;;  %v10414_v20 = vadd.f32 %v2590_v37, %v2460_v56 }
 0x1dc   : > { %16168 = vst [vmem:[#allocation104_spill] sm:$0xff] %v10412_v0  ;;  %v1092_v34 = vadd.f32 %v1091_v51, %v9484_v7  ;;  %v1798_v44 = vadd.f32 %v1797_v32, %v9486_v8  ;;  %v1093_v42 = vpop.f32.mrb[117].mxu1  ;;  %v1799_v10 = vpop.f32.mrb[117].mxu0 }
 0x1dd   : > { %16169 = vst [vmem:[#allocation105_spill] sm:$0xff] %v10414_v20  ;;  %v1094_v45 = vadd.f32 %v1093_v42, %v9491_v11  ;;  %v1800_v4 = vadd.f32 %v1799_v10, %v9493_v13  ;;  %v1095_v50 = vpop.f32.mrb[118].mxu1  ;;  %v1801_v59 = vpop.f32.mrb[118].mxu0 }
 0x1de   : > { %v2461_v48 = vmul.f32 %v10019_v28, %v1092_v34  ;;  %v2591_v14 = vmul.f32 %v10025_v31, %v1798_v44  ;;  %v1096_v25 = vadd.f32 %v1095_v50, %v9484_v7  ;;  %v1802_v33 = vadd.f32 %v1801_v59, %v9486_v8  ;;  %v1097_v56 = vpop.f32.mrb[119].mxu1  ;;  %v1803_v37 = vpop.f32.mrb[119].mxu0 }
 0x1df   : > { %v2462_v51 = vmul.f32 %v10033_v16, %v1094_v45  ;;  %v2592_v32 = vmul.f32 %v10039_v26, %v1800_v4  ;;  %v1098_v42 = vadd.f32 %v1097_v56, %v9491_v11  ;;  %v1804_v10 = vadd.f32 %v1803_v37, %v9493_v13 }
 0x1e0   : > { %v2463_v20 = vmul.f32 %v10019_v28, %v1096_v25  ;;  %v2593_v34 = vmul.f32 %v10025_v31, %v1802_v33  ;;  %8175 = vmatmul.mubr.msk.bf16.gmra.mrb[224].mxu1 %vm670_vm0, %v9441_v49  ;;  %v10432_v50 = vadd.f32 %v2591_v14, %v2461_v48 }
 0x1e1   : > { %v2464_v59 = vmul.f32 %v10033_v16, %v1098_v42  ;;  %v2594_v44 = vmul.f32 %v10039_v26, %v1804_v10  ;;  %1402 = vmatprep.mubr.bf16.mxu1 %v16075_v23  ;;  %v10437_v45 = vadd.f32 %v2592_v32, %v2462_v51 }
 0x1e2   : > { %16170 = vst [vmem:[#allocation106_spill] sm:$0xff] %v10432_v50  ;;  %v10439_v4 = vadd.f32 %v2593_v34, %v2463_v20 }
 0x1e3   : > { %16171 = vst [vmem:[#allocation107_spill] sm:$0xff] %v10437_v45  ;;  %v1101_v56 = vpop.f32.mrb[120].mxu1  ;;  %v1807_v37 = vpop.f32.mrb[120].mxu0  ;;  %v10441_v25 = vadd.f32 %v2594_v44, %v2464_v59 }
 0x1e4   : > { %16172 = vst [vmem:[#allocation108_spill] sm:$0xff] %v10439_v4  ;;  %v1102_v33 = vadd.f32 %v1101_v56, %v9484_v7  ;;  %v1808_v49 = vadd.f32 %v1807_v37, %v9486_v8  ;;  %v1103_v48 = vpop.f32.mrb[121].mxu1  ;;  %v1809_v14 = vpop.f32.mrb[121].mxu0 }
 0x1e5   : > { %16173 = vst [vmem:[#allocation109_spill] sm:$0xff] %v10441_v25  ;;  %v1104_v42 = vadd.f32 %v1103_v48, %v9491_v11  ;;  %v1810_v10 = vadd.f32 %v1809_v14, %v9493_v13  ;;  %v1105_v50 = vpop.f32.mrb[122].mxu1  ;;  %v1811_v0 = vpop.f32.mrb[122].mxu0 }
 0x1e6   : > { %v2465_v51 = vmul.f32 %v10019_v28, %v1102_v33  ;;  %v2595_v20 = vmul.f32 %v10025_v31, %v1808_v49  ;;  %v1106_v32 = vadd.f32 %v1105_v50, %v9484_v7  ;;  %v1812_v34 = vadd.f32 %v1811_v0, %v9486_v8  ;;  %v1107_v59 = vpop.f32.mrb[123].mxu1  ;;  %v1813_v44 = vpop.f32.mrb[123].mxu0 }
 0x1e7   : > { %v2466_v56 = vmul.f32 %v10033_v16, %v1104_v42  ;;  %v2596_v37 = vmul.f32 %v10039_v26, %v1810_v10  ;;  %v1108_v48 = vadd.f32 %v1107_v59, %v9491_v11  ;;  %v1814_v14 = vadd.f32 %v1813_v44, %v9493_v13 }
 0x1e8   : > { %v2467_v25 = vmul.f32 %v10019_v28, %v1106_v32  ;;  %v2597_v33 = vmul.f32 %v10025_v31, %v1812_v34  ;;  %8176 = vmatmul.mubr.msk.bf16.gmra.mrb[228].mxu1 %vm670_vm0, %v9457_v55  ;;  %v10459_v50 = vadd.f32 %v2595_v20, %v2465_v51 }
 0x1e9   : > { %v2468_v0 = vmul.f32 %v10033_v16, %v1108_v48  ;;  %v2598_v49 = vmul.f32 %v10039_v26, %v1814_v14  ;;  %1412 = vmatprep.mubr.bf16.mxu1 %v16075_v23  ;;  %v10464_v42 = vadd.f32 %v2596_v37, %v2466_v56  ;;  %v590_v56 = vsub.s32 2, %v9463_v58 }
 0x1ea   : > { %16174 = vst [vmem:[#allocation110_spill] sm:$0xff] %v10459_v50  ;;  %v10466_v10 = vadd.f32 %v2597_v33, %v2467_v25  ;;  %v594_v25 = vsub.s32 3, %v9463_v58 }
 0x1eb   : > { %16175 = vst [vmem:[#allocation111_spill] sm:$0xff] %v10464_v42  ;;  %v1111_v59 = vpop.f32.mrb[124].mxu1  ;;  %v1817_v44 = vpop.f32.mrb[124].mxu0  ;;  %v10468_v32 = vadd.f32 %v2598_v49, %v2468_v0 }
 0x1ec   : > { %16176 = vst [vmem:[#allocation112_spill] sm:$0xff] %v10466_v10  ;;  %v1112_v34 = vadd.f32 %v1111_v59, %v9484_v7  ;;  %v1818_v55 = vadd.f32 %v1817_v44, %v9486_v8  ;;  %v1113_v51 = vpop.f32.mrb[125].mxu1  ;;  %v1819_v20 = vpop.f32.mrb[125].mxu0 }
 0x1ed   : > { %16177 = vst [vmem:[#allocation113_spill] sm:$0xff] %v10468_v32  ;;  %v1114_v48 = vadd.f32 %v1113_v51, %v9491_v11  ;;  %v1820_v14 = vadd.f32 %v1819_v20, %v9493_v13  ;;  %v1115_v50 = vpop.f32.mrb[126].mxu1  ;;  %v1821_v4 = vpop.f32.mrb[126].mxu0 }
 0x1ee   : > { %v2469_v37 = vmul.f32 %v10019_v28, %v1112_v34  ;;  %v2599_v33 = vmul.f32 %v10025_v31, %v1818_v55  ;;  %v1116_v0 = vadd.f32 %v1115_v50, %v9484_v7  ;;  %v1822_v49 = vadd.f32 %v1821_v4, %v9486_v8  ;;  %v1117_v59 = vpop.f32.mrb[127].mxu1  ;;  %v1823_v44 = vpop.f32.mrb[127].mxu0  ;;  %v8939_v50 = vld [vmem:[%s15770_s4] sm:$0x3f] }
 0x1ef   : > { %v2470_v51 = vmul.f32 %v10033_v16, %v1114_v48  ;;  %v2600_v20 = vmul.f32 %v10039_v26, %v1820_v14  ;;  %v1118_v32 = vadd.f32 %v1117_v59, %v9491_v11  ;;  %v1824_v10 = vadd.f32 %v1823_v44, %v9493_v13 }
 0x1f0   : > { %v2471_v42 = vmul.f32 %v10019_v28, %v1116_v0  ;;  %v2601_v34 = vmul.f32 %v10025_v31, %v1822_v49  ;;  %8177 = vmatmul.mubr.msk.bf16.gmra.mrb[232].mxu1 %vm670_vm0, %v9469_v62  ;;  %v10488_v7 = vadd.f32 %v2599_v33, %v2469_v37  ;;  %v10495_v11 = vrot.slane %v8939_v50, %v594_v25 }
 0x1f1   : > { %v2472_v8 = vmul.f32 %v10033_v16, %v1118_v32  ;;  %v2602_v4 = vmul.f32 %v10039_v26, %v1824_v10  ;;  %1422 = vmatprep.mubr.bf16.mxu1 %v16075_v23  ;;  %v10498_v13 = vadd.f32 %v2600_v20, %v2470_v51  ;;  %v10500_v28 = vrot.slane %v8939_v50, %v590_v56 }
 0x1f2   : > { %16178 = vst [vmem:[#allocation114_spill] sm:$0xff] %v10488_v7  ;;  %v10502_v31 = vadd.f32 %v2601_v34, %v2471_v42 }
 0x1f3   : > { %16179 = vst [vmem:[#allocation115_spill] sm:$0xff] %v10498_v13  ;;  %v1154_v62 = vpop.f32.mrb[128].mxu1  ;;  %v10504_v55 = vadd.f32 %v2602_v4, %v2472_v8  ;;  %v471_v13 = vld [vmem:[%s10587_s18 + $0x8] sm:$0xff] }
 0x1f4   : > { %16180 = vst [vmem:[#allocation116_spill] sm:$0xff] %v10502_v31  ;;  %v1156_v16 = vpop.f32.mrb[129].mxu1  ;;  %v1155_v32 = vadd.f32 %v1154_v62, %v10500_v28  ;;  %v470_v31 = vld [vmem:[%s10587_s18] sm:$0xff] }
 0x1f5   : > { %16181 = vst [vmem:[#allocation117_spill] sm:$0xff] %v10504_v55  ;;  %v1157_v26 = vadd.f32 %v1156_v16, %v10495_v11  ;;  %v1158_v10 = vpop.f32.mrb[130].mxu1 }
 0x1f6   : > { %v1159_v48 = vadd.f32 %v1158_v10, %v10500_v28  ;;  %v1160_v14 = vpop.f32.mrb[131].mxu1  ;;  %v10519_v33 = vmul.f32 %v1155_v32, %v1155_v32 }
 0x1f7   : > { %v1161_v25 = vadd.f32 %v1160_v14, %v10495_v11  ;;  %v10514_v42 = vmul.f32 %v1157_v26, %v1157_v26 }
 0x1f8   : > { %v10510_v37 = vmul.f32 %v1159_v48, %v1159_v48  ;;  %8178 = vmatmul.mubr.msk.bf16.gmra.mrb[236].mxu1 %vm670_vm0, %v9526_v40  ;;  %16185 = vst [vmem:[#allocation121_spill] sm:$0xff] %v10519_v33 }
 0x1f9   : > { %16183 = vst [vmem:[#allocation119_spill] sm:$0xff] %v10514_v42  ;;  %v10516_v56 = vmul.f32 %v1161_v25, %v1161_v25  ;;  %1432 = vmatprep.mubr.bf16.mxu1 %v16075_v23 }
 0x1fa   : > { %16182 = vst [vmem:[#allocation118_spill] sm:$0xff] %v10510_v37  ;;  %v2987_v59 = vpack.c.bf16 %v10510_v37, %v10519_v33 }
 0x1fb   : > { %16184 = vst [vmem:[#allocation120_spill] sm:$0xff] %v10516_v56  ;;  %v2988_v0 = vpack.c.bf16 %v10516_v56, %v10514_v42  ;;  %v1164_v49 = vpop.f32.mrb[132].mxu1  ;;  %v16319_v56 = vld [vmem:[#allocation12_spill] sm:$0xff] }
 0x1fc   : > { %v1166_v44 = vpop.f32.mrb[133].mxu1  ;;  %v1165_v40 = vadd.f32 %v1164_v49, %v10500_v28 }
 0x1fd   : > { %v1167_v51 = vadd.f32 %v1166_v44, %v10495_v11  ;;  %v1168_v20 = vpop.f32.mrb[134].mxu1  ;;  %3339 = vmatprep.mubr.bf16.mxu0 %v2988_v0 }
 0x1fe   : > { %v1169_v34 = vadd.f32 %v1168_v20, %v10500_v28  ;;  %v1170_v8 = vpop.f32.mrb[135].mxu1  ;;  %3340 = vmatmul.mubr.bf16.vlgmr.msra.gmra.mrb[128].mxu0 %v2987_v59  ;;  %v10538_v26 = vmul.f32 %v1165_v40, %v1165_v40 }
 0x1ff   : > { %v1171_v4 = vadd.f32 %v1170_v8, %v10495_v11  ;;  %v10533_v62 = vmul.f32 %v1167_v51, %v1167_v51 }
 0x200   : > { %v10529_v50 = vmul.f32 %v1169_v34, %v1169_v34  ;;  %8179 = vmatmul.mubr.msk.bf16.gmra.mrb[240].mxu1 %vm670_vm0, %v9560_v53  ;;  %16189 = vst [vmem:[#allocation125_spill] sm:$0xff] %v10538_v26 }
 0x201   : > { %16187 = vst [vmem:[#allocation123_spill] sm:$0xff] %v10533_v62  ;;  %v10535_v16 = vmul.f32 %v1171_v4, %v1171_v4  ;;  %1442 = vmatprep.mubr.bf16.mxu1 %v16075_v23 }
 0x202   : > { %16186 = vst [vmem:[#allocation122_spill] sm:$0xff] %v10529_v50  ;;  %v2989_v48 = vpack.c.bf16 %v10529_v50, %v10538_v26  ;;  %v16315_v50 = vld [vmem:[#allocation8_spill] sm:$0xff] }
 0x203   : > { %16188 = vst [vmem:[#allocation124_spill] sm:$0xff] %v10535_v16  ;;  %v2990_v10 = vpack.c.bf16 %v10535_v16, %v10533_v62  ;;  %v1174_v32 = vpop.f32.mrb[136].mxu1 }
 0x204   : > { %v1176_v14 = vpop.f32.mrb[137].mxu1  ;;  %v1175_v53 = vadd.f32 %v1174_v32, %v10500_v28 }
 0x205   : > { %v1177_v25 = vadd.f32 %v1176_v14, %v10495_v11  ;;  %v1178_v0 = vpop.f32.mrb[138].mxu1  ;;  %3349 = vmatprep.mubr.bf16.mxu0 %v2990_v10 }
 0x206   : > { %v1179_v49 = vadd.f32 %v1178_v0, %v10500_v28  ;;  %v1180_v59 = vpop.f32.mrb[139].mxu1  ;;  %3350 = vmatmul.mubr.bf16.gmra.mrb[132].mxu0 %v2989_v48  ;;  %v10557_v34 = vmul.f32 %v1175_v53, %v1175_v53 }
 0x207   : > { %v1181_v44 = vadd.f32 %v1180_v59, %v10495_v11  ;;  %v10552_v20 = vmul.f32 %v1177_v25, %v1177_v25 }
 0x208   : > { %v10548_v51 = vmul.f32 %v1179_v49, %v1179_v49  ;;  %8180 = vmatmul.mubr.msk.bf16.gmra.mrb[244].mxu1 %vm670_vm0, %v9600_v63  ;;  %16193 = vst [vmem:[#allocation129_spill] sm:$0xff] %v10557_v34 }
 0x209   : > { %16191 = vst [vmem:[#allocation127_spill] sm:$0xff] %v10552_v20  ;;  %v10554_v40 = vmul.f32 %v1181_v44, %v1181_v44  ;;  %1452 = vmatprep.mubr.bf16.mxu1 %v16075_v23 }
 0x20a   : > { %16190 = vst [vmem:[#allocation126_spill] sm:$0xff] %v10548_v51  ;;  %v2991_v10 = vpack.c.bf16 %v10548_v51, %v10557_v34 }
 0x20b   : > { %16192 = vst [vmem:[#allocation128_spill] sm:$0xff] %v10554_v40  ;;  %v2992_v8 = vpack.c.bf16 %v10554_v40, %v10552_v20  ;;  %v1184_v4 = vpop.f32.mrb[140].mxu1 }
 0x20c   : > { %v1186_v32 = vpop.f32.mrb[141].mxu1  ;;  %v1185_v63 = vadd.f32 %v1184_v4, %v10500_v28 }
 0x20d   : > { %v1187_v48 = vadd.f32 %v1186_v32, %v10495_v11  ;;  %v1188_v14 = vpop.f32.mrb[142].mxu1  ;;  %3359 = vmatprep.mubr.bf16.mxu0 %v2992_v8 }
 0x20e   : > { %v1189_v25 = vadd.f32 %v1188_v14, %v10500_v28  ;;  %v1190_v0 = vpop.f32.mrb[143].mxu1  ;;  %3360 = vmatmul.mubr.bf16.gmra.mrb[136].mxu0 %v2991_v10  ;;  %v10576_v8 = vmul.f32 %v1185_v63, %v1185_v63 }
 0x20f   : > { %v1191_v53 = vadd.f32 %v1190_v0, %v10495_v11  ;;  %v10571_v59 = vmul.f32 %v1187_v48, %v1187_v48 }
 0x210   : > { %v10567_v49 = vmul.f32 %v1189_v25, %v1189_v25  ;;  %8181 = vmatmul.mubr.msk.bf16.gmra.mrb[248].mxu1 %vm670_vm0, %v9634_v35  ;;  %16197 = vst [vmem:[#allocation133_spill] sm:$0xff] %v10576_v8 }
 0x211   : > { %16195 = vst [vmem:[#allocation131_spill] sm:$0xff] %v10571_v59  ;;  %v10573_v44 = vmul.f32 %v1191_v53, %v1191_v53  ;;  %1462 = vmatprep.mubr.bf16.mxu1 %v16075_v23 }
 0x212   : > { %16194 = vst [vmem:[#allocation130_spill] sm:$0xff] %v10567_v49  ;;  %v2993_v10 = vpack.c.bf16 %v10567_v49, %v10576_v8 }
 0x213   : > { %16196 = vst [vmem:[#allocation132_spill] sm:$0xff] %v10573_v44  ;;  %v2994_v4 = vpack.c.bf16 %v10573_v44, %v10571_v59  ;;  %v1194_v32 = vpop.f32.mrb[144].mxu1 }
 0x214   : > { %v1196_v14 = vpop.f32.mrb[145].mxu1  ;;  %v1195_v35 = vadd.f32 %v1194_v32, %v10500_v28 }
 0x215   : > { %v1197_v25 = vadd.f32 %v1196_v14, %v10495_v11  ;;  %v1198_v0 = vpop.f32.mrb[146].mxu1  ;;  %3369 = vmatprep.mubr.bf16.mxu0 %v2994_v4 }
 0x216   : > { %v1199_v48 = vadd.f32 %v1198_v0, %v10500_v28  ;;  %v1200_v63 = vpop.f32.mrb[147].mxu1  ;;  %3370 = vmatmul.mubr.bf16.gmra.mrb[140].mxu0 %v2993_v10  ;;  %v10603_v32 = vmul.f32 %v1195_v35, %v1195_v35 }
 0x217   : > { %v1201_v53 = vadd.f32 %v1200_v63, %v10495_v11  ;;  %v10596_v4 = vmul.f32 %v1197_v25, %v1197_v25 }
 0x218   : > { %v10592_v55 = vmul.f32 %v1199_v48, %v1199_v48  ;;  %8182 = vmatmul.mubr.msk.bf16.gmra.mrb[252].mxu1 %vm670_vm0, %v9674_v43  ;;  %16201 = vst [vmem:[#allocation137_spill] sm:$0xff] %v10603_v32  ;;  %v1826_v43 = vpack.c.bf16 %v471_v13, %v470_v31  ;;  %v472_v13 = vld [vmem:[%s10587_s18 + $0x10] sm:$0xff]  ;;  %v473_v31 = vld [vmem:[%s10587_s18 + $0x18] sm:$0xff] }
 0x219   : > { %16199 = vst [vmem:[#allocation135_spill] sm:$0xff] %v10596_v4  ;;  %v10598_v14 = vmul.f32 %v1201_v53, %v1201_v53  ;;  %2022 = vmatprep.mubr.bf16.mxu1 %v16075_v23 }
 0x21a   : > { %16198 = vst [vmem:[#allocation134_spill] sm:$0xff] %v10592_v55  ;;  %v2995_v48 = vpack.c.bf16 %v10592_v55, %v10603_v32 }
 0x21b   : > { %16200 = vst [vmem:[#allocation136_spill] sm:$0xff] %v10598_v14  ;;  %v2996_v10 = vpack.c.bf16 %v10598_v14, %v10596_v4  ;;  %v1204_v0 = vpop.f32.mrb[148].mxu1 }
 0x21c   : > { %v1206_v63 = vpop.f32.mrb[149].mxu1  ;;  %v1205_v7 = vadd.f32 %v1204_v0, %v10500_v28 }
 0x21d   : > { %v1207_v25 = vadd.f32 %v1206_v63, %v10495_v11  ;;  %v1208_v53 = vpop.f32.mrb[150].mxu1  ;;  %3379 = vmatprep.mubr.bf16.mxu0 %v2996_v10 }
 0x21e   : > { %v1209_v35 = vadd.f32 %v1208_v53, %v10500_v28  ;;  %v1210_v45 = vpop.f32.mrb[151].mxu1  ;;  %3380 = vmatmul.mubr.bf16.gmra.mrb[144].mxu0 %v2995_v48  ;;  %v10623_v10 = vmul.f32 %v1205_v7, %v1205_v7 }
 0x21f   : > { %v1211_v38 = vadd.f32 %v1210_v45, %v10495_v11  ;;  %v10616_v41 = vmul.f32 %v1207_v25, %v1207_v25 }
 0x220   : > { %v10613_v21 = vmul.f32 %v1209_v35, %v1209_v35  ;;  %8219 = vmatmul.mubr.msk.bf16.vlgmr.msra.gmra.mrb[0].mxu1 %vm670_vm0, %v1826_v43  ;;  %16205 = vst [vmem:[#allocation141_spill] sm:$0xff] %v10623_v10  ;;  %v1827_v43 = vpack.c.bf16 %v473_v31, %v472_v13  ;;  %v474_v13 = vld [vmem:[%s10587_s18 + $0x20] sm:$0xff]  ;;  %v475_v31 = vld [vmem:[%s10587_s18 + $0x28] sm:$0xff] }
 0x221   : > { %16203 = vst [vmem:[#allocation139_spill] sm:$0xff] %v10616_v41  ;;  %v10618_v36 = vmul.f32 %v1211_v38, %v1211_v38  ;;  %2032 = vmatprep.mubr.bf16.mxu1 %v16075_v23 }
 0x222   : > { %16202 = vst [vmem:[#allocation138_spill] sm:$0xff] %v10613_v21  ;;  %v2997_v45 = vpack.c.bf16 %v10613_v21, %v10623_v10 }
 0x223   : > { %16204 = vst [vmem:[#allocation140_spill] sm:$0xff] %v10618_v36  ;;  %v2998_v0 = vpack.c.bf16 %v10618_v36, %v10616_v41  ;;  %v1214_v48 = vpop.f32.mrb[152].mxu1  ;;  %v3984_v36 = vld [vmem:[%s10996_s26 + $0x20] sm:$0xff] }
 0x224   : > { %v1216_v63 = vpop.f32.mrb[153].mxu1  ;;  %v1215_v53 = vadd.f32 %v1214_v48, %v10500_v28 }
 0x225   : > { %v1217_v38 = vadd.f32 %v1216_v63, %v10495_v11  ;;  %v1218_v25 = vpop.f32.mrb[154].mxu1  ;;  %3389 = vmatprep.mubr.bf16.mxu0 %v2998_v0 }
 0x226   : > { %v1219_v7 = vadd.f32 %v1218_v25, %v10500_v28  ;;  %v1220_v35 = vpop.f32.mrb[155].mxu1  ;;  %3390 = vmatmul.mubr.bf16.gmra.mrb[148].mxu0 %v2997_v45  ;;  %v10643_v0 = vmul.f32 %v1215_v53, %v1215_v53 }
 0x227   : > { %v1221_v22 = vadd.f32 %v1220_v35, %v10495_v11  ;;  %v10636_v3 = vmul.f32 %v1217_v38, %v1217_v38 }
 0x228   : > { %v10633_v9 = vmul.f32 %v1219_v7, %v1219_v7  ;;  %8220 = vmatmul.mubr.msk.bf16.gmra.mrb[4].mxu1 %vm670_vm0, %v1827_v43  ;;  %16209 = vst [vmem:[#allocation145_spill] sm:$0xff] %v10643_v0  ;;  %v1828_v43 = vpack.c.bf16 %v475_v31, %v474_v13  ;;  %v476_v13 = vld [vmem:[%s10587_s18 + $0x30] sm:$0xff]  ;;  %v477_v31 = vld [vmem:[%s10587_s18 + $0x38] sm:$0xff] }
 0x229   : > { %16207 = vst [vmem:[#allocation143_spill] sm:$0xff] %v10636_v3  ;;  %v10638_v39 = vmul.f32 %v1221_v22, %v1221_v22  ;;  %2042 = vmatprep.mubr.bf16.mxu1 %v16075_v23 }
 0x22a   : > { %16206 = vst [vmem:[#allocation142_spill] sm:$0xff] %v10633_v9  ;;  %v2999_v63 = vpack.c.bf16 %v10633_v9, %v10643_v0 }
 0x22b   : > { %16208 = vst [vmem:[#allocation144_spill] sm:$0xff] %v10638_v39  ;;  %v3000_v48 = vpack.c.bf16 %v10638_v39, %v10636_v3  ;;  %v1224_v45 = vpop.f32.mrb[156].mxu1 }
 0x22c   : > { %v1226_v25 = vpop.f32.mrb[157].mxu1  ;;  %v1225_v7 = vadd.f32 %v1224_v45, %v10500_v28 }
 0x22d   : > { %v1227_v22 = vadd.f32 %v1226_v25, %v10495_v11  ;;  %v1228_v38 = vpop.f32.mrb[158].mxu1  ;;  %3399 = vmatprep.mubr.bf16.mxu0 %v3000_v48 }
 0x22e   : > { %v1229_v53 = vadd.f32 %v1228_v38, %v10500_v28  ;;  %v1230_v35 = vpop.f32.mrb[159].mxu1  ;;  %3400 = vmatmul.mubr.bf16.gmra.mrb[152].mxu0 %v2999_v63  ;;  %v10663_v48 = vmul.f32 %v1225_v7, %v1225_v7 }
 0x22f   : > { %v1231_v39 = vadd.f32 %v1230_v35, %v10495_v11  ;;  %v10656_v9 = vmul.f32 %v1227_v22, %v1227_v22 }
 0x230   : > { %v10653_v3 = vmul.f32 %v1229_v53, %v1229_v53  ;;  %8221 = vmatmul.mubr.msk.bf16.gmra.mrb[8].mxu1 %vm670_vm0, %v1828_v43  ;;  %16213 = vst [vmem:[#allocation149_spill] sm:$0xff] %v10663_v48  ;;  %v1829_v43 = vpack.c.bf16 %v477_v31, %v476_v13  ;;  %v478_v13 = vld [vmem:[%s10587_s18 + $0x40] sm:$0xff]  ;;  %v479_v31 = vld [vmem:[%s10587_s18 + $0x48] sm:$0xff] }
 0x231   : > { %16211 = vst [vmem:[#allocation147_spill] sm:$0xff] %v10656_v9  ;;  %v10658_v0 = vmul.f32 %v1231_v39, %v1231_v39  ;;  %2052 = vmatprep.mubr.bf16.mxu1 %v16075_v23 }
 0x232   : > { %16210 = vst [vmem:[#allocation146_spill] sm:$0xff] %v10653_v3  ;;  %v3001_v25 = vpack.c.bf16 %v10653_v3, %v10663_v48 }
 0x233   : > { %16212 = vst [vmem:[#allocation148_spill] sm:$0xff] %v10658_v0  ;;  %v3002_v45 = vpack.c.bf16 %v10658_v0, %v10656_v9  ;;  %v1234_v63 = vpop.f32.mrb[160].mxu1 }
 0x234   : > { %v1236_v38 = vpop.f32.mrb[161].mxu1  ;;  %v1235_v53 = vadd.f32 %v1234_v63, %v10500_v28 }
 0x235   : > { %v1237_v39 = vadd.f32 %v1236_v38, %v10495_v11  ;;  %v1238_v22 = vpop.f32.mrb[162].mxu1  ;;  %3409 = vmatprep.mubr.bf16.mxu0 %v3002_v45 }
 0x236   : > { %v1239_v7 = vadd.f32 %v1238_v22, %v10500_v28  ;;  %v1240_v35 = vpop.f32.mrb[163].mxu1  ;;  %3410 = vmatmul.mubr.bf16.gmra.mrb[156].mxu0 %v3001_v25  ;;  %v10683_v45 = vmul.f32 %v1235_v53, %v1235_v53 }
 0x237   : > { %v1241_v0 = vadd.f32 %v1240_v35, %v10495_v11  ;;  %v10676_v3 = vmul.f32 %v1237_v39, %v1237_v39 }
 0x238   : > { %v10673_v9 = vmul.f32 %v1239_v7, %v1239_v7  ;;  %8222 = vmatmul.mubr.msk.bf16.gmra.mrb[12].mxu1 %vm670_vm0, %v1829_v43  ;;  %16217 = vst [vmem:[#allocation153_spill] sm:$0xff] %v10683_v45  ;;  %v1830_v43 = vpack.c.bf16 %v479_v31, %v478_v13  ;;  %v480_v13 = vld [vmem:[%s10587_s18 + $0x50] sm:$0xff]  ;;  %v481_v31 = vld [vmem:[%s10587_s18 + $0x58] sm:$0xff] }
 0x239   : > { %16215 = vst [vmem:[#allocation151_spill] sm:$0xff] %v10676_v3  ;;  %v10678_v48 = vmul.f32 %v1241_v0, %v1241_v0  ;;  %2062 = vmatprep.mubr.bf16.mxu1 %v16075_v23 }
 0x23a   : > { %16214 = vst [vmem:[#allocation150_spill] sm:$0xff] %v10673_v9  ;;  %v3003_v38 = vpack.c.bf16 %v10673_v9, %v10683_v45 }
 0x23b   : > { %16216 = vst [vmem:[#allocation152_spill] sm:$0xff] %v10678_v48  ;;  %v3004_v63 = vpack.c.bf16 %v10678_v48, %v10676_v3  ;;  %v1244_v25 = vpop.f32.mrb[164].mxu1 }
 0x23c   : > { %v1246_v22 = vpop.f32.mrb[165].mxu1  ;;  %v1245_v7 = vadd.f32 %v1244_v25, %v10500_v28 }
 0x23d   : > { %v1247_v0 = vadd.f32 %v1246_v22, %v10495_v11  ;;  %v1248_v39 = vpop.f32.mrb[166].mxu1  ;;  %3419 = vmatprep.mubr.bf16.mxu0 %v3004_v63 }
 0x23e   : > { %v1249_v53 = vadd.f32 %v1248_v39, %v10500_v28  ;;  %v1250_v35 = vpop.f32.mrb[167].mxu1  ;;  %3420 = vmatmul.mubr.bf16.gmra.mrb[160].mxu0 %v3003_v38  ;;  %v10703_v63 = vmul.f32 %v1245_v7, %v1245_v7 }
 0x23f   : > { %v1251_v48 = vadd.f32 %v1250_v35, %v10495_v11  ;;  %v10696_v9 = vmul.f32 %v1247_v0, %v1247_v0 }
 0x240   : > { %v10693_v3 = vmul.f32 %v1249_v53, %v1249_v53  ;;  %8223 = vmatmul.mubr.msk.bf16.gmra.mrb[16].mxu1 %vm670_vm0, %v1830_v43  ;;  %16221 = vst [vmem:[#allocation157_spill] sm:$0xff] %v10703_v63  ;;  %v1831_v43 = vpack.c.bf16 %v481_v31, %v480_v13  ;;  %v482_v13 = vld [vmem:[%s10587_s18 + $0x60] sm:$0xff]  ;;  %v483_v31 = vld [vmem:[%s10587_s18 + $0x68] sm:$0xff] }
 0x241   : > { %16219 = vst [vmem:[#allocation155_spill] sm:$0xff] %v10696_v9  ;;  %v10698_v45 = vmul.f32 %v1251_v48, %v1251_v48  ;;  %2072 = vmatprep.mubr.bf16.mxu1 %v16075_v23 }
 0x242   : > { %16218 = vst [vmem:[#allocation154_spill] sm:$0xff] %v10693_v3  ;;  %v3005_v22 = vpack.c.bf16 %v10693_v3, %v10703_v63 }
 0x243   : > { %16220 = vst [vmem:[#allocation156_spill] sm:$0xff] %v10698_v45  ;;  %v3006_v25 = vpack.c.bf16 %v10698_v45, %v10696_v9  ;;  %v1254_v38 = vpop.f32.mrb[168].mxu1 }
 0x244   : > { %v1256_v39 = vpop.f32.mrb[169].mxu1  ;;  %v1255_v53 = vadd.f32 %v1254_v38, %v10500_v28 }
 0x245   : > { %v1257_v48 = vadd.f32 %v1256_v39, %v10495_v11  ;;  %v1258_v0 = vpop.f32.mrb[170].mxu1  ;;  %3429 = vmatprep.mubr.bf16.mxu0 %v3006_v25 }
 0x246   : > { %v1259_v7 = vadd.f32 %v1258_v0, %v10500_v28  ;;  %v1260_v35 = vpop.f32.mrb[171].mxu1  ;;  %3430 = vmatmul.mubr.bf16.gmra.mrb[164].mxu0 %v3005_v22  ;;  %v10723_v25 = vmul.f32 %v1255_v53, %v1255_v53 }
 0x247   : > { %v1261_v45 = vadd.f32 %v1260_v35, %v10495_v11  ;;  %v10716_v3 = vmul.f32 %v1257_v48, %v1257_v48 }
 0x248   : > { %v10713_v9 = vmul.f32 %v1259_v7, %v1259_v7  ;;  %8224 = vmatmul.mubr.msk.bf16.gmra.mrb[20].mxu1 %vm670_vm0, %v1831_v43  ;;  %16225 = vst [vmem:[#allocation161_spill] sm:$0xff] %v10723_v25  ;;  %v1832_v43 = vpack.c.bf16 %v483_v31, %v482_v13  ;;  %v484_v13 = vld [vmem:[%s10587_s18 + $0x70] sm:$0xff]  ;;  %v485_v31 = vld [vmem:[%s10587_s18 + $0x78] sm:$0xff] }
 0x249   : > { %16223 = vst [vmem:[#allocation159_spill] sm:$0xff] %v10716_v3  ;;  %v10718_v63 = vmul.f32 %v1261_v45, %v1261_v45  ;;  %2082 = vmatprep.mubr.bf16.mxu1 %v16075_v23 }
 0x24a   : > { %16222 = vst [vmem:[#allocation158_spill] sm:$0xff] %v10713_v9  ;;  %v3007_v39 = vpack.c.bf16 %v10713_v9, %v10723_v25 }
 0x24b   : > { %16224 = vst [vmem:[#allocation160_spill] sm:$0xff] %v10718_v63  ;;  %v3008_v38 = vpack.c.bf16 %v10718_v63, %v10716_v3  ;;  %v1264_v22 = vpop.f32.mrb[172].mxu1 }
 0x24c   : > { %v1266_v0 = vpop.f32.mrb[173].mxu1  ;;  %v1265_v7 = vadd.f32 %v1264_v22, %v10500_v28 }
 0x24d   : > { %v1267_v45 = vadd.f32 %v1266_v0, %v10495_v11  ;;  %v1268_v48 = vpop.f32.mrb[174].mxu1  ;;  %3439 = vmatprep.mubr.bf16.mxu0 %v3008_v38 }
 0x24e   : > { %v1269_v53 = vadd.f32 %v1268_v48, %v10500_v28  ;;  %v1270_v35 = vpop.f32.mrb[175].mxu1  ;;  %3440 = vmatmul.mubr.bf16.gmra.mrb[168].mxu0 %v3007_v39  ;;  %v10743_v38 = vmul.f32 %v1265_v7, %v1265_v7 }
 0x24f   : > { %v1271_v63 = vadd.f32 %v1270_v35, %v10495_v11  ;;  %v10736_v9 = vmul.f32 %v1267_v45, %v1267_v45 }
 0x250   : > { %v10733_v3 = vmul.f32 %v1269_v53, %v1269_v53  ;;  %8225 = vmatmul.mubr.msk.bf16.gmra.mrb[24].mxu1 %vm670_vm0, %v1832_v43  ;;  %16229 = vst [vmem:[#allocation165_spill] sm:$0xff] %v10743_v38  ;;  %v1833_v43 = vpack.c.bf16 %v485_v31, %v484_v13  ;;  %v486_v13 = vld [vmem:[%s10587_s18 + $0x80] sm:$0xff]  ;;  %v487_v31 = vld [vmem:[%s10587_s18 + $0x88] sm:$0xff] }
 0x251   : > { %16227 = vst [vmem:[#allocation163_spill] sm:$0xff] %v10736_v9  ;;  %v10738_v25 = vmul.f32 %v1271_v63, %v1271_v63  ;;  %2092 = vmatprep.mubr.bf16.mxu1 %v16075_v23 }
 0x252   : > { %16226 = vst [vmem:[#allocation162_spill] sm:$0xff] %v10733_v3  ;;  %v3009_v0 = vpack.c.bf16 %v10733_v3, %v10743_v38 }
 0x253   : > { %16228 = vst [vmem:[#allocation164_spill] sm:$0xff] %v10738_v25  ;;  %v3010_v22 = vpack.c.bf16 %v10738_v25, %v10736_v9  ;;  %v1274_v39 = vpop.f32.mrb[176].mxu1 }
 0x254   : > { %v1276_v48 = vpop.f32.mrb[177].mxu1  ;;  %v1275_v53 = vadd.f32 %v1274_v39, %v10500_v28 }
 0x255   : > { %v1277_v63 = vadd.f32 %v1276_v48, %v10495_v11  ;;  %v1278_v45 = vpop.f32.mrb[178].mxu1  ;;  %3449 = vmatprep.mubr.bf16.mxu0 %v3010_v22 }
 0x256   : > { %v1279_v7 = vadd.f32 %v1278_v45, %v10500_v28  ;;  %v1280_v35 = vpop.f32.mrb[179].mxu1  ;;  %3450 = vmatmul.mubr.bf16.gmra.mrb[172].mxu0 %v3009_v0  ;;  %v10763_v22 = vmul.f32 %v1275_v53, %v1275_v53 }
 0x257   : > { %v1281_v25 = vadd.f32 %v1280_v35, %v10495_v11  ;;  %v10756_v3 = vmul.f32 %v1277_v63, %v1277_v63 }
 0x258   : > { %v10753_v9 = vmul.f32 %v1279_v7, %v1279_v7  ;;  %8226 = vmatmul.mubr.msk.bf16.gmra.mrb[28].mxu1 %vm670_vm0, %v1833_v43  ;;  %16233 = vst [vmem:[#allocation169_spill] sm:$0xff] %v10763_v22  ;;  %v1834_v43 = vpack.c.bf16 %v487_v31, %v486_v13  ;;  %v488_v13 = vld [vmem:[%s10587_s18 + $0x90] sm:$0xff]  ;;  %v489_v31 = vld [vmem:[%s10587_s18 + $0x98] sm:$0xff] }
 0x259   : > { %16231 = vst [vmem:[#allocation167_spill] sm:$0xff] %v10756_v3  ;;  %v10758_v38 = vmul.f32 %v1281_v25, %v1281_v25  ;;  %2102 = vmatprep.mubr.bf16.mxu1 %v16075_v23 }
 0x25a   : > { %16230 = vst [vmem:[#allocation166_spill] sm:$0xff] %v10753_v9  ;;  %v3011_v48 = vpack.c.bf16 %v10753_v9, %v10763_v22 }
 0x25b   : > { %16232 = vst [vmem:[#allocation168_spill] sm:$0xff] %v10758_v38  ;;  %v3012_v39 = vpack.c.bf16 %v10758_v38, %v10756_v3  ;;  %v1284_v0 = vpop.f32.mrb[180].mxu1 }
 0x25c   : > { %v1286_v45 = vpop.f32.mrb[181].mxu1  ;;  %v1285_v7 = vadd.f32 %v1284_v0, %v10500_v28 }
 0x25d   : > { %v1287_v25 = vadd.f32 %v1286_v45, %v10495_v11  ;;  %v1288_v63 = vpop.f32.mrb[182].mxu1  ;;  %3459 = vmatprep.mubr.bf16.mxu0 %v3012_v39 }
 0x25e   : > { %v1289_v53 = vadd.f32 %v1288_v63, %v10500_v28  ;;  %v1290_v35 = vpop.f32.mrb[183].mxu1  ;;  %3460 = vmatmul.mubr.bf16.gmra.mrb[176].mxu0 %v3011_v48  ;;  %v10783_v39 = vmul.f32 %v1285_v7, %v1285_v7 }
 0x25f   : > { %v1291_v38 = vadd.f32 %v1290_v35, %v10495_v11  ;;  %v10776_v9 = vmul.f32 %v1287_v25, %v1287_v25 }
 0x260   : > { %v10773_v3 = vmul.f32 %v1289_v53, %v1289_v53  ;;  %8227 = vmatmul.mubr.msk.bf16.gmra.mrb[32].mxu1 %vm670_vm0, %v1834_v43  ;;  %16237 = vst [vmem:[#allocation173_spill] sm:$0xff] %v10783_v39  ;;  %v1835_v43 = vpack.c.bf16 %v489_v31, %v488_v13  ;;  %v490_v13 = vld [vmem:[%s10587_s18 + $0xa0] sm:$0xff]  ;;  %v491_v31 = vld [vmem:[%s10587_s18 + $0xa8] sm:$0xff] }
 0x261   : > { %16235 = vst [vmem:[#allocation171_spill] sm:$0xff] %v10776_v9  ;;  %v10778_v22 = vmul.f32 %v1291_v38, %v1291_v38  ;;  %2112 = vmatprep.mubr.bf16.mxu1 %v16075_v23 }
 0x262   : > { %16234 = vst [vmem:[#allocation170_spill] sm:$0xff] %v10773_v3  ;;  %v3013_v45 = vpack.c.bf16 %v10773_v3, %v10783_v39 }
 0x263   : > { %16236 = vst [vmem:[#allocation172_spill] sm:$0xff] %v10778_v22  ;;  %v3014_v0 = vpack.c.bf16 %v10778_v22, %v10776_v9  ;;  %v1294_v48 = vpop.f32.mrb[184].mxu1 }
 0x264   : > { %v1296_v63 = vpop.f32.mrb[185].mxu1  ;;  %v1295_v53 = vadd.f32 %v1294_v48, %v10500_v28 }
 0x265   : > { %v1297_v38 = vadd.f32 %v1296_v63, %v10495_v11  ;;  %v1298_v25 = vpop.f32.mrb[186].mxu1  ;;  %3469 = vmatprep.mubr.bf16.mxu0 %v3014_v0 }
 0x266   : > { %v1299_v7 = vadd.f32 %v1298_v25, %v10500_v28  ;;  %v1300_v35 = vpop.f32.mrb[187].mxu1  ;;  %3470 = vmatmul.mubr.bf16.gmra.mrb[180].mxu0 %v3013_v45  ;;  %v10803_v0 = vmul.f32 %v1295_v53, %v1295_v53 }
 0x267   : > { %v1301_v22 = vadd.f32 %v1300_v35, %v10495_v11  ;;  %v10796_v3 = vmul.f32 %v1297_v38, %v1297_v38 }
 0x268   : > { %v10793_v9 = vmul.f32 %v1299_v7, %v1299_v7  ;;  %8228 = vmatmul.mubr.msk.bf16.gmra.mrb[36].mxu1 %vm670_vm0, %v1835_v43  ;;  %16241 = vst [vmem:[#allocation177_spill] sm:$0xff] %v10803_v0  ;;  %v1836_v43 = vpack.c.bf16 %v491_v31, %v490_v13  ;;  %v492_v13 = vld [vmem:[%s10587_s18 + $0xb0] sm:$0xff]  ;;  %v493_v31 = vld [vmem:[%s10587_s18 + $0xb8] sm:$0xff] }
 0x269   : > { %16239 = vst [vmem:[#allocation175_spill] sm:$0xff] %v10796_v3  ;;  %v10798_v39 = vmul.f32 %v1301_v22, %v1301_v22  ;;  %2122 = vmatprep.mubr.bf16.mxu1 %v16075_v23 }
 0x26a   : > { %16238 = vst [vmem:[#allocation174_spill] sm:$0xff] %v10793_v9  ;;  %v3015_v63 = vpack.c.bf16 %v10793_v9, %v10803_v0 }
 0x26b   : > { %16240 = vst [vmem:[#allocation176_spill] sm:$0xff] %v10798_v39  ;;  %v3016_v48 = vpack.c.bf16 %v10798_v39, %v10796_v3  ;;  %v1304_v45 = vpop.f32.mrb[188].mxu1 }
 0x26c   : > { %v1306_v25 = vpop.f32.mrb[189].mxu1  ;;  %v1305_v7 = vadd.f32 %v1304_v45, %v10500_v28 }
 0x26d   : > { %v1307_v22 = vadd.f32 %v1306_v25, %v10495_v11  ;;  %v1308_v38 = vpop.f32.mrb[190].mxu1  ;;  %3479 = vmatprep.mubr.bf16.mxu0 %v3016_v48 }
 0x26e   : > { %v1309_v53 = vadd.f32 %v1308_v38, %v10500_v28  ;;  %v1310_v35 = vpop.f32.mrb[191].mxu1  ;;  %3480 = vmatmul.mubr.bf16.gmra.mrb[184].mxu0 %v3015_v63  ;;  %v10823_v48 = vmul.f32 %v1305_v7, %v1305_v7 }
 0x26f   : > { %v1311_v39 = vadd.f32 %v1310_v35, %v10495_v11  ;;  %v10816_v9 = vmul.f32 %v1307_v22, %v1307_v22 }
 0x270   : > { %v10813_v3 = vmul.f32 %v1309_v53, %v1309_v53  ;;  %8229 = vmatmul.mubr.msk.bf16.gmra.mrb[40].mxu1 %vm670_vm0, %v1836_v43  ;;  %16245 = vst [vmem:[#allocation181_spill] sm:$0xff] %v10823_v48  ;;  %v1837_v43 = vpack.c.bf16 %v493_v31, %v492_v13  ;;  %v494_v13 = vld [vmem:[%s10587_s18 + $0xc0] sm:$0xff]  ;;  %v495_v31 = vld [vmem:[%s10587_s18 + $0xc8] sm:$0xff] }
 0x271   : > { %16243 = vst [vmem:[#allocation179_spill] sm:$0xff] %v10816_v9  ;;  %v10818_v0 = vmul.f32 %v1311_v39, %v1311_v39  ;;  %2132 = vmatprep.mubr.bf16.mxu1 %v16075_v23 }
 0x272   : > { %16242 = vst [vmem:[#allocation178_spill] sm:$0xff] %v10813_v3  ;;  %v3017_v25 = vpack.c.bf16 %v10813_v3, %v10823_v48 }
 0x273   : > { %16244 = vst [vmem:[#allocation180_spill] sm:$0xff] %v10818_v0  ;;  %v3018_v45 = vpack.c.bf16 %v10818_v0, %v10816_v9  ;;  %v1314_v63 = vpop.f32.mrb[192].mxu1 }
 0x274   : > { %v1316_v38 = vpop.f32.mrb[193].mxu1  ;;  %v1315_v53 = vadd.f32 %v1314_v63, %v10500_v28 }
 0x275   : > { %v1317_v39 = vadd.f32 %v1316_v38, %v10495_v11  ;;  %v1318_v22 = vpop.f32.mrb[194].mxu1  ;;  %3489 = vmatprep.mubr.bf16.mxu0 %v3018_v45 }
 0x276   : > { %v1319_v7 = vadd.f32 %v1318_v22, %v10500_v28  ;;  %v1320_v35 = vpop.f32.mrb[195].mxu1  ;;  %3490 = vmatmul.mubr.bf16.gmra.mrb[188].mxu0 %v3017_v25  ;;  %v10843_v45 = vmul.f32 %v1315_v53, %v1315_v53 }
 0x277   : > { %v1321_v0 = vadd.f32 %v1320_v35, %v10495_v11  ;;  %v10836_v3 = vmul.f32 %v1317_v39, %v1317_v39 }
 0x278   : > { %v10833_v9 = vmul.f32 %v1319_v7, %v1319_v7  ;;  %8230 = vmatmul.mubr.msk.bf16.gmra.mrb[44].mxu1 %vm670_vm0, %v1837_v43  ;;  %16249 = vst [vmem:[#allocation185_spill] sm:$0xff] %v10843_v45  ;;  %v1838_v43 = vpack.c.bf16 %v495_v31, %v494_v13  ;;  %v496_v13 = vld [vmem:[%s10587_s18 + $0xd0] sm:$0xff]  ;;  %v497_v31 = vld [vmem:[%s10587_s18 + $0xd8] sm:$0xff] }
 0x279   : > { %16247 = vst [vmem:[#allocation183_spill] sm:$0xff] %v10836_v3  ;;  %v10838_v48 = vmul.f32 %v1321_v0, %v1321_v0  ;;  %2142 = vmatprep.mubr.bf16.mxu1 %v16075_v23 }
 0x27a   : > { %16246 = vst [vmem:[#allocation182_spill] sm:$0xff] %v10833_v9  ;;  %v3019_v38 = vpack.c.bf16 %v10833_v9, %v10843_v45 }
 0x27b   : > { %16248 = vst [vmem:[#allocation184_spill] sm:$0xff] %v10838_v48  ;;  %v3020_v63 = vpack.c.bf16 %v10838_v48, %v10836_v3  ;;  %v1324_v25 = vpop.f32.mrb[196].mxu1 }
 0x27c   : > { %v1326_v22 = vpop.f32.mrb[197].mxu1  ;;  %v1325_v7 = vadd.f32 %v1324_v25, %v10500_v28 }
 0x27d   : > { %v1327_v0 = vadd.f32 %v1326_v22, %v10495_v11  ;;  %v1328_v39 = vpop.f32.mrb[198].mxu1  ;;  %3499 = vmatprep.mubr.bf16.mxu0 %v3020_v63 }
 0x27e   : > { %v1329_v53 = vadd.f32 %v1328_v39, %v10500_v28  ;;  %v1330_v35 = vpop.f32.mrb[199].mxu1  ;;  %3500 = vmatmul.mubr.bf16.gmra.mrb[192].mxu0 %v3019_v38  ;;  %v10863_v63 = vmul.f32 %v1325_v7, %v1325_v7 }
 0x27f   : > { %v1331_v48 = vadd.f32 %v1330_v35, %v10495_v11  ;;  %v10856_v9 = vmul.f32 %v1327_v0, %v1327_v0 }
 0x280   : > { %v10853_v3 = vmul.f32 %v1329_v53, %v1329_v53  ;;  %8231 = vmatmul.mubr.msk.bf16.gmra.mrb[48].mxu1 %vm670_vm0, %v1838_v43  ;;  %16253 = vst [vmem:[#allocation189_spill] sm:$0xff] %v10863_v63  ;;  %v1839_v43 = vpack.c.bf16 %v497_v31, %v496_v13  ;;  %v498_v13 = vld [vmem:[%s10587_s18 + $0xe0] sm:$0xff]  ;;  %v499_v31 = vld [vmem:[%s10587_s18 + $0xe8] sm:$0xff] }
 0x281   : > { %16251 = vst [vmem:[#allocation187_spill] sm:$0xff] %v10856_v9  ;;  %v10858_v45 = vmul.f32 %v1331_v48, %v1331_v48  ;;  %2152 = vmatprep.mubr.bf16.mxu1 %v16075_v23 }
 0x282   : > { %16250 = vst [vmem:[#allocation186_spill] sm:$0xff] %v10853_v3  ;;  %v3021_v22 = vpack.c.bf16 %v10853_v3, %v10863_v63 }
 0x283   : > { %16252 = vst [vmem:[#allocation188_spill] sm:$0xff] %v10858_v45  ;;  %v3022_v25 = vpack.c.bf16 %v10858_v45, %v10856_v9  ;;  %v1334_v38 = vpop.f32.mrb[200].mxu1 }
 0x284   : > { %v1336_v39 = vpop.f32.mrb[201].mxu1  ;;  %v1335_v53 = vadd.f32 %v1334_v38, %v10500_v28 }
 0x285   : > { %v1337_v48 = vadd.f32 %v1336_v39, %v10495_v11  ;;  %v1338_v0 = vpop.f32.mrb[202].mxu1  ;;  %3509 = vmatprep.mubr.bf16.mxu0 %v3022_v25 }
 0x286   : > { %v1339_v7 = vadd.f32 %v1338_v0, %v10500_v28  ;;  %v1340_v35 = vpop.f32.mrb[203].mxu1  ;;  %3510 = vmatmul.mubr.bf16.gmra.mrb[196].mxu0 %v3021_v22  ;;  %v10883_v25 = vmul.f32 %v1335_v53, %v1335_v53 }
 0x287   : > { %v1341_v45 = vadd.f32 %v1340_v35, %v10495_v11  ;;  %v10876_v3 = vmul.f32 %v1337_v48, %v1337_v48 }
 0x288   : > { %v10873_v9 = vmul.f32 %v1339_v7, %v1339_v7  ;;  %8232 = vmatmul.mubr.msk.bf16.gmra.mrb[52].mxu1 %vm670_vm0, %v1839_v43  ;;  %16257 = vst [vmem:[#allocation193_spill] sm:$0xff] %v10883_v25  ;;  %v1840_v43 = vpack.c.bf16 %v499_v31, %v498_v13  ;;  %v500_v13 = vld [vmem:[%s10587_s18 + $0xf0] sm:$0xff]  ;;  %v501_v31 = vld [vmem:[%s10587_s18 + $0xf8] sm:$0xff] }
 0x289   : > { %16255 = vst [vmem:[#allocation191_spill] sm:$0xff] %v10876_v3  ;;  %v10878_v63 = vmul.f32 %v1341_v45, %v1341_v45  ;;  %2162 = vmatprep.mubr.bf16.mxu1 %v16075_v23 }
 0x28a   : > { %16254 = vst [vmem:[#allocation190_spill] sm:$0xff] %v10873_v9  ;;  %v3023_v39 = vpack.c.bf16 %v10873_v9, %v10883_v25 }
 0x28b   : > { %16256 = vst [vmem:[#allocation192_spill] sm:$0xff] %v10878_v63  ;;  %v3024_v38 = vpack.c.bf16 %v10878_v63, %v10876_v3  ;;  %v1344_v22 = vpop.f32.mrb[204].mxu1 }
 0x28c   : > { %v1346_v0 = vpop.f32.mrb[205].mxu1  ;;  %v1345_v7 = vadd.f32 %v1344_v22, %v10500_v28 }
 0x28d   : > { %v1347_v45 = vadd.f32 %v1346_v0, %v10495_v11  ;;  %v1348_v48 = vpop.f32.mrb[206].mxu1  ;;  %3519 = vmatprep.mubr.bf16.mxu0 %v3024_v38 }
 0x28e   : > { %v1349_v53 = vadd.f32 %v1348_v48, %v10500_v28  ;;  %v1350_v35 = vpop.f32.mrb[207].mxu1  ;;  %3520 = vmatmul.mubr.bf16.gmra.mrb[200].mxu0 %v3023_v39  ;;  %v10903_v38 = vmul.f32 %v1345_v7, %v1345_v7 }
 0x28f   : > { %v1351_v63 = vadd.f32 %v1350_v35, %v10495_v11  ;;  %v10896_v9 = vmul.f32 %v1347_v45, %v1347_v45 }
 0x290   : > { %v10893_v3 = vmul.f32 %v1349_v53, %v1349_v53  ;;  %8233 = vmatmul.mubr.msk.bf16.gmra.mrb[56].mxu1 %vm670_vm0, %v1840_v43  ;;  %16261 = vst [vmem:[#allocation197_spill] sm:$0xff] %v10903_v38  ;;  %v1841_v43 = vpack.c.bf16 %v501_v31, %v500_v13  ;;  %v502_v13 = vld [vmem:[%s10587_s18 + $0x100] sm:$0xff]  ;;  %v503_v31 = vld [vmem:[%s10587_s18 + $0x108] sm:$0xff] }
 0x291   : > { %16259 = vst [vmem:[#allocation195_spill] sm:$0xff] %v10896_v9  ;;  %v10898_v25 = vmul.f32 %v1351_v63, %v1351_v63  ;;  %2172 = vmatprep.mubr.bf16.mxu1 %v16075_v23 }
 0x292   : > { %16258 = vst [vmem:[#allocation194_spill] sm:$0xff] %v10893_v3  ;;  %v3025_v0 = vpack.c.bf16 %v10893_v3, %v10903_v38 }
 0x293   : > { %16260 = vst [vmem:[#allocation196_spill] sm:$0xff] %v10898_v25  ;;  %v3026_v22 = vpack.c.bf16 %v10898_v25, %v10896_v9  ;;  %v1354_v39 = vpop.f32.mrb[208].mxu1 }
 0x294   : > { %v1356_v48 = vpop.f32.mrb[209].mxu1  ;;  %v1355_v53 = vadd.f32 %v1354_v39, %v10500_v28 }
 0x295   : > { %v1357_v63 = vadd.f32 %v1356_v48, %v10495_v11  ;;  %v1358_v45 = vpop.f32.mrb[210].mxu1  ;;  %3529 = vmatprep.mubr.bf16.mxu0 %v3026_v22 }
 0x296   : > { %v1359_v7 = vadd.f32 %v1358_v45, %v10500_v28  ;;  %v1360_v35 = vpop.f32.mrb[211].mxu1  ;;  %3530 = vmatmul.mubr.bf16.gmra.mrb[204].mxu0 %v3025_v0  ;;  %v10923_v22 = vmul.f32 %v1355_v53, %v1355_v53 }
 0x297   : > { %v1361_v25 = vadd.f32 %v1360_v35, %v10495_v11  ;;  %v10916_v3 = vmul.f32 %v1357_v63, %v1357_v63 }
 0x298   : > { %v10913_v9 = vmul.f32 %v1359_v7, %v1359_v7  ;;  %8234 = vmatmul.mubr.msk.bf16.gmra.mrb[60].mxu1 %vm670_vm0, %v1841_v43  ;;  %16265 = vst [vmem:[#allocation201_spill] sm:$0xff] %v10923_v22  ;;  %v1842_v43 = vpack.c.bf16 %v503_v31, %v502_v13  ;;  %v504_v13 = vld [vmem:[%s10587_s18 + $0x110] sm:$0xff]  ;;  %v505_v31 = vld [vmem:[%s10587_s18 + $0x118] sm:$0xff] }
 0x299   : > { %16263 = vst [vmem:[#allocation199_spill] sm:$0xff] %v10916_v3  ;;  %v10918_v38 = vmul.f32 %v1361_v25, %v1361_v25  ;;  %2182 = vmatprep.mubr.bf16.mxu1 %v16075_v23 }
 0x29a   : > { %16262 = vst [vmem:[#allocation198_spill] sm:$0xff] %v10913_v9  ;;  %v3027_v48 = vpack.c.bf16 %v10913_v9, %v10923_v22 }
 0x29b   : > { %16264 = vst [vmem:[#allocation200_spill] sm:$0xff] %v10918_v38  ;;  %v3028_v39 = vpack.c.bf16 %v10918_v38, %v10916_v3  ;;  %v1364_v0 = vpop.f32.mrb[212].mxu1 }
 0x29c   : > { %v1366_v45 = vpop.f32.mrb[213].mxu1  ;;  %v1365_v7 = vadd.f32 %v1364_v0, %v10500_v28 }
 0x29d   : > { %v1367_v25 = vadd.f32 %v1366_v45, %v10495_v11  ;;  %v1368_v63 = vpop.f32.mrb[214].mxu1  ;;  %3539 = vmatprep.mubr.bf16.mxu0 %v3028_v39 }
 0x29e   : > { %v1369_v53 = vadd.f32 %v1368_v63, %v10500_v28  ;;  %v1370_v35 = vpop.f32.mrb[215].mxu1  ;;  %3540 = vmatmul.mubr.bf16.gmra.mrb[208].mxu0 %v3027_v48  ;;  %v10943_v39 = vmul.f32 %v1365_v7, %v1365_v7 }
 0x29f   : > { %v1371_v38 = vadd.f32 %v1370_v35, %v10495_v11  ;;  %v10936_v9 = vmul.f32 %v1367_v25, %v1367_v25 }
 0x2a0   : > { %v10933_v3 = vmul.f32 %v1369_v53, %v1369_v53  ;;  %8235 = vmatmul.mubr.msk.bf16.gmra.mrb[64].mxu1 %vm670_vm0, %v1842_v43  ;;  %16269 = vst [vmem:[#allocation205_spill] sm:$0xff] %v10943_v39  ;;  %v1843_v43 = vpack.c.bf16 %v505_v31, %v504_v13  ;;  %v506_v13 = vld [vmem:[%s10587_s18 + $0x120] sm:$0xff]  ;;  %v507_v31 = vld [vmem:[%s10587_s18 + $0x128] sm:$0xff] }
 0x2a1   : > { %16267 = vst [vmem:[#allocation203_spill] sm:$0xff] %v10936_v9  ;;  %v10938_v22 = vmul.f32 %v1371_v38, %v1371_v38  ;;  %2192 = vmatprep.mubr.bf16.mxu1 %v16075_v23 }
 0x2a2   : > { %16266 = vst [vmem:[#allocation202_spill] sm:$0xff] %v10933_v3  ;;  %v3029_v45 = vpack.c.bf16 %v10933_v3, %v10943_v39 }
 0x2a3   : > { %16268 = vst [vmem:[#allocation204_spill] sm:$0xff] %v10938_v22  ;;  %v3030_v0 = vpack.c.bf16 %v10938_v22, %v10936_v9  ;;  %v1374_v48 = vpop.f32.mrb[216].mxu1 }
 0x2a4   : > { %v1376_v63 = vpop.f32.mrb[217].mxu1  ;;  %v1375_v53 = vadd.f32 %v1374_v48, %v10500_v28 }
 0x2a5   : > { %v1377_v38 = vadd.f32 %v1376_v63, %v10495_v11  ;;  %v1378_v25 = vpop.f32.mrb[218].mxu1  ;;  %3549 = vmatprep.mubr.bf16.mxu0 %v3030_v0 }
 0x2a6   : > { %v1379_v7 = vadd.f32 %v1378_v25, %v10500_v28  ;;  %v1380_v35 = vpop.f32.mrb[219].mxu1  ;;  %3550 = vmatmul.mubr.bf16.gmra.mrb[212].mxu0 %v3029_v45  ;;  %v10963_v0 = vmul.f32 %v1375_v53, %v1375_v53 }
 0x2a7   : > { %v1381_v22 = vadd.f32 %v1380_v35, %v10495_v11  ;;  %v10956_v3 = vmul.f32 %v1377_v38, %v1377_v38 }
 0x2a8   : > { %v10953_v9 = vmul.f32 %v1379_v7, %v1379_v7  ;;  %8236 = vmatmul.mubr.msk.bf16.gmra.mrb[68].mxu1 %vm670_vm0, %v1843_v43  ;;  %16273 = vst [vmem:[#allocation209_spill] sm:$0xff] %v10963_v0  ;;  %v1844_v43 = vpack.c.bf16 %v507_v31, %v506_v13  ;;  %v508_v13 = vld [vmem:[%s10587_s18 + $0x130] sm:$0xff]  ;;  %v509_v31 = vld [vmem:[%s10587_s18 + $0x138] sm:$0xff] }
 0x2a9   : > { %16271 = vst [vmem:[#allocation207_spill] sm:$0xff] %v10956_v3  ;;  %v10958_v39 = vmul.f32 %v1381_v22, %v1381_v22  ;;  %2202 = vmatprep.mubr.bf16.mxu1 %v16075_v23 }
 0x2aa   : > { %16270 = vst [vmem:[#allocation206_spill] sm:$0xff] %v10953_v9  ;;  %v3031_v63 = vpack.c.bf16 %v10953_v9, %v10963_v0 }
 0x2ab   : > { %16272 = vst [vmem:[#allocation208_spill] sm:$0xff] %v10958_v39  ;;  %v3032_v48 = vpack.c.bf16 %v10958_v39, %v10956_v3  ;;  %v1384_v45 = vpop.f32.mrb[220].mxu1 }
 0x2ac   : > { %v1386_v25 = vpop.f32.mrb[221].mxu1  ;;  %v1385_v7 = vadd.f32 %v1384_v45, %v10500_v28 }
 0x2ad   : > { %v1387_v22 = vadd.f32 %v1386_v25, %v10495_v11  ;;  %v1388_v38 = vpop.f32.mrb[222].mxu1  ;;  %3559 = vmatprep.mubr.bf16.mxu0 %v3032_v48 }
 0x2ae   : > { %v1389_v53 = vadd.f32 %v1388_v38, %v10500_v28  ;;  %v1390_v35 = vpop.f32.mrb[223].mxu1  ;;  %3560 = vmatmul.mubr.bf16.gmra.mrb[216].mxu0 %v3031_v63  ;;  %v10983_v48 = vmul.f32 %v1385_v7, %v1385_v7 }
 0x2af   : > { %v1391_v39 = vadd.f32 %v1390_v35, %v10495_v11  ;;  %v10976_v9 = vmul.f32 %v1387_v22, %v1387_v22 }
 0x2b0   : > { %v10973_v3 = vmul.f32 %v1389_v53, %v1389_v53  ;;  %8237 = vmatmul.mubr.msk.bf16.gmra.mrb[72].mxu1 %vm670_vm0, %v1844_v43  ;;  %16277 = vst [vmem:[#allocation213_spill] sm:$0xff] %v10983_v48  ;;  %v1845_v43 = vpack.c.bf16 %v509_v31, %v508_v13  ;;  %v3980_v31 = vld [vmem:[%s10996_s26] sm:$0xff] }
 0x2b1   : > { %16275 = vst [vmem:[#allocation211_spill] sm:$0xff] %v10976_v9  ;;  %v10978_v0 = vmul.f32 %v1391_v39, %v1391_v39  ;;  %2212 = vmatprep.mubr.bf16.mxu1 %v16075_v23  ;;  %4046 = vperm.xlu0 %8333, %v3980_v31  }
 0x2b2   : > { %16274 = vst [vmem:[#allocation210_spill] sm:$0xff] %v10973_v3  ;;  %v3033_v25 = vpack.c.bf16 %v10973_v3, %v10983_v48 }
 0x2b3   : > { %16276 = vst [vmem:[#allocation212_spill] sm:$0xff] %v10978_v0  ;;  %v3034_v45 = vpack.c.bf16 %v10978_v0, %v10976_v9  ;;  %v1394_v63 = vpop.f32.mrb[224].mxu1 }
 0x2b4   : > { %v1396_v38 = vpop.f32.mrb[225].mxu1  ;;  %v1395_v53 = vadd.f32 %v1394_v63, %v10500_v28 }
 0x2b5   : > { %v1397_v22 = vadd.f32 %v1396_v38, %v10495_v11  ;;  %v1398_v39 = vpop.f32.mrb[226].mxu1  ;;  %3569 = vmatprep.mubr.bf16.mxu0 %v3034_v45 }
 0x2b6   : > { %v1399_v7 = vadd.f32 %v1398_v39, %v10500_v28  ;;  %v1400_v35 = vpop.f32.mrb[227].mxu1  ;;  %3570 = vmatmul.mubr.bf16.gmra.mrb[220].mxu0 %v3033_v25  ;;  %v510_v25 = vld [vmem:[%s10587_s18 + $0x140] sm:$0xff]  ;;  %v511_v39 = vld [vmem:[%s10587_s18 + $0x148] sm:$0xff]  ;;  %v11010_v0 = vmul.f32 %v1395_v53, %v1395_v53 }
 0x2b7   : > { %v1401_v13 = vadd.f32 %v1400_v35, %v10495_v11  ;;  %v11003_v45 = vmul.f32 %v1397_v22, %v1397_v22  ;;  %v1846_v22 = vpack.c.bf16 %v511_v39, %v510_v25 }
 0x2b8   : > { %v11000_v38 = vmul.f32 %v1399_v7, %v1399_v7  ;;  %8238 = vmatmul.mubr.msk.bf16.gmra.mrb[76].mxu1 %vm670_vm0, %v1845_v43  ;;  %16281 = vst [vmem:[#allocation217_spill] sm:$0xff] %v11010_v0  ;;  %v3981_v7 = vld [vmem:[%s10996_s26 + $0x8] sm:$0xff] }
 0x2b9   : > { %16279 = vst [vmem:[#allocation215_spill] sm:$0xff] %v11003_v45  ;;  %v11005_v63 = vmul.f32 %v1401_v13, %v1401_v13  ;;  %2222 = vmatprep.mubr.bf16.mxu1 %v16075_v23  ;;  %4051 = vperm.xlu0 %8333, %v3981_v7  }
 0x2ba   : > { %16278 = vst [vmem:[#allocation214_spill] sm:$0xff] %v11000_v38  ;;  %v3035_v43 = vpack.c.bf16 %v11000_v38, %v11010_v0  ;;  %v3988_v0 = vld [vmem:[%s10996_s26 + $0x40] sm:$0xff] }
 0x2bb   : > { %16280 = vst [vmem:[#allocation216_spill] sm:$0xff] %v11005_v63  ;;  %v3036_v35 = vpack.c.bf16 %v11005_v63, %v11003_v45  ;;  %v1404_v3 = vpop.f32.mrb[228].mxu1 }
 0x2bc   : > { %v1406_v31 = vpop.f32.mrb[229].mxu1  ;;  %v1405_v53 = vadd.f32 %v1404_v3, %v10500_v28  ;;  %v512_v3 = vld [vmem:[%s10587_s18 + $0x150] sm:$0xff] }
 0x2bd   : > { %v1407_v13 = vadd.f32 %v1406_v31, %v10495_v11  ;;  %v1408_v9 = vpop.f32.mrb[230].mxu1  ;;  %3579 = vmatprep.mubr.bf16.mxu0 %v3036_v35  ;;  %4066 = vperm.xlu0 %8333, %v3984_v36   ;;  %v513_v35 = vld [vmem:[%s10587_s18 + $0x158] sm:$0xff] }
 0x2be   : > { %v1409_v48 = vadd.f32 %v1408_v9, %v10500_v28  ;;  %v1410_v63 = vpop.f32.mrb[231].mxu1  ;;  %3580 = vmatmul.mubr.bf16.gmra.mrb[224].mxu0 %v3035_v43  ;;  %v11032_v9 = vmul.f32 %v1405_v53, %v1405_v53  ;;  %v1847_v31 = vpack.c.bf16 %v513_v35, %v512_v3 }
 0x2bf   : > { %v1411_v45 = vadd.f32 %v1410_v63, %v10495_v11  ;;  %v11025_v25 = vmul.f32 %v1407_v13, %v1407_v13 }
 0x2c0   : > { %v11022_v38 = vmul.f32 %v1409_v48, %v1409_v48  ;;  %8239 = vmatmul.mubr.msk.bf16.gmra.mrb[80].mxu1 %vm670_vm0, %v1846_v22  ;;  %16285 = vst [vmem:[#allocation221_spill] sm:$0xff] %v11032_v9  ;;  %v3986_v48 = vld [vmem:[%s10996_s26 + $0x30] sm:$0xff] }
 0x2c1   : > { %16283 = vst [vmem:[#allocation219_spill] sm:$0xff] %v11025_v25  ;;  %v11027_v39 = vmul.f32 %v1411_v45, %v1411_v45  ;;  %2232 = vmatprep.mubr.bf16.mxu1 %v16075_v23  ;;  %4076 = vperm.xlu0 %8333, %v3986_v48  }
 0x2c2   : > { %16282 = vst [vmem:[#allocation218_spill] sm:$0xff] %v11022_v38  ;;  %v3037_v43 = vpack.c.bf16 %v11022_v38, %v11032_v9 }
 0x2c3   : > { %16284 = vst [vmem:[#allocation220_spill] sm:$0xff] %v11027_v39  ;;  %v3038_v63 = vpack.c.bf16 %v11027_v39, %v11025_v25  ;;  %v1414_v7 = vpop.f32.mrb[232].mxu1 }
 0x2c4   : > { %v1416_v36 = vpop.f32.mrb[233].mxu1  ;;  %v1415_v13 = vadd.f32 %v1414_v7, %v10500_v28  ;;  %v515_v7 = vld [vmem:[%s10587_s18 + $0x168] sm:$0xff] }
 0x2c5   : > { %v1417_v45 = vadd.f32 %v1416_v36, %v10495_v11  ;;  %v1418_v22 = vpop.f32.mrb[234].mxu1  ;;  %3589 = vmatprep.mubr.bf16.mxu0 %v3038_v63  ;;  %4086 = vperm.xlu0 %8333, %v3988_v0   ;;  %v514_v63 = vld [vmem:[%s10587_s18 + $0x160] sm:$0xff]  ;;  %v3990_v36 = vld [vmem:[%s10996_s26 + $0x50] sm:$0xff] }
 0x2c6   : > { %v1419_v53 = vadd.f32 %v1418_v22, %v10500_v28  ;;  %v1420_v39 = vpop.f32.mrb[235].mxu1  ;;  %3590 = vmatmul.mubr.bf16.gmra.mrb[228].mxu0 %v3037_v43  ;;  %v11054_v48 = vmul.f32 %v1415_v13, %v1415_v13 }
 0x2c7   : > { %v1421_v25 = vadd.f32 %v1420_v39, %v10495_v11  ;;  %v11047_v3 = vmul.f32 %v1417_v45, %v1417_v45  ;;  %v1848_v45 = vpack.c.bf16 %v515_v7, %v514_v63 }
 0x2c8   : > { %v11044_v38 = vmul.f32 %v1419_v53, %v1419_v53  ;;  %8240 = vmatmul.mubr.msk.bf16.gmra.mrb[84].mxu1 %vm670_vm0, %v1847_v31  ;;  %16289 = vst [vmem:[#allocation225_spill] sm:$0xff] %v11054_v48 }
 0x2c9   : > { %16287 = vst [vmem:[#allocation223_spill] sm:$0xff] %v11047_v3  ;;  %v11049_v35 = vmul.f32 %v1421_v25, %v1421_v25  ;;  %2242 = vmatprep.mubr.bf16.mxu1 %v16075_v23  ;;  %4096 = vperm.xlu0 %8333, %v3990_v36   ;;  %v517_v36 = vld [vmem:[%s10587_s18 + $0x178] sm:$0xff] }
 0x2ca   : > { %16286 = vst [vmem:[#allocation222_spill] sm:$0xff] %v11044_v38  ;;  %v3039_v31 = vpack.c.bf16 %v11044_v38, %v11054_v48 }
 0x2cb   : > { %16288 = vst [vmem:[#allocation224_spill] sm:$0xff] %v11049_v35  ;;  %v3040_v39 = vpack.c.bf16 %v11049_v35, %v11047_v3  ;;  %v1424_v43 = vpop.f32.mrb[236].mxu1  ;;  %v3992_v3 = vld [vmem:[%s10996_s26 + $0x60] sm:$0xff] }
 0x2cc   : > { %v1426_v0 = vpop.f32.mrb[237].mxu1  ;;  %v1425_v13 = vadd.f32 %v1424_v43, %v10500_v28  ;;  %v516_v43 = vld [vmem:[%s10587_s18 + $0x170] sm:$0xff] }
 0x2cd   : > { %v1427_v25 = vadd.f32 %v1426_v0, %v10495_v11  ;;  %v1428_v22 = vpop.f32.mrb[238].mxu1  ;;  %3599 = vmatprep.mubr.bf16.mxu0 %v3040_v39  ;;  %4106 = vperm.xlu0 %8333, %v3992_v3   ;;  %v1849_v48 = vpack.c.bf16 %v517_v36, %v516_v43  ;;  %v3983_v36 = vld [vmem:[%s10996_s26 + $0x18] sm:$0xff] }
 0x2ce   : > { %v1429_v53 = vadd.f32 %v1428_v22, %v10500_v28  ;;  %v1430_v9 = vpop.f32.mrb[239].mxu1  ;;  %3600 = vmatmul.mubr.bf16.gmra.mrb[232].mxu0 %v3039_v31  ;;  %v11078_v31 = vmul.f32 %v1425_v13, %v1425_v13  ;;  %v3982_v13 = vld [vmem:[%s10996_s26 + $0x10] sm:$0xff] }
 0x2cf   : > { %v1431_v35 = vadd.f32 %v1430_v9, %v10495_v11  ;;  %v11069_v63 = vmul.f32 %v1427_v25, %v1427_v25  ;;  %v3994_v25 = vld [vmem:[%s10996_s26 + $0x70] sm:$0xff]  ;;  %4056 = vperm.xlu1 %8334, %v3982_v13  }
 0x2d0   : > { %v11066_v38 = vmul.f32 %v1429_v53, %v1429_v53  ;;  %8241 = vmatmul.mubr.msk.bf16.gmra.mrb[88].mxu1 %vm670_vm0, %v1848_v45  ;;  %16293 = vst [vmem:[#allocation229_spill] sm:$0xff] %v11078_v31 }
 0x2d1   : > { %16291 = vst [vmem:[#allocation227_spill] sm:$0xff] %v11069_v63  ;;  %v11071_v7 = vmul.f32 %v1431_v35, %v1431_v35  ;;  %v11073_v39 = vpop.f32.mrb[128].mxu0  ;;  %2252 = vmatprep.mubr.bf16.mxu1 %v16075_v23  ;;  %4116 = vperm.xlu0 %8333, %v3994_v25  }
 0x2d2   : > { %16290 = vst [vmem:[#allocation226_spill] sm:$0xff] %v11066_v38  ;;  %v11080_v9 = vpop.f32.mrb[129].mxu0  ;;  %v3041_v35 = vpack.c.bf16 %v11066_v38, %v11078_v31  ;;  %v3996_v31 = vld [vmem:[%s10996_s26 + $0x80] sm:$0xff] }
 0x2d3   : > { %16292 = vst [vmem:[#allocation228_spill] sm:$0xff] %v11071_v7  ;;  %v3042_v0 = vpack.c.bf16 %v11071_v7, %v11069_v63  ;;  %v1434_v45 = vpop.f32.mrb[240].mxu1  ;;  %v11084_v3 = vpop.f32.mrb[130].mxu0  ;;  %4061 = vperm.xlu1 %8334, %v3983_v36  }
 0x2d4   : > { %v1436_v22 = vpop.f32.mrb[241].mxu1  ;;  %v11089_v53 = vpop.f32.mrb[131].mxu0  ;;  %v1435_v7 = vadd.f32 %v1434_v45, %v10500_v28  ;;  %v519_v45 = vld [vmem:[%s10587_s18 + $0x188] sm:$0xff] }
 0x2d5   : > { %v1437_v24 = vadd.f32 %v1436_v22, %v10495_v11  ;;  %v1438_v21 = vpop.f32.mrb[242].mxu1  ;;  %3609 = vmatprep.mubr.bf16.mxu0 %v3042_v0  ;;  %4126 = vperm.xlu0 %8333, %v3996_v31  }
 0x2d6   : > { %v1439_v63 = vadd.f32 %v1438_v21, %v10500_v28  ;;  %v1440_v41 = vpop.f32.mrb[243].mxu1  ;;  %3610 = vmatmul.mubr.bf16.gmra.mrb[236].mxu0 %v3041_v35  ;;  %v518_v21 = vld [vmem:[%s10587_s18 + $0x180] sm:$0xff] }
 0x2d7   : > { %v1441_v38 = vadd.f32 %v1440_v41, %v10495_v11  ;;  %v11101_v0 = vmul.f32 %v1437_v24, %v1437_v24  ;;  %v11110_v41 = vmul.f32 %v1435_v7, %v1435_v7  ;;  %v1850_v14 = vpack.c.bf16 %v519_v45, %v518_v21  ;;  %v3985_v7 = vld [vmem:[%s10996_s26 + $0x28] sm:$0xff]  ;;  %v3987_v45 = vld [vmem:[%s10996_s26 + $0x38] sm:$0xff] }
 0x2d8   : > { %v11097_v43 = vmul.f32 %v1439_v63, %v1439_v63  ;;  %8242 = vmatmul.mubr.msk.bf16.gmra.mrb[92].mxu1 %vm670_vm0, %v1849_v48  ;;  %4071 = vperm.xlu1 %8334, %v3985_v7  }
 0x2d9   : > { %16295 = vst [vmem:[#allocation231_spill] sm:$0xff] %v11101_v0  ;;  %v11103_v25 = vmul.f32 %v1441_v38, %v1441_v38  ;;  %v11105_v22 = vpop.f32.mrb[132].mxu0  ;;  %2262 = vmatprep.mubr.bf16.mxu1 %v16075_v23  ;;  %16297 = vst [vmem:[#allocation233_spill] sm:$0xff] %v11110_v41  ;;  %v4004_v38 = vld [vmem:[%s10996_s26 + $0xc0] sm:$0xff] }
 0x2da   : > { %16294 = vst [vmem:[#allocation230_spill] sm:$0xff] %v11097_v43  ;;  %v11112_v63 = vpop.f32.mrb[133].mxu0  ;;  %v3043_v35 = vpack.c.bf16 %v11097_v43, %v11110_v41  ;;  %4166 = vperm.xlu0 %8333, %v4004_v38   ;;  %v4012_v41 = vld [vmem:[%s10996_s26 + $0x100] sm:$0xff] }
 0x2db   : > { %16296 = vst [vmem:[#allocation232_spill] sm:$0xff] %v11103_v25  ;;  %v3044_v48 = vpack.c.bf16 %v11103_v25, %v11101_v0  ;;  %v1444_v31 = vpop.f32.mrb[244].mxu1  ;;  %v11116_v24 = vpop.f32.mrb[134].mxu0 }
 0x2dc   : > { %v1446_v13 = vpop.f32.mrb[245].mxu1  ;;  %v11121_v10 = vpop.f32.mrb[135].mxu0  ;;  %v1445_v25 = vadd.f32 %v1444_v31, %v10500_v28  ;;  %v521_v31 = vld [vmem:[%s10587_s18 + $0x198] sm:$0xff]  ;;  %4081 = vperm.xlu1 %8334, %v3987_v45  }
 0x2dd   : > { %v1447_v36 = vadd.f32 %v1446_v13, %v10495_v11  ;;  %v1448_v55 = vpop.f32.mrb[246].mxu1  ;;  %3619 = vmatprep.mubr.bf16.mxu0 %v3044_v48 }
 0x2de   : > { %v1449_v0 = vadd.f32 %v1448_v55, %v10500_v28  ;;  %v1450_v4 = vpop.f32.mrb[247].mxu1  ;;  %3620 = vmatmul.mubr.bf16.gmra.mrb[240].mxu0 %v3043_v35  ;;  %4206 = vperm.xlu0 %8333, %v4012_v41   ;;  %v520_v55 = vld [vmem:[%s10587_s18 + $0x190] sm:$0xff] }
 0x2df   : > { %v1451_v43 = vadd.f32 %v1450_v4, %v10495_v11  ;;  %v11133_v48 = vmul.f32 %v1447_v36, %v1447_v36  ;;  %v11142_v4 = vmul.f32 %v1445_v25, %v1445_v25  ;;  %v1851_v32 = vpack.c.bf16 %v521_v31, %v520_v55  ;;  %v3989_v25 = vld [vmem:[%s10996_s26 + $0x48] sm:$0xff]  ;;  %v3991_v31 = vld [vmem:[%s10996_s26 + $0x58] sm:$0xff] }
 0x2e0   : > { %v11129_v21 = vmul.f32 %v1449_v0, %v1449_v0  ;;  %8243 = vmatmul.mubr.msk.bf16.gmra.mrb[96].mxu1 %vm670_vm0, %v1850_v14  ;;  %4091 = vperm.xlu1 %8334, %v3989_v25  }
 0x2e1   : > { %16299 = vst [vmem:[#allocation235_spill] sm:$0xff] %v11133_v48  ;;  %v11135_v38 = vmul.f32 %v1451_v43, %v1451_v43  ;;  %v11137_v13 = vpop.f32.mrb[136].mxu0  ;;  %2272 = vmatprep.mubr.bf16.mxu1 %v16075_v23  ;;  %16301 = vst [vmem:[#allocation237_spill] sm:$0xff] %v11142_v4  ;;  %v4020_v43 = vld [vmem:[%s10996_s26 + $0x140] sm:$0xff] }
 0x2e2   : > { %16298 = vst [vmem:[#allocation234_spill] sm:$0xff] %v11129_v21  ;;  %v11144_v0 = vpop.f32.mrb[137].mxu0  ;;  %v3045_v7 = vpack.c.bf16 %v11129_v21, %v11142_v4  ;;  %4246 = vperm.xlu0 %8333, %v4020_v43   ;;  %v4028_v4 = vld [vmem:[%s10996_s26 + $0x180] sm:$0xff] }
 0x2e3   : > { %16300 = vst [vmem:[#allocation236_spill] sm:$0xff] %v11135_v38  ;;  %v3046_v14 = vpack.c.bf16 %v11135_v38, %v11133_v48  ;;  %v1454_v41 = vpop.f32.mrb[248].mxu1  ;;  %v11148_v35 = vpop.f32.mrb[138].mxu0 }
 0x2e4   : > { %v1456_v36 = vpop.f32.mrb[249].mxu1  ;;  %v11153_v61 = vpop.f32.mrb[139].mxu0  ;;  %v1455_v38 = vadd.f32 %v1454_v41, %v10500_v28  ;;  %v523_v41 = vld [vmem:[%s10587_s18 + $0x1a8] sm:$0xff]  ;;  %4101 = vperm.xlu1 %8334, %v3991_v31  }
 0x2e5   : > { %v1457_v45 = vadd.f32 %v1456_v36, %v10495_v11  ;;  %v1458_v44 = vpop.f32.mrb[250].mxu1  ;;  %3629 = vmatprep.mubr.bf16.mxu0 %v3046_v14 }
 0x2e6   : > { %v1459_v48 = vadd.f32 %v1458_v44, %v10500_v28  ;;  %v1460_v49 = vpop.f32.mrb[251].mxu1  ;;  %3630 = vmatmul.mubr.bf16.gmra.mrb[244].mxu0 %v3045_v7  ;;  %4286 = vperm.xlu0 %8333, %v4028_v4   ;;  %v522_v44 = vld [vmem:[%s10587_s18 + $0x1a0] sm:$0xff] }
 0x2e7   : > { %v1461_v21 = vadd.f32 %v1460_v49, %v10495_v11  ;;  %v11165_v14 = vmul.f32 %v1457_v45, %v1457_v45  ;;  %v11174_v49 = vmul.f32 %v1455_v38, %v1455_v38  ;;  %v1852_v8 = vpack.c.bf16 %v523_v41, %v522_v44  ;;  %v3993_v38 = vld [vmem:[%s10996_s26 + $0x68] sm:$0xff]  ;;  %v3998_v41 = vld [vmem:[%s10996_s26 + $0x90] sm:$0xff] }
 0x2e8   : > { %v11161_v55 = vmul.f32 %v1459_v48, %v1459_v48  ;;  %8244 = vmatmul.mubr.msk.bf16.gmra.mrb[100].mxu1 %vm670_vm0, %v1851_v32  ;;  %4111 = vperm.xlu1 %8334, %v3993_v38  }
 0x2e9   : > { %16303 = vst [vmem:[#allocation239_spill] sm:$0xff] %v11165_v14  ;;  %v11167_v43 = vmul.f32 %v1461_v21, %v1461_v21  ;;  %v11169_v36 = vpop.f32.mrb[140].mxu0  ;;  %2282 = vmatprep.mubr.bf16.mxu1 %v16075_v23  ;;  %16305 = vst [vmem:[#allocation241_spill] sm:$0xff] %v11174_v49  ;;  %v4036_v21 = vld [vmem:[%s10996_s26 + $0x1c0] sm:$0xff] }
 0x2ea   : > { %16302 = vst [vmem:[#allocation238_spill] sm:$0xff] %v11161_v55  ;;  %v11176_v48 = vpop.f32.mrb[141].mxu0  ;;  %v3047_v25 = vpack.c.bf16 %v11161_v55, %v11174_v49  ;;  %4326 = vperm.xlu0 %8333, %v4036_v21  }
 0x2eb   : > { %16304 = vst [vmem:[#allocation240_spill] sm:$0xff] %v11167_v43  ;;  %v3048_v32 = vpack.c.bf16 %v11167_v43, %v11165_v14  ;;  %v1464_v4 = vpop.f32.mrb[252].mxu1  ;;  %v11180_v7 = vpop.f32.mrb[142].mxu0  ;;  %v1862_v43 = vld [vmem:[%s15772_s6] sm:$0x3] }
 0x2ec   : > { %v1466_v45 = vpop.f32.mrb[253].mxu1  ;;  %v11185_v59 = vpop.f32.mrb[143].mxu0  ;;  %v1465_v14 = vadd.f32 %v1464_v4, %v10500_v28  ;;  %v3995_v4 = vld [vmem:[%s10996_s26 + $0x78] sm:$0xff] }
 0x2ed   : > { %v1467_v31 = vadd.f32 %v1466_v45, %v10495_v11  ;;  %v1468_v40 = vpop.f32.mrb[254].mxu1  ;;  %3639 = vmatprep.mubr.bf16.mxu0 %v3048_v32  ;;  %v16307_v32 = vsub.s32 0, %v9463_v58  ;;  %4121 = vperm.xlu1 %8334, %v3995_v4   ;;  %v3997_v4 = vld [vmem:[%s10996_s26 + $0x88] sm:$0xff] }
 0x2ee   : > { %v1469_v55 = vadd.f32 %v1468_v40, %v10500_v28  ;;  %v1470_v49 = vpop.f32.mrb[255].mxu1  ;;  %3640 = vmatmul.mubr.bf16.gmra.mrb[248].mxu0 %v3047_v25  ;;  %4136 = vperm.xlu0 %8333, %v3998_v41   ;;  %v11217_v25 = vmul.f32 %v1465_v14, %v1465_v14 }
 0x2ef   : > { %v1471_v44 = vadd.f32 %v1470_v49, %v10495_v11  ;;  %v11201_v45 = vrot.slane %v1862_v43, %v16307_v32  ;;  %v11204_v38 = vmul.f32 %v1467_v31, %v1467_v31  ;;  %v16310_v11 = vsub.s32 1, %v9463_v58 }
 0x2f0   : > { %v11196_v21 = vmul.f32 %v1469_v55, %v1469_v55  ;;  %8245 = vmatmul.mubr.msk.bf16.gmra.mrb[104].mxu1 %vm670_vm0, %v1852_v8  ;;  %v524_v8 = vld [vmem:[%s10587_s18 + $0x1b0] sm:$0xff]  ;;  %v525_v55 = vld [vmem:[%s10587_s18 + $0x1b8] sm:$0xff]  ;;  %16311 = vst [vmem:[#allocation245_spill] sm:$0xff] %v11217_v25 }
 0x2f1   : > { %16308 = vst [vmem:[#allocation243_spill] sm:$0xff] %v11204_v38  ;;  %v11206_v28 = vmul.f32 %v1471_v44, %v1471_v44  ;;  %v11208_v40 = vpop.f32.mrb[144].mxu0  ;;  %v11212_v49 = vrot.slane %v1862_v43, %v16310_v11  ;;  %2292 = vmatprep.mubr.bf16.mxu1 %v16075_v23  ;;  %v1853_v14 = vpack.c.bf16 %v525_v55, %v524_v8  ;;  %v16312_v55 = vld [vmem:[#allocation5_spill] sm:$0xff] }
 0x2f2   : > { %16306 = vst [vmem:[#allocation242_spill] sm:$0xff] %v11196_v21  ;;  %v11219_v41 = vpop.f32.mrb[145].mxu0  ;;  %v3049_v58 = vpack.c.bf16 %v11196_v21, %v11217_v25  ;;  %4216 = vperm.xlu0 %8333, %v4014_v2   ;;  %4131 = vperm.xlu1 %8334, %v3997_v4   ;;  %v4030_v2 = vld [vmem:[%s10996_s26 + $0x190] sm:$0xff] }
 0x2f3   : > { %16309 = vst [vmem:[#allocation244_spill] sm:$0xff] %v11206_v28  ;;  %v3050_v31 = vpack.c.bf16 %v11206_v28, %v11204_v38  ;;  %v2024_v44 = vpop.f32.mrb[0].mxu1  ;;  %v11223_v32 = vpop.f32.mrb[146].mxu0 }
 0x2f4   : > { %v2025_v43 = vadd.f32 %v2024_v44, %v11201_v45  ;;  %v2026_v11 = vpop.f32.mrb[1].mxu1  ;;  %v11229_v51 = vpop.f32.mrb[147].mxu0 }
 0x2f5   : > { %v2027_v20 = vadd.f32 %v2026_v11, %v11212_v49  ;;  %v2028_v28 = vpop.f32.mrb[2].mxu1  ;;  %3649 = vmatprep.mubr.bf16.mxu0 %v3050_v31  ;;  %v4005_v31 = vld [vmem:[%s10996_s26 + $0xc8] sm:$0xff] }
 0x2f6   : > { %v2859_v38 = vmul.f32 %v9544_v17, %v2025_v43  ;;  %v2029_v21 = vadd.f32 %v2028_v28, %v11201_v45  ;;  %v2030_v44 = vpop.f32.mrb[3].mxu1  ;;  %3650 = vmatmul.mubr.bf16.gmra.mrb[252].mxu0 %v3049_v58  ;;  %4296 = vperm.xlu0 %8333, %v4030_v2   ;;  %v16313_v11 = vld [vmem:[#allocation6_spill] sm:$0xff]  ;;  %v526_v17 = vld [vmem:[%s10587_s18 + $0x1c0] sm:$0xff] }
 0x2f7   : > { %v2860_v25 = vmul.f32 %v9552_v29, %v2027_v20  ;;  %v2031_v8 = vadd.f32 %v2030_v44, %v11212_v49  ;;  %v527_v28 = vld [vmem:[%s10587_s18 + $0x1c8] sm:$0xff]  ;;  %4171 = vperm.xlu1 %8334, %v4005_v31  }
 0x2f8   : > { %v2861_v34 = vmul.f32 %v16312_v55, %v2029_v21  ;;  %8246 = vmatmul.mubr.msk.bf16.gmra.mrb[108].mxu1 %vm670_vm0, %v1853_v14  ;;  %v3999_v14 = vld [vmem:[%s10996_s26 + $0x98] sm:$0xff]  ;;  %v1854_v55 = vpack.c.bf16 %v527_v28, %v526_v17 }
 0x2f9   : > { %v2862_v4 = vmul.f32 %v16313_v11, %v2031_v8  ;;  %v11242_v16 = vpop.f32.mrb[148].mxu0  ;;  %2302 = vmatprep.mubr.bf16.mxu1 %v16075_v23  ;;  %v4013_v11 = vld [vmem:[%s10996_s26 + $0x108] sm:$0xff]  ;;  %v4015_v28 = vld [vmem:[%s10996_s26 + $0x118] sm:$0xff] }
 0x2fa   : > { %v3051_v29 = vpack.c.bf16 %v2861_v34, %v2859_v38  ;;  %v11247_v20 = vpop.f32.mrb[149].mxu0  ;;  %4141 = vperm.xlu0 %8333, %v3999_v14   ;;  %v16314_v38 = vld [vmem:[#allocation7_spill] sm:$0xff]  ;;  %v16316_v14 = vld [vmem:[#allocation9_spill] sm:$0xff] }
 0x2fb   : > { %v2034_v58 = vpop.f32.mrb[4].mxu1  ;;  %v11249_v43 = vpop.f32.mrb[150].mxu0  ;;  %v3052_v21 = vpack.c.bf16 %v2862_v4, %v2860_v25  ;;  %4211 = vperm.xlu1 %8334, %v4013_v11  }
 0x2fc   : > { %v2035_v44 = vadd.f32 %v2034_v58, %v11201_v45  ;;  %v2036_v8 = vpop.f32.mrb[5].mxu1  ;;  %v11253_v2 = vpop.f32.mrb[151].mxu0 }
 0x2fd   : > { %v2037_v31 = vadd.f32 %v2036_v8, %v11212_v49  ;;  %v2038_v34 = vpop.f32.mrb[6].mxu1  ;;  %3659 = vmatprep.mubr.bf16.mxu0 %v3052_v21  ;;  %v4021_v21 = vld [vmem:[%s10996_s26 + $0x148] sm:$0xff] }
 0x2fe   : > { %v2863_v25 = vmul.f32 %v16314_v38, %v2035_v44  ;;  %v2039_v4 = vadd.f32 %v2038_v34, %v11201_v45  ;;  %v2040_v58 = vpop.f32.mrb[7].mxu1  ;;  %3660 = vmatmul.mubr.bf16.gmra.mrb[0].mxu0 %v3051_v29  ;;  %4221 = vperm.xlu0 %8333, %v4015_v28   ;;  %v16317_v8 = vld [vmem:[#allocation10_spill] sm:$0xff]  ;;  %v528_v29 = vld [vmem:[%s10587_s18 + $0x1d0] sm:$0xff]  ;;  %v529_v44 = vld [vmem:[%s10587_s18 + $0x1d8] sm:$0xff] }
 0x2ff   : > { %v2864_v62 = vmul.f32 %v16315_v50, %v2037_v31  ;;  %v2041_v17 = vadd.f32 %v2040_v58, %v11212_v49  ;;  %4251 = vperm.xlu1 %8334, %v4021_v21  }
 0x300   : > { %v2865_v30 = vmul.f32 %v16316_v14, %v2039_v4  ;;  %8247 = vmatmul.mubr.msk.bf16.gmra.mrb[112].mxu1 %vm670_vm0, %v1854_v55  ;;  %v4031_v55 = vld [vmem:[%s10996_s26 + $0x198] sm:$0xff]  ;;  %v1855_v14 = vpack.c.bf16 %v529_v44, %v528_v29  ;;  %v4000_v44 = vld [vmem:[%s10996_s26 + $0xa0] sm:$0xff] }
 0x301   : > { %v2866_v11 = vmul.f32 %v16317_v8, %v2041_v17  ;;  %v11266_v26 = vpop.f32.mrb[152].mxu0  ;;  %2312 = vmatprep.mubr.bf16.mxu1 %v16075_v23  ;;  %v4029_v8 = vld [vmem:[%s10996_s26 + $0x188] sm:$0xff] }
 0x302   : > { %v3053_v50 = vpack.c.bf16 %v2865_v30, %v2863_v25  ;;  %v11271_v31 = vpop.f32.mrb[153].mxu0  ;;  %4301 = vperm.xlu0 %8333, %v4031_v55   ;;  %v16318_v25 = vld [vmem:[#allocation11_spill] sm:$0xff]  ;;  %v16320_v55 = vld [vmem:[#allocation13_spill] sm:$0xff] }
 0x303   : > { %v2044_v34 = vpop.f32.mrb[8].mxu1  ;;  %v11273_v38 = vpop.f32.mrb[154].mxu0  ;;  %v3054_v4 = vpack.c.bf16 %v2866_v11, %v2864_v62  ;;  %4291 = vperm.xlu1 %8334, %v4029_v8  }
 0x304   : > { %v2045_v58 = vadd.f32 %v2044_v34, %v11201_v45  ;;  %v2046_v17 = vpop.f32.mrb[9].mxu1  ;;  %v11277_v28 = vpop.f32.mrb[155].mxu0 }
 0x305   : > { %v2047_v21 = vadd.f32 %v2046_v17, %v11212_v49  ;;  %v2048_v30 = vpop.f32.mrb[10].mxu1  ;;  %3669 = vmatprep.mubr.bf16.mxu0 %v3054_v4  ;;  %v4037_v4 = vld [vmem:[%s10996_s26 + $0x1c8] sm:$0xff] }
 0x306   : > { %v2867_v62 = vmul.f32 %v16318_v25, %v2045_v58  ;;  %v2049_v11 = vadd.f32 %v2048_v30, %v11201_v45  ;;  %v2050_v34 = vpop.f32.mrb[11].mxu1  ;;  %3670 = vmatmul.mubr.bf16.gmra.mrb[4].mxu0 %v3053_v50  ;;  %4146 = vperm.xlu0 %8333, %v4000_v44   ;;  %v16321_v17 = vld [vmem:[#allocation14_spill] sm:$0xff]  ;;  %v530_v50 = vld [vmem:[%s10587_s18 + $0x1e0] sm:$0xff] }
 0x307   : > { %v2868_v37 = vmul.f32 %v16319_v56, %v2047_v21  ;;  %v2051_v29 = vadd.f32 %v2050_v34, %v11212_v49  ;;  %v531_v58 = vld [vmem:[%s10587_s18 + $0x1e8] sm:$0xff]  ;;  %4331 = vperm.xlu1 %8334, %v4037_v4  }
 0x308   : > { %v2869_v42 = vmul.f32 %v16320_v55, %v2049_v11  ;;  %8248 = vmatmul.mubr.msk.bf16.gmra.mrb[116].mxu1 %vm670_vm0, %v1855_v14  ;;  %v4016_v14 = vld [vmem:[%s10996_s26 + $0x120] sm:$0xff]  ;;  %v1856_v55 = vpack.c.bf16 %v531_v58, %v530_v50 }
 0x309   : > { %v2870_v8 = vmul.f32 %v16321_v17, %v2051_v29  ;;  %v11290_v33 = vpop.f32.mrb[156].mxu0  ;;  %2322 = vmatprep.mubr.bf16.mxu1 %v16075_v23  ;;  %v4006_v17 = vld [vmem:[%s10996_s26 + $0xd0] sm:$0xff]  ;;  %v4032_v58 = vld [vmem:[%s10996_s26 + $0x1a0] sm:$0xff] }
 0x30a   : > { %v3055_v56 = vpack.c.bf16 %v2869_v42, %v2867_v62  ;;  %v11295_v21 = vpop.f32.mrb[157].mxu0  ;;  %4226 = vperm.xlu0 %8333, %v4016_v14   ;;  %v16324_v62 = vld [vmem:[#allocation15_spill] sm:$0xff]  ;;  %v16325_v14 = vld [vmem:[#allocation16_spill] sm:$0xff] }
 0x30b   : > { %v2054_v30 = vpop.f32.mrb[12].mxu1  ;;  %v11297_v25 = vpop.f32.mrb[158].mxu0  ;;  %v3056_v11 = vpack.c.bf16 %v2870_v8, %v2868_v37  ;;  %4176 = vperm.xlu1 %8334, %v4006_v17  }
 0x30c   : > { %16322 = vst [vmem:[#allocation5_spill] sm:$0xff] %v11297_v25  ;;  %v2055_v34 = vadd.f32 %v2054_v30, %v11201_v45  ;;  %v2056_v29 = vpop.f32.mrb[13].mxu1  ;;  %v11301_v44 = vpop.f32.mrb[159].mxu0 }
 0x30d   : > { %16323 = vst [vmem:[#allocation6_spill] sm:$0xff] %v11301_v44  ;;  %v2057_v4 = vadd.f32 %v2056_v29, %v11212_v49  ;;  %v2058_v42 = vpop.f32.mrb[14].mxu1  ;;  %3679 = vmatprep.mubr.bf16.mxu0 %v3056_v11  ;;  %v4022_v11 = vld [vmem:[%s10996_s26 + $0x150] sm:$0xff]  ;;  %v16326_v29 = vld [vmem:[#allocation17_spill] sm:$0xff] }
 0x30e   : > { %v2871_v37 = vmul.f32 %v16324_v62, %v2055_v34  ;;  %v2059_v8 = vadd.f32 %v2058_v42, %v11201_v45  ;;  %v2060_v30 = vpop.f32.mrb[15].mxu1  ;;  %3680 = vmatmul.mubr.bf16.gmra.mrb[8].mxu0 %v3055_v56  ;;  %4306 = vperm.xlu0 %8333, %v4032_v58   ;;  %v532_v56 = vld [vmem:[%s10587_s18 + $0x1f0] sm:$0xff]  ;;  %v533_v34 = vld [vmem:[%s10587_s18 + $0x1f8] sm:$0xff] }
 0x30f   : > { %v2872_v27 = vmul.f32 %v9666_v15, %v2057_v4  ;;  %v2061_v50 = vadd.f32 %v2060_v30, %v11212_v49  ;;  %4256 = vperm.xlu1 %8334, %v4022_v11  }
 0x310   : > { %v2873_v44 = vmul.f32 %v16325_v14, %v2059_v8  ;;  %8249 = vmatmul.mubr.msk.bf16.gmra.mrb[120].mxu1 %vm670_vm0, %v1856_v55  ;;  %v4001_v55 = vld [vmem:[%s10996_s26 + $0xa8] sm:$0xff]  ;;  %v1857_v14 = vpack.c.bf16 %v533_v34, %v532_v56  ;;  %v16329_v34 = vld [vmem:[#allocation19_spill] sm:$0xff] }
 0x311   : > { %v2874_v17 = vmul.f32 %v16326_v29, %v2061_v50  ;;  %v11314_v25 = vpop.f32.mrb[160].mxu0  ;;  %2332 = vmatprep.mubr.bf16.mxu1 %v16075_v23  ;;  %v4038_v23 = vld [vmem:[%s10996_s26 + $0x1d0] sm:$0xff]  ;;  %v4017_v56 = vld [vmem:[%s10996_s26 + $0x128] sm:$0xff] }
 0x312   : > { %v3057_v15 = vpack.c.bf16 %v2873_v44, %v2871_v37  ;;  %v11319_v4 = vpop.f32.mrb[161].mxu0  ;;  %4151 = vperm.xlu0 %8333, %v4001_v55   ;;  %v16328_v37 = vld [vmem:[#allocation18_spill] sm:$0xff] }
 0x313   : > { %v2064_v42 = vpop.f32.mrb[16].mxu1  ;;  %v11321_v62 = vpop.f32.mrb[162].mxu0  ;;  %v3058_v8 = vpack.c.bf16 %v2874_v17, %v2872_v27  ;;  %4336 = vperm.xlu1 %8334, %v4038_v23  }
 0x314   : > { %v2065_v30 = vadd.f32 %v2064_v42, %v11201_v45  ;;  %v2066_v50 = vpop.f32.mrb[17].mxu1  ;;  %v11325_v58 = vpop.f32.mrb[163].mxu0 }
 0x315   : > { %16327 = vst [vmem:[#allocation7_spill] sm:$0xff] %v11325_v58  ;;  %v2067_v11 = vadd.f32 %v2066_v50, %v11212_v49  ;;  %v2068_v44 = vpop.f32.mrb[18].mxu1  ;;  %3689 = vmatprep.mubr.bf16.mxu0 %v3058_v8  ;;  %v4007_v8 = vld [vmem:[%s10996_s26 + $0xd8] sm:$0xff] }
 0x316   : > { %v2875_v29 = vmul.f32 %v16328_v37, %v2065_v30  ;;  %v2069_v27 = vadd.f32 %v2068_v44, %v11201_v45  ;;  %v2070_v17 = vpop.f32.mrb[19].mxu1  ;;  %3690 = vmatmul.mubr.bf16.gmra.mrb[12].mxu0 %v3057_v15  ;;  %4231 = vperm.xlu0 %8333, %v4017_v56   ;;  %v16330_v50 = vld [vmem:[#allocation20_spill] sm:$0xff] }
 0x317   : > { %v2876_v42 = vmul.f32 %v9697_v1, %v2067_v11  ;;  %v2071_v58 = vadd.f32 %v2070_v17, %v11212_v49  ;;  %4181 = vperm.xlu1 %8334, %v4007_v8   ;;  %v4033_v17 = vld [vmem:[%s10996_s26 + $0x1a8] sm:$0xff] }
 0x318   : > { %v2877_v55 = vmul.f32 %v16329_v34, %v2069_v27  ;;  %8250 = vmatmul.mubr.msk.bf16.gmra.mrb[124].mxu1 %vm670_vm0, %v1857_v14 }
 0x319   : > { %v2878_v23 = vmul.f32 %v16330_v50, %v2071_v58  ;;  %v11338_v30 = vpop.f32.mrb[164].mxu0  ;;  %v4023_v58 = vld [vmem:[%s10996_s26 + $0x158] sm:$0xff] }
 0x31a   : > { %v3059_v44 = vpack.c.bf16 %v2877_v55, %v2875_v29  ;;  %v11340_v15 = vpop.f32.mrb[165].mxu0  ;;  %4311 = vperm.xlu0 %8333, %v4033_v17   ;;  %v16334_v29 = vld [vmem:[#allocation21_spill] sm:$0xff] }
 0x31b   : > { %16331 = vst [vmem:[#allocation8_spill] sm:$0xff] %v11340_v15  ;;  %v2074_v37 = vpop.f32.mrb[20].mxu1  ;;  %v11342_v1 = vpop.f32.mrb[166].mxu0  ;;  %v3060_v11 = vpack.c.bf16 %v2878_v23, %v2876_v42  ;;  %4261 = vperm.xlu1 %8334, %v4023_v58   ;;  %v16335_v23 = vld [vmem:[#allocation22_spill] sm:$0xff]  ;;  %v16336_v15 = vld [vmem:[#allocation23_spill] sm:$0xff] }
 0x31c   : > { %16332 = vst [vmem:[#allocation9_spill] sm:$0xff] %v11342_v1  ;;  %v2075_v27 = vadd.f32 %v2074_v37, %v11201_v45  ;;  %v2076_v14 = vpop.f32.mrb[21].mxu1  ;;  %v11346_v34 = vpop.f32.mrb[167].mxu0 }
 0x31d   : > { %16333 = vst [vmem:[#allocation10_spill] sm:$0xff] %v11346_v34  ;;  %v2077_v56 = vadd.f32 %v2076_v14, %v11212_v49  ;;  %v2078_v8 = vpop.f32.mrb[22].mxu1  ;;  %3699 = vmatprep.mubr.bf16.mxu0 %v3060_v11  ;;  %v4002_v34 = vld [vmem:[%s10996_s26 + $0xb0] sm:$0xff]  ;;  %v4039_v14 = vld [vmem:[%s10996_s26 + $0x1d8] sm:$0xff] }
 0x31e   : > { %v2879_v55 = vmul.f32 %v16334_v29, %v2075_v27  ;;  %v2079_v50 = vadd.f32 %v2078_v8, %v11201_v45  ;;  %v2080_v42 = vpop.f32.mrb[23].mxu1  ;;  %3700 = vmatmul.mubr.bf16.gmra.mrb[16].mxu0 %v3059_v44  ;;  %4156 = vperm.xlu0 %8333, %v4002_v34  }
 0x31f   : > { %v2880_v37 = vmul.f32 %v16335_v23, %v2077_v56  ;;  %v2081_v1 = vadd.f32 %v2080_v42, %v11212_v49  ;;  %4341 = vperm.xlu1 %8334, %v4039_v14   ;;  %v4018_v23 = vld [vmem:[%s10996_s26 + $0x130] sm:$0xff] }
 0x320   : > { %v2881_v17 = vmul.f32 %v9741_v52, %v2079_v50 }
 0x321   : > { %v2882_v11 = vmul.f32 %v16336_v15, %v2081_v1  ;;  %v11358_v58 = vpop.f32.mrb[168].mxu0  ;;  %v4008_v15 = vld [vmem:[%s10996_s26 + $0xe0] sm:$0xff] }
 0x322   : > { %v3061_v27 = vpack.c.bf16 %v2881_v17, %v2879_v55  ;;  %v11360_v8 = vpop.f32.mrb[169].mxu0  ;;  %4236 = vperm.xlu0 %8333, %v4018_v23   ;;  %v16340_v55 = vld [vmem:[#allocation24_spill] sm:$0xff] }
 0x323   : > { %16337 = vst [vmem:[#allocation11_spill] sm:$0xff] %v11360_v8  ;;  %v2084_v29 = vpop.f32.mrb[24].mxu1  ;;  %v11362_v44 = vpop.f32.mrb[170].mxu0  ;;  %v3062_v56 = vpack.c.bf16 %v2882_v11, %v2880_v37  ;;  %4186 = vperm.xlu1 %8334, %v4008_v15   ;;  %v16342_v8 = vld [vmem:[#allocation26_spill] sm:$0xff] }
 0x324   : > { %16338 = vst [vmem:[#allocation12_spill] sm:$0xff] %v11362_v44  ;;  %v2085_v42 = vadd.f32 %v2084_v29, %v11201_v45  ;;  %v2086_v52 = vpop.f32.mrb[25].mxu1  ;;  %v11366_v50 = vpop.f32.mrb[171].mxu0  ;;  %v16341_v44 = vld [vmem:[#allocation25_spill] sm:$0xff] }
 0x325   : > { %16339 = vst [vmem:[#allocation13_spill] sm:$0xff] %v11366_v50  ;;  %v2087_v1 = vadd.f32 %v2086_v52, %v11212_v49  ;;  %v2088_v34 = vpop.f32.mrb[26].mxu1  ;;  %3709 = vmatprep.mubr.bf16.mxu0 %v3062_v56  ;;  %v4034_v50 = vld [vmem:[%s10996_s26 + $0x1b0] sm:$0xff]  ;;  %v4024_v52 = vld [vmem:[%s10996_s26 + $0x160] sm:$0xff] }
 0x326   : > { %v2883_v17 = vmul.f32 %v16340_v55, %v2085_v42  ;;  %v2089_v14 = vadd.f32 %v2088_v34, %v11201_v45  ;;  %v2090_v37 = vpop.f32.mrb[27].mxu1  ;;  %3710 = vmatmul.mubr.bf16.gmra.mrb[20].mxu0 %v3061_v27  ;;  %4316 = vperm.xlu0 %8333, %v4034_v50   ;;  %v4040_v50 = vld [vmem:[%s10996_s26 + $0x1e0] sm:$0xff] }
 0x327   : > { %v2884_v11 = vmul.f32 %v9766_v19, %v2087_v1  ;;  %v2091_v29 = vadd.f32 %v2090_v37, %v11212_v49  ;;  %4266 = vperm.xlu1 %8334, %v4024_v52   ;;  %v4003_v1 = vld [vmem:[%s10996_s26 + $0xb8] sm:$0xff] }
 0x328   : > { %v2885_v23 = vmul.f32 %v16341_v44, %v2089_v14 }
 0x329   : > { %v2886_v56 = vmul.f32 %v16342_v8, %v2091_v29  ;;  %v11378_v15 = vpop.f32.mrb[172].mxu0 }
 0x32a   : > { %16343 = vst [vmem:[#allocation14_spill] sm:$0xff] %v11378_v15  ;;  %v3063_v42 = vpack.c.bf16 %v2885_v23, %v2883_v17  ;;  %v11380_v34 = vpop.f32.mrb[173].mxu0  ;;  %4161 = vperm.xlu0 %8333, %v4003_v1   ;;  %v16347_v17 = vld [vmem:[#allocation27_spill] sm:$0xff]  ;;  %v4009_v1 = vld [vmem:[%s10996_s26 + $0xe8] sm:$0xff] }
 0x32b   : > { %16344 = vst [vmem:[#allocation15_spill] sm:$0xff] %v11380_v34  ;;  %v2094_v55 = vpop.f32.mrb[28].mxu1  ;;  %v11382_v27 = vpop.f32.mrb[174].mxu0  ;;  %v3064_v19 = vpack.c.bf16 %v2886_v56, %v2884_v11  ;;  %4346 = vperm.xlu1 %8334, %v4040_v50   ;;  %v16349_v34 = vld [vmem:[#allocation29_spill] sm:$0xff] }
 0x32c   : > { %16345 = vst [vmem:[#allocation16_spill] sm:$0xff] %v11382_v27  ;;  %v2095_v37 = vadd.f32 %v2094_v55, %v11201_v45  ;;  %v2096_v44 = vpop.f32.mrb[29].mxu1  ;;  %v11386_v14 = vpop.f32.mrb[175].mxu0  ;;  %v16348_v55 = vld [vmem:[#allocation28_spill] sm:$0xff] }
 0x32d   : > { %16346 = vst [vmem:[#allocation17_spill] sm:$0xff] %v11386_v14  ;;  %v2097_v8 = vadd.f32 %v2096_v44, %v11212_v49  ;;  %v2098_v29 = vpop.f32.mrb[30].mxu1  ;;  %3719 = vmatprep.mubr.bf16.mxu0 %v3064_v19 }
 0x32e   : > { %v2887_v23 = vmul.f32 %v16347_v17, %v2095_v37  ;;  %v2099_v52 = vadd.f32 %v2098_v29, %v11201_v45  ;;  %v2100_v27 = vpop.f32.mrb[31].mxu1  ;;  %3720 = vmatmul.mubr.bf16.gmra.mrb[24].mxu0 %v3063_v42  ;;  %v4025_v17 = vld [vmem:[%s10996_s26 + $0x168] sm:$0xff] }
 0x32f   : > { %v2888_v11 = vmul.f32 %v9799_v12, %v2097_v8  ;;  %v2101_v56 = vadd.f32 %v2100_v27, %v11212_v49  ;;  %4191 = vperm.xlu1 %8334, %v4009_v1   ;;  %v16354_v1 = vld [vmem:[#allocation31_spill] sm:$0xff] }
 0x330   : > { %v2889_v14 = vmul.f32 %v16348_v55, %v2099_v52 }
 0x331   : > { %v2890_v15 = vmul.f32 %v16349_v34, %v2101_v56  ;;  %v11397_v44 = vpop.f32.mrb[176].mxu0  ;;  %v16353_v56 = vld [vmem:[#allocation30_spill] sm:$0xff] }
 0x332   : > { %v3065_v19 = vpack.c.bf16 %v2889_v14, %v2887_v23  ;;  %v11399_v50 = vpop.f32.mrb[177].mxu0 }
 0x333   : > { %16350 = vst [vmem:[#allocation18_spill] sm:$0xff] %v11399_v50  ;;  %v2104_v37 = vpop.f32.mrb[32].mxu1  ;;  %v11401_v29 = vpop.f32.mrb[178].mxu0  ;;  %v3066_v42 = vpack.c.bf16 %v2890_v15, %v2888_v11  ;;  %4271 = vperm.xlu1 %8334, %v4025_v17  }
 0x334   : > { %16351 = vst [vmem:[#allocation19_spill] sm:$0xff] %v11401_v29  ;;  %v2105_v12 = vadd.f32 %v2104_v37, %v11201_v45  ;;  %v2106_v8 = vpop.f32.mrb[33].mxu1  ;;  %v11404_v27 = vpop.f32.mrb[179].mxu0  ;;  %v16355_v29 = vld [vmem:[#allocation32_spill] sm:$0xff] }
 0x335   : > { %16352 = vst [vmem:[#allocation20_spill] sm:$0xff] %v11404_v27  ;;  %v2107_v52 = vadd.f32 %v2106_v8, %v11212_v49  ;;  %v2108_v34 = vpop.f32.mrb[34].mxu1  ;;  %3729 = vmatprep.mubr.bf16.mxu0 %v3066_v42  ;;  %v4041_v27 = vld [vmem:[%s10996_s26 + $0x1e8] sm:$0xff] }
 0x336   : > { %v2891_v14 = vmul.f32 %v16353_v56, %v2105_v12  ;;  %v2109_v23 = vadd.f32 %v2108_v34, %v11201_v45  ;;  %v2110_v55 = vpop.f32.mrb[35].mxu1  ;;  %3730 = vmatmul.mubr.bf16.gmra.mrb[28].mxu0 %v3065_v19 }
 0x337   : > { %v2892_v15 = vmul.f32 %v9826_v46, %v2107_v52  ;;  %v2111_v11 = vadd.f32 %v2110_v55, %v11212_v49  ;;  %4351 = vperm.xlu1 %8334, %v4041_v27   ;;  %v16359_v27 = vld [vmem:[#allocation33_spill] sm:$0xff] }
 0x338   : > { %v2893_v37 = vmul.f32 %v16354_v1, %v2109_v23  ;;  %v4010_v23 = vld [vmem:[%s10996_s26 + $0xf0] sm:$0xff] }
 0x339   : > { %v2894_v50 = vmul.f32 %v16355_v29, %v2111_v11  ;;  %v11415_v8 = vpop.f32.mrb[180].mxu0 }
 0x33a   : > { %v3067_v42 = vpack.c.bf16 %v2893_v37, %v2891_v14  ;;  %v11417_v17 = vpop.f32.mrb[181].mxu0  ;;  %v16360_v37 = vld [vmem:[#allocation34_spill] sm:$0xff] }
 0x33b   : > { %16356 = vst [vmem:[#allocation21_spill] sm:$0xff] %v11417_v17  ;;  %v2114_v12 = vpop.f32.mrb[36].mxu1  ;;  %v11419_v34 = vpop.f32.mrb[182].mxu0  ;;  %v3068_v19 = vpack.c.bf16 %v2894_v50, %v2892_v15  ;;  %4196 = vperm.xlu1 %8334, %v4010_v23  }
 0x33c   : > { %16357 = vst [vmem:[#allocation22_spill] sm:$0xff] %v11419_v34  ;;  %v2115_v46 = vadd.f32 %v2114_v12, %v11201_v45  ;;  %v2116_v52 = vpop.f32.mrb[37].mxu1  ;;  %v11422_v56 = vpop.f32.mrb[183].mxu0  ;;  %v16361_v34 = vld [vmem:[#allocation35_spill] sm:$0xff] }
 0x33d   : > { %16358 = vst [vmem:[#allocation23_spill] sm:$0xff] %v11422_v56  ;;  %v2117_v55 = vadd.f32 %v2116_v52, %v11212_v49  ;;  %v2118_v29 = vpop.f32.mrb[38].mxu1  ;;  %3739 = vmatprep.mubr.bf16.mxu0 %v3068_v19  ;;  %v4026_v56 = vld [vmem:[%s10996_s26 + $0x170] sm:$0xff] }
 0x33e   : > { %v2895_v14 = vmul.f32 %v16359_v27, %v2115_v46  ;;  %v2119_v11 = vadd.f32 %v2118_v29, %v11201_v45  ;;  %v2120_v1 = vpop.f32.mrb[39].mxu1  ;;  %3740 = vmatmul.mubr.bf16.gmra.mrb[32].mxu0 %v3067_v42 }
 0x33f   : > { %v2896_v50 = vmul.f32 %v9859_v6, %v2117_v55  ;;  %v2121_v15 = vadd.f32 %v2120_v1, %v11212_v49  ;;  %4276 = vperm.xlu1 %8334, %v4026_v56   ;;  %v16365_v56 = vld [vmem:[#allocation36_spill] sm:$0xff] }
 0x340   : > { %v2897_v12 = vmul.f32 %v16360_v37, %v2119_v11  ;;  %v4042_v11 = vld [vmem:[%s10996_s26 + $0x1f0] sm:$0xff] }
 0x341   : > { %v2898_v17 = vmul.f32 %v16361_v34, %v2121_v15  ;;  %v11433_v52 = vpop.f32.mrb[184].mxu0 }
 0x342   : > { %v3069_v19 = vpack.c.bf16 %v2897_v12, %v2895_v14  ;;  %v11435_v23 = vpop.f32.mrb[185].mxu0  ;;  %v16366_v12 = vld [vmem:[#allocation37_spill] sm:$0xff] }
 0x343   : > { %16362 = vst [vmem:[#allocation24_spill] sm:$0xff] %v11435_v23  ;;  %v2124_v46 = vpop.f32.mrb[40].mxu1  ;;  %v11437_v29 = vpop.f32.mrb[186].mxu0  ;;  %v3070_v42 = vpack.c.bf16 %v2898_v17, %v2896_v50  ;;  %4356 = vperm.xlu1 %8334, %v4042_v11  }
 0x344   : > { %16363 = vst [vmem:[#allocation25_spill] sm:$0xff] %v11437_v29  ;;  %v2125_v6 = vadd.f32 %v2124_v46, %v11201_v45  ;;  %v2126_v55 = vpop.f32.mrb[41].mxu1  ;;  %v11440_v27 = vpop.f32.mrb[187].mxu0  ;;  %v4019_v29 = vld [vmem:[%s10996_s26 + $0x138] sm:$0xff] }
 0x345   : > { %16364 = vst [vmem:[#allocation26_spill] sm:$0xff] %v11440_v27  ;;  %v2127_v34 = vadd.f32 %v2126_v55, %v11212_v49  ;;  %v2128_v1 = vpop.f32.mrb[42].mxu1  ;;  %3749 = vmatprep.mubr.bf16.mxu0 %v3070_v42  ;;  %v4011_v27 = vld [vmem:[%s10996_s26 + $0xf8] sm:$0xff]  ;;  %v16367_v55 = vld [vmem:[#allocation38_spill] sm:$0xff]  ;;  %4241 = vperm.xlu0 %8333, %v4019_v29   ;;  %v16372_v29 = vld [vmem:[#allocation39_spill] sm:$0xff] }
 0x346   : > { %v2899_v14 = vmul.f32 %v16365_v56, %v2125_v6  ;;  %v2129_v15 = vadd.f32 %v2128_v1, %v11201_v45  ;;  %v2130_v37 = vpop.f32.mrb[43].mxu1  ;;  %3750 = vmatmul.mubr.bf16.gmra.mrb[36].mxu0 %v3069_v19 }
 0x347   : > { %v2900_v17 = vmul.f32 %v9886_v60, %v2127_v34  ;;  %v2131_v50 = vadd.f32 %v2130_v37, %v11212_v49  ;;  %4201 = vperm.xlu1 %8334, %v4011_v27   ;;  %v4027_v37 = vld [vmem:[%s10996_s26 + $0x178] sm:$0xff] }
 0x348   : > { %v2901_v46 = vmul.f32 %v16366_v12, %v2129_v15  ;;  %v4035_v12 = vld [vmem:[%s10996_s26 + $0x1b8] sm:$0xff] }
 0x349   : > { %v2902_v23 = vmul.f32 %v16367_v55, %v2131_v50  ;;  %v11452_v42 = vpop.f32.mrb[188].mxu0  ;;  %4321 = vperm.xlu0 %8333, %v4035_v12  }
 0x34a   : > { %16368 = vst [vmem:[#allocation27_spill] sm:$0xff] %v11452_v42  ;;  %v3071_v6 = vpack.c.bf16 %v2901_v46, %v2899_v14  ;;  %v11454_v11 = vpop.f32.mrb[189].mxu0 }
 0x34b   : > { %16369 = vst [vmem:[#allocation28_spill] sm:$0xff] %v11454_v11  ;;  %v2134_v19 = vpop.f32.mrb[44].mxu1  ;;  %v11456_v1 = vpop.f32.mrb[190].mxu0  ;;  %v3072_v60 = vpack.c.bf16 %v2902_v23, %v2900_v17  ;;  %4281 = vperm.xlu1 %8334, %v4027_v37   ;;  %v16374_v11 = vld [vmem:[#allocation41_spill] sm:$0xff] }
 0x34c   : > { %16370 = vst [vmem:[#allocation29_spill] sm:$0xff] %v11456_v1  ;;  %v2135_v34 = vadd.f32 %v2134_v19, %v11201_v45  ;;  %v2136_v56 = vpop.f32.mrb[45].mxu1  ;;  %v11459_v15 = vpop.f32.mrb[191].mxu0  ;;  %v16373_v19 = vld [vmem:[#allocation40_spill] sm:$0xff] }
 0x34d   : > { %16371 = vst [vmem:[#allocation30_spill] sm:$0xff] %v11459_v15  ;;  %v2137_v50 = vadd.f32 %v2136_v56, %v11212_v49  ;;  %v2138_v55 = vpop.f32.mrb[46].mxu1  ;;  %3759 = vmatprep.mubr.bf16.mxu0 %v3072_v60  ;;  %v4043_v1 = vld [vmem:[%s10996_s26 + $0x1f8] sm:$0xff]  ;;  %s8940_s26 = scalar_lea.vmem %s15717_s11, 2048 }
 0x34e   : > { %v2903_v27 = vmul.f32 %v16372_v29, %v2135_v34  ;;  %v2139_v14 = vadd.f32 %v2138_v55, %v11201_v45  ;;  %v2140_v46 = vpop.f32.mrb[47].mxu1  ;;  %3760 = vmatmul.mubr.bf16.gmra.mrb[40].mxu0 %v3071_v6  ;;  %p8941_p11 = scmp.ne.s32.totalorder %s15717_s11, %s8940_s26  ;;  %p8948_p1 = scmp.lt.s32.totalorder %s8946_s29, %s8940_s26 }
 0x34f   : > { %v2904_v23 = vmul.f32 %v9919_v47, %v2137_v50  ;;  %v2141_v17 = vadd.f32 %v2140_v46, %v11212_v49  ;;  %4361 = vperm.xlu1 %8334, %v4043_v1  }
 0x350   : > { %v2905_v15 = vmul.f32 %v16373_v19, %v2139_v14  ;;  %v16378_v19 = vld [vmem:[#allocation43_spill] sm:$0xff]  ;;  %p8942_p12 = pnand %p8941_p11, %p9101_p5  ;;  %p8949_p2 = por %p8948_p1, %p8947_p0 }
 0x351   : > { %v2906_v42 = vmul.f32 %v16374_v11, %v2141_v17  ;;  %v11471_v56 = vpop.f32.mrb[192].mxu0  ;;  %v16377_v11 = vld [vmem:[#allocation42_spill] sm:$0xff] }
 0x352   : > { %v3073_v60 = vpack.c.bf16 %v2905_v15, %v2903_v27  ;;  %v11473_v37 = vpop.f32.mrb[193].mxu0  ;;  %v4492_v27 = vmax.f32 %v11073_v39, 1e-38  ;;  %p8943_p13 = pneg %p8942_p12 }
 0x353   : > { %v2144_v34 = vpop.f32.mrb[48].mxu1  ;;  %v11475_v55 = vpop.f32.mrb[194].mxu0  ;;  %v3074_v6 = vpack.c.bf16 %v2906_v42, %v2904_v23  ;;  %v4493_v23 = vmax.f32 %v11080_v9, 1e-38 }
 0x354   : > { %16375 = vst [vmem:[#allocation31_spill] sm:$0xff] %v11475_v55  ;;  %v2145_v12 = vadd.f32 %v2144_v34, %v11201_v45  ;;  %v2146_v47 = vpop.f32.mrb[49].mxu1  ;;  %v11478_v50 = vpop.f32.mrb[195].mxu0  ;;  %8407 = vrcp.f32 %v4492_v27  ;;  %v16380_v27 = vld [vmem:[#allocation45_spill] sm:$0xff]  ;;  %p8950_p3 = pnand %p8949_p2, %p8943_p13 }
 0x355   : > { %16376 = vst [vmem:[#allocation32_spill] sm:$0xff] %v11478_v50  ;;  %v2147_v29 = vadd.f32 %v2146_v47, %v11212_v49  ;;  %v2148_v14 = vpop.f32.mrb[50].mxu1  ;;  %3769 = vmatprep.mubr.bf16.mxu0 %v3074_v6  ;;  %v4494_v47 = vmax.f32 %v11084_v3, 1e-38  ;;  %v16379_v50 = vld [vmem:[#allocation44_spill] sm:$0xff]  ;;  %8409 = vrcp.f32 %v4493_v23 }
 0x356   : > { %v2907_v46 = vmul.f32 %v16377_v11, %v2145_v12  ;;  %v2149_v1 = vadd.f32 %v2148_v14, %v11201_v45  ;;  %v2150_v15 = vpop.f32.mrb[51].mxu1  ;;  %3770 = vmatmul.mubr.bf16.gmra.mrb[44].mxu0 %v3073_v60  ;;  %v4495_v12 = vmax.f32 %v11089_v53, 1e-38  ;;  %v4497_v11 = vmax.f32 %v11112_v63, 1e-38 }
 0x357   : > { %v2908_v17 = vmul.f32 %v9946_v54, %v2147_v29  ;;  %v2151_v42 = vadd.f32 %v2150_v15, %v11212_v49  ;;  %v4496_v54 = vmax.f32 %v11105_v22, 1e-38  ;;  %8411 = vrcp.f32 %v4494_v47 }
 0x358   : > { %v2909_v34 = vmul.f32 %v16378_v19, %v2149_v1  ;;  %v4498_v53 = vmax.f32 %v11116_v24, 1e-38  ;;  %8413 = vrcp.f32 %v4495_v12  ;;  %v4499_v22 = vmax.f32 %v11121_v10, 1e-38 }
 0x359   : > { %v2910_v6 = vmul.f32 %v16379_v50, %v2151_v42  ;;  %v11490_v55 = vpop.f32.mrb[196].mxu0  ;;  %8415 = vrcp.f32 %v4496_v54  ;;  %v4500_v23 = vmax.f32 %v11137_v13, 1e-38  ;;  %v4502_v10 = vmax.f32 %v11148_v35, 1e-38 }
 0x35a   : > { %v3075_v14 = vpack.c.bf16 %v2909_v34, %v2907_v46  ;;  %v11493_v60 = vpop.f32.mrb[197].mxu0  ;;  %8417 = vrcp.f32 %v4497_v11  ;;  %v4501_v34 = vmax.f32 %v11144_v0, 1e-38  ;;  %v4505_v35 = vmax.f32 %v11176_v48, 1e-38  ;;  %v16382_v48 = vld [vmem:[#allocation47_spill] sm:$0xff] }
 0x35b   : > { %v2154_v39 = vpop.f32.mrb[52].mxu1  ;;  %v11496_v29 = vpop.f32.mrb[198].mxu0  ;;  %v3076_v9 = vpack.c.bf16 %v2910_v6, %v2908_v17  ;;  %8419 = vrcp.f32 %v4498_v53  ;;  %v16381_v6 = vld [vmem:[#allocation46_spill] sm:$0xff] }
 0x35c   : > { %v2155_v3 = vadd.f32 %v2154_v39, %v11201_v45  ;;  %v2156_v50 = vpop.f32.mrb[53].mxu1  ;;  %v11500_v1 = vpop.f32.mrb[199].mxu0  ;;  %8421 = vrcp.f32 %v4499_v22  ;;  %v4507_v22 = vmax.f32 %v11185_v59, 1e-38  ;;  %v4509_v59 = vmax.f32 %v11219_v41, 1e-38 }
 0x35d   : > { %v2157_v46 = vadd.f32 %v2156_v50, %v11212_v49  ;;  %v2158_v15 = vpop.f32.mrb[54].mxu1  ;;  %3779 = vmatprep.mubr.bf16.mxu0 %v3076_v9  ;;  %8423 = vrcp.f32 %v4500_v23  ;;  %v16383_v23 = vld [vmem:[#allocation48_spill] sm:$0xff] }
 0x35e   : > { %v2911_v17 = vmul.f32 %v16380_v27, %v2155_v3  ;;  %v2159_v42 = vadd.f32 %v2158_v15, %v11201_v45  ;;  %v2160_v63 = vpop.f32.mrb[55].mxu1  ;;  %3780 = vmatmul.mubr.bf16.gmra.mrb[48].mxu0 %v3075_v14  ;;  %v4503_v14 = vmax.f32 %v11153_v61, 1e-38  ;;  %8425 = vrcp.f32 %v4501_v34  ;;  %v11526_v53 = vpop.eup %8407 }
 0x35f   : > { %v2912_v19 = vmul.f32 %v9979_v57, %v2157_v46  ;;  %v2161_v24 = vadd.f32 %v2160_v63, %v11212_v49  ;;  %v4504_v57 = vmax.f32 %v11169_v36, 1e-38  ;;  %8427 = vrcp.f32 %v4502_v10  ;;  %v11530_v15 = vpop.eup %8409 }
 0x360   : > { %v2913_v47 = vmul.f32 %v9981_v5, %v2159_v42  ;;  %v4506_v61 = vmax.f32 %v11180_v7, 1e-38  ;;  %8429 = vrcp.f32 %v4503_v14  ;;  %v4508_v7 = vmax.f32 %v11208_v40, 1e-38  ;;  %v16385_v14 = vld [vmem:[#allocation50_spill] sm:$0xff] }
 0x361   : > { %v2914_v12 = vmul.f32 %v16381_v6, %v2161_v24  ;;  %v11514_v39 = vpop.f32.mrb[200].mxu0  ;;  %v11535_v63 = vpop.eup %8411  ;;  %8431 = vrcp.f32 %v4504_v57 }
 0x362   : > { %v3077_v13 = vpack.c.bf16 %v2913_v47, %v2911_v17  ;;  %v11517_v54 = vpop.f32.mrb[201].mxu0  ;;  %v11540_v34 = vpop.eup %8413  ;;  %8433 = vrcp.f32 %v4505_v35  ;;  %v16384_v47 = vld [vmem:[#allocation49_spill] sm:$0xff] }
 0x363   : > { %v2164_v9 = vpop.f32.mrb[56].mxu1  ;;  %v11520_v0 = vpop.f32.mrb[202].mxu0  ;;  %v3078_v5 = vpack.c.bf16 %v2914_v12, %v2912_v19  ;;  %8435 = vrcp.f32 %v4506_v61  ;;  %v4510_v12 = vmax.f32 %v11223_v32, 1e-38 }
 0x364   : > { %v2165_v11 = vadd.f32 %v2164_v9, %v11201_v45  ;;  %v2166_v3 = vpop.f32.mrb[57].mxu1  ;;  %v11524_v50 = vpop.f32.mrb[203].mxu0  ;;  %8437 = vrcp.f32 %v4507_v22  ;;  %v4511_v9 = vmax.f32 %v11229_v51, 1e-38 }
 0x365   : > { %v2167_v46 = vadd.f32 %v2166_v3, %v11212_v49  ;;  %v2168_v36 = vpop.f32.mrb[58].mxu1  ;;  %3789 = vmatprep.mubr.bf16.mxu0 %v3078_v5  ;;  %v11544_v6 = vpop.eup %8415  ;;  %8439 = vrcp.f32 %v4508_v7 }
 0x366   : > { %v2915_v27 = vmul.f32 %v16382_v48, %v2165_v11  ;;  %v2169_v17 = vadd.f32 %v2168_v36, %v11201_v45  ;;  %v2170_v42 = vpop.f32.mrb[59].mxu1  ;;  %3790 = vmatmul.mubr.bf16.gmra.mrb[52].mxu0 %v3077_v13  ;;  %v11550_v40 = vpop.eup %8417  ;;  %v4512_v11 = vmax.f32 %v11242_v16, 1e-38  ;;  %8441 = vrcp.f32 %v4509_v59 }
 0x367   : > { %v2916_v19 = vmul.f32 %v16383_v23, %v2167_v46  ;;  %v2171_v24 = vadd.f32 %v2170_v42, %v11212_v49  ;;  %v11555_v41 = vpop.eup %8419  ;;  %v4513_v36 = vmax.f32 %v11247_v20, 1e-38  ;;  %8443 = vrcp.f32 %v4510_v12  ;;  %v16386_v20 = vld [vmem:[#allocation51_spill] sm:$0xff] }
 0x368   : > { %v2917_v10 = vmul.f32 %v16384_v47, %v2169_v17  ;;  %v11560_v46 = vpop.eup %8421  ;;  %v4514_v17 = vmax.f32 %v11249_v43, 1e-38  ;;  %8445 = vrcp.f32 %v4511_v9  ;;  %v4515_v23 = vmax.f32 %v11253_v2, 1e-38 }
 0x369   : > { %v2918_v13 = vmul.f32 %v16385_v14, %v2171_v24  ;;  %v11548_v57 = vpop.f32.mrb[204].mxu0  ;;  %8447 = vrcp.f32 %v4512_v11  ;;  %v4516_v43 = vmax.f32 %v11266_v26, 1e-38  ;;  %v4517_v2 = vmax.f32 %v11271_v31, 1e-38 }
 0x36a   : > { %v3079_v5 = vpack.c.bf16 %v2917_v10, %v2915_v27  ;;  %v11553_v35 = vpop.f32.mrb[205].mxu0  ;;  %v11566_v27 = vpop.eup %8423  ;;  %8449 = vrcp.f32 %v4513_v36 }
 0x36b   : > { %v2174_v3 = vpop.f32.mrb[60].mxu1  ;;  %v11558_v61 = vpop.f32.mrb[206].mxu0  ;;  %v3080_v32 = vpack.c.bf16 %v2918_v13, %v2916_v19  ;;  %v16387_v13 = vld [vmem:[#allocation52_spill] sm:$0xff]  ;;  %8451 = vrcp.f32 %v4514_v17 }
 0x36c   : > { %v2175_v22 = vadd.f32 %v2174_v3, %v11201_v45  ;;  %v2176_v51 = vpop.f32.mrb[61].mxu1  ;;  %v11564_v48 = vpop.f32.mrb[207].mxu0  ;;  %8453 = vrcp.f32 %v4515_v23 }
 0x36d   : > { %v2177_v16 = vadd.f32 %v2176_v51, %v11212_v49  ;;  %v2178_v42 = vpop.f32.mrb[62].mxu1  ;;  %3799 = vmatprep.mubr.bf16.mxu0 %v3080_v32  ;;  %v11570_v7 = vpop.eup %8425  ;;  %v16388_v32 = vld [vmem:[#allocation53_spill] sm:$0xff]  ;;  %8455 = vrcp.f32 %v4516_v43 }
 0x36e   : > { %v2919_v19 = vmul.f32 %v16386_v20, %v2175_v22  ;;  %v2179_v24 = vadd.f32 %v2178_v42, %v11201_v45  ;;  %v2180_v59 = vpop.f32.mrb[63].mxu1  ;;  %3800 = vmatmul.mubr.bf16.gmra.mrb[56].mxu0 %v3079_v5  ;;  %v11575_v47 = vpop.eup %8427  ;;  %v4518_v5 = vmax.f32 %v11273_v38, 1e-38  ;;  %8457 = vrcp.f32 %v4517_v2  ;;  %v16393_v43 = vld [vmem:[#allocation5_spill] sm:$0xff]  ;;  %v16394_v2 = vld [vmem:[#allocation6_spill] sm:$0xff] }
 0x36f   : > { %v2920_v10 = vmul.f32 %v10059_v18, %v2177_v16  ;;  %v2181_v12 = vadd.f32 %v2180_v59, %v11212_v49  ;;  %v11580_v14 = vpop.eup %8429  ;;  %v4519_v18 = vmax.f32 %v11277_v28, 1e-38  ;;  %v4520_v16 = vmax.f32 %v11290_v33, 1e-38 }
 0x370   : > { %v2921_v9 = vmul.f32 %v16387_v13, %v2179_v24  ;;  %v11584_v3 = vpop.eup %8431  ;;  %v4521_v24 = vmax.f32 %v11295_v21, 1e-38  ;;  %8459 = vrcp.f32 %v4518_v5  ;;  %v16395_v21 = vld [vmem:[#allocation54_spill] sm:$0xff]  ;;  %v4524_v5 = vmax.f32 %v11314_v25, 1e-38  ;;  %v16400_v25 = vld [vmem:[#allocation121_spill] sm:$0xff] }
 0x371   : > { %v2922_v11 = vmul.f32 %v16388_v32, %v2181_v12  ;;  %v11588_v22 = vpop.f32.mrb[208].mxu0  ;;  %v11590_v26 = vpop.eup %8433  ;;  %v4522_v12 = vmax.f32 %v16393_v43, 1e-38  ;;  %8461 = vrcp.f32 %v4519_v18  ;;  %v16396_v43 = vld [vmem:[#allocation55_spill] sm:$0xff]  ;;  %v4525_v18 = vmax.f32 %v11319_v4, 1e-38 }
 0x372   : > { %16389 = vst [vmem:[#allocation33_spill] sm:$0xff] %v11588_v22  ;;  %v3081_v51 = vpack.c.bf16 %v2921_v9, %v2919_v19  ;;  %v11593_v36 = vpop.f32.mrb[209].mxu0  ;;  %v11595_v31 = vpop.eup %8435  ;;  %v4523_v9 = vmax.f32 %v16394_v2, 1e-38  ;;  %8463 = vrcp.f32 %v4520_v16  ;;  %v16397_v2 = vld [vmem:[#allocation56_spill] sm:$0xff]  ;;  %v16451_v22 = vld [vmem:[#allocation65_spill] sm:$0xff] }
 0x373   : > { %16390 = vst [vmem:[#allocation34_spill] sm:$0xff] %v11593_v36  ;;  %v2184_v17 = vpop.f32.mrb[64].mxu1  ;;  %v11598_v42 = vpop.f32.mrb[210].mxu0  ;;  %v3082_v38 = vpack.c.bf16 %v2922_v11, %v2920_v10  ;;  %8465 = vrcp.f32 %v4521_v24  ;;  %v16402_v24 = vld [vmem:[#allocation7_spill] sm:$0xff] }
 0x374   : > { %16391 = vst [vmem:[#allocation35_spill] sm:$0xff] %v11598_v42  ;;  %v11600_v20 = vpop.eup %8437  ;;  %v2185_v23 = vadd.f32 %v2184_v17, %v11201_v45  ;;  %v2186_v28 = vpop.f32.mrb[65].mxu1  ;;  %8467 = vrcp.f32 %v4522_v12  ;;  %v4527_v4 = vmax.f32 %v16402_v24, 1e-38 }
 0x375   : > { %v11604_v19 = vpop.f32.mrb[211].mxu0  ;;  %v11606_v59 = vpop.eup %8439  ;;  %v2187_v33 = vadd.f32 %v2186_v28, %v11212_v49  ;;  %3809 = vmatprep.mubr.bf16.mxu0 %v3082_v38  ;;  %8469 = vrcp.f32 %v4523_v9 }
 0x376   : > { %16392 = vst [vmem:[#allocation36_spill] sm:$0xff] %v11604_v19  ;;  %v2188_v13 = vpop.f32.mrb[66].mxu1  ;;  %v11610_v10 = vpop.eup %8441  ;;  %v2923_v32 = vmul.f32 %v16395_v21, %v2185_v23  ;;  %3810 = vmatmul.mubr.bf16.gmra.mrb[60].mxu0 %v3081_v51  ;;  %v4526_v51 = vmax.f32 %v11321_v62, 1e-38  ;;  %8471 = vrcp.f32 %v4524_v5  ;;  %v16411_v5 = vld [vmem:[#allocation120_spill] sm:$0xff] }
 0x377   : > { %v2189_v11 = vadd.f32 %v2188_v13, %v11201_v45  ;;  %v2190_v17 = vpop.f32.mrb[67].mxu1  ;;  %v11615_v19 = vpop.eup %8443  ;;  %v2924_v28 = vmul.f32 %v16396_v43, %v2187_v33  ;;  %v16398_v13 = vld [vmem:[#allocation57_spill] sm:$0xff]  ;;  %v11632_v33 = vmul.f32 %v11526_v53, %v16400_v25  ;;  %8473 = vrcp.f32 %v4525_v18 }
 0x378   : > { %v2191_v38 = vadd.f32 %v2190_v17, %v11212_v49  ;;  %v11620_v42 = vpop.eup %8445  ;;  %8475 = vrcp.f32 %v4526_v51  ;;  %v16414_v18 = vld [vmem:[#allocation125_spill] sm:$0xff] }
 0x379   : > { %v2925_v23 = vmul.f32 %v16397_v2, %v2189_v11  ;;  %v11624_v21 = vpop.eup %8447  ;;  %v11628_v36 = vpop.f32.mrb[212].mxu0  ;;  %16401 = vst [vmem:[#allocation38_spill] sm:$0xff] %v11632_v33  ;;  %v16404_v2 = vld [vmem:[#allocation119_spill] sm:$0xff]  ;;  %v16407_v33 = vld [vmem:[#allocation118_spill] sm:$0xff]  ;;  %8477 = vrcp.f32 %v4527_v4 }
 0x37a   : > { %v2926_v16 = vmul.f32 %v16398_v13, %v2191_v38  ;;  %16399 = vst [vmem:[#allocation37_spill] sm:$0xff] %v11628_v36  ;;  %v11634_v17 = vpop.eup %8449  ;;  %v11637_v11 = vpop.f32.mrb[213].mxu0  ;;  %v11641_v12 = vmul.f32 %v11530_v15, %v16404_v2  ;;  %v4528_v38 = vmax.f32 %v11338_v30, 1e-38  ;;  %v11650_v9 = vmul.f32 %v11535_v63, %v16407_v33  ;;  %v16419_v4 = vld [vmem:[#allocation11_spill] sm:$0xff]  ;;  %v16424_v36 = vld [vmem:[#allocation61_spill] sm:$0xff] }
 0x37b   : > { %v3083_v43 = vpack.c.bf16 %v2925_v23, %v2923_v32  ;;  %16403 = vst [vmem:[#allocation39_spill] sm:$0xff] %v11637_v11  ;;  %v11643_v62 = vpop.eup %8451  ;;  %v2194_v13 = vpop.f32.mrb[68].mxu1  ;;  %v16409_v23 = vld [vmem:[#allocation8_spill] sm:$0xff]  ;;  %v11660_v30 = vmul.f32 %v11540_v34, %v16411_v5  ;;  %v16417_v34 = vld [vmem:[#allocation58_spill] sm:$0xff] }
 0x37c   : > { %16405 = vst [vmem:[#allocation40_spill] sm:$0xff] %v11641_v12  ;;  %v11646_v53 = vpop.f32.mrb[214].mxu0  ;;  %v3084_v25 = vpack.c.bf16 %v2926_v16, %v2924_v28  ;;  %16408 = vst [vmem:[#allocation42_spill] sm:$0xff] %v11650_v9  ;;  %v11652_v32 = vpop.eup %8453  ;;  %v4529_v24 = vmax.f32 %v16409_v23, 1e-38  ;;  %v2195_v15 = vadd.f32 %v2194_v13, %v11201_v45  ;;  %v16413_v28 = vld [vmem:[#allocation9_spill] sm:$0xff]  ;;  %v11668_v23 = vmul.f32 %v11544_v6, %v16414_v18 }
 0x37d   : > { %16406 = vst [vmem:[#allocation41_spill] sm:$0xff] %v11646_v53  ;;  %v2196_v2 = vpop.f32.mrb[69].mxu1  ;;  %v11656_v12 = vpop.f32.mrb[215].mxu0  ;;  %16412 = vst [vmem:[#allocation44_spill] sm:$0xff] %v11660_v30  ;;  %v4530_v63 = vmax.f32 %v16413_v28, 1e-38  ;;  %8479 = vrcp.f32 %v4528_v38 }
 0x37e   : > { %16410 = vst [vmem:[#allocation43_spill] sm:$0xff] %v11656_v12  ;;  %v11662_v53 = vpop.eup %8455  ;;  %v2197_v16 = vadd.f32 %v2196_v2, %v11212_v49  ;;  %v2198_v33 = vpop.f32.mrb[70].mxu1  ;;  %3819 = vmatprep.mubr.bf16.mxu0 %v3084_v25  ;;  %16415 = vst [vmem:[#allocation45_spill] sm:$0xff] %v11668_v23  ;;  %v16416_v9 = vld [vmem:[#allocation10_spill] sm:$0xff]  ;;  %v2927_v5 = vmul.f32 %v16417_v34, %v2195_v15  ;;  %v4532_v25 = vmax.f32 %v11358_v58, 1e-38  ;;  %8481 = vrcp.f32 %v4529_v24 }
 0x37f   : > { %v11670_v13 = vpop.eup %8457  ;;  %v4531_v12 = vmax.f32 %v16416_v9, 1e-38  ;;  %v2199_v30 = vadd.f32 %v2198_v33, %v11201_v45  ;;  %v2200_v51 = vpop.f32.mrb[71].mxu1  ;;  %3820 = vmatmul.mubr.bf16.gmra.mrb[64].mxu0 %v3083_v43  ;;  %v16418_v2 = vld [vmem:[#allocation59_spill] sm:$0xff]  ;;  %v4533_v9 = vmax.f32 %v16419_v4, 1e-38  ;;  %8483 = vrcp.f32 %v4530_v63 }
 0x380   : > { %v11675_v28 = vpop.eup %8459  ;;  %v2928_v11 = vmul.f32 %v16418_v2, %v2197_v16  ;;  %v2201_v6 = vadd.f32 %v2200_v51, %v11212_v49  ;;  %v16420_v23 = vld [vmem:[#allocation60_spill] sm:$0xff]  ;;  %v16421_v34 = vld [vmem:[#allocation123_spill] sm:$0xff]  ;;  %v16426_v51 = vld [vmem:[#allocation122_spill] sm:$0xff] }
 0x381   : > { %v11680_v18 = vpop.eup %8461  ;;  %v2929_v15 = vmul.f32 %v16420_v23, %v2199_v30  ;;  %v11686_v33 = vmul.f32 %v11550_v40, %v16421_v34  ;;  %v16423_v38 = vld [vmem:[#allocation12_spill] sm:$0xff]  ;;  %v11692_v2 = vpop.f32.mrb[216].mxu0  ;;  %v11696_v24 = vmul.f32 %v11555_v41, %v16426_v51  ;;  %8485 = vrcp.f32 %v4531_v12  ;;  %v16428_v30 = vld [vmem:[#allocation13_spill] sm:$0xff] }
 0x382   : > { %v11688_v43 = vpop.eup %8463  ;;  %v4534_v58 = vmax.f32 %v16423_v38, 1e-38  ;;  %v2930_v16 = vmul.f32 %v16424_v36, %v2201_v6  ;;  %16425 = vst [vmem:[#allocation47_spill] sm:$0xff] %v11692_v2  ;;  %v4535_v23 = vmax.f32 %v16428_v30, 1e-38  ;;  %v11701_v34 = vpop.f32.mrb[217].mxu0  ;;  %8487 = vrcp.f32 %v4532_v25 }
 0x383   : > { %16422 = vst [vmem:[#allocation46_spill] sm:$0xff] %v11686_v33  ;;  %16427 = vst [vmem:[#allocation48_spill] sm:$0xff] %v11696_v24  ;;  %v11698_v4 = vpop.eup %8465  ;;  %v3085_v40 = vpack.c.bf16 %v2929_v15, %v2927_v5  ;;  %v16430_v33 = vld [vmem:[#allocation124_spill] sm:$0xff]  ;;  %v16432_v36 = vld [vmem:[#allocation14_spill] sm:$0xff]  ;;  %v2204_v2 = vpop.f32.mrb[72].mxu1  ;;  %8489 = vrcp.f32 %v4533_v9 }
 0x384   : > { %16429 = vst [vmem:[#allocation49_spill] sm:$0xff] %v11701_v34  ;;  %v11705_v63 = vmul.f32 %v11560_v46, %v16430_v33  ;;  %v11707_v38 = vpop.eup %8467  ;;  %v4536_v6 = vmax.f32 %v16432_v36, 1e-38  ;;  %v11710_v41 = vpop.f32.mrb[218].mxu0  ;;  %v3086_v51 = vpack.c.bf16 %v2930_v16, %v2928_v11  ;;  %v16434_v24 = vld [vmem:[#allocation129_spill] sm:$0xff]  ;;  %v16436_v15 = vld [vmem:[#allocation15_spill] sm:$0xff]  ;;  %v2205_v46 = vadd.f32 %v2204_v2, %v11201_v45 }
 0x385   : > { %16433 = vst [vmem:[#allocation51_spill] sm:$0xff] %v11710_v41  ;;  %v11714_v12 = vmul.f32 %v11566_v27, %v16434_v24  ;;  %v11716_v5 = vpop.eup %8469  ;;  %v4537_v30 = vmax.f32 %v16436_v15, 1e-38  ;;  %v2206_v33 = vpop.f32.mrb[73].mxu1  ;;  %v16438_v25 = vld [vmem:[#allocation127_spill] sm:$0xff]  ;;  %8491 = vrcp.f32 %v4534_v58  ;;  %v16440_v11 = vld [vmem:[#allocation16_spill] sm:$0xff] }
 0x386   : > { %16431 = vst [vmem:[#allocation50_spill] sm:$0xff] %v11705_v63  ;;  %v11720_v63 = vpop.f32.mrb[219].mxu0  ;;  %v11724_v36 = vmul.f32 %v11570_v7, %v16438_v25  ;;  %v11726_v41 = vpop.eup %8471  ;;  %v4538_v27 = vmax.f32 %v16440_v11, 1e-38  ;;  %v2207_v16 = vadd.f32 %v2206_v33, %v11212_v49  ;;  %3829 = vmatprep.mubr.bf16.mxu0 %v3086_v51  ;;  %v16441_v9 = vld [vmem:[#allocation126_spill] sm:$0xff]  ;;  %8493 = vrcp.f32 %v4535_v23  ;;  %v16445_v33 = vld [vmem:[#allocation63_spill] sm:$0xff] }
 0x387   : > { %16435 = vst [vmem:[#allocation52_spill] sm:$0xff] %v11714_v12  ;;  %16437 = vst [vmem:[#allocation53_spill] sm:$0xff] %v11720_v63  ;;  %v2208_v24 = vpop.f32.mrb[74].mxu1  ;;  %v11732_v15 = vmul.f32 %v11575_v47, %v16441_v9  ;;  %v11734_v2 = vpop.eup %8473  ;;  %v16443_v12 = vld [vmem:[#allocation17_spill] sm:$0xff]  ;;  %v16444_v7 = vld [vmem:[#allocation62_spill] sm:$0xff]  ;;  %3830 = vmatmul.mubr.bf16.gmra.mrb[68].mxu0 %v3085_v40  ;;  %8495 = vrcp.f32 %v4536_v6 }
 0x388   : > { %16439 = vst [vmem:[#allocation5_spill] sm:$0xff] %v11724_v36  ;;  %v4539_v63 = vmax.f32 %v16443_v12, 1e-38  ;;  %v2931_v25 = vmul.f32 %v16444_v7, %v2205_v46  ;;  %v2209_v36 = vadd.f32 %v2208_v24, %v11201_v45  ;;  %v2210_v58 = vpop.f32.mrb[75].mxu1  ;;  %v11739_v11 = vpop.eup %8475  ;;  %v4540_v51 = vmax.f32 %v11397_v44, 1e-38 }
 0x389   : > { %16442 = vst [vmem:[#allocation6_spill] sm:$0xff] %v11732_v15  ;;  %v2932_v34 = vmul.f32 %v16445_v33, %v2207_v16  ;;  %v2211_v47 = vadd.f32 %v2210_v58, %v11212_v49  ;;  %v11744_v9 = vpop.eup %8477  ;;  %8497 = vrcp.f32 %v4537_v30  ;;  %v16446_v23 = vld [vmem:[#allocation18_spill] sm:$0xff]  ;;  %v16447_v15 = vld [vmem:[#allocation64_spill] sm:$0xff]  ;;  %v16450_v6 = vld [vmem:[#allocation19_spill] sm:$0xff]  ;;  %v11756_v33 = vpop.f32.mrb[220].mxu0 }
 0x38a   : > { %v4541_v12 = vmax.f32 %v16446_v23, 1e-38  ;;  %v2933_v46 = vmul.f32 %v16447_v15, %v2209_v36  ;;  %v16448_v7 = vld [vmem:[#allocation128_spill] sm:$0xff]  ;;  %v11752_v40 = vpop.eup %8479  ;;  %8499 = vrcp.f32 %v4538_v27  ;;  %v4542_v44 = vmax.f32 %v16450_v6, 1e-38  ;;  %16452 = vst [vmem:[#allocation55_spill] sm:$0xff] %v11756_v33 }
 0x38b   : > { %v11750_v24 = vmul.f32 %v11580_v14, %v16448_v7  ;;  %v2934_v16 = vmul.f32 %v16451_v22, %v2211_v47  ;;  %v16453_v58 = vld [vmem:[#allocation133_spill] sm:$0xff]  ;;  %v11762_v23 = vpop.eup %8481  ;;  %8501 = vrcp.f32 %v4539_v63  ;;  %v16455_v36 = vld [vmem:[#allocation20_spill] sm:$0xff]  ;;  %v11765_v7 = vpop.f32.mrb[221].mxu0  ;;  %v4544_v22 = vmax.f32 %v11415_v8, 1e-38 }
 0x38c   : > { %v11760_v30 = vmul.f32 %v11584_v3, %v16453_v58  ;;  %v4543_v15 = vmax.f32 %v16455_v36, 1e-38  ;;  %v3087_v14 = vpack.c.bf16 %v2933_v46, %v2931_v25  ;;  %16456 = vst [vmem:[#allocation57_spill] sm:$0xff] %v11765_v7  ;;  %v11771_v6 = vpop.eup %8483  ;;  %8503 = vrcp.f32 %v4540_v51  ;;  %v2214_v47 = vpop.f32.mrb[76].mxu1  ;;  %v16462_v46 = vld [vmem:[#allocation21_spill] sm:$0xff]  ;;  %v16464_v51 = vld [vmem:[#allocation132_spill] sm:$0xff] }
 0x38d   : > { %16449 = vst [vmem:[#allocation54_spill] sm:$0xff] %v11750_v24  ;;  %v16457_v24 = vld [vmem:[#allocation131_spill] sm:$0xff]  ;;  %v11774_v3 = vpop.f32.mrb[222].mxu0  ;;  %v3088_v58 = vpack.c.bf16 %v2934_v16, %v2932_v34  ;;  %v11780_v25 = vpop.eup %8485  ;;  %8505 = vrcp.f32 %v4541_v12  ;;  %v4545_v36 = vmax.f32 %v16462_v46, 1e-38  ;;  %v11788_v8 = vmul.f32 %v11600_v20, %v16464_v51  ;;  %v16466_v34 = vld [vmem:[#allocation22_spill] sm:$0xff] }
 0x38e   : > { %16454 = vst [vmem:[#allocation56_spill] sm:$0xff] %v11760_v30  ;;  %v11769_v27 = vmul.f32 %v11590_v26, %v16457_v24  ;;  %16459 = vst [vmem:[#allocation7_spill] sm:$0xff] %v11774_v3  ;;  %v16460_v30 = vld [vmem:[#allocation130_spill] sm:$0xff]  ;;  %v2215_v26 = vadd.f32 %v2214_v47, %v11201_v45  ;;  %v2216_v24 = vpop.f32.mrb[77].mxu1  ;;  %v11790_v3 = vpop.eup %8487  ;;  %8507 = vrcp.f32 %v4542_v44  ;;  %v16467_v12 = vld [vmem:[#allocation137_spill] sm:$0xff] }
 0x38f   : > { %v11778_v63 = vmul.f32 %v11595_v31, %v16460_v30  ;;  %16465 = vst [vmem:[#allocation8_spill] sm:$0xff] %v11788_v8  ;;  %v4546_v31 = vmax.f32 %v16466_v34, 1e-38  ;;  %v2217_v16 = vadd.f32 %v2216_v24, %v11212_v49  ;;  %v2218_v30 = vpop.f32.mrb[78].mxu1  ;;  %3839 = vmatprep.mubr.bf16.mxu0 %v3088_v58  ;;  %v11796_v46 = vmul.f32 %v11606_v59, %v16467_v12  ;;  %v11798_v47 = vpop.eup %8489  ;;  %v16470_v20 = vld [vmem:[#allocation66_spill] sm:$0xff]  ;;  %v16471_v24 = vld [vmem:[#allocation67_spill] sm:$0xff] }
 0x390   : > { %16458 = vst [vmem:[#allocation121_spill] sm:$0xff] %v11769_v27  ;;  %v11784_v27 = vpop.f32.mrb[223].mxu0  ;;  %8509 = vrcp.f32 %v4543_v15  ;;  %v2935_v51 = vmul.f32 %v16470_v20, %v2215_v26  ;;  %v2219_v8 = vadd.f32 %v2218_v30, %v11201_v45  ;;  %v2220_v44 = vpop.f32.mrb[79].mxu1  ;;  %3840 = vmatmul.mubr.bf16.gmra.mrb[72].mxu0 %v3087_v14  ;;  %v4548_v58 = vmax.f32 %v11433_v52, 1e-38  ;;  %v16472_v15 = vld [vmem:[#allocation24_spill] sm:$0xff] }
 0x391   : > { %16461 = vst [vmem:[#allocation119_spill] sm:$0xff] %v11778_v63  ;;  %16463 = vst [vmem:[#allocation118_spill] sm:$0xff] %v11784_v27  ;;  %v16469_v63 = vld [vmem:[#allocation23_spill] sm:$0xff]  ;;  %v11803_v34 = vpop.eup %8491  ;;  %8511 = vrcp.f32 %v4544_v22  ;;  %v2936_v7 = vmul.f32 %v16471_v24, %v2217_v16  ;;  %v2221_v59 = vadd.f32 %v2220_v44, %v11212_v49  ;;  %v16476_v22 = vld [vmem:[#allocation25_spill] sm:$0xff]  ;;  %v11820_v24 = vpop.f32.mrb[224].mxu0 }
 0x392   : > { %16468 = vst [vmem:[#allocation120_spill] sm:$0xff] %v11796_v46  ;;  %v4547_v27 = vmax.f32 %v16469_v63, 1e-38  ;;  %v11808_v12 = vpop.eup %8493  ;;  %8513 = vrcp.f32 %v4545_v36  ;;  %v4549_v63 = vmax.f32 %v16472_v15, 1e-38  ;;  %v16473_v46 = vld [vmem:[#allocation68_spill] sm:$0xff] }
 0x393   : > { %v2937_v26 = vmul.f32 %v16473_v46, %v2219_v8  ;;  %v16474_v20 = vld [vmem:[#allocation135_spill] sm:$0xff]  ;;  %v11816_v14 = vpop.eup %8495  ;;  %8515 = vrcp.f32 %v4546_v31  ;;  %v4550_v52 = vmax.f32 %v16476_v22, 1e-38  ;;  %v16477_v33 = vld [vmem:[#allocation69_spill] sm:$0xff]  ;;  %16478 = vst [vmem:[#allocation125_spill] sm:$0xff] %v11820_v24  ;;  %v16479_v44 = vld [vmem:[#allocation134_spill] sm:$0xff] }
 0x394   : > { %v11814_v30 = vmul.f32 %v11610_v10, %v16474_v20  ;;  %v2938_v16 = vmul.f32 %v16477_v33, %v2221_v59  ;;  %v11824_v36 = vmul.f32 %v11615_v19, %v16479_v44  ;;  %v11826_v15 = vpop.eup %8497  ;;  %8517 = vrcp.f32 %v4547_v27  ;;  %v16481_v8 = vld [vmem:[#allocation26_spill] sm:$0xff]  ;;  %v11829_v20 = vpop.f32.mrb[225].mxu0  ;;  %v16484_v33 = vld [vmem:[#allocation27_spill] sm:$0xff] }
 0x395   : > { %v4551_v46 = vmax.f32 %v16481_v8, 1e-38  ;;  %v3089_v10 = vpack.c.bf16 %v2937_v26, %v2935_v51  ;;  %v11835_v22 = vpop.eup %8499  ;;  %8519 = vrcp.f32 %v4548_v58  ;;  %v4552_v59 = vmax.f32 %v16484_v33, 1e-38  ;;  %v2224_v24 = vpop.f32.mrb[80].mxu1  ;;  %v16488_v26 = vld [vmem:[#allocation28_spill] sm:$0xff] }
 0x396   : > { %16475 = vst [vmem:[#allocation9_spill] sm:$0xff] %v11814_v30  ;;  %16480 = vst [vmem:[#allocation10_spill] sm:$0xff] %v11824_v36  ;;  %v16482_v30 = vld [vmem:[#allocation136_spill] sm:$0xff]  ;;  %v11838_v19 = vpop.f32.mrb[226].mxu0  ;;  %v3090_v44 = vpack.c.bf16 %v2938_v16, %v2936_v7  ;;  %v16486_v36 = vld [vmem:[#allocation141_spill] sm:$0xff]  ;;  %v11844_v51 = vpop.eup %8501  ;;  %8521 = vrcp.f32 %v4549_v63 }
 0x397   : > { %v11833_v31 = vmul.f32 %v11620_v42, %v16482_v30  ;;  %16485 = vst [vmem:[#allocation59_spill] sm:$0xff] %v11838_v19  ;;  %v11842_v27 = vmul.f32 %v11624_v21, %v16486_v36  ;;  %v4553_v8 = vmax.f32 %v16488_v26, 1e-38  ;;  %v2225_v42 = vadd.f32 %v2224_v24, %v11201_v45  ;;  %v2226_v30 = vpop.f32.mrb[81].mxu1  ;;  %v16490_v58 = vld [vmem:[#allocation139_spill] sm:$0xff]  ;;  %v11854_v19 = vpop.eup %8503  ;;  %v16493_v7 = vld [vmem:[#allocation29_spill] sm:$0xff] }
 0x398   : > { %v11852_v33 = vmul.f32 %v11634_v17, %v16490_v58  ;;  %16492 = vst [vmem:[#allocation12_spill] sm:$0xff] %v11854_v19  ;;  %8523 = vrcp.f32 %v4550_v52  ;;  %v4554_v21 = vmax.f32 %v16493_v7, 1e-38  ;;  %v2227_v16 = vadd.f32 %v2226_v30, %v11212_v49  ;;  %v2228_v36 = vpop.f32.mrb[82].mxu1  ;;  %3849 = vmatprep.mubr.bf16.mxu0 %v3090_v44  ;;  %v16494_v63 = vld [vmem:[#allocation138_spill] sm:$0xff]  ;;  %v11862_v24 = vpop.eup %8505  ;;  %v16498_v30 = vld [vmem:[#allocation71_spill] sm:$0xff] }
 0x399   : > { %16483 = vst [vmem:[#allocation58_spill] sm:$0xff] %v11833_v31  ;;  %16487 = vst [vmem:[#allocation11_spill] sm:$0xff] %v11842_v27  ;;  %v11848_v31 = vpop.f32.mrb[227].mxu0  ;;  %v11860_v26 = vmul.f32 %v11643_v62, %v16494_v63  ;;  %8525 = vrcp.f32 %v4551_v46  ;;  %v16496_v27 = vld [vmem:[#allocation30_spill] sm:$0xff]  ;;  %v2230_v52 = vpop.f32.mrb[83].mxu1  ;;  %3850 = vmatmul.mubr.bf16.gmra.mrb[76].mxu0 %v3089_v10 }
 0x39a   : > { %16489 = vst [vmem:[#allocation60_spill] sm:$0xff] %v11848_v31  ;;  %16491 = vst [vmem:[#allocation123_spill] sm:$0xff] %v11852_v33  ;;  %v4555_v31 = vmax.f32 %v16496_v27, 1e-38  ;;  %v16497_v17 = vld [vmem:[#allocation70_spill] sm:$0xff]  ;;  %v2229_v33 = vadd.f32 %v2228_v36, %v11201_v45  ;;  %v11867_v7 = vpop.eup %8507  ;;  %8527 = vrcp.f32 %v4552_v59  ;;  %v2940_v19 = vmul.f32 %v16498_v30, %v2227_v16  ;;  %v16499_v27 = vld [vmem:[#allocation72_spill] sm:$0xff] }
 0x39b   : > { %16495 = vst [vmem:[#allocation61_spill] sm:$0xff] %v11860_v26  ;;  %v2939_v58 = vmul.f32 %v16497_v17, %v2225_v42  ;;  %v4556_v44 = vmax.f32 %v11471_v56, 1e-38  ;;  %v2231_v62 = vadd.f32 %v2230_v52, %v11212_v49  ;;  %v11872_v63 = vpop.eup %8509  ;;  %8529 = vrcp.f32 %v4553_v8  ;;  %v16500_v17 = vld [vmem:[#allocation140_spill] sm:$0xff]  ;;  %v16502_v59 = vld [vmem:[#allocation31_spill] sm:$0xff]  ;;  %v16503_v26 = vld [vmem:[#allocation73_spill] sm:$0xff] }
 0x39c   : > { %v4557_v46 = vmax.f32 %v11473_v37, 1e-38  ;;  %v2941_v42 = vmul.f32 %v16499_v27, %v2229_v33  ;;  %v11878_v36 = vmul.f32 %v11652_v32, %v16500_v17  ;;  %v11880_v10 = vpop.eup %8511  ;;  %8531 = vrcp.f32 %v4554_v21  ;;  %v11884_v30 = vpop.f32.mrb[228].mxu0  ;;  %v16504_v52 = vld [vmem:[#allocation145_spill] sm:$0xff]  ;;  %v16506_v33 = vld [vmem:[#allocation32_spill] sm:$0xff] }
 0x39d   : > { %v4558_v56 = vmax.f32 %v16502_v59, 1e-38  ;;  %v2942_v16 = vmul.f32 %v16503_v26, %v2231_v62  ;;  %v11888_v8 = vmul.f32 %v11662_v53, %v16504_v52  ;;  %v11890_v37 = vpop.eup %8513  ;;  %8533 = vrcp.f32 %v4555_v31  ;;  %v11893_v17 = vpop.f32.mrb[229].mxu0 }
 0x39e   : > { %16501 = vst [vmem:[#allocation122_spill] sm:$0xff] %v11878_v36  ;;  %v4559_v27 = vmax.f32 %v16506_v33, 1e-38  ;;  %v3091_v32 = vpack.c.bf16 %v2941_v42, %v2939_v58  ;;  %v16507_v36 = vld [vmem:[#allocation143_spill] sm:$0xff]  ;;  %v11899_v59 = vpop.eup %8515  ;;  %8535 = vrcp.f32 %v4556_v44  ;;  %v4560_v26 = vmax.f32 %v11490_v55, 1e-38 }
 0x39f   : > { %16505 = vst [vmem:[#allocation13_spill] sm:$0xff] %v11888_v8  ;;  %v11897_v21 = vmul.f32 %v11670_v13, %v16507_v36  ;;  %v2234_v62 = vpop.f32.mrb[84].mxu1  ;;  %v11902_v53 = vpop.f32.mrb[230].mxu0  ;;  %v3092_v52 = vpack.c.bf16 %v2942_v16, %v2940_v19  ;;  %v16509_v8 = vld [vmem:[#allocation142_spill] sm:$0xff]  ;;  %8537 = vrcp.f32 %v4557_v46  ;;  %v4561_v42 = vmax.f32 %v11493_v60, 1e-38 }
 0x3a0   : > { %v11906_v31 = vmul.f32 %v11675_v28, %v16509_v8  ;;  %v11908_v58 = vpop.eup %8517  ;;  %v2235_v13 = vadd.f32 %v2234_v62, %v11201_v45  ;;  %v2236_v36 = vpop.f32.mrb[85].mxu1  ;;  %v16511_v44 = vld [vmem:[#allocation144_spill] sm:$0xff]  ;;  %8539 = vrcp.f32 %v4558_v56  ;;  %v4562_v28 = vmax.f32 %v11496_v29, 1e-38  ;;  %v16513_v46 = vld [vmem:[#allocation149_spill] sm:$0xff] }
 0x3a1   : > { %16508 = vst [vmem:[#allocation124_spill] sm:$0xff] %v11897_v21  ;;  %v11912_v33 = vpop.f32.mrb[231].mxu0  ;;  %v11916_v55 = vmul.f32 %v11680_v18, %v16511_v44  ;;  %v11918_v21 = vpop.eup %8519  ;;  %v2237_v19 = vadd.f32 %v2236_v36, %v11212_v49  ;;  %3859 = vmatprep.mubr.bf16.mxu0 %v3092_v52  ;;  %v11924_v60 = vmul.f32 %v11688_v43, %v16513_v46  ;;  %8541 = vrcp.f32 %v4559_v27  ;;  %v16515_v18 = vld [vmem:[#allocation74_spill] sm:$0xff]  ;;  %v16516_v36 = vld [vmem:[#allocation75_spill] sm:$0xff]  ;;  %v16517_v27 = vld [vmem:[#allocation76_spill] sm:$0xff] }
 0x3a2   : > { %16510 = vst [vmem:[#allocation14_spill] sm:$0xff] %v11906_v31  ;;  %v2238_v16 = vpop.f32.mrb[86].mxu1  ;;  %v11926_v8 = vpop.eup %8521  ;;  %v4563_v62 = vmax.f32 %v11500_v1, 1e-38  ;;  %v2943_v44 = vmul.f32 %v16515_v18, %v2235_v13  ;;  %3860 = vmatmul.mubr.bf16.gmra.mrb[80].mxu0 %v3091_v32  ;;  %8543 = vrcp.f32 %v4560_v26  ;;  %v4564_v52 = vmax.f32 %v11514_v39, 1e-38 }
 0x3a3   : > { %16512 = vst [vmem:[#allocation129_spill] sm:$0xff] %v11916_v55  ;;  %16514 = vst [vmem:[#allocation15_spill] sm:$0xff] %v11924_v60  ;;  %v2239_v55 = vadd.f32 %v2238_v16, %v11201_v45  ;;  %v2240_v56 = vpop.f32.mrb[87].mxu1  ;;  %v11931_v29 = vpop.eup %8523  ;;  %v2944_v31 = vmul.f32 %v16516_v36, %v2237_v19  ;;  %8545 = vrcp.f32 %v4561_v42  ;;  %v4565_v1 = vmax.f32 %v11517_v54, 1e-38  ;;  %v16518_v18 = vld [vmem:[#allocation147_spill] sm:$0xff] }
 0x3a4   : > { %v2241_v43 = vadd.f32 %v2240_v56, %v11212_v49  ;;  %v11936_v46 = vpop.eup %8525  ;;  %v11942_v16 = vmul.f32 %v11698_v4, %v16518_v18  ;;  %8547 = vrcp.f32 %v4562_v28  ;;  %v4566_v39 = vmax.f32 %v11520_v0, 1e-38  ;;  %v16520_v26 = vld [vmem:[#allocation77_spill] sm:$0xff]  ;;  %v11948_v36 = vpop.f32.mrb[232].mxu0  ;;  %v16521_v56 = vld [vmem:[#allocation146_spill] sm:$0xff]  ;;  %v16523_v18 = vld [vmem:[#allocation148_spill] sm:$0xff] }
 0x3a5   : > { %v2945_v13 = vmul.f32 %v16517_v27, %v2239_v55  ;;  %v11944_v32 = vpop.eup %8527  ;;  %v11952_v42 = vmul.f32 %v11707_v38, %v16521_v56  ;;  %8549 = vrcp.f32 %v4563_v62  ;;  %v4567_v55 = vmax.f32 %v11524_v50, 1e-38  ;;  %v11957_v27 = vpop.f32.mrb[233].mxu0  ;;  %v16540_v60 = vld [vmem:[#allocation81_spill] sm:$0xff] }
 0x3a6   : > { %16519 = vst [vmem:[#allocation127_spill] sm:$0xff] %v11942_v16  ;;  %v2946_v19 = vmul.f32 %v16520_v26, %v2241_v43  ;;  %v11954_v54 = vpop.eup %8529  ;;  %v11961_v28 = vmul.f32 %v11716_v5, %v16523_v18  ;;  %8551 = vrcp.f32 %v4564_v52  ;;  %v4568_v43 = vmax.f32 %v11548_v57, 1e-38  ;;  %v2244_v26 = vpop.f32.mrb[88].mxu1  ;;  %v16527_v52 = vld [vmem:[#allocation151_spill] sm:$0xff] }
 0x3a7   : > { %16522 = vst [vmem:[#allocation16_spill] sm:$0xff] %v11952_v42  ;;  %v3093_v4 = vpack.c.bf16 %v2945_v13, %v2943_v44  ;;  %v11963_v0 = vpop.eup %8531  ;;  %v11966_v38 = vpop.f32.mrb[234].mxu0  ;;  %v16525_v42 = vld [vmem:[#allocation153_spill] sm:$0xff]  ;;  %8553 = vrcp.f32 %v4565_v1  ;;  %v4569_v44 = vmax.f32 %v11553_v35, 1e-38  ;;  %v2245_v5 = vadd.f32 %v2244_v26, %v11201_v45  ;;  %v16529_v1 = vld [vmem:[#allocation150_spill] sm:$0xff] }
 0x3a8   : > { %16524 = vst [vmem:[#allocation126_spill] sm:$0xff] %v11961_v28  ;;  %v3094_v56 = vpack.c.bf16 %v2946_v19, %v2944_v31  ;;  %v11970_v62 = vmul.f32 %v11726_v41, %v16525_v42  ;;  %v11972_v50 = vpop.eup %8533  ;;  %v2246_v13 = vpop.f32.mrb[89].mxu1  ;;  %v11980_v57 = vmul.f32 %v11734_v2, %v16527_v52  ;;  %8555 = vrcp.f32 %v4566_v39  ;;  %v16531_v2 = vld [vmem:[#allocation78_spill] sm:$0xff] }
 0x3a9   : > { %v11976_v18 = vpop.f32.mrb[235].mxu0  ;;  %v11982_v28 = vpop.eup %8535  ;;  %v4570_v41 = vmax.f32 %v11558_v61, 1e-38  ;;  %v2247_v31 = vadd.f32 %v2246_v13, %v11212_v49  ;;  %v11988_v35 = vmul.f32 %v11739_v11, %v16529_v1  ;;  %8557 = vrcp.f32 %v4567_v55  ;;  %v16532_v13 = vld [vmem:[#allocation33_spill] sm:$0xff]  ;;  %v16534_v55 = vld [vmem:[#allocation34_spill] sm:$0xff] }
 0x3aa   : > { %16526 = vst [vmem:[#allocation17_spill] sm:$0xff] %v11970_v62  ;;  %16528 = vst [vmem:[#allocation62_spill] sm:$0xff] %v11980_v57  ;;  %v2248_v19 = vpop.f32.mrb[90].mxu1  ;;  %3869 = vmatprep.mubr.bf16.mxu0 %v3094_v56  ;;  %v11990_v42 = vpop.eup %8537  ;;  %v4571_v26 = vmax.f32 %v11564_v48, 1e-38  ;;  %v2947_v52 = vmul.f32 %v16531_v2, %v2245_v5  ;;  %8559 = vrcp.f32 %v4568_v43  ;;  %v16533_v62 = vld [vmem:[#allocation79_spill] sm:$0xff] }
 0x3ab   : > { %16530 = vst [vmem:[#allocation63_spill] sm:$0xff] %v11988_v35  ;;  %v2249_v57 = vadd.f32 %v2248_v19, %v11201_v45  ;;  %v2250_v39 = vpop.f32.mrb[91].mxu1  ;;  %3870 = vmatmul.mubr.bf16.gmra.mrb[84].mxu0 %v3093_v4  ;;  %v11995_v61 = vpop.eup %8539  ;;  %v4572_v56 = vmax.f32 %v16532_v13, 1e-38  ;;  %v2948_v16 = vmul.f32 %v16533_v62, %v2247_v31  ;;  %8561 = vrcp.f32 %v4569_v44  ;;  %v16535_v35 = vld [vmem:[#allocation80_spill] sm:$0xff]  ;;  %v16539_v43 = vld [vmem:[#allocation35_spill] sm:$0xff] }
 0x3ac   : > { %v2251_v11 = vadd.f32 %v2250_v39, %v11212_v49  ;;  %v12000_v1 = vpop.eup %8541  ;;  %v4573_v48 = vmax.f32 %v16534_v55, 1e-38  ;;  %v16536_v2 = vld [vmem:[#allocation152_spill] sm:$0xff]  ;;  %8563 = vrcp.f32 %v4570_v41  ;;  %v4574_v13 = vmax.f32 %v16539_v43, 1e-38  ;;  %v12012_v31 = vpop.f32.mrb[236].mxu0 }
 0x3ad   : > { %v2949_v5 = vmul.f32 %v16535_v35, %v2249_v57  ;;  %v12006_v19 = vmul.f32 %v11744_v9, %v16536_v2  ;;  %v12008_v4 = vpop.eup %8543  ;;  %v16541_v39 = vld [vmem:[#allocation157_spill] sm:$0xff]  ;;  %8565 = vrcp.f32 %v4571_v26  ;;  %v16544_v57 = vld [vmem:[#allocation36_spill] sm:$0xff]  ;;  %v12021_v2 = vpop.f32.mrb[237].mxu0 }
 0x3ae   : > { %16538 = vst [vmem:[#allocation64_spill] sm:$0xff] %v12008_v4  ;;  %v2950_v62 = vmul.f32 %v16540_v60, %v2251_v11  ;;  %v12016_v44 = vmul.f32 %v11752_v40, %v16541_v39  ;;  %v12018_v55 = vpop.eup %8545  ;;  %v4575_v35 = vmax.f32 %v16544_v57, 1e-38  ;;  %8567 = vrcp.f32 %v4572_v56  ;;  %v16548_v60 = vld [vmem:[#allocation37_spill] sm:$0xff]  ;;  %v2254_v4 = vpop.f32.mrb[92].mxu1  ;;  %v16553_v56 = vld [vmem:[#allocation156_spill] sm:$0xff] }
 0x3af   : > { %16537 = vst [vmem:[#allocation18_spill] sm:$0xff] %v12006_v19  ;;  %16543 = vst [vmem:[#allocation19_spill] sm:$0xff] %v12018_v55  ;;  %v3095_v9 = vpack.c.bf16 %v2949_v5, %v2947_v52  ;;  %v16545_v19 = vld [vmem:[#allocation155_spill] sm:$0xff]  ;;  %v12027_v43 = vpop.eup %8547  ;;  %v4576_v11 = vmax.f32 %v16548_v60, 1e-38  ;;  %v12030_v40 = vpop.f32.mrb[238].mxu0  ;;  %8569 = vrcp.f32 %v4573_v48  ;;  %v12044_v60 = vmul.f32 %v11780_v25, %v16553_v56 }
 0x3b0   : > { %16542 = vst [vmem:[#allocation128_spill] sm:$0xff] %v12016_v44  ;;  %v12025_v41 = vmul.f32 %v11762_v23, %v16545_v19  ;;  %16547 = vst [vmem:[#allocation133_spill] sm:$0xff] %v12027_v43  ;;  %v3096_v39 = vpack.c.bf16 %v2950_v62, %v2948_v16  ;;  %v16549_v44 = vld [vmem:[#allocation154_spill] sm:$0xff]  ;;  %v12036_v52 = vpop.eup %8549  ;;  %v16552_v5 = vld [vmem:[#allocation39_spill] sm:$0xff]  ;;  %v2255_v23 = vadd.f32 %v2254_v4, %v11201_v45  ;;  %v2256_v19 = vpop.f32.mrb[93].mxu1  ;;  %8571 = vrcp.f32 %v4574_v13 }
 0x3b1   : > { %v12034_v26 = vmul.f32 %v11771_v6, %v16549_v44  ;;  %16551 = vst [vmem:[#allocation131_spill] sm:$0xff] %v12036_v52  ;;  %v4577_v57 = vmax.f32 %v16552_v5, 1e-38  ;;  %16554 = vst [vmem:[#allocation130_spill] sm:$0xff] %v12044_v60  ;;  %v12046_v43 = vpop.eup %8551  ;;  %v16556_v16 = vld [vmem:[#allocation41_spill] sm:$0xff]  ;;  %v2257_v62 = vadd.f32 %v2256_v19, %v11212_v49  ;;  %v2258_v44 = vpop.f32.mrb[94].mxu1  ;;  %8573 = vrcp.f32 %v4575_v35 }
 0x3b2   : > { %16546 = vst [vmem:[#allocation65_spill] sm:$0xff] %v12025_v41  ;;  %v12040_v41 = vpop.f32.mrb[239].mxu0  ;;  %16555 = vst [vmem:[#allocation21_spill] sm:$0xff] %v12046_v43  ;;  %v4578_v6 = vmax.f32 %v16556_v16, 1e-38  ;;  %3879 = vmatprep.mubr.bf16.mxu0 %v3096_v39  ;;  %v16557_v48 = vld [vmem:[#allocation161_spill] sm:$0xff]  ;;  %v12054_v4 = vpop.eup %8553  ;;  %v2259_v60 = vadd.f32 %v2258_v44, %v11201_v45  ;;  %8575 = vrcp.f32 %v4576_v11 }
 0x3b3   : > { %16550 = vst [vmem:[#allocation20_spill] sm:$0xff] %v12034_v26  ;;  %v12052_v5 = vmul.f32 %v11790_v3, %v16557_v48  ;;  %v16559_v26 = vld [vmem:[#allocation43_spill] sm:$0xff]  ;;  %v16560_v25 = vld [vmem:[#allocation82_spill] sm:$0xff]  ;;  %v2260_v13 = vpop.f32.mrb[95].mxu1  ;;  %3880 = vmatmul.mubr.bf16.gmra.mrb[88].mxu0 %v3095_v9  ;;  %v12059_v16 = vpop.eup %8555  ;;  %8577 = vrcp.f32 %v4577_v57  ;;  %v16564_v35 = vld [vmem:[#allocation49_spill] sm:$0xff] }
 0x3b4   : > { %v4579_v52 = vmax.f32 %v16559_v26, 1e-38  ;;  %v2951_v56 = vmul.f32 %v16560_v25, %v2255_v23  ;;  %16561 = vst [vmem:[#allocation22_spill] sm:$0xff] %v12059_v16  ;;  %v16562_v19 = vld [vmem:[#allocation47_spill] sm:$0xff]  ;;  %v2261_v3 = vadd.f32 %v2260_v13, %v11212_v49  ;;  %v12064_v48 = vpop.eup %8557  ;;  %v4581_v26 = vmax.f32 %v16564_v35, 1e-38 }
 0x3b5   : > { %16558 = vst [vmem:[#allocation132_spill] sm:$0xff] %v12052_v5  ;;  %v4580_v39 = vmax.f32 %v16562_v19, 1e-38  ;;  %v16563_v43 = vld [vmem:[#allocation83_spill] sm:$0xff]  ;;  %v16565_v5 = vld [vmem:[#allocation84_spill] sm:$0xff]  ;;  %v12072_v9 = vpop.eup %8559  ;;  %8579 = vrcp.f32 %v4578_v6  ;;  %v16570_v16 = vld [vmem:[#allocation85_spill] sm:$0xff] }
 0x3b6   : > { %v2952_v55 = vmul.f32 %v16563_v43, %v2257_v62  ;;  %v2953_v23 = vmul.f32 %v16565_v5, %v2259_v60  ;;  %v16566_v25 = vld [vmem:[#allocation159_spill] sm:$0xff]  ;;  %16568 = vst [vmem:[#allocation23_spill] sm:$0xff] %v12072_v9  ;;  %v2954_v43 = vmul.f32 %v16570_v16, %v2261_v3  ;;  %v12076_v62 = vpop.f32.mrb[240].mxu0  ;;  %v16571_v13 = vld [vmem:[#allocation158_spill] sm:$0xff]  ;;  %v12082_v35 = vpop.eup %8561  ;;  %8581 = vrcp.f32 %v4579_v52  ;;  %v16574_v60 = vld [vmem:[#allocation53_spill] sm:$0xff] }
 0x3b7   : > { %v12070_v44 = vmul.f32 %v11798_v47, %v16566_v25  ;;  %v16569_v11 = vld [vmem:[#allocation51_spill] sm:$0xff]  ;;  %v12080_v57 = vmul.f32 %v11803_v34, %v16571_v13  ;;  %16573 = vst [vmem:[#allocation67_spill] sm:$0xff] %v12082_v35  ;;  %v4583_v5 = vmax.f32 %v16574_v60, 1e-38  ;;  %v12085_v25 = vpop.f32.mrb[241].mxu0  ;;  %8583 = vrcp.f32 %v4580_v39  ;;  %v2264_v9 = vpop.f32.mrb[96].mxu1 }
 0x3b8   : > { %v4582_v19 = vmax.f32 %v16569_v11, 1e-38  ;;  %v3097_v47 = vpack.c.bf16 %v2953_v23, %v2951_v56  ;;  %v12091_v11 = vpop.eup %8563  ;;  %v16578_v16 = vld [vmem:[#allocation55_spill] sm:$0xff]  ;;  %v12094_v34 = vpop.f32.mrb[242].mxu0  ;;  %v3098_v13 = vpack.c.bf16 %v2954_v43, %v2952_v55  ;;  %8585 = vrcp.f32 %v4581_v26  ;;  %v16582_v23 = vld [vmem:[#allocation57_spill] sm:$0xff]  ;;  %v16587_v26 = vld [vmem:[#allocation162_spill] sm:$0xff] }
 0x3b9   : > { %16567 = vst [vmem:[#allocation137_spill] sm:$0xff] %v12070_v44  ;;  %16572 = vst [vmem:[#allocation66_spill] sm:$0xff] %v12080_v57  ;;  %v16575_v44 = vld [vmem:[#allocation160_spill] sm:$0xff]  ;;  %v4584_v3 = vmax.f32 %v16578_v16, 1e-38  ;;  %v16579_v57 = vld [vmem:[#allocation165_spill] sm:$0xff]  ;;  %v12100_v56 = vpop.eup %8565 }
 0x3ba   : > { %v12089_v6 = vmul.f32 %v11808_v12, %v16575_v44  ;;  %16577 = vst [vmem:[#allocation68_spill] sm:$0xff] %v12091_v11  ;;  %v12098_v52 = vmul.f32 %v11816_v14, %v16579_v57  ;;  %16581 = vst [vmem:[#allocation25_spill] sm:$0xff] %v12100_v56  ;;  %v4585_v60 = vmax.f32 %v16582_v23, 1e-38  ;;  %v2265_v12 = vadd.f32 %v2264_v9, %v11201_v45  ;;  %v2266_v44 = vpop.f32.mrb[97].mxu1  ;;  %v16583_v39 = vld [vmem:[#allocation163_spill] sm:$0xff]  ;;  %v12110_v11 = vpop.eup %8567 }
 0x3bb   : > { %v12108_v16 = vmul.f32 %v11826_v15, %v16583_v39  ;;  %16585 = vst [vmem:[#allocation134_spill] sm:$0xff] %v12110_v11  ;;  %8587 = vrcp.f32 %v4582_v19  ;;  %v16586_v55 = vld [vmem:[#allocation7_spill] sm:$0xff]  ;;  %v2267_v43 = vadd.f32 %v2266_v44, %v11212_v49  ;;  %v2268_v57 = vpop.f32.mrb[98].mxu1  ;;  %3889 = vmatprep.mubr.bf16.mxu0 %v3098_v13  ;;  %v12116_v23 = vmul.f32 %v11835_v22, %v16587_v26  ;;  %v12118_v9 = vpop.eup %8569  ;;  %v16591_v15 = vld [vmem:[#allocation86_spill] sm:$0xff]  ;;  %v16593_v44 = vld [vmem:[#allocation125_spill] sm:$0xff] }
 0x3bc   : > { %16576 = vst [vmem:[#allocation24_spill] sm:$0xff] %v12089_v6  ;;  %16580 = vst [vmem:[#allocation135_spill] sm:$0xff] %v12098_v52  ;;  %v12104_v6 = vpop.f32.mrb[243].mxu0  ;;  %v4586_v14 = vmax.f32 %v16586_v55, 1e-38  ;;  %8589 = vrcp.f32 %v4583_v5  ;;  %v16590_v52 = vld [vmem:[#allocation118_spill] sm:$0xff]  ;;  %v2955_v39 = vmul.f32 %v16591_v15, %v2265_v12  ;;  %3890 = vmatmul.mubr.bf16.gmra.mrb[92].mxu0 %v3097_v47  ;;  %v12123_v55 = vpop.eup %8571 }
 0x3bd   : > { %16584 = vst [vmem:[#allocation69_spill] sm:$0xff] %v12108_v16  ;;  %16588 = vst [vmem:[#allocation26_spill] sm:$0xff] %v12116_v23  ;;  %v4587_v56 = vmax.f32 %v16590_v52, 1e-38  ;;  %v2269_v16 = vadd.f32 %v2268_v57, %v11201_v45  ;;  %v2270_v19 = vpop.f32.mrb[99].mxu1  ;;  %8591 = vrcp.f32 %v4584_v3  ;;  %v16594_v11 = vld [vmem:[#allocation87_spill] sm:$0xff]  ;;  %v12128_v26 = vpop.eup %8573 }
 0x3be   : > { %16589 = vst [vmem:[#allocation136_spill] sm:$0xff] %v12118_v9  ;;  %16592 = vst [vmem:[#allocation27_spill] sm:$0xff] %v12123_v55  ;;  %v4588_v13 = vmax.f32 %v16593_v44, 1e-38  ;;  %v2956_v35 = vmul.f32 %v16594_v11, %v2267_v43  ;;  %v2271_v22 = vadd.f32 %v2270_v19, %v11212_v49  ;;  %8593 = vrcp.f32 %v4585_v60  ;;  %v16596_v52 = vld [vmem:[#allocation88_spill] sm:$0xff]  ;;  %v12136_v47 = vpop.eup %8575  ;;  %v16600_v3 = vld [vmem:[#allocation59_spill] sm:$0xff] }
 0x3bf   : > { %16595 = vst [vmem:[#allocation141_spill] sm:$0xff] %v12128_v26  ;;  %v4589_v5 = vmax.f32 %v11829_v20, 1e-38  ;;  %v2957_v12 = vmul.f32 %v16596_v52, %v2269_v16  ;;  %v16597_v15 = vld [vmem:[#allocation164_spill] sm:$0xff]  ;;  %16599 = vst [vmem:[#allocation139_spill] sm:$0xff] %v12136_v47  ;;  %8595 = vrcp.f32 %v4586_v14  ;;  %v16601_v55 = vld [vmem:[#allocation89_spill] sm:$0xff]  ;;  %v12146_v20 = vpop.eup %8577 }
 0x3c0   : > { %v12134_v57 = vmul.f32 %v11844_v51, %v16597_v15  ;;  %v4590_v44 = vmax.f32 %v16600_v3, 1e-38  ;;  %v2958_v11 = vmul.f32 %v16601_v55, %v2271_v22  ;;  %v12140_v43 = vpop.f32.mrb[244].mxu0  ;;  %v16602_v19 = vld [vmem:[#allocation169_spill] sm:$0xff]  ;;  %v16603_v26 = vld [vmem:[#allocation12_spill] sm:$0xff]  ;;  %16605 = vst [vmem:[#allocation138_spill] sm:$0xff] %v12146_v20  ;;  %8597 = vrcp.f32 %v4587_v56  ;;  %v12155_v3 = vpop.eup %8579 }
 0x3c1   : > { %v12144_v60 = vmul.f32 %v16603_v26, %v16602_v19  ;;  %v16606_v16 = vld [vmem:[#allocation60_spill] sm:$0xff]  ;;  %v3099_v51 = vpack.c.bf16 %v2957_v12, %v2955_v39  ;;  %v12149_v15 = vpop.f32.mrb[245].mxu0  ;;  %v16607_v47 = vld [vmem:[#allocation167_spill] sm:$0xff]  ;;  %16609 = vst [vmem:[#allocation70_spill] sm:$0xff] %v12155_v3  ;;  %8599 = vrcp.f32 %v4588_v13  ;;  %v4592_v55 = vmax.f32 %v11884_v30, 1e-38  ;;  %v12164_v39 = vpop.eup %8581 }
 0x3c2   : > { %16598 = vst [vmem:[#allocation28_spill] sm:$0xff] %v12134_v57  ;;  %v4591_v52 = vmax.f32 %v16606_v16, 1e-38  ;;  %v12153_v14 = vmul.f32 %v11862_v24, %v16607_v47  ;;  %v2274_v22 = vpop.f32.mrb[100].mxu1  ;;  %v12158_v26 = vpop.f32.mrb[246].mxu0  ;;  %v3100_v19 = vpack.c.bf16 %v2958_v11, %v2956_v35  ;;  %v16610_v20 = vld [vmem:[#allocation166_spill] sm:$0xff]  ;;  %8601 = vrcp.f32 %v4589_v5 }
 0x3c3   : > { %16604 = vst [vmem:[#allocation29_spill] sm:$0xff] %v12144_v60  ;;  %v12162_v56 = vmul.f32 %v11867_v7, %v16610_v20  ;;  %16612 = vst [vmem:[#allocation72_spill] sm:$0xff] %v12164_v39  ;;  %v4593_v12 = vmax.f32 %v11893_v17, 1e-38  ;;  %v2275_v24 = vadd.f32 %v2274_v22, %v11201_v45  ;;  %v2276_v47 = vpop.f32.mrb[101].mxu1  ;;  %v12168_v16 = vpop.f32.mrb[247].mxu0  ;;  %8603 = vrcp.f32 %v4590_v44 }
 0x3c4   : > { %16608 = vst [vmem:[#allocation30_spill] sm:$0xff] %v12153_v14  ;;  %v16613_v13 = vld [vmem:[#allocation168_spill] sm:$0xff]  ;;  %v12174_v3 = vpop.eup %8583  ;;  %v4594_v7 = vmax.f32 %v11902_v53, 1e-38  ;;  %v2277_v35 = vadd.f32 %v2276_v47, %v11212_v49  ;;  %v2278_v11 = vpop.f32.mrb[102].mxu1  ;;  %3899 = vmatprep.mubr.bf16.mxu0 %v3100_v19  ;;  %v16616_v5 = vld [vmem:[#allocation173_spill] sm:$0xff]  ;;  %8605 = vrcp.f32 %v4591_v52 }
 0x3c5   : > { %16611 = vst [vmem:[#allocation71_spill] sm:$0xff] %v12162_v56  ;;  %v12172_v30 = vmul.f32 %v11872_v63, %v16613_v13  ;;  %16615 = vst [vmem:[#allocation31_spill] sm:$0xff] %v12174_v3  ;;  %v12180_v17 = vmul.f32 %v11880_v10, %v16616_v5  ;;  %v12182_v20 = vpop.eup %8585  ;;  %v4595_v22 = vmax.f32 %v11912_v33, 1e-38  ;;  %v16619_v63 = vld [vmem:[#allocation90_spill] sm:$0xff]  ;;  %v2279_v3 = vadd.f32 %v2278_v11, %v11201_v45  ;;  %v2280_v44 = vpop.f32.mrb[103].mxu1 }
 0x3c6   : > { %16618 = vst [vmem:[#allocation145_spill] sm:$0xff] %v12182_v20  ;;  %v2959_v13 = vmul.f32 %v16619_v63, %v2275_v24  ;;  %3900 = vmatmul.mubr.bf16.gmra.mrb[96].mxu0 %v3099_v51  ;;  %v12187_v53 = vpop.eup %8587  ;;  %8607 = vrcp.f32 %v4592_v55  ;;  %v4596_v19 = vmax.f32 %v11948_v36, 1e-38  ;;  %v16621_v47 = vld [vmem:[#allocation91_spill] sm:$0xff]  ;;  %v2281_v10 = vadd.f32 %v2280_v44, %v11212_v49  ;;  %v16623_v52 = vld [vmem:[#allocation92_spill] sm:$0xff]  ;;  %v16627_v55 = vld [vmem:[#allocation93_spill] sm:$0xff] }
 0x3c7   : > { %16614 = vst [vmem:[#allocation140_spill] sm:$0xff] %v12172_v30  ;;  %16617 = vst [vmem:[#allocation73_spill] sm:$0xff] %v12180_v17  ;;  %v2960_v39 = vmul.f32 %v16621_v47, %v2277_v35  ;;  %v12192_v5 = vpop.eup %8589  ;;  %8609 = vrcp.f32 %v4593_v12  ;;  %v4597_v33 = vmax.f32 %v11957_v27, 1e-38  ;;  %v2961_v24 = vmul.f32 %v16623_v52, %v2279_v3  ;;  %v16624_v63 = vld [vmem:[#allocation171_spill] sm:$0xff]  ;;  %v12204_v47 = vpop.f32.mrb[248].mxu0 }
 0x3c8   : > { %16620 = vst [vmem:[#allocation32_spill] sm:$0xff] %v12187_v53  ;;  %16622 = vst [vmem:[#allocation143_spill] sm:$0xff] %v12192_v5  ;;  %v12198_v11 = vmul.f32 %v11890_v37, %v16624_v63  ;;  %v12200_v51 = vpop.eup %8591  ;;  %8611 = vrcp.f32 %v4594_v7  ;;  %v4598_v36 = vmax.f32 %v11966_v38, 1e-38  ;;  %v2962_v35 = vmul.f32 %v16627_v55, %v2281_v10  ;;  %v16628_v44 = vld [vmem:[#allocation170_spill] sm:$0xff]  ;;  %v12213_v52 = vpop.f32.mrb[249].mxu0 }
 0x3c9   : > { %16626 = vst [vmem:[#allocation144_spill] sm:$0xff] %v12200_v51  ;;  %v12208_v12 = vmul.f32 %v11899_v59, %v16628_v44  ;;  %v12210_v27 = vpop.eup %8593  ;;  %8613 = vrcp.f32 %v4595_v22  ;;  %v4599_v3 = vmax.f32 %v11976_v18, 1e-38  ;;  %v3101_v37 = vpack.c.bf16 %v2961_v24, %v2959_v13  ;;  %v16631_v63 = vld [vmem:[#allocation172_spill] sm:$0xff]  ;;  %v2284_v55 = vpop.f32.mrb[104].mxu1  ;;  %v16713_v30 = vld [vmem:[#allocation42_spill] sm:$0xff] }
 0x3ca   : > { %16625 = vst [vmem:[#allocation142_spill] sm:$0xff] %v12198_v11  ;;  %16630 = vst [vmem:[#allocation74_spill] sm:$0xff] %v12210_v27  ;;  %v12217_v7 = vmul.f32 %v11908_v58, %v16631_v63  ;;  %v12219_v38 = vpop.eup %8595  ;;  %8615 = vrcp.f32 %v4596_v19  ;;  %v4600_v10 = vmax.f32 %v12012_v31, 1e-38  ;;  %v12222_v59 = vpop.f32.mrb[250].mxu0  ;;  %v3102_v44 = vpack.c.bf16 %v2962_v35, %v2960_v39  ;;  %v16634_v27 = vld [vmem:[#allocation177_spill] sm:$0xff] }
 0x3cb   : > { %16629 = vst [vmem:[#allocation149_spill] sm:$0xff] %v12208_v12  ;;  %16633 = vst [vmem:[#allocation76_spill] sm:$0xff] %v12219_v38  ;;  %v12226_v22 = vmul.f32 %v11918_v21, %v16634_v27  ;;  %v12228_v18 = vpop.eup %8597  ;;  %8617 = vrcp.f32 %v4597_v33  ;;  %v4601_v13 = vmax.f32 %v12021_v2, 1e-38  ;;  %v2285_v58 = vadd.f32 %v2284_v55, %v11201_v45  ;;  %v2286_v24 = vpop.f32.mrb[105].mxu1  ;;  %v16637_v19 = vld [vmem:[#allocation175_spill] sm:$0xff] }
 0x3cc   : > { %16632 = vst [vmem:[#allocation75_spill] sm:$0xff] %v12217_v7  ;;  %16636 = vst [vmem:[#allocation77_spill] sm:$0xff] %v12228_v18  ;;  %v12232_v63 = vpop.f32.mrb[251].mxu0  ;;  %v12236_v31 = vmul.f32 %v11926_v8, %v16637_v19  ;;  %v12238_v38 = vpop.eup %8599  ;;  %8619 = vrcp.f32 %v4598_v36  ;;  %v4602_v21 = vmax.f32 %v12030_v40, 1e-38  ;;  %v2287_v39 = vadd.f32 %v2286_v24, %v11212_v49  ;;  %3909 = vmatprep.mubr.bf16.mxu0 %v3102_v44  ;;  %v16640_v33 = vld [vmem:[#allocation174_spill] sm:$0xff] }
 0x3cd   : > { %16635 = vst [vmem:[#allocation147_spill] sm:$0xff] %v12226_v22  ;;  %16639 = vst [vmem:[#allocation148_spill] sm:$0xff] %v12238_v38  ;;  %v2288_v35 = vpop.f32.mrb[106].mxu1  ;;  %v12244_v2 = vmul.f32 %v11931_v29, %v16640_v33  ;;  %v12246_v27 = vpop.eup %8601  ;;  %8621 = vrcp.f32 %v4599_v3  ;;  %v4603_v55 = vmax.f32 %v12040_v41, 1e-38  ;;  %v16643_v8 = vld [vmem:[#allocation94_spill] sm:$0xff] }
 0x3ce   : > { %16638 = vst [vmem:[#allocation146_spill] sm:$0xff] %v12236_v31  ;;  %16642 = vst [vmem:[#allocation151_spill] sm:$0xff] %v12246_v27  ;;  %v2963_v19 = vmul.f32 %v16643_v8, %v2285_v58  ;;  %v2289_v38 = vadd.f32 %v2288_v35, %v11201_v45  ;;  %v2290_v36 = vpop.f32.mrb[107].mxu1  ;;  %3910 = vmatmul.mubr.bf16.gmra.mrb[100].mxu0 %v3101_v37  ;;  %v12251_v40 = vpop.eup %8603  ;;  %8623 = vrcp.f32 %v4600_v10  ;;  %v4604_v44 = vmax.f32 %v12076_v62, 1e-38  ;;  %v16645_v24 = vld [vmem:[#allocation95_spill] sm:$0xff] }
 0x3cf   : > { %16641 = vst [vmem:[#allocation153_spill] sm:$0xff] %v12244_v2  ;;  %16644 = vst [vmem:[#allocation150_spill] sm:$0xff] %v12251_v40  ;;  %v2964_v18 = vmul.f32 %v16645_v24, %v2287_v39  ;;  %v2291_v29 = vadd.f32 %v2290_v36, %v11212_v49  ;;  %v12256_v33 = vpop.eup %8605  ;;  %8625 = vrcp.f32 %v4601_v13  ;;  %v4605_v41 = vmax.f32 %v12085_v25, 1e-38  ;;  %v16647_v3 = vld [vmem:[#allocation96_spill] sm:$0xff]  ;;  %v16651_v10 = vld [vmem:[#allocation97_spill] sm:$0xff] }
 0x3d0   : > { %16646 = vst [vmem:[#allocation78_spill] sm:$0xff] %v12256_v33  ;;  %v2965_v58 = vmul.f32 %v16647_v3, %v2289_v38  ;;  %v16648_v8 = vld [vmem:[#allocation176_spill] sm:$0xff]  ;;  %v12264_v37 = vpop.eup %8607  ;;  %8627 = vrcp.f32 %v4602_v21  ;;  %v4606_v62 = vmax.f32 %v12094_v34, 1e-38  ;;  %v12268_v24 = vpop.f32.mrb[252].mxu0  ;;  %v16652_v36 = vld [vmem:[#allocation181_spill] sm:$0xff] }
 0x3d1   : > { %v12262_v35 = vmul.f32 %v11936_v46, %v16648_v8  ;;  %16650 = vst [vmem:[#allocation79_spill] sm:$0xff] %v12264_v37  ;;  %v2966_v39 = vmul.f32 %v16651_v10, %v2291_v29  ;;  %v12272_v13 = vmul.f32 %v11944_v32, %v16652_v36  ;;  %v12274_v25 = vpop.eup %8609  ;;  %8629 = vrcp.f32 %v4603_v55  ;;  %v4047_v46 = vpop.permute.xlu0 %4046  ;;  %v16655_v21 = vld [vmem:[#allocation179_spill] sm:$0xff]  ;;  %v16658_v55 = vld [vmem:[#allocation178_spill] sm:$0xff] }
 0x3d2   : > { %16654 = vst [vmem:[#allocation80_spill] sm:$0xff] %v12274_v25  ;;  %v4607_v38 = vmax.f32 %v12104_v6, 1e-38  ;;  %v3103_v3 = vpack.c.bf16 %v2965_v58, %v2963_v19  ;;  %v12277_v8 = vpop.f32.mrb[253].mxu0  ;;  %v12281_v34 = vmul.f32 %v11954_v54, %v16655_v21  ;;  %v12283_v29 = vpop.eup %8611  ;;  %8631 = vrcp.f32 %v4604_v44  ;;  %v16661_v44 = vld [vmem:[#allocation180_spill] sm:$0xff]  ;;  %v16711_v11 = vld [vmem:[#allocation111_spill] sm:$0xff] }
 0x3d3   : > { %16649 = vst [vmem:[#allocation33_spill] sm:$0xff] %v12262_v35  ;;  %16653 = vst [vmem:[#allocation34_spill] sm:$0xff] %v12272_v13  ;;  %v4608_v10 = vmax.f32 %v12140_v43, 1e-38  ;;  %v2294_v32 = vpop.f32.mrb[108].mxu1  ;;  %v12286_v36 = vpop.f32.mrb[254].mxu0  ;;  %v3104_v25 = vpack.c.bf16 %v2966_v39, %v2964_v18  ;;  %v12290_v6 = vmul.f32 %v11963_v0, %v16658_v55  ;;  %8633 = vrcp.f32 %v4605_v41 }
 0x3d4   : > { %16656 = vst [vmem:[#allocation152_spill] sm:$0xff] %v12281_v34  ;;  %16657 = vst [vmem:[#allocation35_spill] sm:$0xff] %v12283_v29  ;;  %v12292_v19 = vpop.eup %8613  ;;  %v4609_v58 = vmax.f32 %v12149_v15, 1e-38  ;;  %v2295_v54 = vadd.f32 %v2294_v32, %v11201_v45  ;;  %v2296_v21 = vpop.f32.mrb[109].mxu1  ;;  %v12300_v43 = vmul.f32 %v11972_v50, %v16661_v44  ;;  %8635 = vrcp.f32 %v4606_v62  ;;  %v16664_v41 = vld [vmem:[#allocation185_spill] sm:$0xff] }
 0x3d5   : > { %16659 = vst [vmem:[#allocation81_spill] sm:$0xff] %v12290_v6  ;;  %16660 = vst [vmem:[#allocation157_spill] sm:$0xff] %v12292_v19  ;;  %v12296_v29 = vpop.f32.mrb[255].mxu0  ;;  %v12302_v37 = vpop.eup %8615  ;;  %v4610_v0 = vmax.f32 %v12158_v26, 1e-38  ;;  %v2297_v18 = vadd.f32 %v2296_v21, %v11212_v49  ;;  %3919 = vmatprep.mubr.bf16.mxu0 %v3104_v25  ;;  %v12308_v15 = vmul.f32 %v11982_v28, %v16664_v41  ;;  %8637 = vrcp.f32 %v4607_v38  ;;  %v16667_v50 = vld [vmem:[#allocation98_spill] sm:$0xff] }
 0x3d6   : > { %16662 = vst [vmem:[#allocation36_spill] sm:$0xff] %v12300_v43  ;;  %16663 = vst [vmem:[#allocation155_spill] sm:$0xff] %v12302_v37  ;;  %v2298_v39 = vpop.f32.mrb[110].mxu1  ;;  %v12310_v32 = vpop.eup %8617  ;;  %v4611_v55 = vmax.f32 %v12168_v16, 1e-38  ;;  %v2967_v44 = vmul.f32 %v16667_v50, %v2295_v54  ;;  %3920 = vmatmul.mubr.bf16.gmra.mrb[104].mxu0 %v3103_v3  ;;  %8639 = vrcp.f32 %v4608_v10  ;;  %v16669_v21 = vld [vmem:[#allocation99_spill] sm:$0xff] }
 0x3d7   : > { %16665 = vst [vmem:[#allocation37_spill] sm:$0xff] %v12308_v15  ;;  %16666 = vst [vmem:[#allocation154_spill] sm:$0xff] %v12310_v32  ;;  %v2299_v37 = vadd.f32 %v2298_v39, %v11201_v45  ;;  %v2300_v62 = vpop.f32.mrb[111].mxu1  ;;  %v12315_v26 = vpop.eup %8619  ;;  %v4612_v25 = vmax.f32 %v12204_v47, 1e-38  ;;  %v2968_v19 = vmul.f32 %v16669_v21, %v2297_v18  ;;  %8641 = vrcp.f32 %v4609_v58  ;;  %v16671_v38 = vld [vmem:[#allocation100_spill] sm:$0xff] }
 0x3d8   : > { %16668 = vst [vmem:[#allocation39_spill] sm:$0xff] %v12315_v26  ;;  %v2301_v28 = vadd.f32 %v2300_v62, %v11212_v49  ;;  %v12320_v41 = vpop.eup %8621  ;;  %v16672_v32 = vld [vmem:[#allocation183_spill] sm:$0xff]  ;;  %v16674_v39 = vld [vmem:[#allocation182_spill] sm:$0xff]  ;;  %v4052_v47 = vpop.permute.xlu0 %4051  ;;  %8643 = vrcp.f32 %v4610_v0  ;;  %v4613_v18 = vmax.f32 %v12213_v52, 1e-38  ;;  %v16677_v50 = vld [vmem:[#allocation101_spill] sm:$0xff] }
 0x3d9   : > { %16670 = vst [vmem:[#allocation156_spill] sm:$0xff] %v12320_v41  ;;  %v2969_v16 = vmul.f32 %v16671_v38, %v2299_v37  ;;  %v12325_v54 = vmul.f32 %v11990_v42, %v16672_v32  ;;  %v12329_v3 = vmul.f32 %v11995_v61, %v16674_v39  ;;  %v12331_v10 = vpop.eup %8623  ;;  %v3661_v21 = vpop.f32.mrb[0].mxu0  ;;  %v16678_v58 = vld [vmem:[#allocation184_spill] sm:$0xff]  ;;  %8645 = vrcp.f32 %v4611_v55  ;;  %v16681_v41 = vld [vmem:[#allocation189_spill] sm:$0xff] }
 0x3da   : > { %16676 = vst [vmem:[#allocation43_spill] sm:$0xff] %v12331_v10  ;;  %v2970_v62 = vmul.f32 %v16677_v50, %v2301_v28  ;;  %v12337_v37 = vmul.f32 %v12000_v1, %v16678_v58  ;;  %v12339_v38 = vpop.eup %8625  ;;  %v4364_v32 = vmul.f32 %v4047_v46, %v3661_v21  ;;  %v3663_v61 = vpop.f32.mrb[1].mxu0  ;;  %v16682_v10 = vld [vmem:[#allocation64_spill] sm:$0xff]  ;;  %8647 = vrcp.f32 %v4612_v25  ;;  %v16685_v1 = vld [vmem:[#allocation187_spill] sm:$0xff] }
 0x3db   : > { %16673 = vst [vmem:[#allocation41_spill] sm:$0xff] %v12325_v54  ;;  %16675 = vst [vmem:[#allocation161_spill] sm:$0xff] %v12329_v3  ;;  %v3105_v42 = vpack.c.bf16 %v2969_v16, %v2967_v44  ;;  %v4057_v39 = vpop.permute.xlu1 %4056  ;;  %v12343_v26 = vmul.f32 %v16682_v10, %v16681_v41  ;;  %v12345_v0 = vpop.eup %8627  ;;  %v4365_v52 = vmul.f32 %v4047_v46, %v3663_v61  ;;  %v16686_v58 = vld [vmem:[#allocation19_spill] sm:$0xff]  ;;  %v4614_v44 = vmax.f32 %v12222_v59, 1e-38 }
 0x3dc   : > { %16679 = vst [vmem:[#allocation82_spill] sm:$0xff] %v12337_v37  ;;  %16680 = vst [vmem:[#allocation47_spill] sm:$0xff] %v12339_v38  ;;  %v2304_v28 = vpop.f32.mrb[112].mxu1  ;;  %v3665_v50 = vpop.f32.mrb[2].mxu0  ;;  %v3106_v33 = vpack.c.bf16 %v2970_v62, %v2968_v19  ;;  %v12349_v40 = vmul.f32 %v16686_v58, %v16685_v1  ;;  %v12354_v16 = vmul.f32 %v4364_v32, %v4364_v32  ;;  %8649 = vrcp.f32 %v4613_v18  ;;  %v16691_v32 = vld [vmem:[#allocation102_spill] sm:$0xff] }
 0x3dd   : > { %16683 = vst [vmem:[#allocation83_spill] sm:$0xff] %v12343_v26  ;;  %16684 = vst [vmem:[#allocation49_spill] sm:$0xff] %v12345_v0  ;;  %v12351_v55 = vpop.eup %8629  ;;  %v2305_v41 = vadd.f32 %v2304_v28, %v11201_v45  ;;  %v4366_v10 = vmul.f32 %v4052_v47, %v3665_v50  ;;  %v2306_v21 = vpop.f32.mrb[113].mxu1  ;;  %v12359_v46 = vmul.f32 %v4365_v52, %v4365_v52  ;;  %8651 = vrcp.f32 %v4614_v44 }
 0x3de   : > { %16687 = vst [vmem:[#allocation84_spill] sm:$0xff] %v12349_v40  ;;  %16688 = vst [vmem:[#allocation159_spill] sm:$0xff] %v12351_v55  ;;  %v3667_v0 = vpop.f32.mrb[3].mxu0  ;;  %v12357_v25 = vpop.eup %8631  ;;  %v2307_v19 = vadd.f32 %v2306_v21, %v11212_v49  ;;  %3929 = vmatprep.mubr.bf16.mxu0 %v3106_v33  ;;  %v5004_v59 = vrot.slane %v12354_v16, 4  ;;  %v16693_v21 = vld [vmem:[#allocation103_spill] sm:$0xff] }
 0x3df   : > { %16689 = vst [vmem:[#allocation51_spill] sm:$0xff] %v12357_v25  ;;  %v4367_v62 = vmul.f32 %v4052_v47, %v3667_v0  ;;  %v2308_v61 = vpop.f32.mrb[114].mxu1  ;;  %v12362_v1 = vpop.eup %8633  ;;  %v2971_v58 = vmul.f32 %v16691_v32, %v2305_v41  ;;  %v12366_v28 = vmul.f32 %v4366_v10, %v4366_v10  ;;  %3930 = vmatmul.mubr.bf16.gmra.mrb[108].mxu0 %v3105_v42  ;;  %v5010_v52 = vrot.slane %v12359_v46, 4  ;;  %v16695_v32 = vld [vmem:[#allocation104_spill] sm:$0xff] }
 0x3e0   : > { %16690 = vst [vmem:[#allocation85_spill] sm:$0xff] %v12362_v1  ;;  %v2309_v50 = vadd.f32 %v2308_v61, %v11201_v45  ;;  %v2310_v55 = vpop.f32.mrb[115].mxu1  ;;  %v12369_v18 = vpop.eup %8635  ;;  %v2972_v47 = vmul.f32 %v16693_v21, %v2307_v19  ;;  %v5005_v10 = vadd.f32 %v5004_v59, %v12354_v16  ;;  %v4616_v22 = vmax.f32 %v12268_v24, 1e-38 }
 0x3e1   : > { %16692 = vst [vmem:[#allocation158_spill] sm:$0xff] %v12369_v18  ;;  %v12373_v0 = vmul.f32 %v4367_v62, %v4367_v62  ;;  %v2311_v33 = vadd.f32 %v2310_v55, %v11212_v49  ;;  %v12376_v1 = vpop.eup %8637  ;;  %v5016_v61 = vrot.slane %v12366_v28, 4  ;;  %v5011_v18 = vadd.f32 %v5010_v52, %v12359_v46  ;;  %v16697_v62 = vld [vmem:[#allocation105_spill] sm:$0xff]  ;;  %v3671_v55 = vpop.f32.mrb[4].mxu0 }
 0x3e2   : > { %16694 = vst [vmem:[#allocation53_spill] sm:$0xff] %v12376_v1  ;;  %v2973_v42 = vmul.f32 %v16695_v32, %v2309_v50  ;;  %v12382_v25 = vpop.eup %8639  ;;  %v5006_v1 = vrot.slane %v5005_v10, 2  ;;  %v4062_v27 = vpop.permute.xlu1 %4061  ;;  %v4368_v51 = vmul.f32 %v4057_v39, %v3671_v55 }
 0x3e3   : > { %16696 = vst [vmem:[#allocation160_spill] sm:$0xff] %v12382_v25  ;;  %v5022_v19 = vrot.slane %v12373_v0, 4  ;;  %v2974_v21 = vmul.f32 %v16697_v62, %v2311_v33  ;;  %v12387_v38 = vpop.eup %8641  ;;  %v5017_v41 = vadd.f32 %v5016_v61, %v12366_v28  ;;  %v3673_v5 = vpop.f32.mrb[5].mxu0  ;;  %v5012_v32 = vrot.slane %v5011_v18, 2 }
 0x3e4   : > { %16698 = vst [vmem:[#allocation55_spill] sm:$0xff] %v12387_v38  ;;  %v3107_v59 = vpack.c.bf16 %v2973_v42, %v2971_v58  ;;  %v12390_v50 = vpop.eup %8643  ;;  %v4369_v52 = vmul.f32 %v4057_v39, %v3673_v5  ;;  %v2314_v25 = vpop.f32.mrb[116].mxu1  ;;  %v5007_v62 = vadd.f32 %v5006_v1, %v5005_v10  ;;  %v12395_v9 = vmul.f32 %v4368_v51, %v4368_v51  ;;  %v16702_v10 = vld [vmem:[#allocation106_spill] sm:$0xff] }
 0x3e5   : > { %16699 = vst [vmem:[#allocation165_spill] sm:$0xff] %v12390_v50  ;;  %v5023_v44 = vadd.f32 %v5022_v19, %v12373_v0  ;;  %v3675_v53 = vpop.f32.mrb[6].mxu0  ;;  %v3108_v20 = vpack.c.bf16 %v2974_v21, %v2972_v47  ;;  %v12393_v33 = vpop.eup %8645  ;;  %v5018_v38 = vrot.slane %v5017_v41, 2  ;;  %v2315_v58 = vadd.f32 %v2314_v25, %v11201_v45 }
 0x3e6   : > { %16700 = vst [vmem:[#allocation57_spill] sm:$0xff] %v12393_v33  ;;  %v2316_v61 = vpop.f32.mrb[117].mxu1  ;;  %v3677_v42 = vpop.f32.mrb[7].mxu0  ;;  %v5013_v50 = vadd.f32 %v5012_v32, %v5011_v18  ;;  %v12400_v26 = vmul.f32 %v4369_v52, %v4369_v52  ;;  %v4370_v5 = vmul.f32 %v4062_v27, %v3675_v53  ;;  %v5008_v47 = vrot.slane %v5007_v62, 1 }
 0x3e7   : > { %v12398_v55 = vpop.eup %8647  ;;  %v5024_v40 = vrot.slane %v5023_v44, 2  ;;  %v2318_v39 = vpop.f32.mrb[118].mxu1  ;;  %3939 = vmatprep.mubr.bf16.mxu0 %v3108_v20  ;;  %v5019_v19 = vadd.f32 %v5018_v38, %v5017_v41  ;;  %v5028_v1 = vrot.slane %v12395_v9, 4  ;;  %v12404_v51 = vmul.f32 %v16702_v10, %v2315_v58 }
 0x3e8   : > { %16701 = vst [vmem:[#allocation163_spill] sm:$0xff] %v12398_v55  ;;  %v2320_v21 = vpop.f32.mrb[119].mxu1  ;;  %3940 = vmatmul.mubr.bf16.gmra.mrb[112].mxu0 %v3107_v59  ;;  %v12406_v25 = vpop.eup %8649  ;;  %v5014_v33 = vrot.slane %v5013_v50, 1  ;;  %v5034_v18 = vrot.slane %v12400_v26, 4  ;;  %v12409_v32 = vmul.f32 %v4370_v5, %v4370_v5  ;;  %v5009_v53 = vadd.f32 %v5008_v47, %v5007_v62 }
 0x3e9   : > { %16703 = vst [vmem:[#allocation7_spill] sm:$0xff] %v12406_v25  ;;  %v5025_v55 = vadd.f32 %v5024_v40, %v5023_v44  ;;  %v5020_v52 = vrot.slane %v5019_v19, 1  ;;  %v5029_v20 = vadd.f32 %v5028_v1, %v12395_v9  ;;  %v2317_v38 = vadd.f32 %v2316_v61, %v11212_v49  ;;  %v3681_v10 = vpop.f32.mrb[8].mxu0  ;;  %v16704_v44 = vld [vmem:[#allocation107_spill] sm:$0xff]  ;;  %v12418_v62 = vpop.eup %8651 }
 0x3ea   : > { %v5015_v41 = vadd.f32 %v5014_v33, %v5013_v50  ;;  %v5035_v58 = vadd.f32 %v5034_v18, %v12400_v26  ;;  %v5040_v59 = vrot.slane %v12409_v32, 4  ;;  %v5772_v25 = vmax.f32 %v5009_v53, 1e-38  ;;  %v3683_v5 = vpop.f32.mrb[9].mxu0  ;;  %16705 = vst [vmem:[#allocation162_spill] sm:$0xff] %v12418_v62  ;;  %v2324_v33 = vpop.f32.mrb[120].mxu1 }
 0x3eb   : > { %v5026_v37 = vrot.slane %v5025_v55, 1  ;;  %v5021_v3 = vadd.f32 %v5020_v52, %v5019_v19  ;;  %v5030_v40 = vrot.slane %v5029_v20, 2  ;;  %v12416_v54 = vmul.f32 %v16704_v44, %v2317_v38  ;;  %v3685_v61 = vpop.f32.mrb[10].mxu0  ;;  %v2326_v53 = vpop.f32.mrb[121].mxu1 }
 0x3ec   : > { %v5773_v47 = vmax.f32 %v5015_v41, 1e-38  ;;  %v5036_v15 = vrot.slane %v5035_v58, 2  ;;  %v5041_v50 = vadd.f32 %v5040_v59, %v12409_v32  ;;  %8653 = vrcp.f32 %v5772_v25  ;;  %v12421_v19 = vpop.f32.mrb[11].mxu0  ;;  %v12423_v34 = vpop.f32.mrb[122].mxu1 }
 0x3ed   : > { %v5027_v1 = vadd.f32 %v5026_v37, %v5025_v55  ;;  %v5774_v18 = vmax.f32 %v5021_v3, 1e-38  ;;  %v5031_v43 = vadd.f32 %v5030_v40, %v5029_v20  ;;  %v4371_v6 = vmul.f32 %v4062_v27, %v3677_v42  ;;  %v12428_v59 = vpop.f32.mrb[123].mxu1  ;;  %v4067_v3 = vpop.permute.xlu0 %4066 }
 0x3ee   : > { %8655 = vrcp.f32 %v5773_v47  ;;  %v5037_v38 = vadd.f32 %v5036_v15, %v5035_v58  ;;  %v5042_v44 = vrot.slane %v5041_v50, 2  ;;  %v2319_v41 = vadd.f32 %v2318_v39, %v11201_v45  ;;  %v16706_v58 = vld [vmem:[#allocation108_spill] sm:$0xff]  ;;  %v12438_v13 = vpop.f32.mrb[12].mxu0 }
 0x3ef   : > { %v5775_v52 = vmax.f32 %v5027_v1, 1e-38  ;;  %8657 = vrcp.f32 %v5774_v18  ;;  %v5032_v37 = vrot.slane %v5031_v43, 1  ;;  %v12425_v55 = vmul.f32 %v4371_v6, %v4371_v6  ;;  %v16707_v18 = vld [vmem:[#allocation109_spill] sm:$0xff] }
 0x3f0   : > { %v5038_v27 = vrot.slane %v5037_v38, 1  ;;  %v5043_v42 = vadd.f32 %v5042_v44, %v5041_v50  ;;  %v2321_v25 = vadd.f32 %v2320_v21, %v11212_v49  ;;  %v12433_v40 = vmul.f32 %v16706_v58, %v2319_v41  ;;  %v12441_v44 = vpop.permute.xlu1 %4071 }
 0x3f1   : > { %8659 = vrcp.f32 %v5775_v52  ;;  %v5033_v20 = vadd.f32 %v5032_v37, %v5031_v43  ;;  %v5046_v15 = vrot.slane %v12425_v55, 4  ;;  %v4372_v47 = vmul.f32 %v4067_v3, %v3681_v10  ;;  %v12447_v37 = vpop.f32.mrb[13].mxu0 }
 0x3f2   : > { %v5039_v1 = vadd.f32 %v5038_v27, %v5037_v38  ;;  %v5044_v6 = vrot.slane %v5043_v42, 1  ;;  %v12436_v62 = vmul.f32 %v16707_v18, %v2321_v25  ;;  %v4373_v39 = vmul.f32 %v4067_v3, %v3683_v5  ;;  %v12452_v3 = vpop.f32.mrb[124].mxu1  ;;  %v12454_v27 = vpop.f32.mrb[14].mxu0 }
 0x3f3   : > { %v5776_v52 = vmax.f32 %v5033_v20, 1e-38  ;;  %v5047_v50 = vadd.f32 %v5046_v15, %v12425_v55  ;;  %v12445_v21 = vmul.f32 %v4372_v47, %v4372_v47  ;;  %v2325_v5 = vadd.f32 %v2324_v33, %v11201_v45  ;;  %v12458_v58 = vpop.f32.mrb[125].mxu1  ;;  %v12460_v47 = vpop.f32.mrb[15].mxu0 }
 0x3f4   : > { %v5777_v10 = vmax.f32 %v5039_v1, 1e-38  ;;  %v5045_v38 = vadd.f32 %v5044_v6, %v5043_v42  ;;  %v12449_v41 = vmul.f32 %v4373_v39, %v4373_v39  ;;  %v4374_v15 = vmul.f32 %v12441_v44, %v3685_v61  ;;  %v16708_v6 = vld [vmem:[#allocation110_spill] sm:$0xff]  ;;  %v12466_v18 = vpop.f32.mrb[126].mxu1 }
 0x3f5   : > { %8661 = vrcp.f32 %v5776_v52  ;;  %v5048_v25 = vrot.slane %v5047_v50, 2  ;;  %v5052_v20 = vrot.slane %v12445_v21, 4  ;;  %v12464_v33 = vmul.f32 %v16708_v6, %v2325_v5  ;;  %v12472_v2 = vpop.f32.mrb[127].mxu1 }
 0x3f6   : > { %8663 = vrcp.f32 %v5777_v10  ;;  %v5778_v42 = vmax.f32 %v5045_v38, 1e-38  ;;  %v5058_v1 = vrot.slane %v12449_v41, 4  ;;  %v8654_v39 = vpop.eup %8653  ;;  %v16709_v52 = vmax.f32 %v12232_v63, 1e-38 }
 0x3f7   : > { %v5049_v43 = vadd.f32 %v5048_v25, %v5047_v50  ;;  %v5053_v61 = vadd.f32 %v5052_v20, %v12445_v21  ;;  %v2327_v35 = vadd.f32 %v2326_v53, %v11212_v49  ;;  %v6028_v38 = vmul.f32 %v8654_v39, %v12354_v16 }
 0x3f8   : > { %8665 = vrcp.f32 %v16709_v52  ;;  %v8656_v10 = vpop.eup %8655  ;;  %v5059_v5 = vadd.f32 %v5058_v1, %v12449_v41  ;;  %v12476_v6 = vmul.f32 %v4374_v15, %v4374_v15  ;;  %v16710_v52 = vld [vmem:[#allocation38_spill] sm:$0xff]  ;;  %v16712_v15 = vld [vmem:[#allocation40_spill] sm:$0xff] }
 0x3f9   : > { %8667 = vrcp.f32 %v5778_v42  ;;  %v8658_v31 = vpop.eup %8657  ;;  %v6029_v63 = vmul.f32 %v8656_v10, %v12359_v46  ;;  %v5050_v50 = vrot.slane %v5049_v43, 1  ;;  %v5054_v25 = vrot.slane %v5053_v61, 2  ;;  %v12485_v42 = vpop.f32.mrb[16].mxu0 }
 0x3fa   : > { %v6156_v53 = vmul.f32 %v6028_v38, %v16710_v52  ;;  %v6030_v7 = vmul.f32 %v8658_v31, %v12366_v28  ;;  %v5060_v12 = vrot.slane %v5059_v5, 2  ;;  %v12483_v16 = vmul.f32 %v16711_v11, %v2327_v35  ;;  %v12489_v46 = vpop.f32.mrb[17].mxu0  ;;  %v16714_v35 = vld [vmem:[#allocation44_spill] sm:$0xff] }
 0x3fb   : > { %v8660_v20 = vpop.eup %8659  ;;  %v6157_v1 = vmul.f32 %v6029_v63, %v16712_v15  ;;  %v5051_v24 = vadd.f32 %v5050_v50, %v5049_v43  ;;  %v5055_v17 = vadd.f32 %v5054_v25, %v5053_v61  ;;  %v5064_v31 = vrot.slane %v12476_v6, 4  ;;  %v12493_v28 = vpop.f32.mrb[18].mxu0  ;;  %v16715_v61 = vld [vmem:[#allocation186_spill] sm:$0xff]  ;;  %v16716_v50 = vld [vmem:[#allocation133_spill] sm:$0xff] }
 0x3fc   : > { %v6031_v39 = vmul.f32 %v8660_v20, %v12373_v0  ;;  %v6284_v10 = vrot.slane %v6156_v53, 4  ;;  %v6158_v56 = vmul.f32 %v6030_v7, %v16713_v30  ;;  %v5061_v38 = vadd.f32 %v5060_v12, %v5059_v5  ;;  %v12496_v63 = vpop.f32.mrb[19].mxu0  ;;  %v16718_v5 = vld [vmem:[#allocation188_spill] sm:$0xff]  ;;  %v16719_v20 = vld [vmem:[#allocation131_spill] sm:$0xff] }
 0x3fd   : > { %v6290_v11 = vrot.slane %v6157_v1, 4  ;;  %v5779_v14 = vmax.f32 %v5051_v24, 1e-38  ;;  %v5056_v60 = vrot.slane %v5055_v17, 1  ;;  %8669 = vrcp.f32 %v4616_v22 }
 0x3fe   : > { %v6159_v52 = vmul.f32 %v6031_v39, %v16714_v35  ;;  %v4617_v0 = vmax.f32 %v12277_v8, 1e-38  ;;  %v5062_v43 = vrot.slane %v5061_v38, 1  ;;  %v12501_v25 = vmul.f32 %v16716_v50, %v16715_v61 }
 0x3ff   : > { %v8662_v30 = vpop.eup %8661  ;;  %v6285_v12 = vadd.f32 %v6284_v10, %v6156_v53  ;;  %8671 = vrcp.f32 %v5779_v14  ;;  %v5057_v7 = vadd.f32 %v5056_v60, %v5055_v17  ;;  %v12505_v15 = vmul.f32 %v16719_v20, %v16718_v5  ;;  %v16722_v10 = vld [vmem:[#allocation45_spill] sm:$0xff] }
 0x400   : > { %16717 = vst [vmem:[#allocation118_spill] sm:$0xff] %v12501_v25  ;;  %v8664_v39 = vpop.eup %8663  ;;  %v4618_v24 = vmax.f32 %v12286_v36, 1e-38  ;;  %v6032_v22 = vmul.f32 %v8662_v30, %v12395_v9  ;;  %v5063_v35 = vadd.f32 %v5062_v43, %v5061_v38  ;;  %v5065_v8 = vadd.f32 %v5064_v31, %v12476_v6  ;;  %v12516_v36 = vpop.f32.mrb[20].mxu0  ;;  %v16723_v31 = vld [vmem:[#allocation46_spill] sm:$0xff] }
 0x401   : > { %16720 = vst [vmem:[#allocation86_spill] sm:$0xff] %v12505_v15  ;;  %v6291_v61 = vadd.f32 %v6290_v11, %v6157_v1  ;;  %v6296_v50 = vrot.slane %v6158_v56, 4  ;;  %v6033_v53 = vmul.f32 %v8664_v39, %v12400_v26  ;;  %v5780_v14 = vmax.f32 %v5057_v7, 1e-38  ;;  %v12523_v11 = vpop.f32.mrb[21].mxu0  ;;  %v12525_v26 = vpop.permute.xlu0 %4076  ;;  %v16724_v39 = vld [vmem:[#allocation193_spill] sm:$0xff] }
 0x402   : > { %v12510_v57 = vpop.eup %8665  ;;  %8673 = vrcp.f32 %v4617_v0  ;;  %v6302_v17 = vrot.slane %v6159_v52, 4  ;;  %v12514_v5 = vmul.f32 %v6032_v22, %v16722_v10  ;;  %v5781_v20 = vmax.f32 %v5063_v35, 1e-38  ;;  %v12529_v7 = vpop.f32.mrb[22].mxu0  ;;  %v16725_v22 = vld [vmem:[#allocation21_spill] sm:$0xff]  ;;  %v16727_v10 = vld [vmem:[#allocation48_spill] sm:$0xff] }
 0x403   : > { %16721 = vst [vmem:[#allocation125_spill] sm:$0xff] %v12510_v57  ;;  %v8668_v60 = vpop.eup %8667  ;;  %v4619_v9 = vmax.f32 %v12296_v29, 1e-38  ;;  %v6286_v38 = vrot.slane %v6285_v12, 2  ;;  %v12520_v43 = vmul.f32 %v6033_v53, %v16723_v31  ;;  %8675 = vrcp.f32 %v5780_v14  ;;  %v16728_v14 = vld [vmem:[#allocation191_spill] sm:$0xff] }
 0x404   : > { %v6034_v1 = vmul.f32 %v8668_v60, %v12409_v32  ;;  %v5066_v0 = vrot.slane %v5065_v8, 2  ;;  %v4375_v30 = vmul.f32 %v12441_v44, %v12421_v19  ;;  %v12533_v29 = vmul.f32 %v16725_v22, %v16724_v39  ;;  %v12538_v60 = vpop.f32.mrb[23].mxu0  ;;  %v16730_v19 = vld [vmem:[#allocation190_spill] sm:$0xff] }
 0x405   : > { %8677 = vrcp.f32 %v4618_v24  ;;  %v6292_v35 = vrot.slane %v6291_v61, 2  ;;  %v6297_v53 = vadd.f32 %v6296_v50, %v6158_v56  ;;  %v6303_v31 = vadd.f32 %v6302_v17, %v6159_v52  ;;  %v16731_v44 = vld [vmem:[#allocation22_spill] sm:$0xff]  ;;  %v16733_v24 = vld [vmem:[#allocation192_spill] sm:$0xff]  ;;  %v16735_v50 = vld [vmem:[#allocation197_spill] sm:$0xff] }
 0x406   : > { %16726 = vst [vmem:[#allocation87_spill] sm:$0xff] %v12533_v29  ;;  %v12536_v32 = vmul.f32 %v6034_v1, %v16727_v10  ;;  %8679 = vrcp.f32 %v5781_v20  ;;  %v12542_v57 = vmul.f32 %v12054_v4, %v16728_v14  ;;  %v12546_v15 = vmul.f32 %v16731_v44, %v16730_v19  ;;  %v16736_v1 = vld [vmem:[#allocation23_spill] sm:$0xff]  ;;  %v16742_v19 = vld [vmem:[#allocation194_spill] sm:$0xff] }
 0x407   : > { %8681 = vrcp.f32 %v4619_v9  ;;  %v6287_v39 = vadd.f32 %v6286_v38, %v6285_v12  ;;  %v12550_v56 = vmul.f32 %v12064_v48, %v16733_v24  ;;  %v12554_v22 = vmul.f32 %v16736_v1, %v16735_v50  ;;  %v12556_v52 = vpop.eup %8669  ;;  %v16739_v4 = vld [vmem:[#allocation195_spill] sm:$0xff]  ;;  %v16743_v9 = vld [vmem:[#allocation68_spill] sm:$0xff]  ;;  %v16746_v1 = vld [vmem:[#allocation25_spill] sm:$0xff] }
 0x408   : > { %16729 = vst [vmem:[#allocation88_spill] sm:$0xff] %v12542_v57  ;;  %16732 = vst [vmem:[#allocation164_spill] sm:$0xff] %v12546_v15  ;;  %v5067_v17 = vadd.f32 %v5066_v0, %v5065_v8  ;;  %v12558_v20 = vmul.f32 %v4375_v30, %v4375_v30  ;;  %v16740_v10 = vld [vmem:[#allocation67_spill] sm:$0xff]  ;;  %v12566_v12 = vmul.f32 %v16743_v9, %v16742_v19  ;;  %v6298_v44 = vrot.slane %v6297_v53, 2  ;;  %v16745_v50 = vld [vmem:[#allocation196_spill] sm:$0xff]  ;;  %v12576_v0 = vpop.permute.xlu0 %4086  ;;  %v12580_v9 = vpop.f32.mrb[24].mxu0 }
 0x409   : > { %16734 = vst [vmem:[#allocation59_spill] sm:$0xff] %v12550_v56  ;;  %16737 = vst [vmem:[#allocation89_spill] sm:$0xff] %v12554_v22  ;;  %v12562_v14 = vmul.f32 %v16740_v10, %v16739_v4  ;;  %v8672_v38 = vpop.eup %8671  ;;  %v12568_v48 = vadd.f32 %v6292_v35, %v6291_v61  ;;  %v2329_v24 = vadd.f32 %v12423_v34, %v11201_v45  ;;  %v6304_v30 = vrot.slane %v6303_v31, 2 }
 0x40a   : > { %16738 = vst [vmem:[#allocation169_spill] sm:$0xff] %v12556_v52  ;;  %16744 = vst [vmem:[#allocation60_spill] sm:$0xff] %v12566_v12  ;;  %v12574_v8 = vmul.f32 %v16746_v1, %v16745_v50  ;;  %v6035_v4 = vmul.f32 %v8672_v38, %v12425_v55  ;;  %v5068_v10 = vrot.slane %v5067_v17, 1  ;;  %v5070_v19 = vrot.slane %v12558_v20, 4  ;;  %v16748_v52 = vld [vmem:[#allocation112_spill] sm:$0xff]  ;;  %v12588_v50 = vpop.f32.mrb[25].mxu0 }
 0x40b   : > { %16741 = vst [vmem:[#allocation12_spill] sm:$0xff] %v12562_v14  ;;  %v6288_v61 = vrot.slane %v6287_v39, 1  ;;  %v6308_v35 = vrot.slane %v12514_v5, 4  ;;  %v12584_v12 = vmul.f32 %v16748_v52, %v2329_v24  ;;  %v3110_v34 = vpack.c.bf16 %v12436_v62, %v12416_v54  ;;  %v16750_v38 = vld [vmem:[#allocation50_spill] sm:$0xff]  ;;  %v12597_v56 = vpop.f32.mrb[26].mxu0  ;;  %v16751_v24 = vld [vmem:[#allocation201_spill] sm:$0xff] }
 0x40c   : > { %16747 = vst [vmem:[#allocation167_spill] sm:$0xff] %v12574_v8  ;;  %v12590_v1 = vpop.eup %8673  ;;  %v6314_v55 = vrot.slane %v12520_v43, 4  ;;  %v12594_v8 = vmul.f32 %v6035_v4, %v16750_v38  ;;  %v5069_v14 = vadd.f32 %v5068_v10, %v5067_v17  ;;  %v5071_v22 = vadd.f32 %v5070_v19, %v12558_v20  ;;  %v12603_v62 = vpop.f32.mrb[27].mxu0 }
 0x40d   : > { %16749 = vst [vmem:[#allocation166_spill] sm:$0xff] %v12590_v1  ;;  %v6299_v15 = vadd.f32 %v6298_v44, %v6297_v53  ;;  %3949 = vmatprep.mubr.bf16.mxu0 %v3110_v34  ;;  %v2331_v54 = vadd.f32 %v12428_v59, %v11212_v49  ;;  %v16752_v1 = vld [vmem:[#allocation134_spill] sm:$0xff]  ;;  %v8676_v4 = vpop.eup %8675  ;;  %v6294_v17 = vrot.slane %v12568_v48, 1  ;;  %v6305_v10 = vadd.f32 %v6304_v30, %v6303_v31  ;;  %v12622_v29 = vpop.permute.xlu0 %4096 }
 0x40e   : > { %v12607_v57 = vmul.f32 %v16752_v1, %v16751_v24  ;;  %v5782_v19 = vmax.f32 %v5069_v14, 1e-38  ;;  %v5072_v38 = vrot.slane %v5071_v22, 2  ;;  %v16754_v53 = vpack.c.bf16 %v12433_v40, %v12404_v51  ;;  %v16757_v1 = vld [vmem:[#allocation113_spill] sm:$0xff] }
 0x40f   : > { %v12613_v44 = vpop.eup %8677  ;;  %v12615_v34 = vadd.f32 %v6288_v61, %v6287_v39  ;;  %v6309_v59 = vadd.f32 %v6308_v35, %v12514_v5  ;;  %v6036_v52 = vmul.f32 %v8676_v4, %v12445_v21  ;;  %v12620_v24 = vmul.f32 %v16757_v1, %v2331_v54  ;;  %v16759_v5 = vld [vmem:[#allocation52_spill] sm:$0xff]  ;;  %v4082_v54 = vpop.permute.xlu1 %4081  ;;  %v16761_v1 = vld [vmem:[#allocation114_spill] sm:$0xff] }
 0x410   : > { %16753 = vst [vmem:[#allocation168_spill] sm:$0xff] %v12607_v57  ;;  %3950 = vmatmul.mubr.bf16.gmra.mrb[116].mxu0 %v16754_v53  ;;  %16755 = vst [vmem:[#allocation173_spill] sm:$0xff] %v12613_v44  ;;  %v8680_v57 = vpop.eup %8679  ;;  %v6315_v31 = vadd.f32 %v6314_v55, %v12520_v43  ;;  %8683 = vrcp.f32 %v5782_v19  ;;  %v5073_v14 = vadd.f32 %v5072_v38, %v5071_v22  ;;  %v6320_v39 = vrot.slane %v12536_v32, 4  ;;  %v12640_v22 = vpop.f32.mrb[28].mxu0  ;;  %v16760_v19 = vld [vmem:[#allocation5_spill] sm:$0xff] }
 0x411   : > { %16756 = vst [vmem:[#allocation90_spill] sm:$0xff] %v12615_v34  ;;  %v4376_v51 = vmul.f32 %v12525_v26, %v12438_v13  ;;  %v12627_v40 = vpop.eup %8681  ;;  %v12631_v30 = vmul.f32 %v6036_v52, %v16759_v5  ;;  %v6037_v21 = vmul.f32 %v8680_v57, %v12449_v41  ;;  %v4377_v61 = vmul.f32 %v12525_v26, %v12447_v37  ;;  %v12648_v41 = vpop.f32.mrb[29].mxu0  ;;  %v16765_v34 = vld [vmem:[#allocation115_spill] sm:$0xff] }
 0x412   : > { %16758 = vst [vmem:[#allocation91_spill] sm:$0xff] %v12627_v40  ;;  %v6300_v35 = vrot.slane %v6299_v15, 1  ;;  %v5074_v43 = vrot.slane %v5073_v14, 1  ;;  %v2335_v13 = vadd.f32 %v12452_v3, %v11201_v45  ;;  %v6310_v4 = vrot.slane %v6309_v59, 2  ;;  %v12654_v3 = vpop.f32.mrb[30].mxu0 }
 0x413   : > { %v12636_v55 = vmul.f32 %v4376_v51, %v4376_v51  ;;  %v12643_v38 = vmul.f32 %v6037_v21, %v16760_v19  ;;  %v12645_v52 = vmul.f32 %v4377_v61, %v4377_v61  ;;  %v4378_v57 = vmul.f32 %v4082_v54, %v12454_v27  ;;  %v12660_v19 = vpop.f32.mrb[31].mxu0  ;;  %v12662_v27 = vpop.permute.xlu0 %4106 }
 0x414   : > { %v6306_v37 = vrot.slane %v6305_v10, 1  ;;  %v5075_v26 = vadd.f32 %v5074_v43, %v5073_v14  ;;  %v12652_v51 = vmul.f32 %v16761_v1, %v2335_v13  ;;  %v6316_v5 = vrot.slane %v6315_v31, 2 }
 0x415   : > { %v5076_v53 = vrot.slane %v12636_v55, 4  ;;  %v6321_v40 = vadd.f32 %v6320_v39, %v12536_v32  ;;  %v5082_v21 = vrot.slane %v12645_v52, 4  ;;  %v12658_v61 = vmul.f32 %v4378_v57, %v4378_v57 }
 0x416   : > { %v12665_v14 = vadd.f32 %v6294_v17, %v12568_v48  ;;  %v5783_v43 = vmax.f32 %v5075_v26, 1e-38  ;;  %v2337_v1 = vadd.f32 %v12458_v58, %v11212_v49  ;;  %v12670_v44 = vadd.f32 %v6300_v35, %v6299_v15 }
 0x417   : > { %v5077_v13 = vadd.f32 %v5076_v53, %v12636_v55  ;;  %v6311_v32 = vadd.f32 %v6310_v4, %v6309_v59  ;;  %v5083_v39 = vadd.f32 %v5082_v21, %v12645_v52  ;;  %v5088_v57 = vrot.slane %v12658_v61, 4 }
 0x418   : > { %16762 = vst [vmem:[#allocation92_spill] sm:$0xff] %v12665_v14  ;;  %16763 = vst [vmem:[#allocation171_spill] sm:$0xff] %v12670_v44  ;;  %v12674_v25 = vadd.f32 %v6306_v37, %v6305_v10  ;;  %8685 = vrcp.f32 %v5783_v43  ;;  %v12677_v48 = vmul.f32 %v16765_v34, %v2337_v1  ;;  %v12679_v17 = vadd.f32 %v6316_v5, %v6315_v31  ;;  %v12687_v37 = vpop.f32.mrb[32].mxu0  ;;  %v12693_v1 = vpop.permute.xlu0 %4116 }
 0x419   : > { %v5078_v23 = vrot.slane %v5077_v13, 2  ;;  %v6322_v26 = vrot.slane %v6321_v40, 2  ;;  %v5084_v53 = vrot.slane %v5083_v39, 2  ;;  %v5089_v58 = vadd.f32 %v5088_v57, %v12658_v61  ;;  %v12691_v43 = vpop.f32.mrb[33].mxu0 }
 0x41a   : > { %16764 = vst [vmem:[#allocation93_spill] sm:$0xff] %v12674_v25  ;;  %v8684_v15 = vpop.eup %8683  ;;  %v4379_v59 = vmul.f32 %v4082_v54, %v12460_v47  ;;  %v2339_v4 = vadd.f32 %v12466_v18, %v11201_v45  ;;  %v3112_v10 = vpack.c.bf16 %v12620_v24, %v12483_v16  ;;  %v6312_v34 = vrot.slane %v6311_v32, 1  ;;  %v16766_v45 = vld [vmem:[#allocation116_spill] sm:$0xff]  ;;  %v12700_v16 = vpop.f32.mrb[34].mxu0 }
 0x41b   : > { %v5079_v35 = vadd.f32 %v5078_v23, %v5077_v13  ;;  %v6326_v31 = vrot.slane %v12594_v8, 4  ;;  %v6038_v5 = vmul.f32 %v8684_v15, %v12476_v6  ;;  %v5085_v21 = vadd.f32 %v5084_v53, %v5083_v39  ;;  %v16767_v6 = vld [vmem:[#allocation6_spill] sm:$0xff]  ;;  %v12711_v15 = vpop.f32.mrb[35].mxu0 }
 0x41c   : > { %v5090_v47 = vrot.slane %v5089_v58, 2  ;;  %v12695_v54 = vmul.f32 %v4379_v59, %v4379_v59  ;;  %v12698_v18 = vmul.f32 %v16766_v45, %v2339_v4  ;;  %3959 = vmatprep.mubr.bf16.mxu0 %v3112_v10  ;;  %v12703_v13 = vadd.f32 %v6322_v26, %v6321_v40 }
 0x41d   : > { %v5080_v23 = vrot.slane %v5079_v35, 1  ;;  %v12706_v39 = vmul.f32 %v6038_v5, %v16767_v6  ;;  %v5086_v57 = vrot.slane %v5085_v21, 1  ;;  %v16768_v53 = vpack.c.bf16 %v12584_v12, %v12464_v33 }
 0x41e   : > { %v5091_v4 = vadd.f32 %v5090_v47, %v5089_v58  ;;  %v5094_v10 = vrot.slane %v12695_v54, 4  ;;  %v3113_v45 = vpack.c.bf16 %v12698_v18, %v12652_v51  ;;  %v12716_v24 = vadd.f32 %v6312_v34, %v6311_v32  ;;  %v16770_v47 = vld [vmem:[#allocation117_spill] sm:$0xff]  ;;  %v12728_v34 = vpop.permute.xlu0 %4126 }
 0x41f   : > { %3960 = vmatmul.mubr.bf16.gmra.mrb[120].mxu0 %v16768_v53  ;;  %v5081_v59 = vadd.f32 %v5080_v23, %v5079_v35  ;;  %v6327_v40 = vadd.f32 %v6326_v31, %v12594_v8  ;;  %v5087_v26 = vadd.f32 %v5086_v57, %v5085_v21  ;;  %v2341_v5 = vadd.f32 %v12472_v2, %v11212_v49  ;;  %v12732_v21 = vpop.f32.mrb[36].mxu0  ;;  %v4092_v57 = vpop.permute.xlu1 %4091 }
 0x420   : > { %16769 = vst [vmem:[#allocation170_spill] sm:$0xff] %v12716_v24  ;;  %v5092_v33 = vrot.slane %v5091_v4, 1  ;;  %v5095_v12 = vadd.f32 %v5094_v10, %v12695_v54  ;;  %v4380_v58 = vmul.f32 %v12576_v0, %v12485_v42  ;;  %v4381_v32 = vmul.f32 %v12576_v0, %v12489_v46 }
 0x421   : > { %v5784_v6 = vmax.f32 %v5081_v59, 1e-38  ;;  %v5785_v23 = vmax.f32 %v5087_v26, 1e-38  ;;  %v2986_v51 = vmul.f32 %v16770_v47, %v2341_v5  ;;  %v6328_v18 = vrot.slane %v6327_v40, 2  ;;  %v12737_v59 = vpop.f32.mrb[37].mxu0 }
 0x422   : > { %v8686_v8 = vpop.eup %8685  ;;  %v5093_v49 = vadd.f32 %v5092_v33, %v5091_v4  ;;  %v5096_v2 = vrot.slane %v5095_v12, 2  ;;  %v12730_v31 = vmul.f32 %v4380_v58, %v4380_v58  ;;  %v12735_v53 = vmul.f32 %v4381_v32, %v4381_v32  ;;  %v12741_v26 = vpop.f32.mrb[38].mxu0 }
 0x423   : > { %8687 = vrcp.f32 %v5784_v6  ;;  %v6039_v42 = vmul.f32 %v8686_v8, %v12558_v20  ;;  %v4382_v4 = vmul.f32 %v4092_v57, %v12493_v28  ;;  %v6332_v5 = vrot.slane %v12631_v30, 4  ;;  %v16771_v6 = vld [vmem:[#allocation54_spill] sm:$0xff] }
 0x424   : > { %8689 = vrcp.f32 %v5785_v23  ;;  %v5786_v46 = vmax.f32 %v5093_v49, 1e-38  ;;  %v5097_v0 = vadd.f32 %v5096_v2, %v5095_v12  ;;  %v5100_v10 = vrot.slane %v12730_v31, 4  ;;  %v12749_v23 = vpop.f32.mrb[39].mxu0 }
 0x425   : > { %v12745_v33 = vmul.f32 %v6039_v42, %v16771_v6  ;;  %v5106_v20 = vrot.slane %v12735_v53, 4  ;;  %v4383_v58 = vmul.f32 %v4092_v57, %v12496_v63  ;;  %v12752_v32 = vmul.f32 %v4382_v4, %v4382_v4 }
 0x426   : > { %8691 = vrcp.f32 %v5786_v46  ;;  %v5098_v47 = vrot.slane %v5097_v0, 1  ;;  %v5101_v12 = vadd.f32 %v5100_v10, %v12730_v31  ;;  %v12754_v28 = vadd.f32 %v6328_v18, %v6327_v40  ;;  %v12763_v46 = vpop.permute.xlu0 %4166 }
 0x427   : > { %v5107_v8 = vadd.f32 %v5106_v20, %v12735_v53  ;;  %v12757_v49 = vmul.f32 %v4383_v58, %v4383_v58  ;;  %v3114_v2 = vpack.c.bf16 %v2986_v51, %v12677_v48  ;;  %v5112_v63 = vrot.slane %v12752_v32, 4  ;;  %16772 = vst [vmem:[#allocation172_spill] sm:$0xff] %v12763_v46  ;;  %v12772_v58 = vpop.f32.mrb[40].mxu0 }
 0x428   : > { %v5099_v42 = vadd.f32 %v5098_v47, %v5097_v0  ;;  %v5102_v6 = vrot.slane %v5101_v12, 2  ;;  %v4384_v57 = vmul.f32 %v12622_v29, %v12516_v36  ;;  %v6338_v10 = vrot.slane %v12643_v38, 4  ;;  %16773 = vst [vmem:[#allocation177_spill] sm:$0xff] %v12772_v58 }
 0x429   : > { %v5108_v4 = vrot.slane %v5107_v8, 2  ;;  %v5118_v40 = vrot.slane %v12757_v49, 4  ;;  %3969 = vmatprep.mubr.bf16.mxu0 %v3114_v2  ;;  %v4385_v18 = vmul.f32 %v12622_v29, %v12523_v11  ;;  %v5113_v51 = vadd.f32 %v5112_v63, %v12752_v32 }
 0x42a   : > { %v5787_v20 = vmax.f32 %v5099_v42, 1e-38  ;;  %v5103_v48 = vadd.f32 %v5102_v6, %v5101_v12  ;;  %3970 = vmatmul.mubr.bf16.gmra.mrb[124].mxu0 %v3113_v45  ;;  %v12770_v0 = vmul.f32 %v4384_v57, %v4384_v57  ;;  %v6333_v36 = vadd.f32 %v6332_v5, %v12631_v30 }
 0x42b   : > { %v5109_v47 = vadd.f32 %v5108_v4, %v5107_v8  ;;  %v5119_v35 = vadd.f32 %v5118_v40, %v12757_v49  ;;  %v12776_v46 = vmul.f32 %v4385_v18, %v4385_v18  ;;  %v5114_v11 = vrot.slane %v5113_v51, 2  ;;  %v12783_v4 = vpop.permute.xlu0 %4206  ;;  %v16775_v40 = vld [vmem:[#allocation56_spill] sm:$0xff] }
 0x42c   : > { %8693 = vrcp.f32 %v5787_v20  ;;  %v5104_v25 = vrot.slane %v5103_v48, 1  ;;  %v5124_v29 = vrot.slane %v12770_v0, 4  ;;  %v6339_v45 = vadd.f32 %v6338_v10, %v12643_v38  ;;  %16774 = vst [vmem:[#allocation175_spill] sm:$0xff] %v12783_v4  ;;  %v16776_v10 = vld [vmem:[#allocation121_spill] sm:$0xff] }
 0x42d   : > { %v8688_v2 = vpop.eup %8687  ;;  %v5110_v6 = vrot.slane %v5109_v47, 1  ;;  %v5120_v63 = vrot.slane %v5119_v35, 2  ;;  %v5115_v8 = vadd.f32 %v5114_v11, %v5113_v51  ;;  %v5130_v14 = vrot.slane %v12776_v46, 4 }
 0x42e   : > { %v8690_v12 = vpop.eup %8689  ;;  %v6040_v42 = vmul.f32 %v8688_v2, %v12636_v55  ;;  %v5105_v5 = vadd.f32 %v5104_v25, %v5103_v48  ;;  %v5125_v57 = vadd.f32 %v5124_v29, %v12770_v0  ;;  %v6334_v25 = vrot.slane %v6333_v36, 2 }
 0x42f   : > { %v6041_v30 = vmul.f32 %v8690_v12, %v12645_v52  ;;  %v5111_v20 = vadd.f32 %v5110_v6, %v5109_v47  ;;  %v5121_v58 = vadd.f32 %v5120_v63, %v5119_v35  ;;  %v5116_v24 = vrot.slane %v5115_v8, 1  ;;  %v12793_v47 = vpop.f32.mrb[41].mxu0  ;;  %v16780_v63 = vld [vmem:[#allocation119_spill] sm:$0xff] }
 0x430   : > { %v12786_v18 = vmul.f32 %v6040_v42, %v16775_v40  ;;  %v8692_v38 = vpop.eup %8691  ;;  %v5788_v2 = vmax.f32 %v5105_v5, 1e-38  ;;  %v5126_v52 = vrot.slane %v5125_v57, 2  ;;  %v6340_v29 = vrot.slane %v6339_v45, 2  ;;  %16777 = vst [vmem:[#allocation174_spill] sm:$0xff] %v12793_v47  ;;  %v12803_v40 = vpop.f32.mrb[42].mxu0 }
 0x431   : > { %v12790_v55 = vmul.f32 %v6041_v30, %v16776_v10  ;;  %v6042_v48 = vmul.f32 %v8692_v38, %v12658_v61  ;;  %v5789_v51 = vmax.f32 %v5111_v20, 1e-38  ;;  %v5122_v11 = vrot.slane %v5121_v58, 1  ;;  %16781 = vst [vmem:[#allocation95_spill] sm:$0xff] %v12803_v40  ;;  %v12811_v10 = vpop.f32.mrb[43].mxu0 }
 0x432   : > { %8695 = vrcp.f32 %v5788_v2  ;;  %v5117_v12 = vadd.f32 %v5116_v24, %v5115_v8  ;;  %v5127_v42 = vadd.f32 %v5126_v52, %v5125_v57  ;;  %v16778_v35 = vrot.slane %v12679_v17, 1  ;;  %v4102_v24 = vpop.permute.xlu1 %4101  ;;  %16784 = vst [vmem:[#allocation176_spill] sm:$0xff] %v12811_v10  ;;  %v12816_v52 = vpop.permute.xlu0 %4246 }
 0x433   : > { %v12801_v30 = vmul.f32 %v6042_v48, %v16780_v63  ;;  %8697 = vrcp.f32 %v5789_v51  ;;  %v5123_v5 = vadd.f32 %v5122_v11, %v5121_v58  ;;  %v16782_v61 = vrot.slane %v12703_v13, 1  ;;  %16785 = vst [vmem:[#allocation97_spill] sm:$0xff] %v12816_v52  ;;  %v16793_v52 = vld [vmem:[#allocation120_spill] sm:$0xff] }
 0x434   : > { %v12798_v6 = vadd.f32 %v16778_v35, %v12679_v17  ;;  %v5790_v8 = vmax.f32 %v5117_v12, 1e-38  ;;  %v5128_v57 = vrot.slane %v5127_v42, 1  ;;  %v5131_v38 = vadd.f32 %v5130_v14, %v12776_v46 }
 0x435   : > { %v12808_v20 = vadd.f32 %v16782_v61, %v12703_v13  ;;  %v6330_v17 = vrot.slane %v12754_v28, 1  ;;  %v12814_v2 = vadd.f32 %v6334_v25, %v6333_v36  ;;  %v5791_v58 = vmax.f32 %v5123_v5, 1e-38 }
 0x436   : > { %16779 = vst [vmem:[#allocation94_spill] sm:$0xff] %v12798_v6  ;;  %v4386_v48 = vmul.f32 %v4102_v24, %v12529_v7  ;;  %v8694_v51 = vpop.eup %8693  ;;  %v12819_v11 = vadd.f32 %v6340_v29, %v6339_v45  ;;  %8699 = vrcp.f32 %v5790_v8  ;;  %v5129_v13 = vadd.f32 %v5128_v57, %v5127_v42  ;;  %v16787_v29 = vld [vmem:[#allocation8_spill] sm:$0xff]  ;;  %v12837_v8 = vpop.f32.mrb[44].mxu0 }
 0x437   : > { %16783 = vst [vmem:[#allocation96_spill] sm:$0xff] %v12808_v20  ;;  %v5132_v12 = vrot.slane %v5131_v38, 2  ;;  %v6344_v35 = vrot.slane %v12706_v39, 4  ;;  %v6043_v14 = vmul.f32 %v8694_v51, %v12695_v54  ;;  %8701 = vrcp.f32 %v5791_v58  ;;  %16788 = vst [vmem:[#allocation179_spill] sm:$0xff] %v12837_v8 }
 0x438   : > { %v12823_v63 = vmul.f32 %v4386_v48, %v4386_v48  ;;  %v5792_v36 = vmax.f32 %v5129_v13, 1e-38  ;;  %v4387_v61 = vmul.f32 %v4102_v24, %v12538_v60  ;;  %v4388_v7 = vmul.f32 %v12662_v27, %v12580_v9  ;;  %v12843_v9 = vpop.f32.mrb[45].mxu0  ;;  %v12857_v13 = vpop.permute.xlu1 %4111 }
 0x439   : > { %v5133_v25 = vadd.f32 %v5132_v12, %v5131_v38  ;;  %v12829_v45 = vadd.f32 %v6330_v17, %v12754_v28  ;;  %v12832_v42 = vmul.f32 %v6043_v14, %v16787_v29  ;;  %v4389_v54 = vmul.f32 %v12662_v27, %v12588_v50  ;;  %16789 = vst [vmem:[#allocation178_spill] sm:$0xff] %v12843_v9  ;;  %v12847_v17 = vpop.permute.xlu0 %4286  ;;  %v12852_v50 = vpop.f32.mrb[46].mxu0 }
 0x43a   : > { %v5136_v5 = vrot.slane %v12823_v63, 4  ;;  %8703 = vrcp.f32 %v5792_v36  ;;  %v12839_v38 = vmul.f32 %v4387_v61, %v4387_v61  ;;  %v12841_v60 = vmul.f32 %v4388_v7, %v4388_v7  ;;  %16790 = vst [vmem:[#allocation180_spill] sm:$0xff] %v12847_v17  ;;  %16791 = vst [vmem:[#allocation185_spill] sm:$0xff] %v12852_v50  ;;  %v12861_v61 = vpop.f32.mrb[47].mxu0  ;;  %v16794_v50 = vld [vmem:[#allocation9_spill] sm:$0xff] }
 0x43b   : > { %16786 = vst [vmem:[#allocation181_spill] sm:$0xff] %v12829_v45  ;;  %v5134_v57 = vrot.slane %v5133_v25, 1  ;;  %v6336_v28 = vrot.slane %v12814_v2, 1  ;;  %v12850_v48 = vmul.f32 %v4389_v54, %v4389_v54  ;;  %v12855_v51 = vadd.f32 %v6344_v35, %v12706_v39  ;;  %16792 = vst [vmem:[#allocation98_spill] sm:$0xff] %v12861_v61  ;;  %v12878_v40 = vpop.f32.mrb[48].mxu0 }
 0x43c   : > { %v5137_v58 = vadd.f32 %v5136_v5, %v12823_v63  ;;  %v8696_v27 = vpop.eup %8695  ;;  %v5142_v14 = vrot.slane %v12839_v38, 4  ;;  %v5148_v36 = vrot.slane %v12841_v60, 4  ;;  %v4390_v24 = vmul.f32 %v12857_v13, %v12597_v56  ;;  %16796 = vst [vmem:[#allocation100_spill] sm:$0xff] %v12878_v40  ;;  %v16800_v40 = vld [vmem:[#allocation58_spill] sm:$0xff] }
 0x43d   : > { %v5135_v12 = vadd.f32 %v5134_v57, %v5133_v25  ;;  %v8698_v7 = vpop.eup %8697  ;;  %v6044_v29 = vmul.f32 %v8696_v27, %v12730_v31  ;;  %v5154_v54 = vrot.slane %v12850_v48, 4  ;;  %v6350_v17 = vrot.slane %v12745_v33, 4 }
 0x43e   : > { %v5138_v5 = vrot.slane %v5137_v58, 2  ;;  %v6045_v39 = vmul.f32 %v8698_v7, %v12735_v53  ;;  %v5143_v25 = vadd.f32 %v5142_v14, %v12839_v38  ;;  %v5149_v57 = vadd.f32 %v5148_v36, %v12841_v60 }
 0x43f   : > { %v5793_v35 = vmax.f32 %v5135_v12, 1e-38  ;;  %v6172_v4 = vmul.f32 %v6044_v29, %v16793_v52  ;;  %v5155_v31 = vadd.f32 %v5154_v54, %v12850_v48  ;;  %v6346_v53 = vrot.slane %v12855_v51, 2  ;;  %v12875_v12 = vpop.permute.xlu0 %4326 }
 0x440   : > { %v5139_v61 = vadd.f32 %v5138_v5, %v5137_v58  ;;  %v8700_v27 = vpop.eup %8699  ;;  %v6173_v9 = vmul.f32 %v6045_v39, %v16794_v50  ;;  %v5144_v8 = vrot.slane %v5143_v25, 2  ;;  %v5150_v56 = vrot.slane %v5149_v57, 2  ;;  %16795 = vst [vmem:[#allocation99_spill] sm:$0xff] %v12875_v12  ;;  %v12883_v50 = vpop.f32.mrb[49].mxu0 }
 0x441   : > { %8705 = vrcp.f32 %v5793_v35  ;;  %v8702_v10 = vpop.eup %8701  ;;  %v6046_v14 = vmul.f32 %v8700_v27, %v12752_v32  ;;  %v5156_v7 = vrot.slane %v5155_v31, 2  ;;  %v12881_v5 = vmul.f32 %v4390_v24, %v4390_v24  ;;  %16797 = vst [vmem:[#allocation183_spill] sm:$0xff] %v12883_v50  ;;  %v16798_v35 = vld [vmem:[#allocation10_spill] sm:$0xff]  ;;  %v12888_v32 = vpop.f32.mrb[50].mxu0 }
 0x442   : > { %v5140_v36 = vrot.slane %v5139_v61, 1  ;;  %v6047_v52 = vmul.f32 %v8702_v10, %v12757_v49  ;;  %v5145_v58 = vadd.f32 %v5144_v8, %v5143_v25  ;;  %v5151_v29 = vadd.f32 %v5150_v56, %v5149_v57  ;;  %16799 = vst [vmem:[#allocation182_spill] sm:$0xff] %v12888_v32  ;;  %v12893_v8 = vpop.f32.mrb[51].mxu0 }
 0x443   : > { %v6351_v54 = vadd.f32 %v6350_v17, %v12745_v33  ;;  %v6356_v39 = vrot.slane %v12786_v18, 4  ;;  %v6174_v12 = vmul.f32 %v6046_v14, %v16798_v35  ;;  %v6380_v45 = vrot.slane %v6172_v4, 4  ;;  %16801 = vst [vmem:[#allocation101_spill] sm:$0xff] %v12893_v8  ;;  %v16803_v35 = vld [vmem:[#allocation11_spill] sm:$0xff] }
 0x444   : > { %v5141_v47 = vadd.f32 %v5140_v36, %v5139_v61  ;;  %v8704_v27 = vpop.eup %8703  ;;  %v12891_v6 = vmul.f32 %v6047_v52, %v16800_v40  ;;  %v5146_v49 = vrot.slane %v5145_v58, 1  ;;  %v5152_v10 = vrot.slane %v5151_v29, 1  ;;  %v12901_v52 = vpop.permute.xlu0 %4136 }
 0x445   : > { %v6386_v24 = vrot.slane %v6173_v9, 4  ;;  %v6048_v25 = vmul.f32 %v8704_v27, %v12770_v0  ;;  %v5157_v17 = vadd.f32 %v5156_v7, %v5155_v31  ;;  %v6362_v57 = vrot.slane %v12790_v55, 4 }
 0x446   : > { %v5794_v33 = vmax.f32 %v5141_v47, 1e-38  ;;  %v5147_v56 = vadd.f32 %v5146_v49, %v5145_v58  ;;  %v5153_v61 = vadd.f32 %v5152_v10, %v5151_v29  ;;  %v5160_v14 = vrot.slane %v12881_v5, 4  ;;  %v12917_v49 = vpop.f32.mrb[52].mxu0 }
 0x447   : > { %v12899_v36 = vadd.f32 %v6336_v28, %v12814_v2  ;;  %v6352_v40 = vrot.slane %v6351_v54, 2  ;;  %v12904_v32 = vmul.f32 %v6048_v25, %v16803_v35  ;;  %v16804_v0 = vrot.slane %v12819_v11, 1  ;;  %16806 = vst [vmem:[#allocation64_spill] sm:$0xff] %v12917_v49 }
 0x448   : > { %8707 = vrcp.f32 %v5794_v33  ;;  %v12912_v31 = vadd.f32 %v6356_v39, %v12786_v18  ;;  %v5795_v7 = vmax.f32 %v5147_v56, 1e-38  ;;  %v5796_v58 = vmax.f32 %v5153_v61, 1e-38  ;;  %v12925_v39 = vpop.f32.mrb[53].mxu0  ;;  %v12937_v56 = vpop.permute.xlu0 %4216 }
 0x449   : > { %16802 = vst [vmem:[#allocation184_spill] sm:$0xff] %v12899_v36  ;;  %v12909_v47 = vadd.f32 %v16804_v0, %v12819_v11  ;;  %v12915_v2 = vadd.f32 %v6346_v53, %v12855_v51  ;;  %v6381_v28 = vadd.f32 %v6380_v45, %v6172_v4  ;;  %v6387_v29 = vadd.f32 %v6386_v24, %v6173_v9  ;;  %v12931_v51 = vpop.f32.mrb[54].mxu0 }
 0x44a   : > { %v5158_v27 = vrot.slane %v5157_v17, 1  ;;  %v12920_v25 = vadd.f32 %v6362_v57, %v12790_v55  ;;  %8709 = vrcp.f32 %v5795_v7  ;;  %v5161_v11 = vadd.f32 %v5160_v14, %v12881_v5  ;;  %16807 = vst [vmem:[#allocation187_spill] sm:$0xff] %v12925_v39  ;;  %16808 = vst [vmem:[#allocation19_spill] sm:$0xff] %v12931_v51  ;;  %v12935_v57 = vpop.f32.mrb[55].mxu0 }
 0x44b   : > { %16805 = vst [vmem:[#allocation189_spill] sm:$0xff] %v12909_v47  ;;  %v8706_v10 = vpop.eup %8705  ;;  %v4391_v18 = vmul.f32 %v12857_v13, %v12603_v62  ;;  %v12927_v33 = vadd.f32 %v6352_v40, %v6351_v54  ;;  %v6368_v4 = vrot.slane %v12801_v30, 4  ;;  %v6392_v45 = vrot.slane %v6174_v12, 4  ;;  %16809 = vst [vmem:[#allocation102_spill] sm:$0xff] %v12935_v57  ;;  %v16811_v54 = vld [vmem:[#allocation123_spill] sm:$0xff] }
 0x44c   : > { %v6049_v9 = vmul.f32 %v8706_v10, %v12776_v46  ;;  %v6374_v53 = vrot.slane %v12832_v42, 4  ;;  %8711 = vrcp.f32 %v5796_v58  ;;  %v5159_v24 = vadd.f32 %v5158_v27, %v5157_v17  ;;  %16810 = vst [vmem:[#allocation103_spill] sm:$0xff] %v12937_v56 }
 0x44d   : > { %v6382_v62 = vrot.slane %v6381_v28, 2  ;;  %v6388_v13 = vrot.slane %v6387_v29, 2  ;;  %v5162_v14 = vrot.slane %v5161_v11, 2  ;;  %v12941_v35 = vmul.f32 %v4391_v18, %v4391_v18 }
 0x44e   : > { %v6177_v61 = vmul.f32 %v6049_v9, %v16811_v54  ;;  %v5797_v46 = vmax.f32 %v5159_v24, 1e-38  ;;  %v4392_v0 = vmul.f32 %v12693_v1, %v12640_v22  ;;  %v12946_v7 = vadd.f32 %v6368_v4, %v12801_v30  ;;  %v12955_v24 = vpop.permute.xlu1 %4121 }
 0x44f   : > { %v6393_v17 = vadd.f32 %v6392_v45, %v6174_v12  ;;  %v6398_v58 = vrot.slane %v12891_v6, 4  ;;  %v5163_v27 = vadd.f32 %v5162_v14, %v5161_v11  ;;  %v12950_v10 = vadd.f32 %v6374_v53, %v12832_v42  ;;  %v12965_v14 = vpop.permute.xlu0 %4296 }
 0x450   : > { %8713 = vrcp.f32 %v5797_v46  ;;  %v5166_v9 = vrot.slane %v12941_v35, 4  ;;  %v12953_v54 = vmul.f32 %v4392_v0, %v4392_v0  ;;  %v6383_v40 = vadd.f32 %v6382_v62, %v6381_v28  ;;  %16812 = vst [vmem:[#allocation104_spill] sm:$0xff] %v12965_v14 }
 0x451   : > { %v6389_v22 = vadd.f32 %v6388_v13, %v6387_v29  ;;  %v5164_v55 = vrot.slane %v5163_v27, 1  ;;  %v4393_v30 = vmul.f32 %v12693_v1, %v12648_v41  ;;  %v4394_v4 = vmul.f32 %v12955_v24, %v12654_v3  ;;  %v16813_v13 = vld [vmem:[#allocation61_spill] sm:$0xff] }
 0x452   : > { %v8708_v18 = vpop.eup %8707  ;;  %v5167_v11 = vadd.f32 %v5166_v9, %v12941_v35  ;;  %v5172_v42 = vrot.slane %v12953_v54, 4  ;;  %v6394_v45 = vrot.slane %v6393_v17, 2  ;;  %v6399_v53 = vadd.f32 %v6398_v58, %v12891_v6 }
 0x453   : > { %v6050_v12 = vmul.f32 %v8708_v18, %v12823_v63  ;;  %v5165_v28 = vadd.f32 %v5164_v55, %v5163_v27  ;;  %v12967_v29 = vmul.f32 %v4393_v30, %v4393_v30  ;;  %v12973_v46 = vmul.f32 %v4394_v4, %v4394_v4  ;;  %v12983_v51 = vpop.permute.xlu0 %4141 }
 0x454   : > { %v8710_v62 = vpop.eup %8709  ;;  %v5168_v1 = vrot.slane %v5167_v11, 2  ;;  %v5173_v63 = vadd.f32 %v5172_v42, %v12953_v54  ;;  %v6404_v0 = vrot.slane %v12904_v32, 4  ;;  %v6384_v55 = vrot.slane %v6383_v40, 1 }
 0x455   : > { %v12970_v41 = vmul.f32 %v6050_v12, %v16813_v13  ;;  %v6051_v3 = vmul.f32 %v8710_v62, %v12839_v38  ;;  %v5798_v9 = vmax.f32 %v5165_v28, 1e-38  ;;  %v5178_v6 = vrot.slane %v12967_v29, 4  ;;  %v16814_v13 = vld [vmem:[#allocation122_spill] sm:$0xff] }
 0x456   : > { %v8712_v58 = vpop.eup %8711  ;;  %v5169_v27 = vadd.f32 %v5168_v1, %v5167_v11  ;;  %v5174_v18 = vrot.slane %v5173_v63, 2  ;;  %v5184_v30 = vrot.slane %v12973_v46, 4  ;;  %v6410_v12 = vrot.slane %v6177_v61, 4  ;;  %v16815_v11 = vld [vmem:[#allocation13_spill] sm:$0xff] }
 0x457   : > { %v6179_v14 = vmul.f32 %v6051_v3, %v16814_v13  ;;  %v6052_v42 = vmul.f32 %v8712_v58, %v12841_v60  ;;  %8715 = vrcp.f32 %v5798_v9  ;;  %v6400_v4 = vrot.slane %v6399_v53, 2 }
 0x458   : > { %v5170_v56 = vrot.slane %v5169_v27, 1  ;;  %v5175_v57 = vadd.f32 %v5174_v18, %v5173_v63  ;;  %v5179_v38 = vadd.f32 %v5178_v6, %v12967_v29  ;;  %v6395_v28 = vadd.f32 %v6394_v45, %v6393_v17 }
 0x459   : > { %v6405_v62 = vadd.f32 %v6404_v0, %v12904_v32  ;;  %v6180_v1 = vmul.f32 %v6052_v42, %v16815_v11  ;;  %v5185_v39 = vadd.f32 %v5184_v30, %v12973_v46  ;;  %v6390_v8 = vrot.slane %v6389_v22, 1  ;;  %v16817_v42 = vld [vmem:[#allocation124_spill] sm:$0xff] }
 0x45a   : > { %v8714_v49 = vpop.eup %8713  ;;  %v5171_v3 = vadd.f32 %v5170_v56, %v5169_v27  ;;  %v5176_v13 = vrot.slane %v5175_v57, 1  ;;  %v5180_v60 = vrot.slane %v5179_v38, 2  ;;  %v12987_v9 = vadd.f32 %v6384_v55, %v6383_v40 }
 0x45b   : > { %v6411_v58 = vadd.f32 %v6410_v12, %v6177_v61  ;;  %v6053_v63 = vmul.f32 %v8714_v49, %v12850_v48  ;;  %v5186_v6 = vrot.slane %v5185_v39, 2  ;;  %v6401_v17 = vadd.f32 %v6400_v4, %v6399_v53  ;;  %v12996_v49 = vpop.permute.xlu0 %4221 }
 0x45c   : > { %16816 = vst [vmem:[#allocation105_spill] sm:$0xff] %v12987_v9  ;;  %v5799_v45 = vmax.f32 %v5171_v3, 1e-38  ;;  %v5177_v32 = vadd.f32 %v5176_v13, %v5175_v57  ;;  %v5181_v0 = vadd.f32 %v5180_v60, %v5179_v38  ;;  %v6396_v18 = vrot.slane %v6395_v28, 1  ;;  %16819 = vst [vmem:[#allocation107_spill] sm:$0xff] %v12996_v49  ;;  %v16826_v49 = vld [vmem:[#allocation127_spill] sm:$0xff] }
 0x45d   : > { %v6406_v50 = vrot.slane %v6405_v62, 2  ;;  %v12991_v11 = vmul.f32 %v6053_v63, %v16817_v42  ;;  %v5187_v30 = vadd.f32 %v5186_v6, %v5185_v39  ;;  %v12993_v47 = vadd.f32 %v6390_v8, %v6389_v22 }
 0x45e   : > { %8717 = vrcp.f32 %v5799_v45  ;;  %v5800_v56 = vmax.f32 %v5177_v32, 1e-38  ;;  %v5182_v40 = vrot.slane %v5181_v0, 1  ;;  %v6412_v55 = vrot.slane %v6411_v58, 2 }
 0x45f   : > { %16818 = vst [vmem:[#allocation106_spill] sm:$0xff] %v12993_v47  ;;  %v6416_v61 = vrot.slane %v12970_v41, 4  ;;  %v6422_v48 = vrot.slane %v6179_v14, 4  ;;  %v5188_v53 = vrot.slane %v5187_v30, 1  ;;  %v6402_v57 = vrot.slane %v6401_v17, 1 }
 0x460   : > { %8719 = vrcp.f32 %v5800_v56  ;;  %v5183_v27 = vadd.f32 %v5182_v40, %v5181_v0  ;;  %v4395_v12 = vmul.f32 %v12955_v24, %v12660_v19  ;;  %v13000_v39 = vadd.f32 %v6396_v18, %v6395_v28  ;;  %v16821_v28 = vld [vmem:[#allocation14_spill] sm:$0xff]  ;;  %v4132_v0 = vpop.permute.xlu1 %4131 }
 0x461   : > { %v8716_v4 = vpop.eup %8715  ;;  %v13002_v8 = vadd.f32 %v6406_v50, %v6405_v62  ;;  %v6428_v22 = vrot.slane %v6180_v1, 4  ;;  %v5189_v38 = vadd.f32 %v5188_v53, %v5187_v30  ;;  %v4396_v63 = vmul.f32 %v12728_v34, %v12687_v37  ;;  %v13021_v37 = vpop.permute.xlu0 %4301 }
 0x462   : > { %16820 = vst [vmem:[#allocation108_spill] sm:$0xff] %v13000_v39  ;;  %v6054_v3 = vmul.f32 %v8716_v4, %v12881_v5  ;;  %v5801_v13 = vmax.f32 %v5183_v27, 1e-38  ;;  %v13005_v60 = vmul.f32 %v4395_v12, %v4395_v12  ;;  %v13009_v6 = vadd.f32 %v6412_v55, %v6411_v58  ;;  %16823 = vst [vmem:[#allocation110_spill] sm:$0xff] %v13021_v37 }
 0x463   : > { %v6417_v45 = vadd.f32 %v6416_v61, %v12970_v41  ;;  %v6423_v19 = vadd.f32 %v6422_v48, %v6179_v14  ;;  %v5802_v24 = vmax.f32 %v5189_v38, 1e-38  ;;  %v13016_v62 = vmul.f32 %v4396_v63, %v4396_v63 }
 0x464   : > { %v13013_v32 = vmul.f32 %v6054_v3, %v16821_v28  ;;  %8721 = vrcp.f32 %v5801_v13  ;;  %v5190_v50 = vrot.slane %v13005_v60, 4  ;;  %v13018_v5 = vadd.f32 %v6402_v57, %v6401_v17  ;;  %v16824_v3 = vld [vmem:[#allocation129_spill] sm:$0xff] }
 0x465   : > { %v6408_v18 = vrot.slane %v13002_v8, 1  ;;  %8723 = vrcp.f32 %v5802_v24  ;;  %v4397_v14 = vmul.f32 %v12728_v34, %v12691_v43  ;;  %v6429_v41 = vadd.f32 %v6428_v22, %v6180_v1  ;;  %v13044_v63 = vpop.permute.xlu0 %4146 }
 0x466   : > { %16822 = vst [vmem:[#allocation109_spill] sm:$0xff] %v13018_v5  ;;  %v5191_v58 = vadd.f32 %v5190_v50, %v13005_v60  ;;  %v5196_v42 = vrot.slane %v13016_v62, 4  ;;  %v4398_v30 = vmul.f32 %v4132_v0, %v12700_v16  ;;  %v6414_v56 = vrot.slane %v13009_v6, 1 }
 0x467   : > { %v6418_v17 = vrot.slane %v6417_v45, 2  ;;  %v13029_v40 = vmul.f32 %v4397_v14, %v4397_v14  ;;  %v4399_v55 = vmul.f32 %v4132_v0, %v12711_v15  ;;  %v6424_v48 = vrot.slane %v6423_v19, 2 }
 0x468   : > { %v8718_v61 = vpop.eup %8717  ;;  %v5192_v53 = vrot.slane %v5191_v58, 2  ;;  %v5197_v57 = vadd.f32 %v5196_v42, %v13016_v62  ;;  %v13033_v43 = vmul.f32 %v4398_v30, %v4398_v30  ;;  %v6434_v34 = vrot.slane %v12991_v11, 4  ;;  %v16825_v30 = vld [vmem:[#allocation15_spill] sm:$0xff] }
 0x469   : > { %v6055_v1 = vmul.f32 %v8718_v61, %v12941_v35  ;;  %v5202_v16 = vrot.slane %v13029_v40, 4  ;;  %v13038_v27 = vmul.f32 %v4399_v55, %v4399_v55  ;;  %v6430_v4 = vrot.slane %v6429_v41, 2 }
 0x46a   : > { %v8720_v12 = vpop.eup %8719  ;;  %v5193_v22 = vadd.f32 %v5192_v53, %v5191_v58  ;;  %v5198_v38 = vrot.slane %v5197_v57, 2  ;;  %v5208_v15 = vrot.slane %v13033_v43, 4  ;;  %v6419_v50 = vadd.f32 %v6418_v17, %v6417_v45 }
 0x46b   : > { %v13042_v13 = vmul.f32 %v6055_v1, %v16824_v3  ;;  %v6056_v24 = vmul.f32 %v8720_v12, %v12953_v54  ;;  %v5203_v28 = vadd.f32 %v5202_v16, %v13029_v40  ;;  %v5214_v35 = vrot.slane %v13038_v27, 4 }
 0x46c   : > { %v5194_v0 = vrot.slane %v5193_v22, 1  ;;  %v5199_v14 = vadd.f32 %v5198_v38, %v5197_v57  ;;  %v5209_v42 = vadd.f32 %v5208_v15, %v13033_v43  ;;  %v6435_v58 = vadd.f32 %v6434_v34, %v12991_v11 }
 0x46d   : > { %v13052_v55 = vmul.f32 %v6056_v24, %v16825_v30  ;;  %v5204_v61 = vrot.slane %v5203_v28, 2  ;;  %v4400_v53 = vmul.f32 %v12901_v52, %v12732_v21  ;;  %v6425_v54 = vadd.f32 %v6424_v48, %v6423_v19  ;;  %v13062_v19 = vpop.permute.xlu0 %4226 }
 0x46e   : > { %v8722_v1 = vpop.eup %8721  ;;  %v5195_v12 = vadd.f32 %v5194_v0, %v5193_v22  ;;  %v5200_v16 = vrot.slane %v5199_v14, 1  ;;  %v5210_v3 = vrot.slane %v5209_v42, 2  ;;  %v6431_v45 = vadd.f32 %v6430_v4, %v6429_v41  ;;  %16827 = vst [vmem:[#allocation38_spill] sm:$0xff] %v13062_v19  ;;  %v16828_v41 = vld [vmem:[#allocation16_spill] sm:$0xff] }
 0x46f   : > { %v8724_v37 = vpop.eup %8723  ;;  %v6057_v17 = vmul.f32 %v8722_v1, %v12967_v29  ;;  %v5205_v57 = vadd.f32 %v5204_v61, %v5203_v28  ;;  %v5215_v38 = vadd.f32 %v5214_v35, %v13038_v27  ;;  %v6436_v30 = vrot.slane %v6435_v58, 2 }
 0x470   : > { %v6058_v11 = vmul.f32 %v8724_v37, %v12973_v46  ;;  %v5803_v34 = vmax.f32 %v5195_v12, 1e-38  ;;  %v5201_v15 = vadd.f32 %v5200_v16, %v5199_v14  ;;  %v5211_v24 = vadd.f32 %v5210_v3, %v5209_v42  ;;  %v13078_v16 = vpop.f32.mrb[56].mxu0 }
 0x471   : > { %v13060_v21 = vmul.f32 %v6057_v17, %v16826_v49  ;;  %v5206_v48 = vrot.slane %v5205_v57, 1  ;;  %v13064_v22 = vmul.f32 %v4400_v53, %v4400_v53  ;;  %v13070_v46 = vadd.f32 %v6408_v18, %v13002_v8  ;;  %v13080_v8 = vpop.permute.xlu1 %4171 }
 0x472   : > { %v13067_v4 = vmul.f32 %v6058_v11, %v16828_v41  ;;  %8725 = vrcp.f32 %v5803_v34  ;;  %v5804_v29 = vmax.f32 %v5201_v15, 1e-38  ;;  %v5212_v28 = vrot.slane %v5211_v24, 1 }
 0x473   : > { %16829 = vst [vmem:[#allocation111_spill] sm:$0xff] %v13070_v46  ;;  %v13073_v37 = vadd.f32 %v6414_v56, %v13009_v6  ;;  %v6420_v35 = vrot.slane %v6419_v50, 1  ;;  %v5207_v49 = vadd.f32 %v5206_v48, %v5205_v57  ;;  %v6426_v0 = vrot.slane %v6425_v54, 1  ;;  %v13085_v57 = vpop.permute.xlu0 %4306 }
 0x474   : > { %8727 = vrcp.f32 %v5804_v29  ;;  %v5213_v14 = vadd.f32 %v5212_v28, %v5211_v24  ;;  %v5216_v42 = vrot.slane %v5215_v38, 2  ;;  %v6432_v61 = vrot.slane %v6431_v45, 1  ;;  %16831 = vst [vmem:[#allocation42_spill] sm:$0xff] %v13085_v57  ;;  %v13103_v28 = vpop.f32.mrb[57].mxu0 }
 0x475   : > { %16830 = vst [vmem:[#allocation40_spill] sm:$0xff] %v13073_v37  ;;  %v5805_v53 = vmax.f32 %v5207_v49, 1e-38  ;;  %v5220_v1 = vrot.slane %v13064_v22, 4  ;;  %v4401_v12 = vmul.f32 %v12901_v52, %v12737_v59  ;;  %v6437_v18 = vadd.f32 %v6436_v30, %v6435_v58  ;;  %16834 = vst [vmem:[#allocation133_spill] sm:$0xff] %v13103_v28 }
 0x476   : > { %v5806_v6 = vmax.f32 %v5213_v14, 1e-38  ;;  %v5217_v56 = vadd.f32 %v5216_v42, %v5215_v38  ;;  %v4402_v3 = vmul.f32 %v12983_v51, %v12741_v26  ;;  %v6440_v17 = vrot.slane %v13013_v32, 4  ;;  %v13110_v42 = vpop.permute.xlu1 %4211 }
 0x477   : > { %8729 = vrcp.f32 %v5805_v53  ;;  %v5221_v11 = vadd.f32 %v5220_v1, %v13064_v22  ;;  %v13088_v34 = vmul.f32 %v4401_v12, %v4401_v12  ;;  %v4403_v58 = vmul.f32 %v12983_v51, %v12749_v23  ;;  %16837 = vst [vmem:[#allocation45_spill] sm:$0xff] %v13110_v42  ;;  %v16841_v42 = vld [vmem:[#allocation17_spill] sm:$0xff] }
 0x478   : > { %8731 = vrcp.f32 %v5806_v6  ;;  %v5218_v59 = vrot.slane %v5217_v56, 1  ;;  %v13090_v52 = vmul.f32 %v4402_v3, %v4402_v3  ;;  %v13094_v38 = vadd.f32 %v6420_v35, %v6419_v50  ;;  %v13108_v50 = vpop.f32.mrb[58].mxu0  ;;  %v13119_v6 = vpop.permute.xlu0 %4151 }
 0x479   : > { %v6446_v26 = vrot.slane %v13042_v13, 4  ;;  %v5222_v15 = vrot.slane %v5221_v11, 2  ;;  %v5226_v24 = vrot.slane %v13088_v34, 4  ;;  %v13098_v30 = vadd.f32 %v6426_v0, %v6425_v54  ;;  %16836 = vst [vmem:[#allocation131_spill] sm:$0xff] %v13108_v50  ;;  %v13115_v12 = vpop.f32.mrb[59].mxu0 }
 0x47a   : > { %16832 = vst [vmem:[#allocation44_spill] sm:$0xff] %v13094_v38  ;;  %v5219_v48 = vadd.f32 %v5218_v59, %v5217_v56  ;;  %v5232_v41 = vrot.slane %v13090_v52, 4  ;;  %v13101_v29 = vmul.f32 %v4403_v58, %v4403_v58  ;;  %v13105_v49 = vadd.f32 %v6432_v61, %v6431_v45  ;;  %16838 = vst [vmem:[#allocation46_spill] sm:$0xff] %v13115_v12  ;;  %v16839_v58 = vld [vmem:[#allocation126_spill] sm:$0xff]  ;;  %v13130_v28 = vpop.f32.mrb[60].mxu0 }
 0x47b   : > { %16833 = vst [vmem:[#allocation186_spill] sm:$0xff] %v13098_v30  ;;  %v6438_v14 = vrot.slane %v6437_v18, 1  ;;  %v5223_v23 = vadd.f32 %v5222_v15, %v5221_v11  ;;  %v5227_v51 = vadd.f32 %v5226_v24, %v13088_v34  ;;  %v6441_v54 = vadd.f32 %v6440_v17, %v13013_v32  ;;  %16842 = vst [vmem:[#allocation21_spill] sm:$0xff] %v13130_v28 }
 0x47c   : > { %16835 = vst [vmem:[#allocation188_spill] sm:$0xff] %v13105_v49  ;;  %v8726_v35 = vpop.eup %8725  ;;  %v5807_v0 = vmax.f32 %v5219_v48, 1e-38  ;;  %v5233_v53 = vadd.f32 %v5232_v41, %v13090_v52  ;;  %v5238_v1 = vrot.slane %v13101_v29, 4  ;;  %v6447_v45 = vadd.f32 %v6446_v26, %v13042_v13 }
 0x47d   : > { %v6059_v61 = vmul.f32 %v8726_v35, %v13005_v60  ;;  %v5224_v56 = vrot.slane %v5223_v23, 1  ;;  %v5228_v3 = vrot.slane %v5227_v51, 2  ;;  %v6452_v59 = vrot.slane %v13052_v55, 4 }
 0x47e   : > { %v8728_v11 = vpop.eup %8727  ;;  %8733 = vrcp.f32 %v5807_v0  ;;  %v5234_v32 = vrot.slane %v5233_v53, 2  ;;  %v5239_v17 = vadd.f32 %v5238_v1, %v13101_v29  ;;  %v13127_v26 = vadd.f32 %v6438_v14, %v6437_v18 }
 0x47f   : > { %v13124_v15 = vmul.f32 %v6059_v61, %v16839_v58  ;;  %v6060_v24 = vmul.f32 %v8728_v11, %v13016_v62  ;;  %v5225_v48 = vadd.f32 %v5224_v56, %v5223_v23  ;;  %v5229_v13 = vadd.f32 %v5228_v3, %v5227_v51  ;;  %v13132_v61 = vpop.permute.xlu1 %4251  ;;  %v13138_v51 = vpop.f32.mrb[61].mxu0 }
 0x480   : > { %16840 = vst [vmem:[#allocation193_spill] sm:$0xff] %v13127_v26  ;;  %v6442_v60 = vrot.slane %v6441_v54, 2  ;;  %v5235_v41 = vadd.f32 %v5234_v32, %v5233_v53  ;;  %v5240_v35 = vrot.slane %v5239_v17, 2  ;;  %v6448_v19 = vrot.slane %v6447_v45, 2  ;;  %16843 = vst [vmem:[#allocation48_spill] sm:$0xff] %v13132_v61  ;;  %v13144_v11 = vpop.f32.mrb[62].mxu0 }
 0x481   : > { %v8730_v57 = vpop.eup %8729  ;;  %v6188_v12 = vmul.f32 %v6060_v24, %v16841_v42  ;;  %v5808_v0 = vmax.f32 %v5225_v48, 1e-38  ;;  %v5230_v50 = vrot.slane %v5229_v13, 1  ;;  %v13135_v62 = vadd.f32 %v6452_v59, %v13052_v55  ;;  %16844 = vst [vmem:[#allocation191_spill] sm:$0xff] %v13138_v51  ;;  %v13141_v42 = vpop.permute.xlu0 %4231  ;;  %16846 = vst [vmem:[#allocation22_spill] sm:$0xff] %v13144_v11  ;;  %v16847_v32 = vld [vmem:[#allocation62_spill] sm:$0xff] }
 0x482   : > { %v8732_v1 = vpop.eup %8731  ;;  %v6061_v18 = vmul.f32 %v8730_v57, %v13029_v40  ;;  %v5236_v14 = vrot.slane %v5235_v41, 1  ;;  %v5241_v23 = vadd.f32 %v5240_v35, %v5239_v17  ;;  %16845 = vst [vmem:[#allocation190_spill] sm:$0xff] %v13141_v42  ;;  %v6370_v3 = vrot.slane %v12946_v7, 2  ;;  %v13147_v40 = vpop.f32.mrb[63].mxu0  ;;  %v16849_v48 = vld [vmem:[#allocation63_spill] sm:$0xff]  ;;  %v16904_v51 = vld [vmem:[#allocation137_spill] sm:$0xff] }
 0x483   : > { %v6476_v53 = vrot.slane %v6188_v12, 4  ;;  %v6062_v56 = vmul.f32 %v8732_v1, %v13033_v43  ;;  %8735 = vrcp.f32 %v5808_v0  ;;  %v5231_v55 = vadd.f32 %v5230_v50, %v5229_v13  ;;  %16848 = vst [vmem:[#allocation192_spill] sm:$0xff] %v13147_v40 }
 0x484   : > { %v6189_v58 = vmul.f32 %v6061_v18, %v16847_v32  ;;  %v5237_v59 = vadd.f32 %v5236_v14, %v5235_v41  ;;  %v5242_v24 = vrot.slane %v5241_v23, 1  ;;  %v13149_v57 = vadd.f32 %v6442_v60, %v6441_v54  ;;  %v13164_v41 = vpop.permute.xlu1 %4291 }
 0x485   : > { %v13151_v17 = vadd.f32 %v6448_v19, %v6447_v45  ;;  %v6190_v43 = vmul.f32 %v6062_v56, %v16849_v48  ;;  %v6376_v35 = vrot.slane %v12950_v10, 2  ;;  %v5809_v0 = vmax.f32 %v5231_v55, 1e-38  ;;  %16852 = vst [vmem:[#allocation197_spill] sm:$0xff] %v13164_v41  ;;  %v13168_v55 = vpop.permute.xlu0 %4311 }
 0x486   : > { %v5810_v1 = vmax.f32 %v5237_v59, 1e-38  ;;  %v5243_v61 = vadd.f32 %v5242_v24, %v5241_v23  ;;  %v6348_v42 = vrot.slane %v12915_v2, 1  ;;  %v16850_v13 = vrot.slane %v12912_v31, 2  ;;  %16853 = vst [vmem:[#allocation23_spill] sm:$0xff] %v13168_v55 }
 0x487   : > { %v16851_v19 = vrot.slane %v12920_v25, 2  ;;  %v6477_v14 = vadd.f32 %v6476_v53, %v6188_v12  ;;  %8737 = vrcp.f32 %v5809_v0  ;;  %v6371_v56 = vadd.f32 %v6370_v3, %v12946_v7 }
 0x488   : > { %v6359_v54 = vadd.f32 %v16850_v13, %v12912_v31  ;;  %v8734_v60 = vpop.eup %8733  ;;  %v5811_v23 = vmax.f32 %v5243_v61, 1e-38  ;;  %8739 = vrcp.f32 %v5810_v1  ;;  %v6377_v59 = vadd.f32 %v6376_v35, %v12950_v10  ;;  %v13171_v31 = vpop.f32.mrb[64].mxu0  ;;  %v16859_v35 = vld [vmem:[#allocation90_spill] sm:$0xff] }
 0x489   : > { %v6365_v45 = vadd.f32 %v16851_v19, %v12920_v25  ;;  %v6063_v32 = vmul.f32 %v8734_v60, %v13038_v27  ;;  %16854 = vst [vmem:[#allocation195_spill] sm:$0xff] %v13171_v31  ;;  %v13175_v24 = vadd.f32 %v6348_v42, %v12915_v2  ;;  %v6354_v12 = vrot.slane %v12927_v33, 1  ;;  %v13178_v61 = vpop.f32.mrb[65].mxu0  ;;  %v16857_v27 = vld [vmem:[#allocation18_spill] sm:$0xff]  ;;  %v13193_v50 = vpop.permute.xlu1 %4331 }
 0x48a   : > { %8741 = vrcp.f32 %v5811_v23  ;;  %16856 = vst [vmem:[#allocation194_spill] sm:$0xff] %v13178_v61  ;;  %v6482_v7 = vrot.slane %v6189_v58, 4  ;;  %v6360_v3 = vrot.slane %v6359_v54, 1  ;;  %v13181_v0 = vpop.f32.mrb[66].mxu0  ;;  %v6478_v10 = vrot.slane %v6477_v14, 2  ;;  %v16861_v23 = vld [vmem:[#allocation170_spill] sm:$0xff]  ;;  %v13202_v41 = vpop.permute.xlu0 %4156 }
 0x48b   : > { %16855 = vst [vmem:[#allocation67_spill] sm:$0xff] %v13175_v24  ;;  %v6191_v53 = vmul.f32 %v6063_v32, %v16857_v27  ;;  %v6366_v48 = vrot.slane %v6365_v45, 1  ;;  %16858 = vst [vmem:[#allocation68_spill] sm:$0xff] %v13181_v0  ;;  %v7181_v1 = vsel %vm7180_vm1, %v12670_v44, %v16859_v35  ;;  %v13186_v2 = vpop.f32.mrb[67].mxu0  ;;  %v6488_v13 = vrot.slane %v6190_v43, 4 }
 0x48c   : > { %16860 = vst [vmem:[#allocation196_spill] sm:$0xff] %v13186_v2  ;;  %v6372_v19 = vrot.slane %v6371_v56, 1  ;;  %v6378_v60 = vrot.slane %v6377_v59, 1  ;;  %v7183_v32 = vsel %vm7182_vm2, %v16861_v23, %v7181_v1  ;;  %16862 = vst [vmem:[#allocation25_spill] sm:$0xff] %v13193_v50  ;;  %v13196_v44 = vadd.f32 %v6354_v12, %v12927_v33  ;;  %v16865_v23 = vld [vmem:[#allocation128_spill] sm:$0xff] }
 0x48d   : > { %v8736_v42 = vpop.eup %8735  ;;  %v6494_v27 = vrot.slane %v6191_v53, 4  ;;  %v7185_v25 = vsel %vm7184_vm3, %v12808_v20, %v7183_v32  ;;  %v13198_v35 = vadd.f32 %v6360_v3, %v6359_v54  ;;  %v6483_v1 = vadd.f32 %v6482_v7, %v6189_v58  ;;  %v13213_v54 = vpop.f32.mrb[68].mxu0  ;;  %v16870_v58 = vld [vmem:[#allocation92_spill] sm:$0xff]  ;;  %v16871_v7 = vld [vmem:[#allocation93_spill] sm:$0xff] }
 0x48e   : > { %v6064_v18 = vmul.f32 %v8736_v42, %v13064_v22  ;;  %16863 = vst [vmem:[#allocation112_spill] sm:$0xff] %v13196_v44  ;;  %v7187_v55 = vsel %vm7186_vm4, %v12899_v36, %v7185_v25  ;;  %v13205_v42 = vadd.f32 %v6366_v48, %v6365_v45  ;;  %v13207_v32 = vadd.f32 %v6478_v10, %v6477_v14  ;;  %v16872_v45 = vld [vmem:[#allocation177_spill] sm:$0xff]  ;;  %v13222_v48 = vpop.f32.mrb[69].mxu0  ;;  %v16897_v2 = vld [vmem:[#allocation172_spill] sm:$0xff] }
 0x48f   : > { %16864 = vst [vmem:[#allocation50_spill] sm:$0xff] %v13198_v35  ;;  %v6489_v20 = vadd.f32 %v6488_v13, %v6190_v43  ;;  %v13209_v50 = vadd.f32 %v6372_v19, %v6371_v56  ;;  %v13211_v33 = vadd.f32 %v6378_v60, %v6377_v59  ;;  %16869 = vst [vmem:[#allocation52_spill] sm:$0xff] %v13213_v54  ;;  %v16896_v54 = vld [vmem:[#allocation100_spill] sm:$0xff] }
 0x490   : > { %v6192_v22 = vmul.f32 %v6064_v18, %v16865_v23  ;;  %16866 = vst [vmem:[#allocation201_spill] sm:$0xff] %v13205_v42  ;;  %v6495_v25 = vadd.f32 %v6494_v27, %v6191_v53  ;;  %v7189_v3 = vsel %vm7188_vm5, %v13175_v24, %v7187_v55  ;;  %v7194_v18 = vsel %vm7180_vm1, %v16871_v7, %v16870_v58  ;;  %v16874_v53 = vld [vmem:[#allocation94_spill] sm:$0xff]  ;;  %v13229_v55 = vpop.f32.mrb[70].mxu0  ;;  %v16876_v23 = vld [vmem:[#allocation181_spill] sm:$0xff] }
 0x491   : > { %16867 = vst [vmem:[#allocation134_spill] sm:$0xff] %v13209_v50  ;;  %16868 = vst [vmem:[#allocation113_spill] sm:$0xff] %v13211_v33  ;;  %v8738_v12 = vpop.eup %8737  ;;  %v4404_v14 = vmul.f32 %v13044_v63, %v16872_v45  ;;  %v7191_v59 = vsel %vm7190_vm6, %v13198_v35, %v7189_v3  ;;  %v7195_v10 = vsel %vm7182_vm2, %v16874_v53, %v7194_v18  ;;  %v13236_v24 = vpop.f32.mrb[71].mxu0  ;;  %v16879_v18 = vld [vmem:[#allocation189_spill] sm:$0xff]  ;;  %v16880_v53 = vld [vmem:[#allocation174_spill] sm:$0xff] }
 0x492   : > { %16873 = vst [vmem:[#allocation5_spill] sm:$0xff] %v13222_v48  ;;  %v8740_v43 = vpop.eup %8739  ;;  %v6065_v56 = vmul.f32 %v8738_v12, %v13088_v34  ;;  %16875 = vst [vmem:[#allocation114_spill] sm:$0xff] %v13229_v55  ;;  %v6500_v19 = vrot.slane %v6192_v22, 4  ;;  %v7196_v27 = vsel %vm7184_vm3, %v16876_v23, %v7195_v10  ;;  %v13238_v34 = vpop.permute.xlu1 %4176  ;;  %v16878_v12 = vld [vmem:[#allocation65_spill] sm:$0xff]  ;;  %v4405_v7 = vmul.f32 %v13044_v63, %v16880_v53  ;;  %v16884_v63 = vld [vmem:[#allocation130_spill] sm:$0xff] }
 0x493   : > { %v6066_v60 = vmul.f32 %v8740_v43, %v13090_v52  ;;  %v13234_v45 = vmul.f32 %v4404_v14, %v4404_v14  ;;  %16877 = vst [vmem:[#allocation115_spill] sm:$0xff] %v13236_v24  ;;  %v7197_v36 = vsel %vm7186_vm4, %v16879_v18, %v7196_v27  ;;  %v13246_v52 = vpop.permute.xlu0 %4236  ;;  %v16882_v43 = vld [vmem:[#allocation20_spill] sm:$0xff]  ;;  %v7193_v14 = vsel %vm7192_vm7, %v13209_v50, %v7191_v59 }
 0x494   : > { %v8742_v13 = vpop.eup %8741  ;;  %v6193_v3 = vmul.f32 %v6065_v56, %v16878_v12  ;;  %16881 = vst [vmem:[#allocation116_spill] sm:$0xff] %v13246_v52  ;;  %v7198_v23 = vsel %vm7188_vm5, %v13196_v44, %v7197_v36  ;;  %v6484_v27 = vrot.slane %v6483_v1, 2  ;;  %v6470_v12 = vrot.slane %v13124_v15, 4 }
 0x495   : > { %v6067_v35 = vmul.f32 %v8742_v13, %v13101_v29  ;;  %v13249_v10 = vmul.f32 %v6066_v60, %v16882_v43  ;;  %v5244_v56 = vrot.slane %v13234_v45, 4  ;;  %v16883_v29 = vrot.slane %v13060_v21, 4 }
 0x496   : > { %v7199_v60 = vsel %vm7190_vm6, %v13205_v42, %v7198_v23  ;;  %v6490_v59 = vrot.slane %v6489_v20, 2  ;;  %v6496_v50 = vrot.slane %v6495_v25, 2  ;;  %v6501_v44 = vadd.f32 %v6500_v19, %v6192_v22  ;;  %v16886_v42 = vld [vmem:[#allocation95_spill] sm:$0xff] }
 0x497   : > { %v13259_v13 = vadd.f32 %v16883_v29, %v13060_v21  ;;  %v13262_v53 = vmul.f32 %v6067_v35, %v16884_v63  ;;  %v7200_v36 = vsel %vm7192_vm7, %v13211_v33, %v7199_v60  ;;  %v5245_v43 = vadd.f32 %v5244_v56, %v13234_v45  ;;  %v13281_v33 = vpop.permute.xlu1 %4256 }
 0x498   : > { %v7315_v18 = vadd.f32 %v7200_v36, %v7193_v14  ;;  %v13270_v21 = vmul.f32 %v4405_v7, %v4405_v7  ;;  %v16885_v35 = vrot.slane %v13067_v4, 4  ;;  %v6480_v23 = vrot.slane %v13207_v32, 1  ;;  %16887 = vst [vmem:[#allocation6_spill] sm:$0xff] %v13281_v33  ;;  %v16888_v7 = vld [vmem:[#allocation176_spill] sm:$0xff] }
 0x499   : > { %v5246_v63 = vrot.slane %v5245_v43, 2  ;;  %v4406_v58 = vmul.f32 %v13119_v6, %v16886_v42  ;;  %v13283_v56 = vadd.f32 %v6484_v27, %v6483_v1  ;;  %v4407_v19 = vmul.f32 %v13119_v6, %v16888_v7 }
 0x49a   : > { %v13275_v29 = vadd.f32 %v16885_v35, %v13067_v4  ;;  %7316 = vadd.xlane.f32.xlu0 %v7315_v18  ;;  %v5250_v22 = vrot.slane %v13270_v21, 4  ;;  %v13288_v4 = vpop.permute.xlu0 %4316  ;;  %v13291_v14 = vadd.f32 %v6470_v12, %v13124_v15  ;;  %v13293_v36 = vadd.f32 %v6490_v59, %v6489_v20  ;;  %v16891_v15 = vld [vmem:[#allocation179_spill] sm:$0xff] }
 0x49b   : > { %16889 = vst [vmem:[#allocation117_spill] sm:$0xff] %v13288_v4  ;;  %v5247_v42 = vadd.f32 %v5246_v63, %v5245_v43  ;;  %v13295_v35 = vmul.f32 %v4406_v58, %v4406_v58  ;;  %v13297_v60 = vadd.f32 %v6496_v50, %v6495_v25  ;;  %v6502_v1 = vrot.slane %v6501_v44, 2  ;;  %v16893_v25 = vld [vmem:[#allocation178_spill] sm:$0xff] }
 0x49c   : > { %v5251_v18 = vadd.f32 %v5250_v22, %v13270_v21  ;;  %v13300_v27 = vmul.f32 %v4407_v19, %v4407_v19  ;;  %v13303_v33 = vadd.f32 %v6480_v23, %v13207_v32  ;;  %v4408_v20 = vmul.f32 %v13202_v41, %v16891_v15  ;;  %v13315_v23 = vpop.permute.xlu1 %4336 }
 0x49d   : > { %v5248_v6 = vrot.slane %v5247_v42, 1  ;;  %v5256_v7 = vrot.slane %v13295_v35, 4  ;;  %v6506_v58 = vrot.slane %v6193_v3, 4  ;;  %16892 = vst [vmem:[#allocation56_spill] sm:$0xff] %v13315_v23  ;;  %v13317_v19 = vadd.f32 %v6502_v1, %v6501_v44 }
 0x49e   : > { %16890 = vst [vmem:[#allocation54_spill] sm:$0xff] %v13303_v33  ;;  %v5252_v59 = vrot.slane %v5251_v18, 2  ;;  %v5262_v50 = vrot.slane %v13300_v27, 4  ;;  %v13312_v22 = vmul.f32 %v4408_v20, %v4408_v20  ;;  %v4162_v4 = vpop.permute.xlu0 %4161  ;;  %v4409_v32 = vmul.f32 %v13202_v41, %v16893_v25 }
 0x49f   : > { %v5249_v43 = vadd.f32 %v5248_v6, %v5247_v42  ;;  %v5257_v63 = vadd.f32 %v5256_v7, %v13295_v35  ;;  %v13322_v6 = vadd.f32 %v6506_v58, %v6193_v3  ;;  %v4412_v0 = vmul.f32 %v16897_v2, %v16896_v54 }
 0x4a0   : > { %v5253_v15 = vadd.f32 %v5252_v59, %v5251_v18  ;;  %v5263_v12 = vadd.f32 %v5262_v50, %v13300_v27  ;;  %v5268_v42 = vrot.slane %v13312_v22, 4  ;;  %v16894_v18 = vld [vmem:[#allocation185_spill] sm:$0xff]  ;;  %v13328_v52 = vmul.f32 %v4409_v32, %v4409_v32  ;;  %v13335_v41 = vpop.permute.xlu1 %4181 }
 0x4a1   : > { %v5812_v33 = vmax.f32 %v5249_v43, 1e-38  ;;  %v5258_v24 = vrot.slane %v5257_v63, 2  ;;  %v4410_v59 = vmul.f32 %v4162_v4, %v16894_v18  ;;  %v16895_v43 = vld [vmem:[#allocation98_spill] sm:$0xff] }
 0x4a2   : > { %v5254_v7 = vrot.slane %v5253_v15, 1  ;;  %v5264_v20 = vrot.slane %v5263_v12, 2  ;;  %v5269_v1 = vadd.f32 %v5268_v42, %v13312_v22  ;;  %v4411_v55 = vmul.f32 %v4162_v4, %v16895_v43 }
 0x4a3   : > { %8743 = vrcp.f32 %v5812_v33  ;;  %v5259_v44 = vadd.f32 %v5258_v24, %v5257_v63  ;;  %v13331_v58 = vmul.f32 %v4410_v59, %v4410_v59  ;;  %v5274_v25 = vrot.slane %v13328_v52, 4 }
 0x4a4   : > { %v5255_v50 = vadd.f32 %v5254_v7, %v5253_v15  ;;  %v5265_v23 = vadd.f32 %v5264_v20, %v5263_v12  ;;  %v5270_v3 = vrot.slane %v5269_v1, 2  ;;  %v13338_v63 = vmul.f32 %v4411_v55, %v4411_v55 }
 0x4a5   : > { %v5260_v48 = vrot.slane %v5259_v44, 1  ;;  %v5280_v15 = vrot.slane %v13331_v58, 4  ;;  %v13341_v4 = vmul.f32 %v4412_v0, %v4412_v0  ;;  %v5275_v7 = vadd.f32 %v5274_v25, %v13328_v52 }
 0x4a6   : > { %v5813_v24 = vmax.f32 %v5255_v50, 1e-38  ;;  %v5266_v33 = vrot.slane %v5265_v23, 1  ;;  %v5271_v32 = vadd.f32 %v5270_v3, %v5269_v1  ;;  %v5286_v54 = vrot.slane %v13338_v63, 4 }
 0x4a7   : > { %v5261_v12 = vadd.f32 %v5260_v48, %v5259_v44  ;;  %v5281_v59 = vadd.f32 %v5280_v15, %v13331_v58  ;;  %v5292_v50 = vrot.slane %v13341_v4, 4  ;;  %v5276_v43 = vrot.slane %v5275_v7, 2  ;;  %v16898_v44 = vld [vmem:[#allocation183_spill] sm:$0xff] }
 0x4a8   : > { %8745 = vrcp.f32 %v5813_v24  ;;  %v5267_v42 = vadd.f32 %v5266_v33, %v5265_v23  ;;  %v5272_v18 = vrot.slane %v5271_v32, 1  ;;  %v5287_v48 = vadd.f32 %v5286_v54, %v13338_v63  ;;  %v13351_v24 = vpop.permute.xlu1 %4261  ;;  %v16900_v54 = vld [vmem:[#allocation182_spill] sm:$0xff] }
 0x4a9   : > { %v5814_v20 = vmax.f32 %v5261_v12, 1e-38  ;;  %v4413_v0 = vmul.f32 %v16897_v2, %v16898_v44  ;;  %v5282_v23 = vrot.slane %v5281_v59, 2  ;;  %v5293_v3 = vadd.f32 %v5292_v50, %v13341_v4  ;;  %16899 = vst [vmem:[#allocation121_spill] sm:$0xff] %v13351_v24 }
 0x4aa   : > { %v5815_v55 = vmax.f32 %v5267_v42, 1e-38  ;;  %v5273_v1 = vadd.f32 %v5272_v18, %v5271_v32  ;;  %v5277_v33 = vadd.f32 %v5276_v43, %v5275_v7  ;;  %v5288_v25 = vrot.slane %v5287_v48, 2  ;;  %v16901_v43 = vld [vmem:[#allocation132_spill] sm:$0xff] }
 0x4ab   : > { %8747 = vrcp.f32 %v5814_v20  ;;  %v13353_v12 = vmul.f32 %v4413_v0, %v4413_v0  ;;  %v5283_v61 = vadd.f32 %v5282_v23, %v5281_v59  ;;  %v5294_v31 = vrot.slane %v5293_v3, 2 }
 0x4ac   : > { %8749 = vrcp.f32 %v5815_v55  ;;  %v5816_v42 = vmax.f32 %v5273_v1, 1e-38  ;;  %v4414_v40 = vmul.f32 %v13080_v8, %v16900_v54  ;;  %v5278_v32 = vrot.slane %v5277_v33, 1 }
 0x4ad   : > { %v8744_v15 = vpop.eup %8743  ;;  %v5289_v20 = vadd.f32 %v5288_v25, %v5287_v48  ;;  %v5298_v18 = vrot.slane %v13353_v12, 4  ;;  %v5284_v50 = vrot.slane %v5283_v61, 1  ;;  %v5295_v55 = vadd.f32 %v5294_v31, %v5293_v3  ;;  %v13365_v25 = vpop.permute.xlu1 %4341 }
 0x4ae   : > { %v6068_v2 = vmul.f32 %v8744_v15, %v13234_v45  ;;  %8751 = vrcp.f32 %v5816_v42  ;;  %v13359_v7 = vmul.f32 %v4414_v40, %v4414_v40  ;;  %v5279_v0 = vadd.f32 %v5278_v32, %v5277_v33  ;;  %16902 = vst [vmem:[#allocation119_spill] sm:$0xff] %v13365_v25  ;;  %v16903_v40 = vld [vmem:[#allocation101_spill] sm:$0xff] }
 0x4af   : > { %v5290_v1 = vrot.slane %v5289_v20, 1  ;;  %v5299_v59 = vadd.f32 %v5298_v18, %v13353_v12  ;;  %v6518_v23 = vrot.slane %v13262_v53, 4  ;;  %v5285_v54 = vadd.f32 %v5284_v50, %v5283_v61 }
 0x4b0   : > { %v6196_v44 = vmul.f32 %v6068_v2, %v16901_v43  ;;  %v5296_v24 = vrot.slane %v5295_v55, 1  ;;  %v5304_v45 = vrot.slane %v13359_v7, 4  ;;  %v5817_v15 = vmax.f32 %v5279_v0, 1e-38 }
 0x4b1   : > { %v5291_v42 = vadd.f32 %v5290_v1, %v5289_v20  ;;  %v5300_v31 = vrot.slane %v5299_v59, 2  ;;  %v4415_v3 = vmul.f32 %v13080_v8, %v16903_v40  ;;  %v5818_v2 = vmax.f32 %v5285_v54, 1e-38 }
 0x4b2   : > { %v8746_v48 = vpop.eup %8745  ;;  %v5297_v32 = vadd.f32 %v5296_v24, %v5295_v55  ;;  %v5305_v18 = vadd.f32 %v5304_v45, %v13359_v7  ;;  %v6524_v43 = vrot.slane %v6196_v44, 4  ;;  %8753 = vrcp.f32 %v5817_v15  ;;  %v16906_v45 = vld [vmem:[#allocation66_spill] sm:$0xff]  ;;  %v13380_v15 = vpop.permute.xlu1 %4186 }
 0x4b3   : > { %v6069_v33 = vmul.f32 %v8746_v48, %v13270_v21  ;;  %v5819_v61 = vmax.f32 %v5291_v42, 1e-38  ;;  %v5301_v50 = vadd.f32 %v5300_v31, %v5299_v59  ;;  %8755 = vrcp.f32 %v5818_v2 }
 0x4b4   : > { %v5820_v0 = vmax.f32 %v5297_v32, 1e-38  ;;  %v5306_v20 = vrot.slane %v5305_v18, 2  ;;  %v16905_v8 = vrot.slane %v13249_v10, 4  ;;  %v6508_v55 = vrot.slane %v13322_v6, 2 }
 0x4b5   : > { %v8748_v11 = vpop.eup %8747  ;;  %v6197_v28 = vmul.f32 %v6069_v33, %v16904_v51  ;;  %8757 = vrcp.f32 %v5819_v61  ;;  %v5302_v24 = vrot.slane %v5301_v50, 1  ;;  %v6519_v51 = vadd.f32 %v6518_v23, %v13262_v53  ;;  %v16907_v33 = vld [vmem:[#allocation24_spill] sm:$0xff] }
 0x4b6   : > { %v8750_v1 = vpop.eup %8749  ;;  %v6513_v40 = vadd.f32 %v16905_v8, %v13249_v10  ;;  %v6070_v21 = vmul.f32 %v8748_v11, %v13295_v35  ;;  %8759 = vrcp.f32 %v5820_v0  ;;  %v5307_v59 = vadd.f32 %v5306_v20, %v5305_v18  ;;  %v16910_v20 = vld [vmem:[#allocation64_spill] sm:$0xff]  ;;  %v16911_v8 = vld [vmem:[#allocation135_spill] sm:$0xff] }
 0x4b7   : > { %v6071_v54 = vmul.f32 %v8750_v1, %v13300_v27  ;;  %v5303_v42 = vadd.f32 %v5302_v24, %v5301_v50  ;;  %v13382_v31 = vmul.f32 %v4415_v3, %v4415_v3  ;;  %v6504_v11 = vrot.slane %v13317_v19, 1 }
 0x4b8   : > { %v6198_v48 = vmul.f32 %v6070_v21, %v16906_v45  ;;  %v8752_v10 = vpop.eup %8751  ;;  %v6525_v35 = vadd.f32 %v6524_v43, %v6196_v44  ;;  %v5308_v32 = vrot.slane %v5307_v59, 1  ;;  %v6514_v27 = vrot.slane %v6513_v40, 2 }
 0x4b9   : > { %v13386_v2 = vmul.f32 %v6071_v54, %v16907_v33  ;;  %v6530_v61 = vrot.slane %v6197_v28, 4  ;;  %v6072_v18 = vmul.f32 %v8752_v10, %v13312_v22  ;;  %v5821_v53 = vmax.f32 %v5303_v42, 1e-38 }
 0x4ba   : > { %v16908_v23 = vrot.slane %v13283_v56, 1  ;;  %v5309_v3 = vadd.f32 %v5308_v32, %v5307_v59  ;;  %v5310_v50 = vrot.slane %v13382_v31, 4  ;;  %v4416_v44 = vmul.f32 %v13238_v34, %v16910_v20  ;;  %v13415_v32 = vpop.permute.xlu1 %4266 }
 0x4bb   : > { %v6509_v43 = vadd.f32 %v6508_v55, %v13322_v6  ;;  %v6520_v1 = vrot.slane %v6519_v51, 2  ;;  %v13399_v21 = vmul.f32 %v6072_v18, %v16911_v8  ;;  %8761 = vrcp.f32 %v5821_v53  ;;  %16917 = vst [vmem:[#allocation58_spill] sm:$0xff] %v13415_v32 }
 0x4bc   : > { %v13392_v0 = vadd.f32 %v16908_v23, %v13283_v56  ;;  %v16912_v22 = vrot.slane %v13293_v36, 1  ;;  %v6526_v56 = vrot.slane %v6525_v35, 2  ;;  %v5822_v54 = vmax.f32 %v5309_v3, 1e-38  ;;  %v8754_v45 = vpop.eup %8753  ;;  %v16918_v23 = vld [vmem:[#allocation187_spill] sm:$0xff] }
 0x4bd   : > { %v5311_v59 = vadd.f32 %v5310_v50, %v13382_v31  ;;  %v16914_v42 = vrot.slane %v13297_v60, 1  ;;  %v13413_v6 = vadd.f32 %v6504_v11, %v13317_v19  ;;  %v6515_v55 = vadd.f32 %v6514_v27, %v6513_v40  ;;  %v8756_v18 = vpop.eup %8755  ;;  %v13423_v11 = vpop.f32.mrb[72].mxu0 }
 0x4be   : > { %16909 = vst [vmem:[#allocation8_spill] sm:$0xff] %v13392_v0  ;;  %v13404_v24 = vadd.f32 %v16912_v22, %v13293_v36  ;;  %v6531_v33 = vadd.f32 %v6530_v61, %v6197_v28  ;;  %v6073_v36 = vmul.f32 %v8754_v45, %v13328_v52  ;;  %8763 = vrcp.f32 %v5822_v54  ;;  %16919 = vst [vmem:[#allocation11_spill] sm:$0xff] %v13423_v11  ;;  %v16920_v61 = vld [vmem:[#allocation69_spill] sm:$0xff]  ;;  %v16921_v54 = vld [vmem:[#allocation26_spill] sm:$0xff] }
 0x4bf   : > { %v13410_v10 = vadd.f32 %v16914_v42, %v13297_v60  ;;  %16916 = vst [vmem:[#allocation10_spill] sm:$0xff] %v13413_v6  ;;  %v13418_v53 = vmul.f32 %v4416_v44, %v4416_v44  ;;  %v4417_v3 = vmul.f32 %v13238_v34, %v16918_v23  ;;  %v8758_v50 = vpop.eup %8757  ;;  %v6510_v20 = vrot.slane %v6509_v43, 1 }
 0x4c0   : > { %16913 = vst [vmem:[#allocation120_spill] sm:$0xff] %v13404_v24  ;;  %v6521_v60 = vadd.f32 %v6520_v1, %v6519_v51  ;;  %v6074_v8 = vmul.f32 %v8756_v18, %v13331_v58  ;;  %v5312_v19 = vrot.slane %v5311_v59, 2  ;;  %v8760_v28 = vpop.eup %8759  ;;  %v6527_v40 = vadd.f32 %v6526_v56, %v6525_v35  ;;  %v16922_v1 = vld [vmem:[#allocation28_spill] sm:$0xff] }
 0x4c1   : > { %16915 = vst [vmem:[#allocation9_spill] sm:$0xff] %v13410_v10  ;;  %v6536_v27 = vrot.slane %v6198_v48, 4  ;;  %v13426_v22 = vmul.f32 %v6073_v36, %v16920_v61  ;;  %v6075_v52 = vmul.f32 %v8758_v50, %v13338_v63  ;;  %v6532_v44 = vrot.slane %v6531_v33, 2  ;;  %v13440_v36 = vpop.permute.xlu1 %4346  ;;  %v16924_v63 = vld [vmem:[#allocation29_spill] sm:$0xff] }
 0x4c2   : > { %v13430_v45 = vmul.f32 %v6074_v8, %v16921_v54  ;;  %v6076_v34 = vmul.f32 %v8760_v28, %v13341_v4  ;;  %v5313_v51 = vadd.f32 %v5312_v19, %v5311_v59  ;;  %v6542_v58 = vrot.slane %v13386_v2, 4  ;;  %16923 = vst [vmem:[#allocation123_spill] sm:$0xff] %v13440_v36  ;;  %v16925_v8 = vld [vmem:[#allocation19_spill] sm:$0xff]  ;;  %v13447_v59 = vpop.f32.mrb[73].mxu0 }
 0x4c3   : > { %v13435_v42 = vmul.f32 %v6075_v52, %v16922_v1  ;;  %v5316_v35 = vrot.slane %v13418_v53, 4  ;;  %v13438_v56 = vmul.f32 %v4417_v3, %v4417_v3  ;;  %v6516_v18 = vrot.slane %v6515_v55, 1  ;;  %16926 = vst [vmem:[#allocation61_spill] sm:$0xff] %v13447_v59  ;;  %v13453_v52 = vpop.f32.mrb[74].mxu0 }
 0x4c4   : > { %v13443_v23 = vmul.f32 %v6076_v34, %v16924_v63  ;;  %v5314_v50 = vrot.slane %v5313_v51, 1  ;;  %v4418_v4 = vmul.f32 %v13335_v41, %v16925_v8  ;;  %v13449_v19 = vadd.f32 %v6510_v20, %v6509_v43  ;;  %16928 = vst [vmem:[#allocation13_spill] sm:$0xff] %v13453_v52  ;;  %v13457_v25 = vpop.f32.mrb[75].mxu0 }
 0x4c5   : > { %v6537_v28 = vadd.f32 %v6536_v27, %v6198_v48  ;;  %v5317_v61 = vadd.f32 %v5316_v35, %v13418_v53  ;;  %v5322_v3 = vrot.slane %v13438_v56, 4  ;;  %v8762_v54 = vpop.eup %8761  ;;  %v6522_v1 = vrot.slane %v6521_v60, 1  ;;  %16929 = vst [vmem:[#allocation124_spill] sm:$0xff] %v13457_v25 }
 0x4c6   : > { %16927 = vst [vmem:[#allocation122_spill] sm:$0xff] %v13449_v19  ;;  %v6533_v36 = vadd.f32 %v6532_v44, %v6531_v33  ;;  %v5315_v34 = vadd.f32 %v5314_v50, %v5313_v51  ;;  %v13455_v63 = vmul.f32 %v4418_v4, %v4418_v4  ;;  %v6528_v8 = vrot.slane %v6527_v40, 1  ;;  %v16930_v44 = vld [vmem:[#allocation30_spill] sm:$0xff] }
 0x4c7   : > { %v6543_v32 = vadd.f32 %v6542_v58, %v13386_v2  ;;  %v6077_v43 = vmul.f32 %v8762_v54, %v13353_v12  ;;  %v5318_v48 = vrot.slane %v5317_v61, 2  ;;  %v6548_v20 = vrot.slane %v13399_v21, 4  ;;  %v16931_v4 = vld [vmem:[#allocation102_spill] sm:$0xff]  ;;  %v13469_v58 = vpop.permute.xlu1 %4191 }
 0x4c8   : > { %v5823_v27 = vmax.f32 %v5315_v34, 1e-38  ;;  %v5323_v35 = vadd.f32 %v5322_v3, %v13438_v56  ;;  %v5328_v52 = vrot.slane %v13455_v63, 4  ;;  %v8764_v59 = vpop.eup %8763  ;;  %v6538_v33 = vrot.slane %v6537_v28, 2 }
 0x4c9   : > { %v13465_v51 = vmul.f32 %v6077_v43, %v16930_v44  ;;  %v5319_v50 = vadd.f32 %v5318_v48, %v5317_v61  ;;  %v4419_v25 = vmul.f32 %v13335_v41, %v16931_v4  ;;  %v6534_v2 = vrot.slane %v6533_v36, 1  ;;  %v13477_v43 = vpop.f32.mrb[76].mxu0  ;;  %v16934_v41 = vld [vmem:[#allocation71_spill] sm:$0xff] }
 0x4ca   : > { %v6078_v12 = vmul.f32 %v8764_v59, %v13359_v7  ;;  %8765 = vrcp.f32 %v5823_v27  ;;  %v5324_v54 = vrot.slane %v5323_v35, 2  ;;  %v13472_v34 = vadd.f32 %v6516_v18, %v6515_v55  ;;  %16933 = vst [vmem:[#allocation129_spill] sm:$0xff] %v13477_v43  ;;  %v13485_v7 = vpop.f32.mrb[77].mxu0 }
 0x4cb   : > { %v5320_v3 = vrot.slane %v5319_v50, 1  ;;  %v5329_v11 = vadd.f32 %v5328_v52, %v13455_v63  ;;  %v13475_v19 = vmul.f32 %v4419_v25, %v4419_v25  ;;  %v6544_v61 = vrot.slane %v6543_v32, 2  ;;  %v13490_v25 = vpop.f32.mrb[78].mxu0 }
 0x4cc   : > { %16932 = vst [vmem:[#allocation14_spill] sm:$0xff] %v13472_v34  ;;  %v13480_v48 = vadd.f32 %v6548_v20, %v13399_v21  ;;  %v13483_v44 = vmul.f32 %v6078_v12, %v16934_v41  ;;  %v5325_v4 = vadd.f32 %v5324_v54, %v5323_v35  ;;  %v13487_v59 = vadd.f32 %v6522_v1, %v6521_v60  ;;  %v13498_v12 = vpop.f32.mrb[79].mxu0 }
 0x4cd   : > { %v5321_v55 = vadd.f32 %v5320_v3, %v5319_v50  ;;  %v5330_v18 = vrot.slane %v5329_v11, 2  ;;  %v5334_v52 = vrot.slane %v13475_v19, 4  ;;  %v13492_v27 = vadd.f32 %v6528_v8, %v6527_v40  ;;  %16938 = vst [vmem:[#allocation126_spill] sm:$0xff] %v13498_v12  ;;  %v13506_v8 = vpop.permute.xlu1 %4271  ;;  %v13520_v3 = vpop.f32.mrb[80].mxu0  ;;  %v16946_v40 = vld [vmem:[#allocation140_spill] sm:$0xff] }
 0x4ce   : > { %16935 = vst [vmem:[#allocation15_spill] sm:$0xff] %v13487_v59  ;;  %v13494_v43 = vadd.f32 %v6534_v2, %v6533_v36  ;;  %v13496_v21 = vadd.f32 %v6538_v33, %v6537_v28  ;;  %v5326_v20 = vrot.slane %v5325_v4, 1  ;;  %v6554_v35 = vrot.slane %v13426_v22, 4  ;;  %16939 = vst [vmem:[#allocation17_spill] sm:$0xff] %v13506_v8 }
 0x4cf   : > { %16936 = vst [vmem:[#allocation127_spill] sm:$0xff] %v13492_v27  ;;  %v5824_v54 = vmax.f32 %v5321_v55, 1e-38  ;;  %v5331_v60 = vadd.f32 %v5330_v18, %v5329_v11  ;;  %v5335_v1 = vadd.f32 %v5334_v52, %v13475_v19  ;;  %v13502_v50 = vadd.f32 %v6544_v61, %v6543_v32  ;;  %16942 = vst [vmem:[#allocation62_spill] sm:$0xff] %v13520_v3 }
 0x4d0   : > { %16937 = vst [vmem:[#allocation16_spill] sm:$0xff] %v13494_v43  ;;  %v5327_v36 = vadd.f32 %v5326_v20, %v5325_v4  ;;  %v6572_v28 = vrot.slane %v13443_v23, 4  ;;  %v6444_v55 = vrot.slane %v13149_v57, 1  ;;  %v16940_v11 = vrot.slane %v13135_v62, 2 }
 0x4d1   : > { %8767 = vrcp.f32 %v5824_v54  ;;  %v5332_v33 = vrot.slane %v5331_v60, 1  ;;  %v5336_v2 = vrot.slane %v5335_v1, 2  ;;  %v16941_v61 = vrot.slane %v13259_v13, 2 }
 0x4d2   : > { %v5825_v41 = vmax.f32 %v5327_v36, 1e-38  ;;  %v6455_v32 = vadd.f32 %v16940_v11, %v13135_v62  ;;  %v13517_v52 = vadd.f32 %v6554_v35, %v13426_v22  ;;  %v6466_v54 = vrot.slane %v13275_v29, 2  ;;  %v13524_v11 = vpop.f32.mrb[81].mxu0 }
 0x4d3   : > { %v6461_v18 = vadd.f32 %v16941_v61, %v13259_v13  ;;  %v5333_v4 = vadd.f32 %v5332_v33, %v5331_v60  ;;  %v5337_v20 = vadd.f32 %v5336_v2, %v5335_v1  ;;  %v6450_v8 = vrot.slane %v13151_v17, 1  ;;  %16943 = vst [vmem:[#allocation63_spill] sm:$0xff] %v13524_v11  ;;  %v13531_v33 = vpop.permute.xlu1 %4351 }
 0x4d4   : > { %v8766_v36 = vpop.eup %8765  ;;  %8769 = vrcp.f32 %v5825_v41  ;;  %v6456_v62 = vrot.slane %v6455_v32, 1  ;;  %v13527_v13 = vadd.f32 %v6572_v28, %v13443_v23  ;;  %v6578_v1 = vrot.slane %v13465_v51, 4  ;;  %16944 = vst [vmem:[#allocation18_spill] sm:$0xff] %v13531_v33 }
 0x4d5   : > { %v6079_v22 = vmul.f32 %v8766_v36, %v13382_v31  ;;  %v5826_v35 = vmax.f32 %v5333_v4, 1e-38  ;;  %v5338_v60 = vrot.slane %v5337_v20, 1  ;;  %v13534_v2 = vadd.f32 %v6444_v55, %v13149_v57 }
 0x4d6   : > { %v6462_v41 = vrot.slane %v6461_v18, 1  ;;  %v6467_v61 = vadd.f32 %v6466_v54, %v13275_v29  ;;  %v6472_v28 = vrot.slane %v13291_v14, 2  ;;  %v13542_v31 = vadd.f32 %v6450_v8, %v13151_v17 }
 0x4d7   : > { %16945 = vst [vmem:[#allocation128_spill] sm:$0xff] %v13534_v2  ;;  %v13538_v3 = vmul.f32 %v6079_v22, %v16946_v40  ;;  %8771 = vrcp.f32 %v5826_v35  ;;  %v5339_v23 = vadd.f32 %v5338_v60, %v5337_v20  ;;  %v13544_v4 = vadd.f32 %v6456_v62, %v6455_v32 }
 0x4d8   : > { %16947 = vst [vmem:[#allocation177_spill] sm:$0xff] %v13542_v31  ;;  %v6468_v36 = vrot.slane %v6467_v61, 1  ;;  %v7201_v57 = vsel %vm7180_vm1, %v13000_v39, %v12987_v9  ;;  %v6473_v29 = vadd.f32 %v6472_v28, %v13291_v14  ;;  %v7208_v20 = vsel %vm7180_vm1, %v13018_v5, %v12993_v47 }
 0x4d9   : > { %16948 = vst [vmem:[#allocation65_spill] sm:$0xff] %v13544_v4  ;;  %v5827_v55 = vmax.f32 %v5339_v23, 1e-38  ;;  %v7202_v40 = vsel %vm7182_vm2, %v13070_v46, %v7201_v57  ;;  %v7209_v8 = vsel %vm7182_vm2, %v13073_v37, %v7208_v20  ;;  %v4420_v32 = vmul.f32 %v13380_v15, %v13078_v16  ;;  %v16973_v46 = vld [vmem:[#allocation68_spill] sm:$0xff] }
 0x4da   : > { %v13555_v54 = vadd.f32 %v6468_v36, %v6467_v61  ;;  %v7203_v17 = vsel %vm7184_vm3, %v13094_v38, %v7202_v40  ;;  %v13563_v14 = vadd.f32 %v6462_v41, %v6461_v18  ;;  %v6474_v22 = vrot.slane %v6473_v29, 1  ;;  %v13568_v61 = vpop.permute.xlu1 %4196 }
 0x4db   : > { %v8768_v62 = vpop.eup %8767  ;;  %8773 = vrcp.f32 %v5827_v55  ;;  %v7204_v35 = vsel %vm7186_vm4, %v13105_v49, %v7203_v17  ;;  %v7210_v28 = vsel %vm7184_vm3, %v13098_v30, %v7209_v8  ;;  %v13574_v36 = vmul.f32 %v4420_v32, %v4420_v32  ;;  %v16952_v55 = vld [vmem:[#allocation73_spill] sm:$0xff] }
 0x4dc   : > { %16949 = vst [vmem:[#allocation174_spill] sm:$0xff] %v13555_v54  ;;  %16950 = vst [vmem:[#allocation20_spill] sm:$0xff] %v13563_v14  ;;  %v6080_v60 = vmul.f32 %v8768_v62, %v13418_v53  ;;  %v7205_v23 = vsel %vm7188_vm5, %v13534_v2, %v7204_v35  ;;  %v6584_v16 = vrot.slane %v13483_v44, 4  ;;  %v13577_v18 = vadd.f32 %v6474_v22, %v6473_v29  ;;  %v16953_v22 = vld [vmem:[#allocation133_spill] sm:$0xff] }
 0x4dd   : > { %v7206_v41 = vsel %vm7190_vm6, %v13544_v4, %v7205_v23  ;;  %v7211_v53 = vsel %vm7186_vm4, %v13127_v26, %v7210_v28  ;;  %v5340_v8 = vrot.slane %v13574_v36, 4  ;;  %v6574_v29 = vrot.slane %v13527_v13, 2  ;;  %v16962_v2 = vld [vmem:[#allocation21_spill] sm:$0xff] }
 0x4de   : > { %16951 = vst [vmem:[#allocation130_spill] sm:$0xff] %v13577_v18  ;;  %v8770_v57 = vpop.eup %8769  ;;  %v6208_v40 = vmul.f32 %v6080_v60, %v16952_v55  ;;  %v7207_v20 = vsel %vm7192_vm7, %v13555_v54, %v7206_v41  ;;  %v7212_v17 = vsel %vm7188_vm5, %v13542_v31, %v7211_v53  ;;  %v4421_v35 = vmul.f32 %v13380_v15, %v16953_v22  ;;  %v16954_v41 = vld [vmem:[#allocation131_spill] sm:$0xff] }
 0x4df   : > { %v6081_v32 = vmul.f32 %v8770_v57, %v13438_v56  ;;  %v7213_v62 = vsel %vm7190_vm6, %v13563_v14, %v7212_v17  ;;  %v6579_v60 = vadd.f32 %v6578_v1, %v13465_v51  ;;  %v5341_v28 = vadd.f32 %v5340_v8, %v13574_v36  ;;  %v16955_v56 = vld [vmem:[#allocation142_spill] sm:$0xff]  ;;  %v13609_v1 = vpop.permute.xlu1 %4276 }
 0x4e0   : > { %v7214_v23 = vsel %vm7192_vm7, %v13577_v18, %v7213_v62  ;;  %v4422_v53 = vmul.f32 %v13469_v58, %v16954_v41  ;;  %v6585_v54 = vadd.f32 %v6584_v16, %v13483_v44  ;;  %v13605_v14 = vmul.f32 %v4421_v35, %v4421_v35  ;;  %16956 = vst [vmem:[#allocation95_spill] sm:$0xff] %v13609_v1  ;;  %v16960_v18 = vld [vmem:[#allocation75_spill] sm:$0xff] }
 0x4e1   : > { %v8772_v55 = vpop.eup %8771  ;;  %v13603_v57 = vmul.f32 %v6081_v32, %v16955_v56  ;;  %v7318_v17 = vadd.f32 %v7214_v23, %v7207_v20  ;;  %v6590_v15 = vrot.slane %v13538_v3, 4  ;;  %v5342_v62 = vrot.slane %v5341_v28, 2  ;;  %v16958_v20 = vld [vmem:[#allocation46_spill] sm:$0xff] }
 0x4e2   : > { %v6082_v51 = vmul.f32 %v8772_v55, %v13455_v63  ;;  %v13611_v8 = vmul.f32 %v4422_v53, %v4422_v53  ;;  %v16957_v22 = vrot.slane %v13430_v45, 4  ;;  %v6575_v44 = vadd.f32 %v6574_v29, %v13527_v13  ;;  %v16959_v63 = vld [vmem:[#allocation149_spill] sm:$0xff] }
 0x4e3   : > { %7319 = vadd.xlane.f32.xlu1 %v7318_v17  ;;  %v5346_v16 = vrot.slane %v13605_v14, 4  ;;  %v4423_v32 = vmul.f32 %v13469_v58, %v16958_v20  ;;  %v6580_v35 = vrot.slane %v6579_v60, 2  ;;  %v5343_v55 = vadd.f32 %v5342_v62, %v5341_v28 }
 0x4e4   : > { %v13616_v41 = vadd.f32 %v16957_v22, %v13430_v45  ;;  %v13623_v23 = vmul.f32 %v6082_v51, %v16959_v63  ;;  %v5352_v53 = vrot.slane %v13611_v8, 4  ;;  %v6586_v45 = vrot.slane %v6585_v54, 2 }
 0x4e5   : > { %v8774_v56 = vpop.eup %8773  ;;  %v5347_v22 = vadd.f32 %v5346_v16, %v13605_v14  ;;  %v13628_v13 = vmul.f32 %v4423_v32, %v4423_v32  ;;  %v6591_v29 = vadd.f32 %v6590_v15, %v13538_v3  ;;  %v6596_v17 = vrot.slane %v6208_v40, 4  ;;  %v13639_v32 = vpop.permute.xlu1 %4356 }
 0x4e6   : > { %v6083_v58 = vmul.f32 %v8774_v56, %v13475_v19  ;;  %v5344_v20 = vrot.slane %v5343_v55, 1  ;;  %v6576_v4 = vrot.slane %v6575_v44, 1  ;;  %v5353_v28 = vadd.f32 %v5352_v53, %v13611_v8  ;;  %16961 = vst [vmem:[#allocation176_spill] sm:$0xff] %v13639_v32 }
 0x4e7   : > { %v5348_v51 = vrot.slane %v5347_v22, 2  ;;  %v5358_v62 = vrot.slane %v13628_v13, 4  ;;  %v13634_v63 = vadd.f32 %v6580_v35, %v6579_v60  ;;  %v4424_v3 = vmul.f32 %v13568_v61, %v16962_v2  ;;  %v16967_v2 = vld [vmem:[#allocation22_spill] sm:$0xff] }
 0x4e8   : > { %v13637_v31 = vmul.f32 %v6083_v58, %v16960_v18  ;;  %v5345_v16 = vadd.f32 %v5344_v20, %v5343_v55  ;;  %v13643_v15 = vadd.f32 %v6586_v45, %v6585_v54  ;;  %v5354_v56 = vrot.slane %v5353_v28, 2 }
 0x4e9   : > { %v5349_v19 = vadd.f32 %v5348_v51, %v5347_v22  ;;  %v5359_v26 = vadd.f32 %v5358_v62, %v13628_v13  ;;  %v16963_v53 = vrot.slane %v13435_v42, 4  ;;  %v6592_v35 = vrot.slane %v6591_v29, 2  ;;  %v16971_v22 = vld [vmem:[#allocation175_spill] sm:$0xff] }
 0x4ea   : > { %v6597_v18 = vadd.f32 %v6596_v17, %v6208_v40  ;;  %v5828_v58 = vmax.f32 %v5345_v16, 1e-38  ;;  %v13651_v55 = vadd.f32 %v6576_v4, %v6575_v44  ;;  %v5355_v49 = vadd.f32 %v5354_v56, %v5353_v28  ;;  %v4202_v4 = vpop.permute.xlu1 %4201  ;;  %v16965_v17 = vld [vmem:[#allocation191_spill] sm:$0xff]  ;;  %v13663_v16 = vpop.f32.mrb[82].mxu0 }
 0x4eb   : > { %v13649_v60 = vadd.f32 %v16963_v53, %v13435_v42  ;;  %v5350_v20 = vrot.slane %v5349_v19, 1  ;;  %v5360_v30 = vrot.slane %v5359_v26, 2  ;;  %v6602_v54 = vrot.slane %v13603_v57, 4  ;;  %16966 = vst [vmem:[#allocation178_spill] sm:$0xff] %v13663_v16 }
 0x4ec   : > { %16964 = vst [vmem:[#allocation179_spill] sm:$0xff] %v13651_v55  ;;  %8775 = vrcp.f32 %v5828_v58  ;;  %v13655_v45 = vmul.f32 %v4424_v3, %v4424_v3  ;;  %v5356_v42 = vrot.slane %v5355_v49, 1  ;;  %v13658_v53 = vadd.f32 %v6592_v35, %v6591_v29  ;;  %v13673_v35 = vpop.f32.mrb[83].mxu0 }
 0x4ed   : > { %v5351_v51 = vadd.f32 %v5350_v20, %v5349_v19  ;;  %v5361_v62 = vadd.f32 %v5360_v30, %v5359_v26  ;;  %v6598_v40 = vrot.slane %v6597_v18, 2  ;;  %v4425_v28 = vmul.f32 %v13568_v61, %v16965_v17  ;;  %16968 = vst [vmem:[#allocation185_spill] sm:$0xff] %v13673_v35 }
 0x4ee   : > { %v5364_v44 = vrot.slane %v13655_v45, 4  ;;  %v5357_v58 = vadd.f32 %v5356_v42, %v5355_v49  ;;  %v4426_v38 = vmul.f32 %v4202_v4, %v16967_v2  ;;  %v13667_v19 = vadd.f32 %v6602_v54, %v13603_v57  ;;  %v16969_v57 = vld [vmem:[#allocation192_spill] sm:$0xff] }
 0x4ef   : > { %v5829_v56 = vmax.f32 %v5351_v51, 1e-38  ;;  %v5362_v3 = vrot.slane %v5361_v62, 1  ;;  %v6608_v30 = vrot.slane %v13623_v23, 4  ;;  %v13671_v29 = vmul.f32 %v4425_v28, %v4425_v28  ;;  %v16970_v28 = vld [vmem:[#allocation195_spill] sm:$0xff] }
 0x4f0   : > { %v5365_v26 = vadd.f32 %v5364_v44, %v13655_v45  ;;  %v5830_v61 = vmax.f32 %v5357_v58, 1e-38  ;;  %v13675_v17 = vmul.f32 %v4426_v38, %v4426_v38  ;;  %v13677_v49 = vadd.f32 %v6598_v40, %v6597_v18 }
 0x4f1   : > { %8777 = vrcp.f32 %v5829_v56  ;;  %v5363_v20 = vadd.f32 %v5362_v3, %v5361_v62  ;;  %v5370_v2 = vrot.slane %v13671_v29, 4  ;;  %v4427_v54 = vmul.f32 %v4202_v4, %v16969_v57  ;;  %v16972_v4 = vld [vmem:[#allocation194_spill] sm:$0xff] }
 0x4f2   : > { %v5366_v51 = vrot.slane %v5365_v26, 2  ;;  %8779 = vrcp.f32 %v5830_v61  ;;  %v5376_v44 = vrot.slane %v13675_v17, 4  ;;  %v4428_v37 = vmul.f32 %v16971_v22, %v16970_v28 }
 0x4f3   : > { %v5831_v42 = vmax.f32 %v5363_v20, 1e-38  ;;  %v6609_v56 = vadd.f32 %v6608_v30, %v13623_v23  ;;  %v5371_v38 = vadd.f32 %v5370_v2, %v13671_v29  ;;  %v13686_v62 = vmul.f32 %v4427_v54, %v4427_v54  ;;  %v16974_v23 = vld [vmem:[#allocation45_spill] sm:$0xff] }
 0x4f4   : > { %v5367_v58 = vadd.f32 %v5366_v51, %v5365_v26  ;;  %v5377_v18 = vadd.f32 %v5376_v44, %v13675_v17  ;;  %v13689_v40 = vmul.f32 %v4428_v37, %v4428_v37  ;;  %v4429_v3 = vmul.f32 %v16971_v22, %v16972_v4  ;;  %v16975_v4 = vld [vmem:[#allocation147_spill] sm:$0xff] }
 0x4f5   : > { %8781 = vrcp.f32 %v5831_v42  ;;  %v5372_v57 = vrot.slane %v5371_v38, 2  ;;  %v5382_v28 = vrot.slane %v13686_v62, 4  ;;  %v4430_v30 = vmul.f32 %v16974_v23, %v16973_v46 }
 0x4f6   : > { %v8776_v61 = vpop.eup %8775  ;;  %v5368_v20 = vrot.slane %v5367_v58, 1  ;;  %v5378_v51 = vrot.slane %v5377_v18, 2  ;;  %v5388_v2 = vrot.slane %v13689_v40, 4  ;;  %v13698_v54 = vmul.f32 %v4429_v3, %v4429_v3 }
 0x4f7   : > { %v6084_v26 = vmul.f32 %v8776_v61, %v13574_v36  ;;  %v6604_v37 = vrot.slane %v13667_v19, 2  ;;  %v5373_v44 = vadd.f32 %v5372_v57, %v5371_v38  ;;  %v5383_v22 = vadd.f32 %v5382_v28, %v13686_v62 }
 0x4f8   : > { %v5369_v42 = vadd.f32 %v5368_v20, %v5367_v58  ;;  %v5379_v39 = vadd.f32 %v5378_v51, %v5377_v18  ;;  %v5389_v47 = vadd.f32 %v5388_v2, %v13689_v40  ;;  %v5394_v46 = vrot.slane %v13698_v54, 4 }
 0x4f9   : > { %v13703_v5 = vmul.f32 %v6084_v26, %v16975_v4  ;;  %v6610_v36 = vrot.slane %v6609_v56, 2  ;;  %v5374_v9 = vrot.slane %v5373_v44, 1  ;;  %v5384_v32 = vrot.slane %v5383_v22, 2  ;;  %v16976_v4 = vld [vmem:[#allocation146_spill] sm:$0xff] }
 0x4fa   : > { %v5832_v61 = vmax.f32 %v5369_v42, 1e-38  ;;  %v5380_v33 = vrot.slane %v5379_v39, 1  ;;  %v5390_v1 = vrot.slane %v5389_v47, 2  ;;  %v5395_v58 = vadd.f32 %v5394_v46, %v13698_v54 }
 0x4fb   : > { %v8778_v3 = vpop.eup %8777  ;;  %v13708_v38 = vmul.f32 %v4430_v30, %v4430_v30  ;;  %v5375_v57 = vadd.f32 %v5374_v9, %v5373_v44  ;;  %v5385_v18 = vadd.f32 %v5384_v32, %v5383_v22  ;;  %v6614_v26 = vrot.slane %v13637_v31, 4  ;;  %v16977_v44 = vld [vmem:[#allocation153_spill] sm:$0xff] }
 0x4fc   : > { %v6085_v20 = vmul.f32 %v8778_v3, %v13605_v14  ;;  %8783 = vrcp.f32 %v5832_v61  ;;  %v8780_v28 = vpop.eup %8779  ;;  %v5381_v51 = vadd.f32 %v5380_v33, %v5379_v39  ;;  %v5391_v2 = vadd.f32 %v5390_v1, %v5389_v47 }
 0x4fd   : > { %v5396_v42 = vrot.slane %v5395_v58, 2  ;;  %v6086_v35 = vmul.f32 %v8780_v28, %v13611_v8  ;;  %v5833_v16 = vmax.f32 %v5375_v57, 1e-38  ;;  %v5386_v46 = vrot.slane %v5385_v18, 1  ;;  %v13723_v8 = vpop.f32.mrb[84].mxu0 }
 0x4fe   : > { %v13713_v55 = vmul.f32 %v6085_v20, %v16976_v4  ;;  %v5834_v11 = vmax.f32 %v5381_v51, 1e-38  ;;  %v5392_v12 = vrot.slane %v5391_v2, 1  ;;  %v5400_v9 = vrot.slane %v13708_v38, 4 }
 0x4ff   : > { %v8782_v30 = vpop.eup %8781  ;;  %v5397_v14 = vadd.f32 %v5396_v42, %v5395_v58  ;;  %v6605_v32 = vadd.f32 %v6604_v37, %v13667_v19  ;;  %v13719_v22 = vmul.f32 %v6086_v35, %v16977_v44  ;;  %8785 = vrcp.f32 %v5833_v16  ;;  %v16978_v58 = vld [vmem:[#allocation33_spill] sm:$0xff] }
 0x500   : > { %v6087_v47 = vmul.f32 %v8782_v30, %v13628_v13  ;;  %v6594_v39 = vrot.slane %v13658_v53, 1  ;;  %8787 = vrcp.f32 %v5834_v11  ;;  %v5387_v33 = vadd.f32 %v5386_v46, %v5385_v18  ;;  %v13741_v18 = vpop.f32.mrb[85].mxu0 }
 0x501   : > { %v5393_v1 = vadd.f32 %v5392_v12, %v5391_v2  ;;  %v6611_v61 = vadd.f32 %v6610_v36, %v6609_v56  ;;  %v6615_v3 = vadd.f32 %v6614_v26, %v13637_v31  ;;  %v5398_v19 = vrot.slane %v5397_v14, 1  ;;  %v16984_v26 = vld [vmem:[#allocation196_spill] sm:$0xff]  ;;  %v13748_v2 = vpop.f32.mrb[86].mxu0 }
 0x502   : > { %v13727_v20 = vmul.f32 %v6087_v47, %v16978_v58  ;;  %v16979_v35 = vrot.slane %v13634_v63, 1  ;;  %v5835_v13 = vmax.f32 %v5387_v33, 1e-38  ;;  %v5401_v11 = vadd.f32 %v5400_v9, %v13708_v38  ;;  %v13751_v30 = vpop.f32.mrb[87].mxu0  ;;  %v16988_v33 = vld [vmem:[#allocation52_spill] sm:$0xff] }
 0x503   : > { %v5836_v16 = vmax.f32 %v5393_v1, 1e-38  ;;  %v16981_v12 = vrot.slane %v13643_v15, 1  ;;  %v6600_v31 = vrot.slane %v13677_v49, 1  ;;  %v6606_v56 = vrot.slane %v6605_v32, 1  ;;  %16985 = vst [vmem:[#allocation183_spill] sm:$0xff] %v13751_v30 }
 0x504   : > { %v13732_v37 = vadd.f32 %v16979_v35, %v13634_v63  ;;  %v5399_v36 = vadd.f32 %v5398_v19, %v5397_v14  ;;  %v13744_v28 = vadd.f32 %v6594_v39, %v13658_v53  ;;  %8789 = vrcp.f32 %v5835_v13  ;;  %v16989_v1 = vld [vmem:[#allocation103_spill] sm:$0xff]  ;;  %v16990_v19 = vld [vmem:[#allocation34_spill] sm:$0xff] }
 0x505   : > { %v13738_v57 = vadd.f32 %v16981_v12, %v13643_v15  ;;  %v5402_v63 = vrot.slane %v5401_v11, 2  ;;  %v4431_v51 = vmul.f32 %v16974_v23, %v16984_v26  ;;  %v6612_v4 = vrot.slane %v6611_v61, 1 }
 0x506   : > { %16980 = vst [vmem:[#allocation98_spill] sm:$0xff] %v13732_v37  ;;  %16983 = vst [vmem:[#allocation172_spill] sm:$0xff] %v13744_v28  ;;  %v8784_v42 = vpop.eup %8783  ;;  %v6616_v15 = vrot.slane %v6615_v3, 2  ;;  %v6620_v46 = vrot.slane %v13703_v5, 4  ;;  %8791 = vrcp.f32 %v5836_v16  ;;  %v5837_v9 = vmax.f32 %v5399_v36, 1e-38 }
 0x507   : > { %16982 = vst [vmem:[#allocation100_spill] sm:$0xff] %v13738_v57  ;;  %v6088_v14 = vmul.f32 %v8784_v42, %v13655_v45  ;;  %v5403_v53 = vadd.f32 %v5402_v63, %v5401_v11  ;;  %v13754_v44 = vmul.f32 %v4431_v51, %v4431_v51  ;;  %v13757_v47 = vadd.f32 %v6600_v31, %v13677_v49  ;;  %v13779_v42 = vpop.f32.mrb[88].mxu0  ;;  %v16999_v28 = vld [vmem:[#allocation37_spill] sm:$0xff] }
 0x508   : > { %v13759_v23 = vadd.f32 %v6606_v56, %v6605_v32  ;;  %v6626_v39 = vrot.slane %v13713_v55, 4  ;;  %v4432_v58 = vmul.f32 %v16989_v1, %v16988_v33  ;;  %8793 = vrcp.f32 %v5837_v9  ;;  %v16992_v32 = vld [vmem:[#allocation5_spill] sm:$0xff]  ;;  %16993 = vst [vmem:[#allocation137_spill] sm:$0xff] %v13779_v42 }
 0x509   : > { %16986 = vst [vmem:[#allocation182_spill] sm:$0xff] %v13757_v47  ;;  %v13765_v35 = vmul.f32 %v6088_v14, %v16990_v19  ;;  %v5404_v13 = vrot.slane %v5403_v53, 1  ;;  %v5406_v45 = vrot.slane %v13754_v44, 4  ;;  %v8786_v16 = vpop.eup %8785  ;;  %v13768_v11 = vadd.f32 %v6612_v4, %v6611_v61  ;;  %v16995_v14 = vld [vmem:[#allocation107_spill] sm:$0xff] }
 0x50a   : > { %16987 = vst [vmem:[#allocation132_spill] sm:$0xff] %v13759_v23  ;;  %v13770_v12 = vadd.f32 %v6616_v15, %v6615_v3  ;;  %v13772_v49 = vmul.f32 %v4432_v58, %v4432_v58  ;;  %v4433_v31 = vmul.f32 %v16989_v1, %v16992_v32  ;;  %v8788_v56 = vpop.eup %8787  ;;  %v6621_v36 = vadd.f32 %v6620_v46, %v13703_v5  ;;  %v16994_v15 = vld [vmem:[#allocation114_spill] sm:$0xff]  ;;  %v16996_v1 = vld [vmem:[#allocation152_spill] sm:$0xff] }
 0x50b   : > { %16991 = vst [vmem:[#allocation101_spill] sm:$0xff] %v13768_v11  ;;  %v6089_v63 = vmul.f32 %v8786_v16, %v13671_v29  ;;  %v5405_v26 = vadd.f32 %v5404_v13, %v5403_v53  ;;  %v5407_v51 = vadd.f32 %v5406_v45, %v13754_v44  ;;  %v6090_v61 = vmul.f32 %v8788_v56, %v13675_v17  ;;  %v16997_v53 = vld [vmem:[#allocation81_spill] sm:$0xff] }
 0x50c   : > { %v5412_v3 = vrot.slane %v13772_v49, 4  ;;  %v13783_v4 = vmul.f32 %v4433_v31, %v4433_v31  ;;  %v4434_v9 = vmul.f32 %v16995_v14, %v16994_v15  ;;  %v6627_v33 = vadd.f32 %v6626_v39, %v13713_v55 }
 0x50d   : > { %v13789_v5 = vmul.f32 %v6089_v63, %v16996_v1  ;;  %v5838_v29 = vmax.f32 %v5405_v26, 1e-38  ;;  %v5408_v46 = vrot.slane %v5407_v51, 2  ;;  %v13792_v58 = vmul.f32 %v6090_v61, %v16997_v53  ;;  %v16998_v53 = vld [vmem:[#allocation36_spill] sm:$0xff] }
 0x50e   : > { %v5413_v19 = vadd.f32 %v5412_v3, %v13772_v49  ;;  %v5418_v17 = vrot.slane %v13783_v4, 4  ;;  %v13796_v13 = vmul.f32 %v4434_v9, %v4434_v9  ;;  %v8790_v45 = vpop.eup %8789  ;;  %v6618_v16 = vrot.slane %v13770_v12, 1 }
 0x50f   : > { %v6622_v32 = vrot.slane %v6621_v36, 2  ;;  %8795 = vrcp.f32 %v5838_v29  ;;  %v5409_v55 = vadd.f32 %v5408_v46, %v5407_v51  ;;  %v6632_v31 = vrot.slane %v13719_v22, 4 }
 0x510   : > { %v8792_v39 = vpop.eup %8791  ;;  %v6091_v56 = vmul.f32 %v8790_v45, %v13686_v62  ;;  %v5414_v63 = vrot.slane %v5413_v19, 2  ;;  %v5419_v26 = vadd.f32 %v5418_v17, %v13783_v4  ;;  %v6628_v61 = vrot.slane %v6627_v33, 2 }
 0x511   : > { %v6092_v3 = vmul.f32 %v8792_v39, %v13689_v40  ;;  %v5410_v15 = vrot.slane %v5409_v55, 1  ;;  %v5424_v9 = vrot.slane %v13796_v13, 4  ;;  %v6638_v1 = vrot.slane %v13727_v20, 4 }
 0x512   : > { %v13806_v42 = vmul.f32 %v6091_v56, %v16998_v53  ;;  %v5415_v51 = vadd.f32 %v5414_v63, %v5413_v19  ;;  %v5420_v29 = vrot.slane %v5419_v26, 2  ;;  %v8794_v46 = vpop.eup %8793  ;;  %v6623_v23 = vadd.f32 %v6622_v32, %v6621_v36  ;;  %v17000_v56 = vld [vmem:[#allocation115_spill] sm:$0xff]  ;;  %v17001_v36 = vld [vmem:[#allocation41_spill] sm:$0xff] }
 0x513   : > { %v6220_v62 = vmul.f32 %v6092_v3, %v16999_v28  ;;  %v5411_v45 = vadd.f32 %v5410_v15, %v5409_v55  ;;  %v5425_v17 = vadd.f32 %v5424_v9, %v13796_v13  ;;  %v6633_v37 = vadd.f32 %v6632_v31, %v13719_v22 }
 0x514   : > { %v6093_v40 = vmul.f32 %v8794_v46, %v13698_v54  ;;  %v5416_v39 = vrot.slane %v5415_v51, 1  ;;  %v5421_v11 = vadd.f32 %v5420_v29, %v5419_v26  ;;  %v6629_v47 = vadd.f32 %v6628_v61, %v6627_v33 }
 0x515   : > { %v5839_v57 = vmax.f32 %v5411_v45, 1e-38  ;;  %v5426_v30 = vrot.slane %v5425_v17, 2  ;;  %v4435_v19 = vmul.f32 %v16995_v14, %v17000_v56  ;;  %v6639_v63 = vadd.f32 %v6638_v1, %v13727_v20 }
 0x516   : > { %v6221_v32 = vmul.f32 %v6093_v40, %v17001_v36  ;;  %v5417_v28 = vadd.f32 %v5416_v39, %v5415_v51  ;;  %v5422_v55 = vrot.slane %v5421_v11, 1  ;;  %v6644_v3 = vrot.slane %v13765_v35, 4 }
 0x517   : > { %8797 = vrcp.f32 %v5839_v57  ;;  %v5427_v22 = vadd.f32 %v5426_v30, %v5425_v17  ;;  %v13817_v31 = vmul.f32 %v4435_v19, %v4435_v19  ;;  %v6624_v54 = vrot.slane %v6623_v23, 1 }
 0x518   : > { %v6634_v26 = vrot.slane %v6633_v37, 2  ;;  %v5840_v33 = vmax.f32 %v5417_v28, 1e-38  ;;  %v5423_v61 = vadd.f32 %v5422_v55, %v5421_v11  ;;  %v13820_v9 = vadd.f32 %v6618_v16, %v13770_v12  ;;  %v17004_v16 = vld [vmem:[#allocation161_spill] sm:$0xff] }
 0x519   : > { %v8796_v15 = vpop.eup %8795  ;;  %v6668_v14 = vrot.slane %v6220_v62, 4  ;;  %v5428_v20 = vrot.slane %v5427_v22, 1  ;;  %v5430_v1 = vrot.slane %v13817_v31, 4  ;;  %v6630_v53 = vrot.slane %v6629_v47, 1 }
 0x51a   : > { %17002 = vst [vmem:[#allocation66_spill] sm:$0xff] %v13820_v9  ;;  %v6094_v51 = vmul.f32 %v8796_v15, %v13708_v38  ;;  %8799 = vrcp.f32 %v5840_v33  ;;  %v5841_v57 = vmax.f32 %v5423_v61, 1e-38  ;;  %v6640_v30 = vrot.slane %v6639_v63, 2 }
 0x51b   : > { %v13825_v29 = vadd.f32 %v6644_v3, %v13765_v35  ;;  %v5429_v46 = vadd.f32 %v5428_v20, %v5427_v22  ;;  %v5431_v11 = vadd.f32 %v5430_v1, %v13817_v31  ;;  %v13828_v45 = vadd.f32 %v6624_v54, %v6623_v23  ;;  %v13849_v22 = vpop.f32.mrb[89].mxu0 }
 0x51c   : > { %v13830_v12 = vadd.f32 %v6634_v26, %v6633_v37  ;;  %v13833_v17 = vmul.f32 %v6094_v51, %v17004_v16  ;;  %8801 = vrcp.f32 %v5841_v57  ;;  %v13835_v40 = vadd.f32 %v6668_v14, %v6220_v62  ;;  %v17009_v16 = vld [vmem:[#allocation82_spill] sm:$0xff] }
 0x51d   : > { %17003 = vst [vmem:[#allocation24_spill] sm:$0xff] %v13828_v45  ;;  %v5842_v38 = vmax.f32 %v5429_v46, 1e-38  ;;  %v5432_v39 = vrot.slane %v5431_v11, 2  ;;  %v17005_v56 = vrot.slane %v13480_v48, 2  ;;  %v13840_v19 = vadd.f32 %v6630_v53, %v6629_v47  ;;  %v17008_v53 = vld [vmem:[#allocation54_spill] sm:$0xff] }
 0x51e   : > { %v6674_v36 = vrot.slane %v6221_v32, 4  ;;  %v17007_v23 = vrot.slane %v13517_v52, 2  ;;  %v6562_v28 = vrot.slane %v13616_v41, 2  ;;  %v13846_v55 = vadd.f32 %v6640_v30, %v6639_v63 }
 0x51f   : > { %v6551_v35 = vadd.f32 %v17005_v56, %v13480_v48  ;;  %17006 = vst [vmem:[#allocation64_spill] sm:$0xff] %v13840_v19  ;;  %8803 = vrcp.f32 %v5842_v38  ;;  %v5433_v3 = vadd.f32 %v5432_v39, %v5431_v11  ;;  %v6650_v54 = vrot.slane %v13789_v5, 4  ;;  %v13872_v56 = vpop.f32.mrb[90].mxu0 }
 0x520   : > { %v6557_v37 = vadd.f32 %v17007_v23, %v13517_v52  ;;  %v6540_v48 = vrot.slane %v13496_v21, 1  ;;  %v6563_v26 = vadd.f32 %v6562_v28, %v13616_v41  ;;  %v6670_v52 = vrot.slane %v13835_v40, 2 }
 0x521   : > { %v6552_v47 = vrot.slane %v6551_v35, 1  ;;  %v8798_v33 = vpop.eup %8797  ;;  %v5434_v61 = vrot.slane %v5433_v3, 1  ;;  %v6546_v63 = vrot.slane %v13502_v50, 1  ;;  %v6568_v15 = vrot.slane %v13649_v60, 2 }
 0x522   : > { %v6675_v14 = vadd.f32 %v6674_v36, %v6221_v32  ;;  %v6095_v20 = vmul.f32 %v8798_v33, %v13754_v44  ;;  %v6558_v1 = vrot.slane %v6557_v37, 1  ;;  %v7215_v51 = vsel %vm7180_vm1, %v13404_v24, %v17008_v53 }
 0x523   : > { %v5435_v57 = vadd.f32 %v5434_v61, %v5433_v3  ;;  %v6564_v30 = vrot.slane %v6563_v26, 1  ;;  %v6569_v41 = vadd.f32 %v6568_v15, %v13649_v60  ;;  %v7216_v46 = vsel %vm7182_vm2, %v13413_v6, %v7215_v51  ;;  %v13878_v3 = vpop.f32.mrb[91].mxu0  ;;  %v17015_v61 = vld [vmem:[#allocation83_spill] sm:$0xff]  ;;  %v17032_v6 = vld [vmem:[#allocation126_spill] sm:$0xff] }
 0x524   : > { %v8800_v11 = vpop.eup %8799  ;;  %v6223_v38 = vmul.f32 %v6095_v20, %v17009_v16  ;;  %v13866_v39 = vadd.f32 %v6540_v48, %v13496_v21  ;;  %v13868_v32 = vadd.f32 %v6552_v47, %v6551_v35  ;;  %v7217_v44 = vsel %vm7184_vm3, %v13472_v34, %v7216_v46  ;;  %v17014_v47 = vld [vmem:[#allocation122_spill] sm:$0xff] }
 0x525   : > { %v6096_v36 = vmul.f32 %v8800_v11, %v13772_v49  ;;  %v5843_v23 = vmax.f32 %v5435_v57, 1e-38  ;;  %v6570_v60 = vrot.slane %v6569_v41, 1  ;;  %v7222_v28 = vsel %vm7180_vm1, %v13410_v10, %v13392_v0  ;;  %v17018_v11 = vld [vmem:[#allocation84_spill] sm:$0xff] }
 0x526   : > { %17010 = vst [vmem:[#allocation135_spill] sm:$0xff] %v13866_v39  ;;  %17011 = vst [vmem:[#allocation187_spill] sm:$0xff] %v13868_v32  ;;  %v8802_v33 = vpop.eup %8801  ;;  %v13881_v21 = vadd.f32 %v6546_v63, %v13502_v50  ;;  %v13883_v35 = vadd.f32 %v6564_v30, %v6563_v26  ;;  %v7218_v48 = vsel %vm7186_vm4, %v13492_v27, %v7217_v44  ;;  %v6656_v57 = vrot.slane %v13792_v58, 4 }
 0x527   : > { %v7223_v49 = vsel %vm7182_vm2, %v17014_v47, %v7222_v28  ;;  %v6224_v15 = vmul.f32 %v6096_v36, %v17015_v61  ;;  %v6097_v20 = vmul.f32 %v8802_v33, %v13783_v4  ;;  %8805 = vrcp.f32 %v5843_v23  ;;  %v17019_v33 = vld [vmem:[#allocation11_spill] sm:$0xff]  ;;  %v13918_v61 = vpop.f32.mrb[92].mxu0 }
 0x528   : > { %17012 = vst [vmem:[#allocation69_spill] sm:$0xff] %v13881_v21  ;;  %17013 = vst [vmem:[#allocation26_spill] sm:$0xff] %v13883_v35  ;;  %v13891_v51 = vadd.f32 %v6558_v1, %v6557_v37  ;;  %v13894_v46 = vadd.f32 %v6570_v60, %v6569_v41  ;;  %v7219_v50 = vsel %vm7188_vm5, %v13866_v39, %v7218_v48  ;;  %v6676_v30 = vrot.slane %v6675_v14, 2  ;;  %v17020_v48 = vld [vmem:[#allocation38_spill] sm:$0xff] }
 0x529   : > { %v7224_v26 = vsel %vm7184_vm3, %v13487_v59, %v7223_v49  ;;  %v8804_v63 = vpop.eup %8803  ;;  %v13901_v16 = vmul.f32 %v6097_v20, %v17018_v11  ;;  %v7220_v4 = vsel %vm7190_vm6, %v13868_v32, %v7219_v50  ;;  %v6680_v1 = vrot.slane %v13833_v17, 4 }
 0x52a   : > { %17016 = vst [vmem:[#allocation28_spill] sm:$0xff] %v13891_v51  ;;  %17017 = vst [vmem:[#allocation29_spill] sm:$0xff] %v13894_v46  ;;  %v7225_v37 = vsel %vm7186_vm4, %v13494_v43, %v7224_v26  ;;  %v6098_v41 = vmul.f32 %v8804_v63, %v13796_v13  ;;  %v7221_v44 = vsel %vm7192_vm7, %v13883_v35, %v7220_v4  ;;  %v6686_v60 = vrot.slane %v6223_v38, 4  ;;  %v17021_v13 = vld [vmem:[#allocation118_spill] sm:$0xff]  ;;  %v17022_v63 = vld [vmem:[#allocation61_spill] sm:$0xff] }
 0x52b   : > { %v7226_v36 = vsel %vm7188_vm5, %v13881_v21, %v7225_v37  ;;  %v6671_v23 = vadd.f32 %v6670_v52, %v13835_v40  ;;  %v4436_v49 = vmul.f32 %v17020_v48, %v17019_v33  ;;  %v13921_v20 = vadd.f32 %v6650_v54, %v13789_v5  ;;  %v13930_v52 = vpop.f32.mrb[93].mxu0  ;;  %v17030_v43 = vld [vmem:[#allocation116_spill] sm:$0xff] }
 0x52c   : > { %v7227_v28 = vsel %vm7190_vm6, %v13891_v51, %v7226_v36  ;;  %v13924_v50 = vmul.f32 %v6098_v41, %v17021_v13  ;;  %v4437_v40 = vmul.f32 %v17020_v48, %v17022_v63  ;;  %v6662_v11 = vrot.slane %v13806_v42, 4  ;;  %v13935_v33 = vpop.f32.mrb[94].mxu0  ;;  %v17024_v13 = vld [vmem:[#allocation190_spill] sm:$0xff] }
 0x52d   : > { %v7228_v26 = vsel %vm7192_vm7, %v13894_v46, %v7227_v28  ;;  %v6677_v4 = vadd.f32 %v6676_v30, %v6675_v14  ;;  %v13933_v36 = vmul.f32 %v4436_v49, %v4436_v49  ;;  %v13938_v5 = vadd.f32 %v6656_v57, %v13792_v58  ;;  %v17023_v28 = vld [vmem:[#allocation13_spill] sm:$0xff]  ;;  %v13945_v63 = vpop.f32.mrb[95].mxu0  ;;  %v17025_v30 = vld [vmem:[#allocation124_spill] sm:$0xff] }
 0x52e   : > { %v7321_v37 = vadd.f32 %v7228_v26, %v7221_v44  ;;  %v6681_v54 = vadd.f32 %v6680_v1, %v13833_v17  ;;  %v13941_v41 = vmul.f32 %v4437_v40, %v4437_v40  ;;  %v4438_v48 = vmul.f32 %v17024_v13, %v17023_v28  ;;  %v13950_v49 = vpop.f32.mrb[96].mxu0 }
 0x52f   : > { %v6672_v62 = vrot.slane %v6671_v23, 1  ;;  %v6687_v46 = vadd.f32 %v6686_v60, %v6223_v38  ;;  %v5436_v14 = vrot.slane %v13933_v36, 4  ;;  %v4439_v44 = vmul.f32 %v17024_v13, %v17025_v30 }
 0x530   : > { %7322 = vadd.xlane.f32.xlu0 %v7321_v37  ;;  %v6692_v17 = vrot.slane %v6224_v15, 4  ;;  %v5442_v57 = vrot.slane %v13941_v41, 4  ;;  %v13954_v1 = vmul.f32 %v4438_v48, %v4438_v48  ;;  %v13957_v40 = vadd.f32 %v6662_v11, %v13806_v42  ;;  %v17027_v11 = vld [vmem:[#allocation86_spill] sm:$0xff] }
 0x531   : > { %v8806_v26 = vpop.eup %8805  ;;  %v6678_v38 = vrot.slane %v6677_v4, 1  ;;  %v5437_v60 = vadd.f32 %v5436_v14, %v13933_v36  ;;  %v13960_v37 = vmul.f32 %v4439_v44, %v4439_v44  ;;  %v6682_v28 = vrot.slane %v6681_v54, 2 }
 0x532   : > { %v6099_v13 = vmul.f32 %v8806_v26, %v13817_v31  ;;  %v5443_v30 = vadd.f32 %v5442_v57, %v13941_v41  ;;  %v5448_v58 = vrot.slane %v13954_v1, 4  ;;  %v13965_v35 = vadd.f32 %v6672_v62, %v6671_v23  ;;  %v17029_v26 = vld [vmem:[#allocation129_spill] sm:$0xff] }
 0x533   : > { %v6688_v48 = vrot.slane %v6687_v46, 2  ;;  %v5438_v51 = vrot.slane %v5437_v60, 2  ;;  %v5454_v32 = vrot.slane %v13960_v37, 4  ;;  %v6693_v42 = vadd.f32 %v6692_v17, %v6224_v15 }
 0x534   : > { %17026 = vst [vmem:[#allocation19_spill] sm:$0xff] %v13965_v35  ;;  %v13969_v21 = vmul.f32 %v6099_v13, %v17027_v11  ;;  %v5444_v14 = vrot.slane %v5443_v30, 2  ;;  %v5449_v44 = vadd.f32 %v5448_v58, %v13954_v1  ;;  %v13972_v39 = vadd.f32 %v6678_v38, %v6677_v4 }
 0x535   : > { %v5439_v31 = vadd.f32 %v5438_v51, %v5437_v60  ;;  %v5455_v57 = vadd.f32 %v5454_v32, %v13960_v37  ;;  %v4440_v62 = vmul.f32 %v17030_v43, %v17029_v26  ;;  %v13977_v23 = vadd.f32 %v6682_v28, %v6681_v54  ;;  %v4242_v60 = vpop.permute.xlu0 %4241 }
 0x536   : > { %17028 = vst [vmem:[#allocation30_spill] sm:$0xff] %v13972_v39  ;;  %v6698_v27 = vrot.slane %v13901_v16, 4  ;;  %v5445_v59 = vadd.f32 %v5444_v14, %v5443_v30  ;;  %v5450_v15 = vrot.slane %v5449_v44, 2  ;;  %v4441_v4 = vmul.f32 %v17030_v43, %v13485_v7  ;;  %v13989_v30 = vpop.f32.mrb[97].mxu0 }
 0x537   : > { %v5440_v17 = vrot.slane %v5439_v31, 1  ;;  %v5456_v13 = vrot.slane %v5455_v57, 2  ;;  %v13980_v11 = vmul.f32 %v4440_v62, %v4440_v62  ;;  %v13984_v58 = vadd.f32 %v6688_v48, %v6687_v46  ;;  %17031 = vst [vmem:[#allocation102_spill] sm:$0xff] %v13989_v30 }
 0x538   : > { %v6694_v51 = vrot.slane %v6693_v42, 2  ;;  %v5446_v32 = vrot.slane %v5445_v59, 1  ;;  %v5451_v38 = vadd.f32 %v5450_v15, %v5449_v44  ;;  %v13987_v34 = vmul.f32 %v4441_v4, %v4441_v4 }
 0x539   : > { %v5441_v26 = vadd.f32 %v5440_v17, %v5439_v31  ;;  %v5457_v54 = vadd.f32 %v5456_v13, %v5455_v57  ;;  %v5460_v28 = vrot.slane %v13980_v11, 4  ;;  %v13992_v14 = vadd.f32 %v6698_v27, %v13901_v16 }
 0x53a   : > { %v5447_v62 = vadd.f32 %v5446_v32, %v5445_v59  ;;  %v5452_v47 = vrot.slane %v5451_v38, 1  ;;  %v4442_v43 = vmul.f32 %v4242_v60, %v13490_v25  ;;  %v5466_v44 = vrot.slane %v13987_v34, 4 }
 0x53b   : > { %v5844_v7 = vmax.f32 %v5441_v26, 1e-38  ;;  %v5458_v46 = vrot.slane %v5457_v54, 1  ;;  %v5461_v48 = vadd.f32 %v5460_v28, %v13980_v11  ;;  %v6704_v31 = vrot.slane %v13924_v50, 4 }
 0x53c   : > { %v5845_v57 = vmax.f32 %v5447_v62, 1e-38  ;;  %v5453_v15 = vadd.f32 %v5452_v47, %v5451_v38  ;;  %v13998_v17 = vmul.f32 %v4442_v43, %v4442_v43  ;;  %v5467_v59 = vadd.f32 %v5466_v44, %v13987_v34  ;;  %v17034_v62 = vld [vmem:[#allocation97_spill] sm:$0xff] }
 0x53d   : > { %8807 = vrcp.f32 %v5844_v7  ;;  %v5459_v13 = vadd.f32 %v5458_v46, %v5457_v54  ;;  %v5462_v27 = vrot.slane %v5461_v48, 2  ;;  %v14001_v16 = vadd.f32 %v6694_v51, %v6693_v42  ;;  %v17033_v54 = vld [vmem:[#allocation62_spill] sm:$0xff]  ;;  %v14009_v7 = vpop.f32.mrb[98].mxu0 }
 0x53e   : > { %8809 = vrcp.f32 %v5845_v57  ;;  %v5846_v25 = vmax.f32 %v5453_v15, 1e-38  ;;  %v5472_v4 = vrot.slane %v13998_v17, 4  ;;  %v5468_v28 = vrot.slane %v5467_v59, 2  ;;  %17035 = vst [vmem:[#allocation71_spill] sm:$0xff] %v14009_v7  ;;  %v17041_v7 = vld [vmem:[#allocation88_spill] sm:$0xff] }
 0x53f   : > { %v5847_v32 = vmax.f32 %v5459_v13, 1e-38  ;;  %v5463_v26 = vadd.f32 %v5462_v27, %v5461_v48  ;;  %v4443_v10 = vmul.f32 %v4242_v60, %v17032_v6  ;;  %v4444_v43 = vmul.f32 %v17034_v62, %v17033_v54  ;;  %v17036_v6 = vld [vmem:[#allocation63_spill] sm:$0xff] }
 0x540   : > { %8811 = vrcp.f32 %v5846_v25  ;;  %v5473_v38 = vadd.f32 %v5472_v4, %v13998_v17  ;;  %v5469_v51 = vadd.f32 %v5468_v28, %v5467_v59  ;;  %v6710_v48 = vrot.slane %v13969_v21, 4  ;;  %v17037_v25 = vld [vmem:[#allocation178_spill] sm:$0xff]  ;;  %v17038_v4 = vld [vmem:[#allocation48_spill] sm:$0xff] }
 0x541   : > { %8813 = vrcp.f32 %v5847_v32  ;;  %v5464_v42 = vrot.slane %v5463_v26, 1  ;;  %v14011_v46 = vmul.f32 %v4443_v10, %v4443_v10  ;;  %v14014_v57 = vmul.f32 %v4444_v43, %v4444_v43 }
 0x542   : > { %v5474_v44 = vrot.slane %v5473_v38, 2  ;;  %v4445_v60 = vmul.f32 %v17034_v62, %v17036_v6  ;;  %v5470_v13 = vrot.slane %v5469_v51, 1  ;;  %v4446_v54 = vmul.f32 %v17038_v4, %v17037_v25 }
 0x543   : > { %v5465_v15 = vadd.f32 %v5464_v42, %v5463_v26  ;;  %v5478_v27 = vrot.slane %v14011_v46, 4  ;;  %v6705_v32 = vadd.f32 %v6704_v31, %v13924_v50  ;;  %v5484_v10 = vrot.slane %v14014_v57, 4 }
 0x544   : > { %v5475_v59 = vadd.f32 %v5474_v44, %v5473_v38  ;;  %v14023_v28 = vmul.f32 %v4445_v60, %v4445_v60  ;;  %v5471_v43 = vadd.f32 %v5470_v13, %v5469_v51  ;;  %v14026_v0 = vmul.f32 %v4446_v54, %v4446_v54  ;;  %v14032_v44 = vpop.f32.mrb[99].mxu0 }
 0x545   : > { %v5848_v47 = vmax.f32 %v5465_v15, 1e-38  ;;  %v5479_v24 = vadd.f32 %v5478_v27, %v14011_v46  ;;  %v6711_v26 = vadd.f32 %v6710_v48, %v13969_v21  ;;  %v5485_v42 = vadd.f32 %v5484_v10, %v14014_v57  ;;  %17039 = vst [vmem:[#allocation140_spill] sm:$0xff] %v14032_v44  ;;  %v17040_v10 = vld [vmem:[#allocation87_spill] sm:$0xff] }
 0x546   : > { %v5476_v62 = vrot.slane %v5475_v59, 1  ;;  %v5490_v6 = vrot.slane %v14023_v28, 4  ;;  %v5849_v50 = vmax.f32 %v5471_v43, 1e-38  ;;  %v5496_v38 = vrot.slane %v14026_v0, 4 }
 0x547   : > { %v8808_v25 = vpop.eup %8807  ;;  %8815 = vrcp.f32 %v5848_v47  ;;  %v5480_v31 = vrot.slane %v5479_v24, 2  ;;  %v5486_v13 = vrot.slane %v5485_v42, 2 }
 0x548   : > { %v8810_v51 = vpop.eup %8809  ;;  %v6100_v60 = vmul.f32 %v8808_v25, %v13933_v36  ;;  %v5477_v15 = vadd.f32 %v5476_v62, %v5475_v59  ;;  %v5491_v21 = vadd.f32 %v5490_v6, %v14023_v28  ;;  %8817 = vrcp.f32 %v5849_v50  ;;  %v14041_v6 = vpop.f32.mrb[100].mxu0 }
 0x549   : > { %v6101_v48 = vmul.f32 %v8810_v51, %v13941_v41  ;;  %v5481_v27 = vadd.f32 %v5480_v31, %v5479_v24  ;;  %v5497_v54 = vadd.f32 %v5496_v38, %v14026_v0  ;;  %v5487_v39 = vadd.f32 %v5486_v13, %v5485_v42  ;;  %v17042_v31 = vld [vmem:[#allocation164_spill] sm:$0xff] }
 0x54a   : > { %v8812_v47 = vpop.eup %8811  ;;  %v6228_v43 = vmul.f32 %v6100_v60, %v17040_v10  ;;  %v5850_v53 = vmax.f32 %v5477_v15, 1e-38  ;;  %v5492_v35 = vrot.slane %v5491_v21, 2  ;;  %v6706_v41 = vrot.slane %v6705_v32, 2 }
 0x54b   : > { %v8814_v44 = vpop.eup %8813  ;;  %v6229_v30 = vmul.f32 %v6101_v48, %v17041_v7  ;;  %v6102_v36 = vmul.f32 %v8812_v47, %v13954_v1  ;;  %v5482_v59 = vrot.slane %v5481_v27, 1  ;;  %v5498_v62 = vrot.slane %v5497_v54, 2  ;;  %v17044_v1 = vld [vmem:[#allocation59_spill] sm:$0xff]  ;;  %v14053_v47 = vpop.f32.mrb[101].mxu0 }
 0x54c   : > { %v6103_v24 = vmul.f32 %v8814_v44, %v13960_v37  ;;  %8819 = vrcp.f32 %v5850_v53  ;;  %v5488_v25 = vrot.slane %v5487_v39, 1  ;;  %v6712_v50 = vrot.slane %v6711_v26, 2  ;;  %17045 = vst [vmem:[#allocation73_spill] sm:$0xff] %v14053_v47 }
 0x54d   : > { %v14045_v38 = vmul.f32 %v6102_v36, %v17042_v31  ;;  %v5483_v42 = vadd.f32 %v5482_v59, %v5481_v27  ;;  %v5493_v51 = vadd.f32 %v5492_v35, %v5491_v21  ;;  %v17043_v7 = vrot.slane %v13992_v14, 2 }
 0x54e   : > { %v14051_v15 = vmul.f32 %v6103_v24, %v17044_v1  ;;  %v5489_v13 = vadd.f32 %v5488_v25, %v5487_v39  ;;  %v5499_v48 = vadd.f32 %v5498_v62, %v5497_v54  ;;  %v6684_v53 = vrot.slane %v13977_v23, 1 }
 0x54f   : > { %v6701_v60 = vadd.f32 %v17043_v7, %v13992_v14  ;;  %v6716_v37 = vrot.slane %v6228_v43, 4  ;;  %v5851_v44 = vmax.f32 %v5483_v42, 1e-38  ;;  %v5494_v10 = vrot.slane %v5493_v51, 1 }
 0x550   : > { %v6690_v36 = vrot.slane %v13984_v58, 1  ;;  %v6707_v27 = vadd.f32 %v6706_v41, %v6705_v32  ;;  %v5852_v35 = vmax.f32 %v5489_v13, 1e-38  ;;  %v5500_v21 = vrot.slane %v5499_v48, 1  ;;  %v17047_v13 = vld [vmem:[#allocation89_spill] sm:$0xff] }
 0x551   : > { %v8816_v59 = vpop.eup %8815  ;;  %v6713_v31 = vadd.f32 %v6712_v50, %v6711_v26  ;;  %v6722_v14 = vrot.slane %v6229_v30, 4  ;;  %8821 = vrcp.f32 %v5851_v44  ;;  %v5495_v24 = vadd.f32 %v5494_v10, %v5493_v51  ;;  %v17048_v50 = vld [vmem:[#allocation185_spill] sm:$0xff] }
 0x552   : > { %v6696_v39 = vrot.slane %v14001_v16, 1  ;;  %v6702_v54 = vrot.slane %v6701_v60, 1  ;;  %v6104_v62 = vmul.f32 %v8816_v59, %v13980_v11  ;;  %8823 = vrcp.f32 %v5852_v35  ;;  %v8818_v25 = vpop.eup %8817 }
 0x553   : > { %v14060_v42 = vadd.f32 %v6684_v53, %v13977_v23  ;;  %v6717_v7 = vadd.f32 %v6716_v37, %v6228_v43  ;;  %v5853_v1 = vmax.f32 %v5495_v24, 1e-38  ;;  %v5501_v32 = vadd.f32 %v5500_v21, %v5499_v48  ;;  %v17052_v53 = vld [vmem:[#allocation12_spill] sm:$0xff] }
 0x554   : > { %v6708_v41 = vrot.slane %v6707_v27, 1  ;;  %v14063_v47 = vmul.f32 %v6104_v62, %v17047_v13  ;;  %v6105_v26 = vmul.f32 %v8818_v25, %v13987_v34  ;;  %v4447_v51 = vmul.f32 %v17038_v4, %v17048_v50  ;;  %v17056_v24 = vld [vmem:[#allocation60_spill] sm:$0xff] }
 0x555   : > { %17046 = vst [vmem:[#allocation133_spill] sm:$0xff] %v14060_v42  ;;  %v6714_v44 = vrot.slane %v6713_v31, 1  ;;  %v6723_v10 = vadd.f32 %v6722_v14, %v6229_v30  ;;  %8825 = vrcp.f32 %v5853_v1  ;;  %v5854_v11 = vmax.f32 %v5501_v32, 1e-38  ;;  %v17058_v62 = vld [vmem:[#allocation136_spill] sm:$0xff]  ;;  %v17059_v1 = vld [vmem:[#allocation198_spill] sm:$0xff] }
 0x556   : > { %v8820_v35 = vpop.eup %8819  ;;  %v14069_v23 = vadd.f32 %v6690_v36, %v13984_v58  ;;  %v14072_v43 = vadd.f32 %v6696_v39, %v14001_v16  ;;  %v14074_v48 = vadd.f32 %v6702_v54, %v6701_v60  ;;  %v14077_v37 = vmul.f32 %v6105_v26, %v17052_v53  ;;  %v17054_v16 = vld [vmem:[#allocation6_spill] sm:$0xff]  ;;  %v17060_v32 = vld [vmem:[#allocation27_spill] sm:$0xff] }
 0x557   : > { %v6718_v34 = vrot.slane %v6717_v7, 2  ;;  %v6728_v21 = vrot.slane %v14045_v38, 4  ;;  %v6106_v4 = vmul.f32 %v8820_v35, %v13998_v17  ;;  %8827 = vrcp.f32 %v5854_v11  ;;  %v14095_v17 = vpop.f32.mrb[102].mxu0 }
 0x558   : > { %17049 = vst [vmem:[#allocation131_spill] sm:$0xff] %v14069_v23  ;;  %17050 = vst [vmem:[#allocation142_spill] sm:$0xff] %v14072_v43  ;;  %v14081_v30 = vadd.f32 %v6708_v41, %v6707_v27  ;;  %v6734_v59 = vrot.slane %v14051_v15, 4  ;;  %v14084_v58 = vmul.f32 %v4447_v51, %v4447_v51  ;;  %v4448_v36 = vmul.f32 %v17054_v16, %v13723_v8  ;;  %v17057_v27 = vld [vmem:[#allocation199_spill] sm:$0xff] }
 0x559   : > { %17051 = vst [vmem:[#allocation46_spill] sm:$0xff] %v14074_v48  ;;  %v14088_v60 = vadd.f32 %v6714_v44, %v6713_v31  ;;  %v6724_v14 = vrot.slane %v6723_v10, 2  ;;  %v14091_v39 = vmul.f32 %v6106_v4, %v17056_v24  ;;  %v4449_v54 = vmul.f32 %v17054_v16, %v13741_v18  ;;  %v14104_v31 = vpop.f32.mrb[103].mxu0  ;;  %v17062_v18 = vld [vmem:[#allocation121_spill] sm:$0xff] }
 0x55a   : > { %17053 = vst [vmem:[#allocation149_spill] sm:$0xff] %v14081_v30  ;;  %v4829_v25 = vmul.f32 %v17058_v62, %v17057_v27  ;;  %v4830_v41 = vmul.f32 %v17060_v32, %v17059_v1  ;;  %v5502_v13 = vrot.slane %v14084_v58, 4  ;;  %v14102_v8 = vmul.f32 %v4448_v36, %v4448_v36  ;;  %17061 = vst [vmem:[#allocation21_spill] sm:$0xff] %v14104_v31  ;;  %v14111_v35 = vpop.f32.mrb[104].mxu0  ;;  %v17066_v32 = vld [vmem:[#allocation168_spill] sm:$0xff] }
 0x55b   : > { %17055 = vst [vmem:[#allocation75_spill] sm:$0xff] %v14088_v60  ;;  %v8822_v26 = vpop.eup %8821  ;;  %v6719_v50 = vadd.f32 %v6718_v34, %v6717_v7  ;;  %v6729_v51 = vadd.f32 %v6728_v21, %v14045_v38  ;;  %v14107_v44 = vmul.f32 %v4449_v54, %v4449_v54  ;;  %v4450_v11 = vmul.f32 %v17062_v18, %v13748_v2  ;;  %v17064_v2 = vld [vmem:[#allocation167_spill] sm:$0xff] }
 0x55c   : > { %17063 = vst [vmem:[#allocation191_spill] sm:$0xff] %v14111_v35  ;;  %v8824_v53 = vpop.eup %8823  ;;  %v6735_v4 = vadd.f32 %v6734_v59, %v14051_v15  ;;  %v6107_v16 = vmul.f32 %v8822_v26, %v14011_v46  ;;  %v5503_v36 = vadd.f32 %v5502_v13, %v14084_v58  ;;  %v5508_v24 = vrot.slane %v14102_v8, 4  ;;  %v17065_v59 = vld [vmem:[#allocation183_spill] sm:$0xff] }
 0x55d   : > { %v14117_v27 = vadd.f32 %v6724_v14, %v6723_v10  ;;  %v6108_v38 = vmul.f32 %v8824_v53, %v14014_v57  ;;  %v5514_v7 = vrot.slane %v14107_v44, 4  ;;  %v14121_v34 = vmul.f32 %v4450_v11, %v4450_v11 }
 0x55e   : > { %v14124_v21 = vmul.f32 %v6107_v16, %v17064_v2  ;;  %v5504_v54 = vrot.slane %v5503_v36, 2  ;;  %v5509_v15 = vadd.f32 %v5508_v24, %v14102_v8  ;;  %v4451_v46 = vmul.f32 %v17062_v18, %v17065_v59 }
 0x55f   : > { %v8826_v62 = vpop.eup %8825  ;;  %v6730_v1 = vrot.slane %v6729_v51, 2  ;;  %v6236_v10 = vmul.f32 %v6108_v38, %v17066_v32  ;;  %v5515_v14 = vadd.f32 %v5514_v7, %v14107_v44  ;;  %v5520_v57 = vrot.slane %v14121_v34, 4 }
 0x560   : > { %v6720_v13 = vrot.slane %v6719_v50, 1  ;;  %v6109_v26 = vmul.f32 %v8826_v62, %v14023_v28  ;;  %v5505_v11 = vadd.f32 %v5504_v54, %v5503_v36  ;;  %v5510_v53 = vrot.slane %v5509_v15, 2 }
 0x561   : > { %v8828_v16 = vpop.eup %8827  ;;  %v6736_v2 = vrot.slane %v6735_v4, 2  ;;  %v5516_v60 = vrot.slane %v5515_v14, 2  ;;  %v5521_v24 = vadd.f32 %v5520_v57, %v14121_v34  ;;  %v14134_v35 = vmul.f32 %v4451_v46, %v4451_v46 }
 0x562   : > { %v6237_v59 = vmul.f32 %v6109_v26, %v4829_v25  ;;  %v6110_v38 = vmul.f32 %v8828_v16, %v14026_v0  ;;  %v5506_v7 = vrot.slane %v5505_v11, 1  ;;  %v14138_v32 = vadd.f32 %v6730_v1, %v6729_v51  ;;  %v17068_v26 = vld [vmem:[#allocation200_spill] sm:$0xff] }
 0x563   : > { %v5511_v48 = vadd.f32 %v5510_v53, %v5509_v15  ;;  %v5517_v30 = vadd.f32 %v5516_v60, %v5515_v14  ;;  %v5522_v28 = vrot.slane %v5521_v24, 2  ;;  %v6764_v36 = vrot.slane %v6236_v10, 4 }
 0x564   : > { %v6238_v54 = vmul.f32 %v6110_v38, %v4830_v41  ;;  %v5507_v62 = vadd.f32 %v5506_v7, %v5505_v11  ;;  %v5526_v23 = vrot.slane %v14134_v35, 4  ;;  %v6770_v43 = vrot.slane %v6237_v59, 4  ;;  %v17069_v11 = vld [vmem:[#allocation141_spill] sm:$0xff] }
 0x565   : > { %v5512_v57 = vrot.slane %v5511_v48, 1  ;;  %v5518_v46 = vrot.slane %v5517_v30, 1  ;;  %v5523_v42 = vadd.f32 %v5522_v28, %v5521_v24  ;;  %v14141_v31 = vadd.f32 %v6720_v13, %v6719_v50  ;;  %v17072_v28 = vld [vmem:[#allocation203_spill] sm:$0xff] }
 0x566   : > { %v6740_v25 = vrot.slane %v14063_v47, 4  ;;  %v5855_v0 = vmax.f32 %v5507_v62, 1e-38  ;;  %v5527_v51 = vadd.f32 %v5526_v23, %v14134_v35  ;;  %v14145_v1 = vadd.f32 %v6736_v2, %v6735_v4  ;;  %v17070_v4 = vld [vmem:[#allocation205_spill] sm:$0xff] }
 0x567   : > { %17067 = vst [vmem:[#allocation22_spill] sm:$0xff] %v14141_v31  ;;  %v5513_v60 = vadd.f32 %v5512_v57, %v5511_v48  ;;  %v5519_v15 = vadd.f32 %v5518_v46, %v5517_v30  ;;  %v5524_v14 = vrot.slane %v5523_v42, 1  ;;  %v14147_v41 = vadd.f32 %v6764_v36, %v6236_v10  ;;  %v17071_v10 = vld [vmem:[#allocation139_spill] sm:$0xff]  ;;  %v17073_v36 = vld [vmem:[#allocation138_spill] sm:$0xff] }
 0x568   : > { %v4831_v53 = vmul.f32 %v17069_v11, %v17068_v26  ;;  %8829 = vrcp.f32 %v5855_v0  ;;  %v5528_v16 = vrot.slane %v5527_v51, 2  ;;  %v14151_v24 = vadd.f32 %v6770_v43, %v6237_v59  ;;  %v17075_v57 = vld [vmem:[#allocation70_spill] sm:$0xff] }
 0x569   : > { %v5856_v50 = vmax.f32 %v5513_v60, 1e-38  ;;  %v5857_v13 = vmax.f32 %v5519_v15, 1e-38  ;;  %v5525_v38 = vadd.f32 %v5524_v14, %v5523_v42  ;;  %v14154_v7 = vadd.f32 %v6740_v25, %v14063_v47  ;;  %v17074_v42 = vld [vmem:[#allocation202_spill] sm:$0xff] }
 0x56a   : > { %v5529_v48 = vadd.f32 %v5528_v16, %v5527_v51  ;;  %v6636_v30 = vrot.slane %v13830_v12, 1  ;;  %v4832_v2 = vmul.f32 %v17071_v10, %v17070_v4  ;;  %v14162_v62 = vmul.f32 %v17073_v36, %v17072_v28  ;;  %v17079_v4 = vld [vmem:[#allocation179_spill] sm:$0xff]  ;;  %v17080_v10 = vld [vmem:[#allocation100_spill] sm:$0xff] }
 0x56b   : > { %8831 = vrcp.f32 %v5856_v50  ;;  %v5858_v43 = vmax.f32 %v5525_v38, 1e-38  ;;  %v6776_v59 = vrot.slane %v6238_v54, 4  ;;  %v14166_v47 = vmul.f32 %v17075_v57, %v17074_v42  ;;  %v17083_v57 = vld [vmem:[#allocation101_spill] sm:$0xff] }
 0x56c   : > { %8833 = vrcp.f32 %v5857_v13  ;;  %v5530_v46 = vrot.slane %v5529_v48, 1  ;;  %v6766_v25 = vrot.slane %v14147_v41, 2  ;;  %v17076_v51 = vrot.slane %v13825_v29, 2 }
 0x56d   : > { %8835 = vrcp.f32 %v5858_v43  ;;  %v14174_v14 = vadd.f32 %v6636_v30, %v13830_v12  ;;  %v6642_v26 = vrot.slane %v13846_v55, 1  ;;  %v17078_v11 = vrot.slane %v13921_v20, 2  ;;  %v17081_v30 = vld [vmem:[#allocation182_spill] sm:$0xff] }
 0x56e   : > { %v6647_v60 = vadd.f32 %v17076_v51, %v13825_v29  ;;  %v5531_v15 = vadd.f32 %v5530_v46, %v5529_v48  ;;  %v6658_v13 = vrot.slane %v13938_v5, 2  ;;  %v6664_v38 = vrot.slane %v13957_v40, 2  ;;  %v14195_v51 = vpop.f32.mrb[105].mxu0 }
 0x56f   : > { %17077 = vst [vmem:[#allocation192_spill] sm:$0xff] %v14174_v14  ;;  %v6653_v16 = vadd.f32 %v17078_v11, %v13921_v20  ;;  %v7229_v28 = vsel %vm7180_vm1, %v17080_v10, %v17079_v4  ;;  %v14185_v29 = vadd.f32 %v6776_v59, %v6238_v54  ;;  %v14198_v54 = vadd.f32 %v6642_v26, %v13846_v55  ;;  %v17088_v26 = vld [vmem:[#allocation132_spill] sm:$0xff]  ;;  %v14216_v23 = vpop.f32.mrb[106].mxu0 }
 0x570   : > { %v6648_v50 = vrot.slane %v6647_v60, 1  ;;  %v5859_v48 = vmax.f32 %v5531_v15, 1e-38  ;;  %v7230_v36 = vsel %vm7182_vm2, %v17081_v30, %v7229_v28  ;;  %v6659_v20 = vadd.f32 %v6658_v13, %v13938_v5  ;;  %v17085_v15 = vld [vmem:[#allocation98_spill] sm:$0xff] }
 0x571   : > { %v6654_v12 = vrot.slane %v6653_v16, 1  ;;  %v6665_v42 = vadd.f32 %v6664_v38, %v13957_v40  ;;  %v7231_v46 = vsel %vm7184_vm3, %v17083_v57, %v7230_v36  ;;  %17084 = vst [vmem:[#allocation175_spill] sm:$0xff] %v14198_v54  ;;  %v17089_v36 = vld [vmem:[#allocation137_spill] sm:$0xff] }
 0x572   : > { %v14189_v43 = vadd.f32 %v6648_v50, %v6647_v60  ;;  %v8830_v11 = vpop.eup %8829  ;;  %8837 = vrcp.f32 %v5859_v48  ;;  %v7232_v59 = vsel %vm7186_vm4, %v13828_v45, %v7231_v46  ;;  %v17086_v60 = vld [vmem:[#allocation172_spill] sm:$0xff]  ;;  %v6660_v40 = vrot.slane %v6659_v20, 1  ;;  %v17090_v46 = vld [vmem:[#allocation58_spill] sm:$0xff] }
 0x573   : > { %v7236_v50 = vsel %vm7180_vm1, %v17086_v60, %v17085_v15  ;;  %v6111_v5 = vmul.f32 %v8830_v11, %v14084_v58  ;;  %v6666_v13 = vrot.slane %v6665_v42, 1  ;;  %v7233_v38 = vsel %vm7188_vm5, %v14174_v14, %v7232_v59 }
 0x574   : > { %17082 = vst [vmem:[#allocation195_spill] sm:$0xff] %v14189_v43  ;;  %v14208_v28 = vadd.f32 %v6654_v12, %v6653_v16  ;;  %v7234_v55 = vsel %vm7190_vm6, %v14189_v43, %v7233_v38  ;;  %v7237_v48 = vsel %vm7182_vm2, %v17088_v26, %v7236_v50  ;;  %v4452_v0 = vmul.f32 %v17090_v46, %v17089_v36  ;;  %v14224_v12 = vpop.f32.mrb[107].mxu0 }
 0x575   : > { %v8832_v18 = vpop.eup %8831  ;;  %v6239_v58 = vmul.f32 %v6111_v5, %v4831_v53  ;;  %v14218_v11 = vadd.f32 %v6660_v40, %v6659_v20  ;;  %v14220_v45 = vadd.f32 %v6666_v13, %v6665_v42  ;;  %v7238_v16 = vsel %vm7184_vm3, %v13820_v9, %v7237_v48  ;;  %v14233_v20 = vpop.f32.mrb[108].mxu0 }
 0x576   : > { %17087 = vst [vmem:[#allocation194_spill] sm:$0xff] %v14208_v28  ;;  %v8834_v59 = vpop.eup %8833  ;;  %v6112_v38 = vmul.f32 %v8832_v18, %v14102_v8  ;;  %v7239_v50 = vsel %vm7186_vm4, %v13840_v19, %v7238_v16  ;;  %v14229_v36 = vmul.f32 %v4452_v0, %v4452_v0  ;;  %v4453_v53 = vmul.f32 %v17090_v46, %v13849_v22 }
 0x577   : > { %17091 = vst [vmem:[#allocation68_spill] sm:$0xff] %v14218_v11  ;;  %17092 = vst [vmem:[#allocation45_spill] sm:$0xff] %v14220_v45  ;;  %v8836_v42 = vpop.eup %8835  ;;  %v6782_v5 = vrot.slane %v6239_v58, 4  ;;  %v6113_v40 = vmul.f32 %v8834_v59, %v14107_v44  ;;  %v7235_v13 = vsel %vm7192_vm7, %v14218_v11, %v7234_v55  ;;  %v7240_v8 = vsel %vm7188_vm5, %v14198_v54, %v7239_v50 }
 0x578   : > { %v6240_v18 = vmul.f32 %v6112_v38, %v4832_v2  ;;  %v6114_v48 = vmul.f32 %v8836_v42, %v14121_v34  ;;  %v7241_v0 = vsel %vm7190_vm6, %v14208_v28, %v7240_v8  ;;  %v5532_v22 = vrot.slane %v14229_v36, 4  ;;  %v14253_v2 = vpop.f32.mrb[109].mxu0 }
 0x579   : > { %v17093_v46 = vrot.slane %v14117_v27, 1  ;;  %v6241_v55 = vmul.f32 %v6113_v40, %v14162_v62  ;;  %v7242_v59 = vsel %vm7192_vm7, %v14220_v45, %v7241_v0  ;;  %v6767_v34 = vadd.f32 %v6766_v25, %v14147_v41  ;;  %v17097_v0 = vld [vmem:[#allocation17_spill] sm:$0xff] }
 0x57a   : > { %v6242_v38 = vmul.f32 %v6114_v48, %v14166_v47  ;;  %v7324_v50 = vadd.f32 %v7242_v59, %v7235_v13  ;;  %v5533_v42 = vadd.f32 %v5532_v22, %v14229_v36  ;;  %v17096_v62 = vrot.slane %v14151_v24, 2  ;;  %v17098_v22 = vld [vmem:[#allocation204_spill] sm:$0xff] }
 0x57b   : > { %v14247_v16 = vadd.f32 %v17093_v46, %v14117_v27  ;;  %v17095_v27 = vrot.slane %v14077_v37, 4  ;;  %v14266_v46 = vmul.f32 %v4453_v53, %v4453_v53  ;;  %v4454_v44 = vmul.f32 %v17097_v0, %v13872_v56  ;;  %v17099_v59 = vld [vmem:[#allocation72_spill] sm:$0xff] }
 0x57c   : > { %v6773_v40 = vadd.f32 %v17096_v62, %v14151_v24  ;;  %v8838_v41 = vpop.eup %8837  ;;  %v6752_v47 = vrot.slane %v14091_v39, 4  ;;  %v6778_v25 = vrot.slane %v14185_v29, 2  ;;  %v6783_v13 = vadd.f32 %v6782_v5, %v6239_v58  ;;  %7325 = vadd.xlane.f32.xlu0 %v7324_v50 }
 0x57d   : > { %17094 = vst [vmem:[#allocation147_spill] sm:$0xff] %v14247_v16  ;;  %v14261_v8 = vadd.f32 %v17095_v27, %v14077_v37  ;;  %v5534_v48 = vrot.slane %v5533_v42, 2  ;;  %v6758_v37 = vrot.slane %v14124_v21, 4  ;;  %v4835_v27 = vmul.f32 %v17099_v59, %v17098_v22 }
 0x57e   : > { %v6115_v24 = vmul.f32 %v8838_v41, %v14134_v35  ;;  %v5538_v53 = vrot.slane %v14266_v46, 4  ;;  %v6768_v62 = vrot.slane %v6767_v34, 1  ;;  %v6788_v45 = vrot.slane %v6240_v18, 4  ;;  %v14287_v41 = vpop.f32.mrb[110].mxu0 }
 0x57f   : > { %v5535_v56 = vadd.f32 %v5534_v48, %v5533_v42  ;;  %v14277_v11 = vmul.f32 %v4454_v44, %v4454_v44  ;;  %v6774_v43 = vrot.slane %v6773_v40, 1  ;;  %v14284_v50 = vadd.f32 %v6778_v25, %v14185_v29 }
 0x580   : > { %v14280_v58 = vmul.f32 %v6115_v24, %v4835_v27  ;;  %v5539_v5 = vadd.f32 %v5538_v53, %v14266_v46  ;;  %v6784_v22 = vrot.slane %v6783_v13, 2  ;;  %v14290_v42 = vadd.f32 %v6752_v47, %v14091_v39  ;;  %v14295_v24 = vpop.f32.mrb[111].mxu0 }
 0x581   : > { %v5536_v59 = vrot.slane %v5535_v56, 1  ;;  %v5544_v35 = vrot.slane %v14277_v11, 4  ;;  %v14293_v44 = vadd.f32 %v6758_v37, %v14124_v21  ;;  %v6794_v48 = vrot.slane %v6241_v55, 4  ;;  %v14300_v54 = vpop.f32.mrb[112].mxu0 }
 0x582   : > { %v5540_v27 = vrot.slane %v5539_v5, 2  ;;  %v14297_v53 = vadd.f32 %v6768_v62, %v6767_v34  ;;  %v6789_v29 = vadd.f32 %v6788_v45, %v6240_v18  ;;  %17101 = vst [vmem:[#allocation153_spill] sm:$0xff] %v14300_v54  ;;  %v14302_v14 = vadd.f32 %v6774_v43, %v6773_v40  ;;  %v17103_v45 = vld [vmem:[#allocation209_spill] sm:$0xff]  ;;  %v17104_v18 = vld [vmem:[#allocation31_spill] sm:$0xff] }
 0x583   : > { %v5537_v25 = vadd.f32 %v5536_v59, %v5535_v56  ;;  %v5545_v28 = vadd.f32 %v5544_v35, %v14277_v11  ;;  %v6800_v19 = vrot.slane %v6242_v38, 4  ;;  %v4455_v21 = vmul.f32 %v17097_v0, %v13878_v3  ;;  %v17105_v59 = vld [vmem:[#allocation207_spill] sm:$0xff]  ;;  %v17106_v35 = vld [vmem:[#allocation145_spill] sm:$0xff] }
 0x584   : > { %17100 = vst [vmem:[#allocation146_spill] sm:$0xff] %v14297_v53  ;;  %17102 = vst [vmem:[#allocation33_spill] sm:$0xff] %v14302_v14  ;;  %v5541_v39 = vadd.f32 %v5540_v27, %v5539_v5  ;;  %v14307_v37 = vadd.f32 %v6784_v22, %v6783_v13  ;;  %v6795_v62 = vadd.f32 %v6794_v48, %v6241_v55  ;;  %v6790_v40 = vrot.slane %v6789_v29, 2  ;;  %v17107_v13 = vld [vmem:[#allocation206_spill] sm:$0xff]  ;;  %v17108_v22 = vld [vmem:[#allocation32_spill] sm:$0xff] }
 0x585   : > { %v5860_v9 = vmax.f32 %v5537_v25, 1e-38  ;;  %v5546_v34 = vrot.slane %v5545_v28, 2  ;;  %v4836_v56 = vmul.f32 %v17104_v18, %v17103_v45  ;;  %v14313_v57 = vmul.f32 %v17106_v35, %v17105_v59  ;;  %v17109_v55 = vld [vmem:[#allocation95_spill] sm:$0xff]  ;;  %v4282_v45 = vpop.permute.xlu1 %4281 }
 0x586   : > { %v5542_v43 = vrot.slane %v5541_v39, 1  ;;  %v14315_v27 = vmul.f32 %v4455_v21, %v4455_v21  ;;  %v14317_v3 = vadd.f32 %v6800_v19, %v6242_v38  ;;  %v14321_v25 = vmul.f32 %v17108_v22, %v17107_v13 }
 0x587   : > { %8839 = vrcp.f32 %v5860_v9  ;;  %v5547_v5 = vadd.f32 %v5546_v34, %v5545_v28  ;;  %v4456_v48 = vmul.f32 %v17109_v55, %v13918_v61  ;;  %v4457_v9 = vmul.f32 %v17109_v55, %v13930_v52  ;;  %v14341_v52 = vpop.f32.mrb[113].mxu0 }
 0x588   : > { %v5543_v0 = vadd.f32 %v5542_v43, %v5541_v39  ;;  %v5550_v35 = vrot.slane %v14315_v27, 4  ;;  %v6796_v28 = vrot.slane %v6795_v62, 2  ;;  %v4458_v39 = vmul.f32 %v4282_v45, %v13935_v33  ;;  %17110 = vst [vmem:[#allocation196_spill] sm:$0xff] %v14341_v52 }
 0x589   : > { %v5548_v59 = vrot.slane %v5547_v5, 1  ;;  %v14329_v38 = vmul.f32 %v4456_v48, %v4456_v48  ;;  %v14332_v21 = vadd.f32 %v6790_v40, %v6789_v29  ;;  %v14335_v43 = vmul.f32 %v4457_v9, %v4457_v9 }
 0x58a   : > { %v5861_v19 = vmax.f32 %v5543_v0, 1e-38  ;;  %v5551_v61 = vadd.f32 %v5550_v35, %v14315_v27  ;;  %v6802_v13 = vrot.slane %v14317_v3, 2  ;;  %v14339_v18 = vmul.f32 %v4458_v39, %v4458_v39 }
 0x58b   : > { %v5549_v34 = vadd.f32 %v5548_v59, %v5547_v5  ;;  %v5556_v22 = vrot.slane %v14329_v38, 4  ;;  %v5562_v33 = vrot.slane %v14335_v43, 4  ;;  %v4459_v29 = vmul.f32 %v4282_v45, %v13945_v63  ;;  %v17111_v59 = vld [vmem:[#allocation180_spill] sm:$0xff] }
 0x58c   : > { %8841 = vrcp.f32 %v5861_v19  ;;  %v5552_v55 = vrot.slane %v5551_v61, 2  ;;  %v14345_v40 = vadd.f32 %v6796_v28, %v6795_v62  ;;  %v5568_v48 = vrot.slane %v14339_v18, 4 }
 0x58d   : > { %v5862_v0 = vmax.f32 %v5549_v34, 1e-38  ;;  %v5557_v5 = vadd.f32 %v5556_v22, %v14329_v38  ;;  %v4460_v35 = vmul.f32 %v17111_v59, %v13950_v49  ;;  %v5563_v19 = vadd.f32 %v5562_v33, %v14335_v43  ;;  %v14354_v34 = vpop.f32.mrb[114].mxu0 }
 0x58e   : > { %v5553_v9 = vadd.f32 %v5552_v55, %v5551_v61  ;;  %v14352_v39 = vmul.f32 %v4459_v29, %v4459_v29  ;;  %17112 = vst [vmem:[#allocation52_spill] sm:$0xff] %v14354_v34  ;;  %v6806_v47 = vrot.slane %v14280_v58, 4  ;;  %v5569_v62 = vadd.f32 %v5568_v48, %v14339_v18 }
 0x58f   : > { %8843 = vrcp.f32 %v5862_v0  ;;  %v5558_v63 = vrot.slane %v5557_v5, 2  ;;  %v14358_v45 = vmul.f32 %v4460_v35, %v4460_v35  ;;  %v5564_v26 = vrot.slane %v5563_v19, 2  ;;  %v17113_v0 = vld [vmem:[#allocation102_spill] sm:$0xff] }
 0x590   : > { %v5554_v22 = vrot.slane %v5553_v9, 1  ;;  %v5574_v49 = vrot.slane %v14352_v39, 4  ;;  %v4461_v61 = vmul.f32 %v17111_v59, %v17113_v0  ;;  %v5570_v29 = vrot.slane %v5569_v62, 2 }
 0x591   : > { %v8840_v28 = vpop.eup %8839  ;;  %v5559_v33 = vadd.f32 %v5558_v63, %v5557_v5  ;;  %v5580_v30 = vrot.slane %v14358_v45, 4  ;;  %v6792_v60 = vrot.slane %v14332_v21, 1  ;;  %v5565_v48 = vadd.f32 %v5564_v26, %v5563_v19 }
 0x592   : > { %v6116_v55 = vmul.f32 %v8840_v28, %v14229_v36  ;;  %v5555_v10 = vadd.f32 %v5554_v22, %v5553_v9  ;;  %v5575_v35 = vadd.f32 %v5574_v49, %v14352_v39  ;;  %v5571_v14 = vadd.f32 %v5570_v29, %v5569_v62 }
 0x593   : > { %v5560_v4 = vrot.slane %v5559_v33, 1  ;;  %v5581_v53 = vadd.f32 %v5580_v30, %v14358_v45  ;;  %v5566_v52 = vrot.slane %v5565_v48, 1  ;;  %v14368_v0 = vmul.f32 %v4461_v61, %v4461_v61 }
 0x594   : > { %v6244_v15 = vmul.f32 %v6116_v55, %v4836_v56  ;;  %v5863_v34 = vmax.f32 %v5555_v10, 1e-38  ;;  %v5576_v59 = vrot.slane %v5575_v35, 2  ;;  %v6807_v5 = vadd.f32 %v6806_v47, %v14280_v58 }
 0x595   : > { %v5561_v63 = vadd.f32 %v5560_v4, %v5559_v33  ;;  %v5572_v28 = vrot.slane %v5571_v14, 1  ;;  %v5582_v54 = vrot.slane %v5581_v53, 2  ;;  %v5567_v9 = vadd.f32 %v5566_v52, %v5565_v48  ;;  %v17116_v48 = vld [vmem:[#allocation71_spill] sm:$0xff] }
 0x596   : > { %v8842_v36 = vpop.eup %8841  ;;  %8845 = vrcp.f32 %v5863_v34  ;;  %v5577_v56 = vadd.f32 %v5576_v59, %v5575_v35  ;;  %v14373_v19 = vadd.f32 %v6802_v13, %v14317_v3  ;;  %v5586_v4 = vrot.slane %v14368_v0, 4  ;;  %v17117_v35 = vld [vmem:[#allocation197_spill] sm:$0xff] }
 0x597   : > { %v6117_v26 = vmul.f32 %v8842_v36, %v14266_v46  ;;  %v5864_v30 = vmax.f32 %v5561_v63, 1e-38  ;;  %v5573_v10 = vadd.f32 %v5572_v28, %v5571_v14  ;;  %v5583_v62 = vadd.f32 %v5582_v54, %v5581_v53  ;;  %v14383_v54 = vpop.f32.mrb[115].mxu0 }
 0x598   : > { %v5865_v61 = vmax.f32 %v5567_v9, 1e-38  ;;  %v5578_v55 = vrot.slane %v5577_v56, 1  ;;  %v6798_v58 = vrot.slane %v14345_v40, 1  ;;  %v6808_v52 = vrot.slane %v6807_v5, 2 }
 0x599   : > { %v8844_v22 = vpop.eup %8843  ;;  %v6245_v49 = vmul.f32 %v6117_v26, %v14313_v57  ;;  %8847 = vrcp.f32 %v5864_v30  ;;  %v5866_v47 = vmax.f32 %v5573_v10, 1e-38  ;;  %v5584_v13 = vrot.slane %v5583_v62, 1  ;;  %v14405_v30 = vpop.f32.mrb[116].mxu0 }
 0x59a   : > { %v6118_v46 = vmul.f32 %v8844_v22, %v14277_v11  ;;  %8849 = vrcp.f32 %v5865_v61  ;;  %v5579_v3 = vadd.f32 %v5578_v55, %v5577_v56  ;;  %v6812_v34 = vrot.slane %v6244_v15, 4  ;;  %v17122_v22 = vld [vmem:[#allocation140_spill] sm:$0xff]  ;;  %v17124_v55 = vld [vmem:[#allocation143_spill] sm:$0xff] }
 0x59b   : > { %8851 = vrcp.f32 %v5866_v47  ;;  %v5587_v57 = vadd.f32 %v5586_v4, %v14368_v0  ;;  %v17114_v53 = vrot.slane %v14284_v50, 1  ;;  %v5585_v29 = vadd.f32 %v5584_v13, %v5583_v62  ;;  %v17123_v61 = vld [vmem:[#allocation208_spill] sm:$0xff] }
 0x59c   : > { %v14380_v14 = vmul.f32 %v6118_v46, %v14321_v25  ;;  %v5867_v11 = vmax.f32 %v5579_v3, 1e-38  ;;  %v4462_v59 = vmul.f32 %v17117_v35, %v17116_v48  ;;  %v17118_v36 = vrot.slane %v14307_v37, 1  ;;  %v17126_v46 = vld [vmem:[#allocation144_spill] sm:$0xff]  ;;  %v14417_v3 = vpop.f32.mrb[117].mxu0 }
 0x59d   : > { %v14388_v33 = vadd.f32 %v17114_v53, %v14284_v50  ;;  %v14398_v63 = vadd.f32 %v6792_v60, %v14332_v21  ;;  %v6804_v28 = vrot.slane %v14373_v19, 1  ;;  %v5588_v26 = vrot.slane %v5587_v57, 2  ;;  %v17128_v53 = vld [vmem:[#allocation74_spill] sm:$0xff]  ;;  %v17129_v48 = vld [vmem:[#allocation104_spill] sm:$0xff] }
 0x59e   : > { %v14395_v25 = vadd.f32 %v17118_v36, %v14307_v37  ;;  %v14401_v9 = vadd.f32 %v6808_v52, %v6807_v5  ;;  %8853 = vrcp.f32 %v5867_v11  ;;  %v5868_v50 = vmax.f32 %v5585_v29, 1e-38  ;;  %v17125_v5 = vld [vmem:[#allocation213_spill] sm:$0xff] }
 0x59f   : > { %17115 = vst [vmem:[#allocation103_spill] sm:$0xff] %v14388_v33  ;;  %17120 = vst [vmem:[#allocation5_spill] sm:$0xff] %v14398_v63  ;;  %v14403_v56 = vmul.f32 %v4462_v59, %v4462_v59  ;;  %v14408_v10 = vadd.f32 %v6798_v58, %v14345_v40  ;;  %v6813_v62 = vadd.f32 %v6812_v34, %v6244_v15  ;;  %v6818_v13 = vrot.slane %v6245_v49, 4 }
 0x5a0   : > { %17119 = vst [vmem:[#allocation34_spill] sm:$0xff] %v14395_v25  ;;  %v5589_v37 = vadd.f32 %v5588_v26, %v5587_v57  ;;  %v4463_v60 = vmul.f32 %v17117_v35, %v17122_v22  ;;  %v8846_v21 = vpop.eup %8845  ;;  %v4839_v4 = vmul.f32 %v17124_v55, %v17123_v61  ;;  %v4840_v47 = vmul.f32 %v17126_v46, %v17125_v5  ;;  %v17127_v57 = vld [vmem:[#allocation211_spill] sm:$0xff]  ;;  %v17130_v61 = vld [vmem:[#allocation210_spill] sm:$0xff]  ;;  %v17131_v55 = vld [vmem:[#allocation76_spill] sm:$0xff] }
 0x5a1   : > { %17121 = vst [vmem:[#allocation114_spill] sm:$0xff] %v14408_v10  ;;  %8855 = vrcp.f32 %v5868_v50  ;;  %v5592_v52 = vrot.slane %v14403_v56, 4  ;;  %v6119_v40 = vmul.f32 %v8846_v21, %v14315_v27  ;;  %v6810_v34 = vrot.slane %v14401_v9, 1  ;;  %v14429_v27 = vpop.f32.mrb[118].mxu0 }
 0x5a2   : > { %v5590_v15 = vrot.slane %v5589_v37, 1  ;;  %v14420_v58 = vmul.f32 %v4463_v60, %v4463_v60  ;;  %v4841_v11 = vmul.f32 %v17128_v53, %v17127_v57  ;;  %v4464_v35 = vmul.f32 %v17129_v48, %v14041_v6 }
 0x5a3   : > { %v5593_v29 = vadd.f32 %v5592_v52, %v14403_v56  ;;  %v8848_v59 = vpop.eup %8847  ;;  %v6814_v36 = vrot.slane %v6813_v62, 2  ;;  %v6247_v26 = vmul.f32 %v6119_v40, %v4839_v4  ;;  %v4842_v5 = vmul.f32 %v17131_v55, %v17130_v61  ;;  %v14444_v61 = vpop.f32.mrb[119].mxu0  ;;  %v17136_v55 = vld [vmem:[#allocation148_spill] sm:$0xff] }
 0x5a4   : > { %v5591_v50 = vadd.f32 %v5590_v15, %v5589_v37  ;;  %v5598_v22 = vrot.slane %v14420_v58, 4  ;;  %v8850_v60 = vpop.eup %8849  ;;  %v6120_v21 = vmul.f32 %v8848_v59, %v14329_v38  ;;  %v14434_v57 = vmul.f32 %v4464_v35, %v4464_v35 }
 0x5a5   : > { %v5594_v46 = vrot.slane %v5593_v29, 2  ;;  %v8852_v52 = vpop.eup %8851  ;;  %v6819_v53 = vadd.f32 %v6818_v13, %v6245_v49  ;;  %v6121_v6 = vmul.f32 %v8850_v60, %v14335_v43  ;;  %v6815_v59 = vadd.f32 %v6814_v36, %v6813_v62 }
 0x5a6   : > { %v5869_v10 = vmax.f32 %v5591_v50, 1e-38  ;;  %v5599_v37 = vadd.f32 %v5598_v22, %v14420_v58  ;;  %v14438_v4 = vmul.f32 %v6120_v21, %v4840_v47  ;;  %v6122_v40 = vmul.f32 %v8852_v52, %v14339_v18  ;;  %v17132_v18 = vld [vmem:[#allocation212_spill] sm:$0xff]  ;;  %v17135_v21 = vld [vmem:[#allocation217_spill] sm:$0xff] }
 0x5a7   : > { %v5595_v15 = vadd.f32 %v5594_v46, %v5593_v29  ;;  %v5604_v38 = vrot.slane %v14434_v57, 4  ;;  %v14442_v25 = vmul.f32 %v6121_v6, %v4841_v11  ;;  %v6824_v43 = vrot.slane %v14380_v14, 4  ;;  %v17133_v29 = vld [vmem:[#allocation77_spill] sm:$0xff] }
 0x5a8   : > { %8857 = vrcp.f32 %v5869_v10  ;;  %v5600_v35 = vrot.slane %v5599_v37, 2  ;;  %v8854_v49 = vpop.eup %8853  ;;  %v14447_v13 = vmul.f32 %v6122_v40, %v4842_v5  ;;  %v6820_v22 = vrot.slane %v6819_v53, 2 }
 0x5a9   : > { %v5596_v50 = vrot.slane %v5595_v15, 1  ;;  %v5605_v47 = vadd.f32 %v5604_v38, %v14434_v57  ;;  %v4843_v60 = vmul.f32 %v17133_v29, %v17132_v18  ;;  %v6123_v62 = vmul.f32 %v8854_v49, %v14352_v39  ;;  %v17138_v49 = vld [vmem:[#allocation215_spill] sm:$0xff] }
 0x5aa   : > { %v5601_v11 = vadd.f32 %v5600_v35, %v5599_v37  ;;  %v14454_v10 = vadd.f32 %v6804_v28, %v14373_v19  ;;  %v4844_v46 = vmul.f32 %v17136_v55, %v17135_v21  ;;  %v6816_v6 = vrot.slane %v6815_v59, 1  ;;  %v17139_v29 = vld [vmem:[#allocation151_spill] sm:$0xff]  ;;  %v17140_v21 = vld [vmem:[#allocation214_spill] sm:$0xff] }
 0x5ab   : > { %v8856_v36 = vpop.eup %8855  ;;  %v5597_v52 = vadd.f32 %v5596_v50, %v5595_v15  ;;  %v5606_v5 = vrot.slane %v5605_v47, 2  ;;  %v6830_v40 = vrot.slane %v6247_v26, 4  ;;  %v14458_v63 = vmul.f32 %v6123_v62, %v4843_v60  ;;  %v17141_v55 = vld [vmem:[#allocation150_spill] sm:$0xff] }
 0x5ac   : > { %17134 = vst [vmem:[#allocation107_spill] sm:$0xff] %v14454_v10  ;;  %v6124_v38 = vmul.f32 %v8856_v36, %v14358_v45  ;;  %v14462_v18 = vadd.f32 %v6810_v34, %v14401_v9  ;;  %v6825_v39 = vadd.f32 %v6824_v43, %v14380_v14  ;;  %v5602_v35 = vrot.slane %v5601_v11, 1  ;;  %v17142_v45 = vld [vmem:[#allocation73_spill] sm:$0xff]  ;;  %v14473_v34 = vpop.f32.mrb[120].mxu0 }
 0x5ad   : > { %v5870_v37 = vmax.f32 %v5597_v52, 1e-38  ;;  %v6821_v19 = vadd.f32 %v6820_v22, %v6819_v53  ;;  %v4845_v15 = vmul.f32 %v17139_v29, %v17138_v49  ;;  %v5607_v50 = vadd.f32 %v5606_v5, %v5605_v47  ;;  %17143 = vst [vmem:[#allocation81_spill] sm:$0xff] %v14473_v34  ;;  %v17145_v22 = vld [vmem:[#allocation110_spill] sm:$0xff]  ;;  %v17146_v5 = vld [vmem:[#allocation21_spill] sm:$0xff] }
 0x5ae   : > { %17137 = vst [vmem:[#allocation152_spill] sm:$0xff] %v14462_v18  ;;  %v14465_v28 = vmul.f32 %v6124_v38, %v4844_v46  ;;  %v4846_v60 = vmul.f32 %v17141_v55, %v17140_v21  ;;  %v5603_v62 = vadd.f32 %v5602_v35, %v5601_v11  ;;  %v4465_v9 = vmul.f32 %v17129_v48, %v17142_v45  ;;  %v17148_v45 = vld [vmem:[#allocation78_spill] sm:$0xff] }
 0x5af   : > { %8859 = vrcp.f32 %v5870_v37  ;;  %v14475_v14 = vadd.f32 %v6816_v6, %v6815_v59  ;;  %v6831_v43 = vadd.f32 %v6830_v40, %v6247_v26  ;;  %v5608_v53 = vrot.slane %v5607_v50, 1 }
 0x5b0   : > { %v4466_v36 = vmul.f32 %v17145_v22, %v14095_v17  ;;  %v6826_v46 = vrot.slane %v6825_v39, 2  ;;  %v5871_v52 = vmax.f32 %v5603_v62, 1e-38  ;;  %v14479_v47 = vmul.f32 %v4465_v9, %v4465_v9  ;;  %v17147_v62 = vld [vmem:[#allocation216_spill] sm:$0xff] }
 0x5b1   : > { %17144 = vst [vmem:[#allocation36_spill] sm:$0xff] %v14475_v14  ;;  %v4467_v38 = vmul.f32 %v17145_v22, %v17146_v5  ;;  %v6822_v37 = vrot.slane %v6821_v19, 1  ;;  %v6836_v48 = vrot.slane %v14438_v4, 4  ;;  %v5609_v35 = vadd.f32 %v5608_v53, %v5607_v50  ;;  %v17149_v22 = vld [vmem:[#allocation221_spill] sm:$0xff] }
 0x5b2   : > { %v8858_v11 = vpop.eup %8857  ;;  %v14484_v49 = vmul.f32 %v4466_v36, %v4466_v36  ;;  %8861 = vrcp.f32 %v5871_v52  ;;  %v5610_v59 = vrot.slane %v14479_v47, 4  ;;  %v6832_v6 = vrot.slane %v6831_v43, 2  ;;  %v17150_v36 = vld [vmem:[#allocation79_spill] sm:$0xff] }
 0x5b3   : > { %v6125_v26 = vmul.f32 %v8858_v11, %v14368_v0  ;;  %v14488_v17 = vmul.f32 %v4467_v38, %v4467_v38  ;;  %v6842_v40 = vrot.slane %v14442_v25, 4  ;;  %v5872_v29 = vmax.f32 %v5609_v35, 1e-38 }
 0x5b4   : > { %v5616_v21 = vrot.slane %v14484_v49, 4  ;;  %v4847_v9 = vmul.f32 %v17148_v45, %v17147_v62  ;;  %v5611_v50 = vadd.f32 %v5610_v59, %v14479_v47  ;;  %v14497_v0 = vadd.f32 %v6836_v48, %v14438_v4 }
 0x5b5   : > { %v6253_v55 = vmul.f32 %v6125_v26, %v4845_v15  ;;  %v5622_v53 = vrot.slane %v14488_v17, 4  ;;  %v4848_v52 = vmul.f32 %v17150_v36, %v17149_v22  ;;  %8863 = vrcp.f32 %v5872_v29 }
 0x5b6   : > { %v5617_v5 = vadd.f32 %v5616_v21, %v14484_v49  ;;  %v14502_v38 = vadd.f32 %v6826_v46, %v6825_v39  ;;  %v6848_v15 = vrot.slane %v14447_v13, 4  ;;  %v5612_v11 = vrot.slane %v5611_v50, 2 }
 0x5b7   : > { %v5623_v35 = vadd.f32 %v5622_v53, %v14488_v17  ;;  %v14506_v26 = vadd.f32 %v6822_v37, %v6821_v19  ;;  %v14508_v59 = vadd.f32 %v6832_v6, %v6831_v43  ;;  %v14511_v4 = vadd.f32 %v6842_v40, %v14442_v25 }
 0x5b8   : > { %v5618_v48 = vrot.slane %v5617_v5, 2  ;;  %v6860_v29 = vrot.slane %v14465_v28, 4  ;;  %v5613_v45 = vadd.f32 %v5612_v11, %v5611_v50  ;;  %v6754_v39 = vrot.slane %v14290_v42, 2 }
 0x5b9   : > { %17151 = vst [vmem:[#allocation37_spill] sm:$0xff] %v14506_v26  ;;  %v8860_v62 = vpop.eup %8859  ;;  %v5624_v21 = vrot.slane %v5623_v35, 2  ;;  %v17152_v19 = vrot.slane %v14154_v7, 2  ;;  %v14521_v25 = vadd.f32 %v6848_v15, %v14447_v13  ;;  %v6732_v40 = vrot.slane %v14138_v32, 1 }
 0x5ba   : > { %v6126_v22 = vmul.f32 %v8860_v62, %v14403_v56  ;;  %v5619_v53 = vadd.f32 %v5618_v48, %v5617_v5  ;;  %v5614_v37 = vrot.slane %v5613_v45, 1  ;;  %v6738_v11 = vrot.slane %v14145_v1, 1 }
 0x5bb   : > { %v6743_v43 = vadd.f32 %v17152_v19, %v14154_v7  ;;  %v5625_v6 = vadd.f32 %v5624_v21, %v5623_v35  ;;  %v6755_v46 = vadd.f32 %v6754_v39, %v14290_v42  ;;  %v6861_v56 = vadd.f32 %v6860_v29, %v14465_v28 }
 0x5bc   : > { %v6254_v50 = vmul.f32 %v6126_v22, %v4846_v60  ;;  %v5620_v36 = vrot.slane %v5619_v53, 1  ;;  %v8862_v34 = vpop.eup %8861  ;;  %v6866_v5 = vrot.slane %v6253_v55, 4  ;;  %v5615_v48 = vadd.f32 %v5614_v37, %v5613_v45 }
 0x5bd   : > { %v5626_v62 = vrot.slane %v5625_v6, 1  ;;  %v6127_v7 = vmul.f32 %v8862_v34, %v14420_v58  ;;  %v6744_v15 = vrot.slane %v6743_v43, 1  ;;  %v17153_v35 = vrot.slane %v14261_v8, 2 }
 0x5be   : > { %v5621_v13 = vadd.f32 %v5620_v36, %v5619_v53  ;;  %v5873_v60 = vmax.f32 %v5615_v48, 1e-38  ;;  %v14532_v19 = vadd.f32 %v6732_v40, %v14138_v32  ;;  %v6760_v42 = vrot.slane %v14293_v44, 2  ;;  %v14542_v40 = vpop.f32.mrb[121].mxu0  ;;  %v17160_v48 = vld [vmem:[#allocation142_spill] sm:$0xff] }
 0x5bf   : > { %v6749_v21 = vadd.f32 %v17153_v35, %v14261_v8  ;;  %v5627_v22 = vadd.f32 %v5626_v62, %v5625_v6  ;;  %v8864_v39 = vpop.eup %8863  ;;  %v6255_v28 = vmul.f32 %v6127_v7, %v4847_v9  ;;  %v14536_v45 = vadd.f32 %v6738_v11, %v14145_v1  ;;  %v17157_v1 = vld [vmem:[#allocation19_spill] sm:$0xff]  ;;  %v17158_v11 = vld [vmem:[#allocation133_spill] sm:$0xff]  ;;  %v17161_v62 = vld [vmem:[#allocation30_spill] sm:$0xff] }
 0x5c0   : > { %17154 = vst [vmem:[#allocation115_spill] sm:$0xff] %v14532_v19  ;;  %v5874_v29 = vmax.f32 %v5621_v13, 1e-38  ;;  %v6756_v58 = vrot.slane %v6755_v46, 1  ;;  %v6867_v34 = vadd.f32 %v6866_v5, %v6253_v55  ;;  %v6128_v53 = vmul.f32 %v8864_v39, %v14434_v57  ;;  %v17162_v7 = vld [vmem:[#allocation131_spill] sm:$0xff]  ;;  %v17164_v35 = vld [vmem:[#allocation46_spill] sm:$0xff] }
 0x5c1   : > { %17155 = vst [vmem:[#allocation41_spill] sm:$0xff] %v14536_v45  ;;  %8865 = vrcp.f32 %v5873_v60  ;;  %v5875_v37 = vmax.f32 %v5627_v22, 1e-38  ;;  %v14539_v8 = vadd.f32 %v6744_v15, %v6743_v43  ;;  %v6750_v6 = vrot.slane %v6749_v21, 1  ;;  %v17163_v15 = vld [vmem:[#allocation149_spill] sm:$0xff]  ;;  %v17165_v22 = vld [vmem:[#allocation191_spill] sm:$0xff] }
 0x5c2   : > { %8867 = vrcp.f32 %v5874_v29  ;;  %v6761_v32 = vadd.f32 %v6760_v42, %v14293_v44  ;;  %v6872_v36 = vrot.slane %v6254_v50, 4  ;;  %v14544_v9 = vmul.f32 %v6128_v53, %v4848_v52  ;;  %v17166_v42 = vld [vmem:[#allocation42_spill] sm:$0xff]  ;;  %v17167_v29 = vld [vmem:[#allocation219_spill] sm:$0xff] }
 0x5c3   : > { %17156 = vst [vmem:[#allocation161_spill] sm:$0xff] %v14539_v8  ;;  %8869 = vrcp.f32 %v5875_v37  ;;  %v7243_v55 = vsel %vm7180_vm1, %v17158_v11, %v17157_v1  ;;  %v14549_v5 = vadd.f32 %v6756_v58, %v6755_v46  ;;  %v7250_v44 = vsel %vm7180_vm1, %v17162_v7, %v17161_v62  ;;  %v17168_v58 = vld [vmem:[#allocation80_spill] sm:$0xff]  ;;  %v17172_v11 = vld [vmem:[#allocation218_spill] sm:$0xff]  ;;  %v17173_v62 = vld [vmem:[#allocation35_spill] sm:$0xff] }
 0x5c4   : > { %v6762_v57 = vrot.slane %v6761_v32, 1  ;;  %v7244_v43 = vsel %vm7182_vm2, %v17160_v48, %v7243_v55  ;;  %v6878_v13 = vrot.slane %v6255_v28, 4  ;;  %v7251_v60 = vsel %vm7182_vm2, %v17164_v35, %v7250_v44  ;;  %v14574_v35 = vpop.f32.mrb[122].mxu0 }
 0x5c5   : > { %17159 = vst [vmem:[#allocation82_spill] sm:$0xff] %v14549_v5  ;;  %v7245_v52 = vsel %vm7184_vm3, %v17163_v15, %v7244_v43  ;;  %v4468_v39 = vmul.f32 %v17166_v42, %v17165_v22  ;;  %v6862_v46 = vrot.slane %v6861_v56, 2  ;;  %v4849_v53 = vmul.f32 %v17168_v58, %v17167_v29  ;;  %v17171_v15 = vld [vmem:[#allocation75_spill] sm:$0xff] }
 0x5c6   : > { %v14564_v37 = vadd.f32 %v6750_v6, %v6749_v21  ;;  %v7246_v55 = vsel %vm7186_vm4, %v14141_v31, %v7245_v52  ;;  %v6868_v48 = vrot.slane %v6867_v34, 2  ;;  %v14568_v7 = vadd.f32 %v6762_v57, %v6761_v32  ;;  %v14582_v32 = vpop.f32.mrb[123].mxu0 }
 0x5c7   : > { %v7247_v43 = vsel %vm7188_vm5, %v14532_v19, %v7246_v55  ;;  %v7252_v44 = vsel %vm7184_vm3, %v17171_v15, %v7251_v60  ;;  %v6873_v22 = vadd.f32 %v6872_v36, %v6254_v50  ;;  %v4850_v29 = vmul.f32 %v17173_v62, %v17172_v11  ;;  %v14590_v50 = vpop.f32.mrb[124].mxu0  ;;  %v17174_v11 = vld [vmem:[#allocation220_spill] sm:$0xff]  ;;  %v17175_v62 = vld [vmem:[#allocation157_spill] sm:$0xff] }
 0x5c8   : > { %17169 = vst [vmem:[#allocation83_spill] sm:$0xff] %v14564_v37  ;;  %17170 = vst [vmem:[#allocation84_spill] sm:$0xff] %v14568_v7  ;;  %v7248_v21 = vsel %vm7190_vm6, %v14539_v8, %v7247_v43  ;;  %v7253_v6 = vsel %vm7186_vm4, %v14247_v16, %v7252_v44  ;;  %v6879_v57 = vadd.f32 %v6878_v13, %v6255_v28  ;;  %v14598_v13 = vpop.f32.mrb[125].mxu0  ;;  %v6884_v8 = vrot.slane %v14544_v9, 4 }
 0x5c9   : > { %v7249_v52 = vsel %vm7192_vm7, %v14549_v5, %v7248_v21  ;;  %v7254_v60 = vsel %vm7188_vm5, %v14536_v45, %v7253_v6  ;;  %v14588_v58 = vmul.f32 %v4468_v39, %v4468_v39  ;;  %v6863_v36 = vadd.f32 %v6862_v46, %v6861_v56  ;;  %v17176_v56 = vld [vmem:[#allocation23_spill] sm:$0xff] }
 0x5ca   : > { %v4851_v55 = vmul.f32 %v17175_v62, %v17174_v11  ;;  %v7255_v43 = vsel %vm7190_vm6, %v14564_v37, %v7254_v60  ;;  %v4469_v28 = vmul.f32 %v17166_v42, %v14195_v51  ;;  %v6869_v21 = vadd.f32 %v6868_v48, %v6867_v34 }
 0x5cb   : > { %v8866_v44 = vpop.eup %8865  ;;  %v7256_v39 = vsel %vm7192_vm7, %v14568_v7, %v7255_v43  ;;  %v5628_v6 = vrot.slane %v14588_v58, 4  ;;  %v4470_v46 = vmul.f32 %v17176_v56, %v14216_v23  ;;  %v6874_v11 = vrot.slane %v6873_v22, 2 }
 0x5cc   : > { %v8868_v5 = vpop.eup %8867  ;;  %v6129_v62 = vmul.f32 %v8866_v44, %v14479_v47  ;;  %v7327_v60 = vadd.f32 %v7256_v39, %v7249_v52  ;;  %v14606_v37 = vmul.f32 %v4469_v28, %v4469_v28  ;;  %v6880_v42 = vrot.slane %v6879_v57, 2  ;;  %v14618_v39 = vpop.f32.mrb[126].mxu0 }
 0x5cd   : > { %v8870_v51 = vpop.eup %8869  ;;  %v6130_v34 = vmul.f32 %v8868_v5, %v14484_v49  ;;  %v5629_v48 = vadd.f32 %v5628_v6, %v14588_v58  ;;  %v14613_v45 = vmul.f32 %v4470_v46, %v4470_v46  ;;  %v6854_v47 = vrot.slane %v14458_v63, 4  ;;  %17177 = vst [vmem:[#allocation11_spill] sm:$0xff] %v14618_v39  ;;  %v14624_v6 = vpop.f32.mrb[127].mxu0  ;;  %v17194_v39 = vld [vmem:[#allocation156_spill] sm:$0xff] }
 0x5ce   : > { %v6257_v43 = vmul.f32 %v6129_v62, %v4849_v53  ;;  %v6131_v7 = vmul.f32 %v8870_v51, %v14488_v17  ;;  %7328 = vadd.xlane.f32.xlu1 %v7327_v60  ;;  %v5634_v23 = vrot.slane %v14606_v37, 4  ;;  %v4471_v44 = vmul.f32 %v17176_v56, %v14224_v12  ;;  %17178 = vst [vmem:[#allocation38_spill] sm:$0xff] %v14624_v6 }
 0x5cf   : > { %v6258_v52 = vmul.f32 %v6130_v34, %v4850_v29  ;;  %v5630_v28 = vrot.slane %v5629_v48, 2  ;;  %v6875_v49 = vadd.f32 %v6874_v11, %v6873_v22  ;;  %v5640_v17 = vrot.slane %v14613_v45, 4  ;;  %v17179_v11 = vld [vmem:[#allocation117_spill] sm:$0xff] }
 0x5d0   : > { %v14620_v5 = vmul.f32 %v6131_v7, %v4851_v55  ;;  %v5635_v53 = vadd.f32 %v5634_v23, %v14606_v37  ;;  %v6864_v46 = vrot.slane %v6863_v36, 1  ;;  %v6885_v62 = vadd.f32 %v6884_v8, %v14544_v9 }
 0x5d1   : > { %v5631_v60 = vadd.f32 %v5630_v28, %v5629_v48  ;;  %v14627_v29 = vmul.f32 %v4471_v44, %v4471_v44  ;;  %v6870_v51 = vrot.slane %v6869_v21, 1  ;;  %v6881_v34 = vadd.f32 %v6880_v42, %v6879_v57 }
 0x5d2   : > { %v5636_v12 = vrot.slane %v5635_v53, 2  ;;  %v5641_v56 = vadd.f32 %v5640_v17, %v14613_v45  ;;  %v4472_v23 = vmul.f32 %v17179_v11, %v14233_v20  ;;  %v14635_v19 = vadd.f32 %v6854_v47, %v14458_v63  ;;  %v17183_v47 = vld [vmem:[#allocation225_spill] sm:$0xff] }
 0x5d3   : > { %v5632_v22 = vrot.slane %v5631_v60, 1  ;;  %v5646_v55 = vrot.slane %v14627_v29, 4  ;;  %v6876_v8 = vrot.slane %v6875_v49, 1  ;;  %v14637_v28 = vadd.f32 %v6864_v46, %v6863_v36 }
 0x5d4   : > { %v5637_v9 = vadd.f32 %v5636_v12, %v5635_v53  ;;  %v5642_v48 = vrot.slane %v5641_v56, 2  ;;  %v6886_v57 = vrot.slane %v6885_v62, 2  ;;  %v14640_v17 = vadd.f32 %v6870_v51, %v6869_v21  ;;  %v17184_v53 = vld [vmem:[#allocation155_spill] sm:$0xff] }
 0x5d5   : > { %17180 = vst [vmem:[#allocation118_spill] sm:$0xff] %v14637_v28  ;;  %v5633_v42 = vadd.f32 %v5632_v22, %v5631_v60  ;;  %v5647_v44 = vadd.f32 %v5646_v55, %v14627_v29  ;;  %v6882_v7 = vrot.slane %v6881_v34, 1  ;;  %v6890_v15 = vrot.slane %v6257_v43, 4  ;;  %v17186_v55 = vld [vmem:[#allocation154_spill] sm:$0xff] }
 0x5d6   : > { %17181 = vst [vmem:[#allocation61_spill] sm:$0xff] %v14640_v17  ;;  %v5638_v16 = vrot.slane %v5637_v9, 1  ;;  %v5643_v31 = vadd.f32 %v5642_v48, %v5641_v56  ;;  %v14642_v6 = vmul.f32 %v4472_v23, %v4472_v23  ;;  %v14644_v63 = vadd.f32 %v6876_v8, %v6875_v49  ;;  %v17185_v56 = vld [vmem:[#allocation223_spill] sm:$0xff] }
 0x5d7   : > { %v5876_v1 = vmax.f32 %v5633_v42, 1e-38  ;;  %v5648_v20 = vrot.slane %v5647_v44, 2  ;;  %v4852_v36 = vmul.f32 %v17184_v53, %v17183_v47  ;;  %v14648_v60 = vadd.f32 %v6886_v57, %v6885_v62  ;;  %v4322_v57 = vpop.permute.xlu0 %4321  ;;  %v17189_v47 = vld [vmem:[#allocation39_spill] sm:$0xff] }
 0x5d8   : > { %17182 = vst [vmem:[#allocation13_spill] sm:$0xff] %v14644_v63  ;;  %v5639_v46 = vadd.f32 %v5638_v16, %v5637_v9  ;;  %v5644_v12 = vrot.slane %v5643_v31, 1  ;;  %v5652_v51 = vrot.slane %v14642_v6, 4  ;;  %v6896_v22 = vrot.slane %v6258_v52, 4 }
 0x5d9   : > { %8871 = vrcp.f32 %v5876_v1  ;;  %v5649_v21 = vadd.f32 %v5648_v20, %v5647_v44  ;;  %v14653_v48 = vmul.f32 %v17186_v55, %v17185_v56  ;;  %v14655_v49 = vadd.f32 %v6882_v7, %v6881_v34  ;;  %v17188_v20 = vld [vmem:[#allocation222_spill] sm:$0xff] }
 0x5da   : > { %v5877_v23 = vmax.f32 %v5639_v46, 1e-38  ;;  %v5645_v42 = vadd.f32 %v5644_v12, %v5643_v31  ;;  %v6891_v8 = vadd.f32 %v6890_v15, %v6257_v43  ;;  %v5653_v16 = vadd.f32 %v5652_v51, %v14642_v6 }
 0x5db   : > { %17187 = vst [vmem:[#allocation190_spill] sm:$0xff] %v14655_v49  ;;  %v5650_v17 = vrot.slane %v5649_v21, 1  ;;  %v6902_v62 = vrot.slane %v14620_v5, 4  ;;  %v4473_v9 = vmul.f32 %v17179_v11, %v14253_v2  ;;  %v4854_v53 = vmul.f32 %v17189_v47, %v17188_v20 }
 0x5dc   : > { %8873 = vrcp.f32 %v5877_v23  ;;  %v5878_v1 = vmax.f32 %v5645_v42, 1e-38  ;;  %v5654_v34 = vrot.slane %v5653_v16, 2  ;;  %v6897_v7 = vadd.f32 %v6896_v22, %v6258_v52  ;;  %v17190_v23 = vld [vmem:[#allocation153_spill] sm:$0xff]  ;;  %v17192_v42 = vld [vmem:[#allocation196_spill] sm:$0xff] }
 0x5dd   : > { %v5651_v31 = vadd.f32 %v5650_v17, %v5649_v21  ;;  %v14664_v15 = vmul.f32 %v4473_v9, %v4473_v9  ;;  %v4474_v43 = vmul.f32 %v4322_v57, %v14287_v41  ;;  %v6892_v46 = vrot.slane %v6891_v8, 2  ;;  %v17191_v17 = vld [vmem:[#allocation99_spill] sm:$0xff] }
 0x5de   : > { %8875 = vrcp.f32 %v5878_v1  ;;  %v5655_v51 = vadd.f32 %v5654_v34, %v5653_v16  ;;  %v4475_v56 = vmul.f32 %v4322_v57, %v14295_v24  ;;  %v6903_v2 = vadd.f32 %v6902_v62, %v14620_v5 }
 0x5df   : > { %v5879_v12 = vmax.f32 %v5651_v31, 1e-38  ;;  %v5658_v11 = vrot.slane %v14664_v15, 4  ;;  %v14670_v55 = vmul.f32 %v4474_v43, %v4474_v43  ;;  %v4476_v21 = vmul.f32 %v17191_v17, %v17190_v23 }
 0x5e0   : > { %v5656_v52 = vrot.slane %v5655_v51, 1  ;;  %v14674_v22 = vmul.f32 %v4475_v56, %v4475_v56  ;;  %v4477_v41 = vmul.f32 %v17191_v17, %v17192_v42  ;;  %v6898_v1 = vrot.slane %v6897_v7, 2 }
 0x5e1   : > { %8877 = vrcp.f32 %v5879_v12  ;;  %v5659_v16 = vadd.f32 %v5658_v11, %v14664_v15  ;;  %v5664_v24 = vrot.slane %v14670_v55, 4  ;;  %v14680_v5 = vmul.f32 %v4476_v21, %v4476_v21 }
 0x5e2   : > { %v6893_v9 = vadd.f32 %v6892_v46, %v6891_v8  ;;  %v5657_v57 = vadd.f32 %v5656_v52, %v5655_v51  ;;  %v5670_v20 = vrot.slane %v14674_v22, 4  ;;  %v14683_v47 = vmul.f32 %v4477_v41, %v4477_v41 }
 0x5e3   : > { %v8872_v62 = vpop.eup %8871  ;;  %v5660_v34 = vrot.slane %v5659_v16, 2  ;;  %v5665_v43 = vadd.f32 %v5664_v24, %v14670_v55  ;;  %v5676_v12 = vrot.slane %v14680_v5, 4  ;;  %v6904_v56 = vrot.slane %v6903_v2, 2 }
 0x5e4   : > { %v6132_v31 = vmul.f32 %v8872_v62, %v14588_v58  ;;  %v5880_v11 = vmax.f32 %v5657_v57, 1e-38  ;;  %v5671_v23 = vadd.f32 %v5670_v20, %v14674_v22  ;;  %v5682_v17 = vrot.slane %v14683_v47, 4 }
 0x5e5   : > { %v5661_v46 = vadd.f32 %v5660_v34, %v5659_v16  ;;  %v5666_v51 = vrot.slane %v5665_v43, 2  ;;  %v5677_v52 = vadd.f32 %v5676_v12, %v14680_v5  ;;  %v6899_v62 = vadd.f32 %v6898_v1, %v6897_v7 }
 0x5e6   : > { %v8874_v21 = vpop.eup %8873  ;;  %v6260_v8 = vmul.f32 %v6132_v31, %v4852_v36  ;;  %8879 = vrcp.f32 %v5880_v11  ;;  %v5672_v58 = vrot.slane %v5671_v23, 2  ;;  %v5683_v41 = vadd.f32 %v5682_v17, %v14683_v47  ;;  %v17193_v17 = vld [vmem:[#allocation224_spill] sm:$0xff] }
 0x5e7   : > { %v6133_v42 = vmul.f32 %v8874_v21, %v14606_v37  ;;  %v5662_v44 = vrot.slane %v5661_v46, 1  ;;  %v5667_v57 = vadd.f32 %v5666_v51, %v5665_v43  ;;  %v5678_v49 = vrot.slane %v5677_v52, 2 }
 0x5e8   : > { %v8876_v24 = vpop.eup %8875  ;;  %v5673_v36 = vadd.f32 %v5672_v58, %v5671_v23  ;;  %v5684_v16 = vrot.slane %v5683_v41, 2  ;;  %v6908_v31 = vrot.slane %v6260_v8, 4  ;;  %v6905_v11 = vadd.f32 %v6904_v56, %v6903_v2  ;;  %v17195_v56 = vld [vmem:[#allocation52_spill] sm:$0xff] }
 0x5e9   : > { %v6261_v20 = vmul.f32 %v6133_v42, %v14653_v48  ;;  %v6134_v63 = vmul.f32 %v8876_v24, %v14613_v45  ;;  %v5663_v34 = vadd.f32 %v5662_v44, %v5661_v46  ;;  %v5668_v12 = vrot.slane %v5667_v57, 1 }
 0x5ea   : > { %v5679_v28 = vadd.f32 %v5678_v49, %v5677_v52  ;;  %v4855_v7 = vmul.f32 %v17194_v39, %v17193_v17  ;;  %v5674_v1 = vrot.slane %v5673_v36, 1  ;;  %v5685_v42 = vadd.f32 %v5684_v16, %v5683_v41  ;;  %v17196_v39 = vld [vmem:[#allocation25_spill] sm:$0xff] }
 0x5eb   : > { %v8878_v37 = vpop.eup %8877  ;;  %v14695_v21 = vmul.f32 %v6134_v63, %v4854_v53  ;;  %v5881_v51 = vmax.f32 %v5663_v34, 1e-38  ;;  %v5669_v48 = vadd.f32 %v5668_v12, %v5667_v57  ;;  %v6894_v45 = vrot.slane %v6893_v9, 1  ;;  %v17201_v34 = vld [vmem:[#allocation43_spill] sm:$0xff] }
 0x5ec   : > { %v6135_v43 = vmul.f32 %v8878_v37, %v14627_v29  ;;  %v6900_v23 = vrot.slane %v6899_v62, 1  ;;  %v5675_v58 = vadd.f32 %v5674_v1, %v5673_v36  ;;  %v5680_v24 = vrot.slane %v5679_v28, 1 }
 0x5ed   : > { %v6909_v44 = vadd.f32 %v6908_v31, %v6260_v8  ;;  %8881 = vrcp.f32 %v5881_v51  ;;  %v5882_v49 = vmax.f32 %v5669_v48, 1e-38  ;;  %v6906_v63 = vrot.slane %v6905_v11, 1  ;;  %v17200_v31 = vld [vmem:[#allocation229_spill] sm:$0xff]  ;;  %v17205_v51 = vld [vmem:[#allocation47_spill] sm:$0xff] }
 0x5ee   : > { %v14700_v46 = vmul.f32 %v6135_v43, %v4855_v7  ;;  %v5883_v53 = vmax.f32 %v5675_v58, 1e-38  ;;  %v5681_v2 = vadd.f32 %v5680_v24, %v5679_v28  ;;  %v4478_v52 = vmul.f32 %v17196_v39, %v17195_v56 }
 0x5ef   : > { %v17197_v29 = vrot.slane %v14648_v60, 1  ;;  %v6914_v41 = vrot.slane %v6261_v20, 4  ;;  %8883 = vrcp.f32 %v5882_v49  ;;  %v5686_v36 = vrot.slane %v5685_v42, 1  ;;  %v17207_v49 = vld [vmem:[#allocation49_spill] sm:$0xff] }
 0x5f0   : > { %v8880_v16 = vpop.eup %8879  ;;  %v14709_v8 = vadd.f32 %v6894_v45, %v6893_v9  ;;  %v4856_v12 = vmul.f32 %v17201_v34, %v17200_v31  ;;  %8885 = vrcp.f32 %v5883_v53  ;;  %v5884_v37 = vmax.f32 %v5681_v2, 1e-38  ;;  %v17210_v2 = vld [vmem:[#allocation56_spill] sm:$0xff] }
 0x5f1   : > { %v14707_v57 = vadd.f32 %v17197_v29, %v14648_v60  ;;  %v14713_v28 = vadd.f32 %v6900_v23, %v6899_v62  ;;  %v6910_v17 = vrot.slane %v6909_v44, 2  ;;  %v6136_v7 = vmul.f32 %v8880_v16, %v14642_v6  ;;  %v17204_v60 = vld [vmem:[#allocation227_spill] sm:$0xff]  ;;  %v17206_v23 = vld [vmem:[#allocation226_spill] sm:$0xff]  ;;  %v17208_v6 = vld [vmem:[#allocation228_spill] sm:$0xff] }
 0x5f2   : > { %17199 = vst [vmem:[#allocation86_spill] sm:$0xff] %v14709_v8  ;;  %v5687_v1 = vadd.f32 %v5686_v36, %v5685_v42  ;;  %v14716_v43 = vadd.f32 %v6906_v63, %v6905_v11  ;;  %v4857_v48 = vmul.f32 %v17205_v51, %v17204_v60  ;;  %8887 = vrcp.f32 %v5884_v37  ;;  %v17209_v42 = vld [vmem:[#allocation159_spill] sm:$0xff] }
 0x5f3   : > { %17198 = vst [vmem:[#allocation124_spill] sm:$0xff] %v14707_v57  ;;  %17202 = vst [vmem:[#allocation129_spill] sm:$0xff] %v14713_v28  ;;  %v14720_v58 = vmul.f32 %v4478_v52, %v4478_v52  ;;  %v6915_v9 = vadd.f32 %v6914_v41, %v6261_v20  ;;  %v14722_v45 = vmul.f32 %v6136_v7, %v4856_v12  ;;  %v6920_v20 = vrot.slane %v14695_v21, 4  ;;  %v17211_v41 = vld [vmem:[#allocation233_spill] sm:$0xff]  ;;  %v17212_v36 = vld [vmem:[#allocation51_spill] sm:$0xff] }
 0x5f4   : > { %17203 = vst [vmem:[#allocation116_spill] sm:$0xff] %v14716_v43  ;;  %v5885_v24 = vmax.f32 %v5687_v1, 1e-38  ;;  %v4479_v62 = vmul.f32 %v17196_v39, %v14383_v54  ;;  %v4858_v53 = vmul.f32 %v17207_v49, %v17206_v23  ;;  %v4859_v11 = vmul.f32 %v17209_v42, %v17208_v6  ;;  %v17213_v37 = vld [vmem:[#allocation119_spill] sm:$0xff] }
 0x5f5   : > { %v5688_v63 = vrot.slane %v14720_v58, 4  ;;  %v4480_v56 = vmul.f32 %v17210_v2, %v14405_v30  ;;  %v6911_v52 = vadd.f32 %v6910_v17, %v6909_v44  ;;  %v4860_v54 = vmul.f32 %v17212_v36, %v17211_v41 }
 0x5f6   : > { %8889 = vrcp.f32 %v5885_v24  ;;  %v14734_v29 = vmul.f32 %v4479_v62, %v4479_v62  ;;  %v4481_v31 = vmul.f32 %v17210_v2, %v14417_v3  ;;  %v6916_v12 = vrot.slane %v6915_v9, 2 }
 0x5f7   : > { %v5689_v39 = vadd.f32 %v5688_v63, %v14720_v58  ;;  %v14739_v16 = vmul.f32 %v4480_v56, %v4480_v56  ;;  %v8882_v34 = vpop.eup %8881  ;;  %v6926_v30 = vrot.slane %v14700_v46, 4  ;;  %v4482_v17 = vmul.f32 %v17213_v37, %v14429_v27 }
 0x5f8   : > { %v5694_v44 = vrot.slane %v14734_v29, 4  ;;  %v6137_v7 = vmul.f32 %v8882_v34, %v14664_v15  ;;  %v14749_v51 = vmul.f32 %v4481_v31, %v4481_v31  ;;  %v6912_v62 = vrot.slane %v6911_v52, 1 }
 0x5f9   : > { %v5690_v1 = vrot.slane %v5689_v39, 2  ;;  %v5700_v60 = vrot.slane %v14739_v16, 4  ;;  %v8884_v24 = vpop.eup %8883  ;;  %v6921_v3 = vadd.f32 %v6920_v20, %v14695_v21  ;;  %v14753_v49 = vmul.f32 %v4482_v17, %v4482_v17 }
 0x5fa   : > { %v5695_v23 = vadd.f32 %v5694_v44, %v14734_v29  ;;  %v8886_v6 = vpop.eup %8885  ;;  %v14755_v42 = vmul.f32 %v6137_v7, %v4857_v48  ;;  %v6138_v27 = vmul.f32 %v8884_v24, %v14670_v55  ;;  %v6917_v2 = vadd.f32 %v6916_v12, %v6915_v9  ;;  %v17214_v9 = vld [vmem:[#allocation231_spill] sm:$0xff]  ;;  %v17215_v12 = vld [vmem:[#allocation85_spill] sm:$0xff] }
 0x5fb   : > { %v5691_v63 = vadd.f32 %v5690_v1, %v5689_v39  ;;  %v5701_v15 = vadd.f32 %v5700_v60, %v14739_v16  ;;  %v6139_v56 = vmul.f32 %v8886_v6, %v14674_v22  ;;  %v5706_v36 = vrot.slane %v14749_v51, 4 }
 0x5fc   : > { %v5696_v41 = vrot.slane %v5695_v23, 2  ;;  %v8888_v31 = vpop.eup %8887  ;;  %v6927_v21 = vadd.f32 %v6926_v30, %v14700_v46  ;;  %v14762_v20 = vmul.f32 %v6138_v27, %v4858_v53  ;;  %v4861_v22 = vmul.f32 %v17215_v12, %v17214_v9  ;;  %v17216_v53 = vld [vmem:[#allocation230_spill] sm:$0xff] }
 0x5fd   : > { %v5692_v34 = vrot.slane %v5691_v63, 1  ;;  %v5702_v44 = vrot.slane %v5701_v15, 2  ;;  %v14764_v48 = vmul.f32 %v6139_v56, %v4859_v11  ;;  %v6140_v55 = vmul.f32 %v8888_v31, %v14680_v5  ;;  %v17217_v30 = vld [vmem:[#allocation158_spill] sm:$0xff] }
 0x5fe   : > { %v5697_v39 = vadd.f32 %v5696_v41, %v5695_v23  ;;  %v5707_v17 = vadd.f32 %v5706_v36, %v14749_v51  ;;  %v5712_v60 = vrot.slane %v14753_v49, 4  ;;  %v14773_v6 = vmul.f32 %v17217_v30, %v17216_v53  ;;  %v17221_v30 = vld [vmem:[#allocation53_spill] sm:$0xff] }
 0x5ff   : > { %v5693_v7 = vadd.f32 %v5692_v34, %v5691_v63  ;;  %v5703_v1 = vadd.f32 %v5702_v44, %v5701_v15  ;;  %v6268_v46 = vmul.f32 %v6140_v55, %v4860_v54  ;;  %v14775_v56 = vadd.f32 %v6912_v62, %v6911_v52 }
 0x600   : > { %v8890_v24 = vpop.eup %8889  ;;  %v5698_v11 = vrot.slane %v5697_v39, 1  ;;  %v5708_v27 = vrot.slane %v5707_v17, 2  ;;  %v6922_v5 = vrot.slane %v6921_v3, 2  ;;  %v6918_v36 = vrot.slane %v6917_v2, 1 }
 0x601   : > { %17218 = vst [vmem:[#allocation126_spill] sm:$0xff] %v14775_v56  ;;  %v6141_v23 = vmul.f32 %v8890_v24, %v14683_v47  ;;  %v5886_v41 = vmax.f32 %v5693_v7, 1e-38  ;;  %v6928_v31 = vrot.slane %v6927_v21, 2  ;;  %v5704_v15 = vrot.slane %v5703_v1, 1 }
 0x602   : > { %v5699_v63 = vadd.f32 %v5698_v11, %v5697_v39  ;;  %v5709_v44 = vadd.f32 %v5708_v27, %v5707_v17  ;;  %v5713_v54 = vadd.f32 %v5712_v60, %v14753_v49  ;;  %v6956_v55 = vrot.slane %v6268_v46, 4  ;;  %v17220_v60 = vld [vmem:[#allocation232_spill] sm:$0xff] }
 0x603   : > { %v6269_v34 = vmul.f32 %v6141_v23, %v4861_v22  ;;  %8891 = vrcp.f32 %v5886_v41  ;;  %v5705_v12 = vadd.f32 %v5704_v15, %v5703_v1  ;;  %v4483_v52 = vmul.f32 %v17213_v37, %v14444_v61  ;;  %v17223_v41 = vld [vmem:[#allocation160_spill] sm:$0xff] }
 0x604   : > { %v5887_v9 = vmax.f32 %v5699_v63, 1e-38  ;;  %v14781_v62 = vadd.f32 %v6922_v5, %v6921_v3  ;;  %v6932_v47 = vrot.slane %v14722_v45, 4  ;;  %v5710_v7 = vrot.slane %v5709_v44, 1  ;;  %v17222_v5 = vld [vmem:[#allocation237_spill] sm:$0xff] }
 0x605   : > { %v5714_v24 = vrot.slane %v5713_v54, 2  ;;  %v6962_v53 = vrot.slane %v6269_v34, 4  ;;  %v5888_v39 = vmax.f32 %v5705_v12, 1e-38  ;;  %v14784_v22 = vmul.f32 %v4483_v52, %v4483_v52 }
 0x606   : > { %8893 = vrcp.f32 %v5887_v9  ;;  %v14786_v17 = vadd.f32 %v6918_v36, %v6917_v2  ;;  %v4863_v11 = vmul.f32 %v17221_v30, %v17220_v60  ;;  %v5711_v1 = vadd.f32 %v5710_v7, %v5709_v44  ;;  %v17224_v9 = vld [vmem:[#allocation235_spill] sm:$0xff] }
 0x607   : > { %v5715_v27 = vadd.f32 %v5714_v24, %v5713_v54  ;;  %v14790_v23 = vadd.f32 %v6928_v31, %v6927_v21  ;;  %v14792_v61 = vadd.f32 %v6956_v55, %v6268_v46  ;;  %8895 = vrcp.f32 %v5888_v39  ;;  %v17225_v44 = vld [vmem:[#allocation55_spill] sm:$0xff] }
 0x608   : > { %17219 = vst [vmem:[#allocation62_spill] sm:$0xff] %v14786_v17  ;;  %v5718_v37 = vrot.slane %v14784_v22, 4  ;;  %v14796_v3 = vadd.f32 %v6932_v47, %v14722_v45  ;;  %v4864_v63 = vmul.f32 %v17223_v41, %v17222_v5  ;;  %v5889_v2 = vmax.f32 %v5711_v1, 1e-38 }
 0x609   : > { %v5716_v36 = vrot.slane %v5715_v27, 1  ;;  %v14800_v15 = vadd.f32 %v6962_v53, %v6269_v34  ;;  %v4865_v54 = vmul.f32 %v17225_v44, %v17224_v9  ;;  %v17226_v46 = vrot.slane %v14497_v0, 2 }
 0x60a   : > { %v5719_v21 = vadd.f32 %v5718_v37, %v14784_v22  ;;  %8897 = vrcp.f32 %v5889_v2  ;;  %v6828_v45 = vrot.slane %v14502_v38, 1  ;;  %v17227_v12 = vrot.slane %v14511_v4, 2 }
 0x60b   : > { %v6839_v31 = vadd.f32 %v17226_v46, %v14497_v0  ;;  %v5717_v55 = vadd.f32 %v5716_v36, %v5715_v27  ;;  %v6938_v34 = vrot.slane %v14755_v42, 4  ;;  %v6958_v47 = vrot.slane %v14792_v61, 2 }
 0x60c   : > { %v6845_v52 = vadd.f32 %v17227_v12, %v14511_v4  ;;  %v5720_v7 = vrot.slane %v5719_v21, 2  ;;  %v6850_v24 = vrot.slane %v14521_v25, 2  ;;  %v6834_v60 = vrot.slane %v14508_v59, 1 }
 0x60d   : > { %v8892_v53 = vpop.eup %8891  ;;  %v5890_v39 = vmax.f32 %v5717_v55, 1e-38  ;;  %v6840_v0 = vrot.slane %v6839_v31, 1  ;;  %v6856_v30 = vrot.slane %v14635_v19, 2  ;;  %v6964_v1 = vrot.slane %v14800_v15, 2  ;;  %v17229_v55 = vld [vmem:[#allocation146_spill] sm:$0xff] }
 0x60e   : > { %v6142_v27 = vmul.f32 %v8892_v53, %v14720_v58  ;;  %v5721_v37 = vadd.f32 %v5720_v7, %v5719_v21  ;;  %v6851_v4 = vadd.f32 %v6850_v24, %v14521_v25  ;;  %v14821_v5 = vadd.f32 %v6828_v45, %v14502_v38  ;;  %v17231_v7 = vld [vmem:[#allocation5_spill] sm:$0xff] }
 0x60f   : > { %8899 = vrcp.f32 %v5890_v39  ;;  %v6846_v41 = vrot.slane %v6845_v52, 1  ;;  %v6857_v2 = vadd.f32 %v6856_v30, %v14635_v19  ;;  %v7257_v12 = vsel %vm7180_vm1, %v14388_v33, %v17229_v55  ;;  %v17233_v53 = vld [vmem:[#allocation33_spill] sm:$0xff]  ;;  %v17234_v39 = vld [vmem:[#allocation34_spill] sm:$0xff] }
 0x610   : > { %17228 = vst [vmem:[#allocation97_spill] sm:$0xff] %v14821_v5  ;;  %v8894_v36 = vpop.eup %8893  ;;  %v6270_v9 = vmul.f32 %v6142_v27, %v14773_v6  ;;  %v5722_v44 = vrot.slane %v5721_v37, 1  ;;  %v6852_v46 = vrot.slane %v6851_v4, 1  ;;  %v14829_v21 = vadd.f32 %v6840_v0, %v6839_v31 }
 0x611   : > { %v6143_v58 = vmul.f32 %v8894_v36, %v14734_v29  ;;  %v6858_v25 = vrot.slane %v6857_v2, 1  ;;  %v7258_v38 = vsel %vm7182_vm2, %v17231_v7, %v7257_v12  ;;  %v8896_v45 = vpop.eup %8895  ;;  %v14834_v19 = vadd.f32 %v6834_v60, %v14508_v59  ;;  %v17236_v60 = vld [vmem:[#allocation114_spill] sm:$0xff] }
 0x612   : > { %17230 = vst [vmem:[#allocation63_spill] sm:$0xff] %v14829_v21  ;;  %v5723_v24 = vadd.f32 %v5722_v44, %v5721_v37  ;;  %v7259_v6 = vsel %vm7184_vm3, %v14454_v10, %v7258_v38  ;;  %v7264_v30 = vsel %vm7180_vm1, %v17234_v39, %v17233_v53  ;;  %v6968_v27 = vrot.slane %v6270_v9, 4 }
 0x613   : > { %17232 = vst [vmem:[#allocation178_spill] sm:$0xff] %v14834_v19  ;;  %v6271_v29 = vmul.f32 %v6143_v58, %v4863_v11  ;;  %v6144_v31 = vmul.f32 %v8896_v45, %v14739_v16  ;;  %v7260_v0 = vsel %vm7186_vm4, %v14475_v14, %v7259_v6  ;;  %v14844_v12 = vadd.f32 %v6852_v46, %v6851_v4  ;;  %v17239_v45 = vld [vmem:[#allocation234_spill] sm:$0xff] }
 0x614   : > { %v5891_v36 = vmax.f32 %v5723_v24, 1e-38  ;;  %v7261_v59 = vsel %vm7188_vm5, %v14821_v5, %v7260_v0  ;;  %v7265_v37 = vsel %vm7182_vm2, %v17236_v60, %v7264_v30  ;;  %v8898_v44 = vpop.eup %8897  ;;  %v14850_v55 = vadd.f32 %v6846_v41, %v6845_v52  ;;  %v17240_v24 = vld [vmem:[#allocation165_spill] sm:$0xff] }
 0x615   : > { %17235 = vst [vmem:[#allocation48_spill] sm:$0xff] %v14844_v12  ;;  %v6272_v38 = vmul.f32 %v6144_v31, %v4864_v63  ;;  %v14852_v53 = vadd.f32 %v6858_v25, %v6857_v2  ;;  %v7262_v16 = vsel %vm7190_vm6, %v14829_v21, %v7261_v59  ;;  %v6974_v11 = vrot.slane %v6271_v29, 4  ;;  %v17241_v41 = vld [vmem:[#allocation81_spill] sm:$0xff]  ;;  %v17242_v2 = vld [vmem:[#allocation123_spill] sm:$0xff] }
 0x616   : > { %17237 = vst [vmem:[#allocation87_spill] sm:$0xff] %v14850_v55  ;;  %v6145_v58 = vmul.f32 %v8898_v44, %v14749_v51  ;;  %8901 = vrcp.f32 %v5891_v36  ;;  %v7266_v4 = vsel %vm7184_vm3, %v14462_v18, %v7265_v37  ;;  %v14860_v46 = vadd.f32 %v6938_v34, %v14755_v42 }
 0x617   : > { %17238 = vst [vmem:[#allocation88_spill] sm:$0xff] %v14852_v53  ;;  %v4866_v63 = vmul.f32 %v17240_v24, %v17239_v45  ;;  %v7267_v52 = vsel %vm7186_vm4, %v14506_v26, %v7266_v4  ;;  %v4484_v25 = vmul.f32 %v17242_v2, %v17241_v41  ;;  %v6969_v6 = vadd.f32 %v6968_v27, %v6270_v9 }
 0x618   : > { %v6273_v30 = vmul.f32 %v6145_v58, %v4865_v54  ;;  %v7263_v51 = vsel %vm7192_vm7, %v14844_v12, %v7262_v16  ;;  %v7268_v31 = vsel %vm7188_vm5, %v14834_v19, %v7267_v52  ;;  %v6944_v42 = vrot.slane %v14762_v20, 4 }
 0x619   : > { %v8900_v0 = vpop.eup %8899  ;;  %v6959_v34 = vadd.f32 %v6958_v47, %v14792_v61  ;;  %v7269_v36 = vsel %vm7190_vm6, %v14850_v55, %v7268_v31  ;;  %v14876_v59 = vmul.f32 %v4484_v25, %v4484_v25  ;;  %v6965_v37 = vadd.f32 %v6964_v1, %v14800_v15  ;;  %v17243_v25 = vld [vmem:[#allocation18_spill] sm:$0xff]  ;;  %v17245_v31 = vld [vmem:[#allocation57_spill] sm:$0xff] }
 0x61a   : > { %v6975_v9 = vadd.f32 %v6974_v11, %v6271_v29  ;;  %v6146_v54 = vmul.f32 %v8900_v0, %v14753_v49  ;;  %v7270_v27 = vsel %vm7192_vm7, %v14852_v53, %v7269_v36  ;;  %v6950_v44 = vrot.slane %v14764_v48, 4 }
 0x61b   : > { %v6980_v16 = vrot.slane %v6272_v38, 4  ;;  %v7330_v58 = vadd.f32 %v7270_v27, %v7263_v51  ;;  %v5724_v4 = vrot.slane %v14876_v59, 4  ;;  %v6970_v47 = vrot.slane %v6969_v6, 2 }
 0x61c   : > { %v6274_v45 = vmul.f32 %v6146_v54, %v4866_v63  ;;  %v4485_v24 = vmul.f32 %v17242_v2, %v14542_v40  ;;  %v14889_v49 = vadd.f32 %v6944_v42, %v14762_v20  ;;  %v6960_v1 = vrot.slane %v6959_v34, 1  ;;  %v17244_v2 = vld [vmem:[#allocation236_spill] sm:$0xff] }
 0x61d   : > { %7331 = vadd.xlane.f32.xlu0 %v7330_v58  ;;  %v5725_v29 = vadd.f32 %v5724_v4, %v14876_v59  ;;  %v6966_v11 = vrot.slane %v6965_v37, 1  ;;  %v6976_v52 = vrot.slane %v6975_v9, 2  ;;  %v4486_v51 = vmul.f32 %v17243_v25, %v14574_v35 }
 0x61e   : > { %v14892_v41 = vmul.f32 %v4485_v24, %v4485_v24  ;;  %v14897_v63 = vadd.f32 %v6950_v44, %v14764_v48  ;;  %v6981_v40 = vadd.f32 %v6980_v16, %v6272_v38  ;;  %v4867_v0 = vmul.f32 %v17245_v31, %v17244_v2 }
 0x61f   : > { %v5726_v20 = vrot.slane %v5725_v29, 2  ;;  %v6971_v36 = vadd.f32 %v6970_v47, %v6969_v6  ;;  %v6986_v54 = vrot.slane %v6273_v30, 4  ;;  %v14902_v58 = vmul.f32 %v4486_v51, %v4486_v51 }
 0x620   : > { %v8902_v42 = vpop.eup %8901  ;;  %v5730_v27 = vrot.slane %v14892_v41, 4  ;;  %v14904_v4 = vadd.f32 %v6960_v1, %v6959_v34  ;;  %v4487_v48 = vmul.f32 %v17243_v25, %v14582_v32  ;;  %v14909_v38 = vadd.f32 %v6966_v11, %v6965_v37  ;;  %v17249_v25 = vld [vmem:[#allocation241_spill] sm:$0xff] }
 0x621   : > { %v6147_v24 = vmul.f32 %v8902_v42, %v14784_v22  ;;  %v5727_v35 = vadd.f32 %v5726_v20, %v5725_v29  ;;  %v6977_v44 = vadd.f32 %v6976_v52, %v6975_v9  ;;  %v5736_v6 = vrot.slane %v14902_v58, 4  ;;  %v17248_v9 = vld [vmem:[#allocation176_spill] sm:$0xff]  ;;  %v17250_v42 = vld [vmem:[#allocation163_spill] sm:$0xff] }
 0x622   : > { %17246 = vst [vmem:[#allocation164_spill] sm:$0xff] %v14904_v4  ;;  %17247 = vst [vmem:[#allocation59_spill] sm:$0xff] %v14909_v38  ;;  %v5731_v16 = vadd.f32 %v5730_v27, %v14892_v41  ;;  %v6982_v47 = vrot.slane %v6981_v40, 2  ;;  %v14915_v31 = vmul.f32 %v4487_v48, %v4487_v48  ;;  %v6972_v34 = vrot.slane %v6971_v36, 1 }
 0x623   : > { %v14913_v2 = vmul.f32 %v6147_v24, %v4867_v0  ;;  %v5728_v51 = vrot.slane %v5727_v35, 1  ;;  %v6987_v1 = vadd.f32 %v6986_v54, %v6273_v30  ;;  %v5737_v29 = vadd.f32 %v5736_v6, %v14902_v58 }
 0x624   : > { %v5732_v22 = vrot.slane %v5731_v16, 2  ;;  %v6992_v20 = vrot.slane %v6274_v45, 4  ;;  %v5742_v37 = vrot.slane %v14915_v31, 4  ;;  %v4488_v11 = vmul.f32 %v17248_v9, %v14590_v50 }
 0x625   : > { %v5729_v32 = vadd.f32 %v5728_v51, %v5727_v35  ;;  %v6978_v52 = vrot.slane %v6977_v44, 1  ;;  %v14923_v0 = vmul.f32 %v17250_v42, %v17249_v25  ;;  %v5738_v24 = vrot.slane %v5737_v29, 2  ;;  %v17252_v42 = vld [vmem:[#allocation239_spill] sm:$0xff] }
 0x626   : > { %v5733_v27 = vadd.f32 %v5732_v22, %v5731_v16  ;;  %v14925_v48 = vadd.f32 %v6982_v47, %v6981_v40  ;;  %v5743_v54 = vadd.f32 %v5742_v37, %v14915_v31  ;;  %v14928_v6 = vmul.f32 %v4488_v11, %v4488_v11  ;;  %v17253_v16 = vld [vmem:[#allocation7_spill] sm:$0xff]  ;;  %v4362_v37 = vpop.permute.xlu1 %4361 }
 0x627   : > { %v5892_v30 = vmax.f32 %v5729_v32, 1e-38  ;;  %v14930_v35 = vadd.f32 %v6972_v34, %v6971_v36  ;;  %v6988_v51 = vrot.slane %v6987_v1, 2  ;;  %v5739_v61 = vadd.f32 %v5738_v24, %v5737_v29 }
 0x628   : > { %v5734_v15 = vrot.slane %v5733_v27, 1  ;;  %v6993_v50 = vadd.f32 %v6992_v20, %v6274_v45  ;;  %v5744_v53 = vrot.slane %v5743_v54, 2  ;;  %v5748_v25 = vrot.slane %v14928_v6, 4 }
 0x629   : > { %17251 = vst [vmem:[#allocation89_spill] sm:$0xff] %v14930_v35  ;;  %8903 = vrcp.f32 %v5892_v30  ;;  %v14935_v22 = vmul.f32 %v17253_v16, %v17252_v42  ;;  %v5740_v47 = vrot.slane %v5739_v61, 1  ;;  %v4489_v32 = vmul.f32 %v17248_v9, %v14598_v13  ;;  %v17255_v30 = vld [vmem:[#allocation11_spill] sm:$0xff] }
 0x62a   : > { %v5735_v40 = vadd.f32 %v5734_v15, %v5733_v27  ;;  %v14939_v36 = vadd.f32 %v6978_v52, %v6977_v44  ;;  %v5745_v29 = vadd.f32 %v5744_v53, %v5743_v54  ;;  %v5749_v45 = vadd.f32 %v5748_v25, %v14928_v6 }
 0x62b   : > { %v5741_v11 = vadd.f32 %v5740_v47, %v5739_v61  ;;  %v14943_v24 = vmul.f32 %v4489_v32, %v4489_v32  ;;  %v4490_v42 = vmul.f32 %v4362_v37, %v17255_v30  ;;  %v14946_v16 = vadd.f32 %v6988_v51, %v6987_v1  ;;  %v17256_v61 = vld [vmem:[#allocation38_spill] sm:$0xff] }
 0x62c   : > { %17254 = vst [vmem:[#allocation185_spill] sm:$0xff] %v14939_v36  ;;  %v5893_v20 = vmax.f32 %v5735_v40, 1e-38  ;;  %v6994_v15 = vrot.slane %v6993_v50, 2  ;;  %v5746_v27 = vrot.slane %v5745_v29, 1  ;;  %v5750_v12 = vrot.slane %v5749_v45, 2 }
 0x62d   : > { %v5894_v13 = vmax.f32 %v5741_v11, 1e-38  ;;  %v5754_v44 = vrot.slane %v14943_v24, 4  ;;  %v14949_v9 = vmul.f32 %v4490_v42, %v4490_v42  ;;  %v6998_v53 = vrot.slane %v14913_v2, 4  ;;  %v17257_v40 = vld [vmem:[#allocation238_spill] sm:$0xff] }
 0x62e   : > { %8905 = vrcp.f32 %v5893_v20  ;;  %v5747_v52 = vadd.f32 %v5746_v27, %v5745_v29  ;;  %v5751_v54 = vadd.f32 %v5750_v12, %v5749_v45  ;;  %v4491_v25 = vmul.f32 %v4362_v37, %v17256_v61  ;;  %v17258_v47 = vld [vmem:[#allocation162_spill] sm:$0xff]  ;;  %v17259_v29 = vld [vmem:[#allocation240_spill] sm:$0xff]  ;;  %v17260_v12 = vld [vmem:[#allocation125_spill] sm:$0xff] }
 0x62f   : > { %v4870_v32 = vmul.f32 %v17258_v47, %v17257_v40  ;;  %8907 = vrcp.f32 %v5894_v13  ;;  %v5755_v1 = vadd.f32 %v5754_v44, %v14943_v24  ;;  %v5760_v51 = vrot.slane %v14949_v9, 4  ;;  %v17262_v47 = vld [vmem:[#allocation169_spill] sm:$0xff] }
 0x630   : > { %v5895_v11 = vmax.f32 %v5747_v52, 1e-38  ;;  %v5752_v30 = vrot.slane %v5751_v54, 1  ;;  %v14958_v42 = vmul.f32 %v4491_v25, %v4491_v25  ;;  %v14960_v34 = vadd.f32 %v6994_v15, %v6993_v50  ;;  %v17261_v25 = vld [vmem:[#allocation245_spill] sm:$0xff] }
 0x631   : > { %v4871_v45 = vmul.f32 %v17260_v12, %v17259_v29  ;;  %v5756_v37 = vrot.slane %v5755_v1, 2  ;;  %v5761_v27 = vadd.f32 %v5760_v51, %v14949_v9  ;;  %v14966_v13 = vadd.f32 %v6998_v53, %v14913_v2 }
 0x632   : > { %8909 = vrcp.f32 %v5895_v11  ;;  %v5753_v44 = vadd.f32 %v5752_v30, %v5751_v54  ;;  %v5766_v40 = vrot.slane %v14958_v42, 4  ;;  %v14972_v50 = vmul.f32 %v17262_v47, %v17261_v25 }
 0x633   : > { %v8904_v61 = vpop.eup %8903  ;;  %v5757_v15 = vadd.f32 %v5756_v37, %v5755_v1  ;;  %v5762_v20 = vrot.slane %v5761_v27, 2  ;;  %v6924_v51 = vrot.slane %v14781_v62, 1  ;;  %v17263_v2 = vrot.slane %v14796_v3, 2 }
 0x634   : > { %v6148_v52 = vmul.f32 %v8904_v61, %v14876_v59  ;;  %v5896_v29 = vmax.f32 %v5753_v44, 1e-38  ;;  %v5767_v12 = vadd.f32 %v5766_v40, %v14958_v42  ;;  %v6946_v59 = vrot.slane %v14889_v49, 2 }
 0x635   : > { %v6935_v53 = vadd.f32 %v17263_v2, %v14796_v3  ;;  %v5758_v11 = vrot.slane %v5757_v15, 1  ;;  %v5763_v30 = vadd.f32 %v5762_v20, %v5761_v27  ;;  %v6930_v37 = vrot.slane %v14790_v23, 1 }
 0x636   : > { %v6276_v54 = vmul.f32 %v6148_v52, %v14923_v0  ;;  %8911 = vrcp.f32 %v5896_v29  ;;  %v5768_v1 = vrot.slane %v5767_v12, 2  ;;  %v6947_v55 = vadd.f32 %v6946_v59, %v14889_v49 }
 0x637   : > { %v5759_v25 = vadd.f32 %v5758_v11, %v5757_v15  ;;  %v5764_v47 = vrot.slane %v5763_v30, 1  ;;  %v14986_v0 = vadd.f32 %v6924_v51, %v14781_v62  ;;  %v6952_v20 = vrot.slane %v14897_v63, 2 }
 0x638   : > { %v8906_v44 = vpop.eup %8905  ;;  %v7004_v40 = vrot.slane %v6276_v54, 4  ;;  %v5769_v2 = vadd.f32 %v5768_v1, %v5767_v12  ;;  %v6936_v61 = vrot.slane %v6935_v53, 1  ;;  %v17265_v21 = vrot.slane %v14860_v46, 2 }
 0x639   : > { %v6149_v3 = vmul.f32 %v8906_v44, %v14892_v41  ;;  %17264 = vst [vmem:[#allocation12_spill] sm:$0xff] %v14986_v0  ;;  %v8908_v27 = vpop.eup %8907  ;;  %v5897_v52 = vmax.f32 %v5759_v25, 1e-38  ;;  %v5765_v29 = vadd.f32 %v5764_v47, %v5763_v30  ;;  %v6953_v41 = vadd.f32 %v6952_v20, %v14897_v63 }
 0x63a   : > { %v6941_v19 = vadd.f32 %v17265_v21, %v14860_v46  ;;  %v6150_v49 = vmul.f32 %v8908_v27, %v14902_v58  ;;  %v5770_v11 = vrot.slane %v5769_v2, 1  ;;  %v7005_v12 = vadd.f32 %v7004_v40, %v6276_v54  ;;  %v17268_v54 = vld [vmem:[#allocation118_spill] sm:$0xff]  ;;  %v17269_v40 = vld [vmem:[#allocation13_spill] sm:$0xff] }
 0x63b   : > { %v6277_v15 = vmul.f32 %v6149_v3, %v14935_v22  ;;  %8913 = vrcp.f32 %v5897_v52  ;;  %v5898_v62 = vmax.f32 %v5765_v29, 1e-38  ;;  %v6948_v51 = vrot.slane %v6947_v55, 1 }
 0x63c   : > { %v8910_v59 = vpop.eup %8909  ;;  %v6278_v44 = vmul.f32 %v6150_v49, %v4870_v32  ;;  %v5771_v30 = vadd.f32 %v5770_v11, %v5769_v2  ;;  %v14996_v25 = vadd.f32 %v6930_v37, %v14790_v23  ;;  %v14999_v46 = vadd.f32 %v6936_v61, %v6935_v53  ;;  %v17271_v61 = vld [vmem:[#allocation61_spill] sm:$0xff]  ;;  %v17272_v2 = vld [vmem:[#allocation190_spill] sm:$0xff] }
 0x63d   : > { %v7010_v1 = vrot.slane %v6277_v15, 4  ;;  %v6151_v21 = vmul.f32 %v8910_v59, %v14915_v31  ;;  %8915 = vrcp.f32 %v5898_v62  ;;  %v6942_v58 = vrot.slane %v6941_v19, 1 }
 0x63e   : > { %17266 = vst [vmem:[#allocation6_spill] sm:$0xff] %v14996_v25  ;;  %17267 = vst [vmem:[#allocation60_spill] sm:$0xff] %v14999_v46  ;;  %v7016_v22 = vrot.slane %v6278_v44, 4  ;;  %v5899_v47 = vmax.f32 %v5771_v30, 1e-38  ;;  %v6954_v63 = vrot.slane %v6953_v41, 1  ;;  %v7271_v3 = vsel %vm7180_vm1, %v17269_v40, %v17268_v54 }
 0x63f   : > { %v7006_v20 = vrot.slane %v7005_v12, 2  ;;  %v6279_v27 = vmul.f32 %v6151_v21, %v4871_v45  ;;  %v15004_v32 = vadd.f32 %v6948_v51, %v6947_v55  ;;  %v7272_v23 = vsel %vm7182_vm2, %v14707_v57, %v7271_v3  ;;  %v17331_v57 = vld [vmem:[#allocation9_spill] sm:$0xff]  ;;  %v17333_v40 = vld [vmem:[#allocation122_spill] sm:$0xff] }
 0x640   : > { %v8912_v37 = vpop.eup %8911  ;;  %v7011_v31 = vadd.f32 %v7010_v1, %v6277_v15  ;;  %8917 = vrcp.f32 %v5899_v47  ;;  %v7273_v53 = vsel %vm7184_vm3, %v14713_v28, %v7272_v23  ;;  %v7278_v52 = vsel %vm7180_vm1, %v17272_v2, %v17271_v61  ;;  %v17276_v23 = vld [vmem:[#allocation243_spill] sm:$0xff] }
 0x641   : > { %17270 = vst [vmem:[#allocation199_spill] sm:$0xff] %v15004_v32  ;;  %v7017_v29 = vadd.f32 %v7016_v22, %v6278_v44  ;;  %v7022_v49 = vrot.slane %v6279_v27, 4  ;;  %v6152_v11 = vmul.f32 %v8912_v37, %v14928_v6  ;;  %v7274_v55 = vsel %vm7186_vm4, %v14775_v56, %v7273_v53  ;;  %v17277_v37 = vld [vmem:[#allocation166_spill] sm:$0xff] }
 0x642   : > { %v15016_v45 = vadd.f32 %v6942_v58, %v6941_v19  ;;  %v15018_v62 = vadd.f32 %v6954_v63, %v6953_v41  ;;  %v7275_v15 = vsel %vm7188_vm5, %v14986_v0, %v7274_v55  ;;  %v7279_v51 = vsel %vm7182_vm2, %v14709_v8, %v7278_v52  ;;  %v17278_v55 = vld [vmem:[#allocation242_spill] sm:$0xff] }
 0x643   : > { %v7023_v59 = vadd.f32 %v7022_v49, %v6279_v27  ;;  %v6280_v1 = vmul.f32 %v6152_v11, %v14972_v50  ;;  %v7276_v44 = vsel %vm7190_vm6, %v14999_v46, %v7275_v15  ;;  %v7280_v6 = vsel %vm7184_vm3, %v14716_v43, %v7279_v51  ;;  %v17279_v15 = vld [vmem:[#allocation173_spill] sm:$0xff]  ;;  %v17317_v43 = vld [vmem:[#allocation40_spill] sm:$0xff] }
 0x644   : > { %17273 = vst [vmem:[#allocation136_spill] sm:$0xff] %v15016_v45  ;;  %17274 = vst [vmem:[#allocation198_spill] sm:$0xff] %v15018_v62  ;;  %v6996_v19 = vrot.slane %v14960_v34, 1  ;;  %v7007_v30 = vadd.f32 %v7006_v20, %v7005_v12  ;;  %v7012_v41 = vrot.slane %v7011_v31, 2  ;;  %v7281_v21 = vsel %vm7186_vm4, %v14786_v17, %v7280_v6  ;;  %v17315_v17 = vld [vmem:[#allocation109_spill] sm:$0xff] }
 0x645   : > { %v8914_v58 = vpop.eup %8913  ;;  %v7018_v22 = vrot.slane %v7017_v29, 2  ;;  %v7028_v47 = vrot.slane %v6280_v1, 4  ;;  %v7277_v63 = vsel %vm7192_vm7, %v15004_v32, %v7276_v44  ;;  %v7282_v50 = vsel %vm7188_vm5, %v14996_v25, %v7281_v21 }
 0x646   : > { %v17275_v3 = vrot.slane %v14966_v13, 2  ;;  %v4873_v12 = vmul.f32 %v17277_v37, %v17276_v23  ;;  %v6153_v20 = vmul.f32 %v8914_v58, %v14943_v24  ;;  %v7283_v53 = vsel %vm7190_vm6, %v15016_v45, %v7282_v50 }
 0x647   : > { %v8916_v52 = vpop.eup %8915  ;;  %v7024_v49 = vrot.slane %v7023_v59, 2  ;;  %v7029_v11 = vadd.f32 %v7028_v47, %v6280_v1  ;;  %v4874_v51 = vmul.f32 %v17279_v15, %v17278_v55  ;;  %v7284_v44 = vsel %vm7192_vm7, %v15018_v62, %v7283_v53 }
 0x648   : > { %v7001_v27 = vadd.f32 %v17275_v3, %v14966_v13  ;;  %v7013_v6 = vadd.f32 %v7012_v41, %v7011_v31  ;;  %v6281_v21 = vmul.f32 %v6153_v20, %v4873_v12  ;;  %v6154_v13 = vmul.f32 %v8916_v52, %v14949_v9  ;;  %v17285_v12 = vld [vmem:[#allocation91_spill] sm:$0xff] }
 0x649   : > { %v7333_v3 = vadd.f32 %v7284_v44, %v7277_v63  ;;  %v17280_v24 = vrot.slane %v14925_v48, 1  ;;  %v7008_v50 = vrot.slane %v7007_v30, 1  ;;  %v7019_v23 = vadd.f32 %v7018_v22, %v7017_v29  ;;  %v17284_v63 = vld [vmem:[#allocation244_spill] sm:$0xff] }
 0x64a   : > { %v7030_v37 = vrot.slane %v7029_v11, 2  ;;  %v8918_v1 = vpop.eup %8917  ;;  %v17282_v47 = vrot.slane %v14946_v16, 1  ;;  %v7002_v53 = vrot.slane %v7001_v27, 1  ;;  %v7034_v31 = vrot.slane %v6281_v21, 4 }
 0x64b   : > { %v15052_v58 = vadd.f32 %v17280_v24, %v14925_v48  ;;  %v6282_v41 = vmul.f32 %v6154_v13, %v4874_v51  ;;  %7334 = vadd.xlane.f32.xlu1 %v7333_v3  ;;  %v7025_v9 = vadd.f32 %v7024_v49, %v7023_v59  ;;  %v4875_v20 = vmul.f32 %v17285_v12, %v17284_v63 }
 0x64c   : > { %v15057_v55 = vadd.f32 %v17282_v47, %v14946_v16  ;;  %v6155_v48 = vmul.f32 %v8918_v1, %v14958_v42  ;;  %v7031_v52 = vadd.f32 %v7030_v37, %v7029_v11  ;;  %v15063_v29 = vadd.f32 %v6996_v19, %v14960_v34 }
 0x64d   : > { %17281 = vst [vmem:[#allocation27_spill] sm:$0xff] %v15052_v58  ;;  %v7014_v22 = vrot.slane %v7013_v6, 1  ;;  %v7035_v15 = vadd.f32 %v7034_v31, %v6281_v21  ;;  %v7040_v44 = vrot.slane %v6282_v41, 4  ;;  %v15065_v24 = vadd.f32 %v7008_v50, %v7007_v30 }
 0x64e   : > { %17283 = vst [vmem:[#allocation121_spill] sm:$0xff] %v15057_v55  ;;  %17286 = vst [vmem:[#allocation167_spill] sm:$0xff] %v15063_v29  ;;  %v6283_v16 = vmul.f32 %v6155_v48, %v4875_v20  ;;  %v7020_v47 = vrot.slane %v7019_v23, 1  ;;  %v7285_v59 = vsel %vm7180_vm1, %v14930_v35, %v14904_v4  ;;  %v7032_v13 = vrot.slane %v7031_v52, 1  ;;  %v17299_v4 = vld [vmem:[#allocation93_spill] sm:$0xff] }
 0x64f   : > { %17287 = vst [vmem:[#allocation183_spill] sm:$0xff] %v15065_v24  ;;  %v7036_v49 = vrot.slane %v7035_v15, 2  ;;  %v7041_v51 = vadd.f32 %v7040_v44, %v6282_v41  ;;  %v7286_v42 = vsel %vm7182_vm2, %v15052_v58, %v7285_v59  ;;  %v15072_v11 = vadd.f32 %v7002_v53, %v7001_v27 }
 0x650   : > { %v7046_v34 = vrot.slane %v6283_v16, 4  ;;  %v7026_v19 = vrot.slane %v7025_v9, 1  ;;  %v7292_v30 = vsel %vm7180_vm1, %v14939_v36, %v14909_v38  ;;  %v15077_v21 = vadd.f32 %v7014_v22, %v7013_v6  ;;  %v17296_v36 = vld [vmem:[#allocation90_spill] sm:$0xff] }
 0x651   : > { %17288 = vst [vmem:[#allocation168_spill] sm:$0xff] %v15072_v11  ;;  %v7037_v3 = vadd.f32 %v7036_v49, %v7035_v15  ;;  %v7042_v50 = vrot.slane %v7041_v51, 2  ;;  %v7293_v37 = vsel %vm7182_vm2, %v15057_v55, %v7292_v30  ;;  %v15081_v31 = vadd.f32 %v7020_v47, %v7019_v23  ;;  %v7320_v30 = vpop.xlane.xlu1 %7319  ;;  %v17298_v55 = vld [vmem:[#allocation171_spill] sm:$0xff] }
 0x652   : > { %17289 = vst [vmem:[#allocation200_spill] sm:$0xff] %v15077_v21  ;;  %v7047_v1 = vadd.f32 %v7046_v34, %v6283_v16  ;;  %v7287_v27 = vsel %vm7184_vm3, %v15063_v29, %v7286_v42  ;;  %v15085_v53 = vadd.f32 %v7032_v13, %v7031_v52  ;;  %v15089_v6 = vadd.f32 %v7026_v19, %v7025_v9  ;;  %v7317_v42 = vpop.xlane.xlu0 %7316  ;;  %v17300_v29 = vld [vmem:[#allocation170_spill] sm:$0xff] }
 0x653   : > { %17290 = vst [vmem:[#allocation141_spill] sm:$0xff] %v15081_v31  ;;  %v7038_v41 = vrot.slane %v7037_v3, 1  ;;  %v7043_v63 = vadd.f32 %v7042_v50, %v7041_v51  ;;  %v7288_v12 = vsel %vm7186_vm4, %v15065_v24, %v7287_v27  ;;  %v7294_v48 = vsel %vm7184_vm3, %v15072_v11, %v7293_v37  ;;  %v17297_v24 = vld [vmem:[#allocation92_spill] sm:$0xff] }
 0x654   : > { %17291 = vst [vmem:[#allocation205_spill] sm:$0xff] %v15085_v53  ;;  %17292 = vst [vmem:[#allocation139_spill] sm:$0xff] %v15089_v6  ;;  %v7048_v20 = vrot.slane %v7047_v1, 2  ;;  %v7295_v15 = vsel %vm7186_vm4, %v15077_v21, %v7294_v48  ;;  %v7289_v52 = vsel %vm7188_vm5, %v15081_v31, %v7288_v12  ;;  %v7339_v50 = vmax.f32 %v7317_v42, 1e-38  ;;  %v17302_v31 = vld [vmem:[#allocation96_spill] sm:$0xff] }
 0x655   : > { %v15093_v22 = vadd.f32 %v7038_v41, %v7037_v3  ;;  %v7044_v23 = vrot.slane %v7043_v63, 1  ;;  %v7290_v9 = vsel %vm7190_vm6, %v15085_v53, %v7289_v52  ;;  %v7296_v59 = vsel %vm7188_vm5, %v15089_v6, %v7295_v15  ;;  %v17301_v6 = vld [vmem:[#allocation94_spill] sm:$0xff] }
 0x656   : > { %v7049_v44 = vadd.f32 %v7048_v20, %v7047_v1  ;;  %v7323_v3 = vpop.xlane.xlu0 %7322  ;;  %v7340_v37 = vmax.f32 %v7320_v30, 1e-38  ;;  %8919 = vrcp.f32 %v7339_v50 }
 0x657   : > { %17293 = vst [vmem:[#allocation203_spill] sm:$0xff] %v15093_v22  ;;  %v15099_v16 = vadd.f32 %v7044_v23, %v7043_v63  ;;  %v7297_v49 = vsel %vm7190_vm6, %v15093_v22, %v7296_v59  ;;  %v7341_v27 = vmax.f32 %v7323_v3, 1e-38 }
 0x658   : > { %v7050_v47 = vrot.slane %v7049_v44, 1  ;;  %8921 = vrcp.f32 %v7340_v37 }
 0x659   : > { %17294 = vst [vmem:[#allocation138_spill] sm:$0xff] %v15099_v16  ;;  %v7291_v13 = vsel %vm7192_vm7, %v15099_v16, %v7290_v9  ;;  %8923 = vrcp.f32 %v7341_v27 }
 0x65a   : > { %v15107_v51 = vadd.f32 %v7050_v47, %v7049_v44  ;;  %v7326_v1 = vpop.xlane.xlu0 %7325 }
 0x65b   : > { %v7329_v41 = vpop.xlane.xlu1 %7328  ;;  %v7342_v63 = vmax.f32 %v7326_v1, 1e-38 }
 0x65c   : > { %17295 = vst [vmem:[#allocation202_spill] sm:$0xff] %v15107_v51  ;;  %v7298_v34 = vsel %vm7192_vm7, %v15107_v51, %v7297_v49  ;;  %v7343_v12 = vmax.f32 %v7329_v41, 1e-38 }
 0x65d   : > { %v7336_v19 = vadd.f32 %v7298_v34, %v7291_v13  ;;  %8925 = vrcp.f32 %v7342_v63 }
 0x65e   : > { %8927 = vrcp.f32 %v7343_v12 }
 0x65f   : > { %7337 = vadd.xlane.f32.xlu0 %v7336_v19 }
 0x660   : > { %v8920_v20 = vpop.eup %8919 }
 0x661   : > { %v7363_v23 = vrot.slane %v8920_v20, 1  ;;  %v7364_v44 = vrot.slane %v8920_v20, 2  ;;  %v7365_v52 = vrot.slane %v8920_v20, 3  ;;  %v7366_v9 = vrot.slane %v8920_v20, 4 }
 0x662   : > { %v15113_v48 = vpop.eup %8921  ;;  %v7367_v47 = vrot.slane %v8920_v20, 5  ;;  %v7368_v59 = vrot.slane %v8920_v20, 6  ;;  %v7369_v49 = vrot.slane %v8920_v20, 7  ;;  %v15150_v11 = vmul.f32 %v8920_v20, %v17296_v36  ;;  %v17303_v36 = vld [vmem:[#allocation181_spill] sm:$0xff] }
 0x663   : > { %v15115_v15 = vpop.eup %8923  ;;  %v7370_v13 = vrot.slane %v15113_v48, 1  ;;  %v7371_v42 = vrot.slane %v15113_v48, 2  ;;  %v7372_v19 = vrot.slane %v15113_v48, 3  ;;  %v7373_v30 = vrot.slane %v15113_v48, 4 }
 0x664   : > { %v7374_v3 = vrot.slane %v15113_v48, 5  ;;  %v7375_v50 = vrot.slane %v15113_v48, 6  ;;  %v7376_v1 = vrot.slane %v15113_v48, 7  ;;  %v7377_v27 = vrot.slane %v15115_v15, 1 }
 0x665   : > { %v7378_v41 = vrot.slane %v15115_v15, 2  ;;  %v7379_v63 = vrot.slane %v15115_v15, 3  ;;  %v7380_v12 = vrot.slane %v15115_v15, 4  ;;  %v7381_v51 = vrot.slane %v15115_v15, 5 }
 0x666   : > { %v7382_v16 = vrot.slane %v15115_v15, 6  ;;  %v7383_v22 = vrot.slane %v15115_v15, 7  ;;  %v15153_v58 = vmul.f32 %v8920_v20, %v17297_v24  ;;  %v15156_v38 = vmul.f32 %v7363_v23, %v17298_v55  ;;  %v17304_v24 = vld [vmem:[#allocation184_spill] sm:$0xff]  ;;  %v17305_v55 = vld [vmem:[#allocation189_spill] sm:$0xff] }
 0x667   : > { %v15119_v34 = vpop.eup %8925  ;;  %v15159_v35 = vmul.f32 %v7363_v23, %v17299_v4  ;;  %v15162_v53 = vmul.f32 %v7364_v44, %v17300_v29  ;;  %v15165_v62 = vmul.f32 %v7364_v44, %v17301_v6  ;;  %v15168_v21 = vmul.f32 %v7365_v52, %v17302_v31  ;;  %v17306_v4 = vld [vmem:[#allocation67_spill] sm:$0xff]  ;;  %v17307_v29 = vld [vmem:[#allocation112_spill] sm:$0xff]  ;;  %v17308_v6 = vld [vmem:[#allocation50_spill] sm:$0xff] }
 0x668   : > { %v15125_v37 = vpop.eup %8927  ;;  %v15171_v32 = vmul.f32 %v7365_v52, %v17303_v36  ;;  %v15174_v20 = vmul.f32 %v7366_v9, %v17304_v24  ;;  %v15177_v45 = vmul.f32 %v7366_v9, %v17305_v55  ;;  %v15180_v23 = vmul.f32 %v7367_v47, %v17306_v4  ;;  %v17309_v31 = vld [vmem:[#allocation201_spill] sm:$0xff]  ;;  %v17310_v52 = vld [vmem:[#allocation134_spill] sm:$0xff] }
 0x669   : > { %v15183_v46 = vmul.f32 %v7367_v47, %v17307_v29  ;;  %v15186_v44 = vmul.f32 %v7368_v59, %v17308_v6  ;;  %v15189_v25 = vmul.f32 %v7368_v59, %v17309_v31  ;;  %v15192_v36 = vmul.f32 %v7369_v49, %v17310_v52  ;;  %v17311_v24 = vld [vmem:[#allocation113_spill] sm:$0xff]  ;;  %v17313_v4 = vld [vmem:[#allocation106_spill] sm:$0xff]  ;;  %v17314_v29 = vld [vmem:[#allocation108_spill] sm:$0xff] }
 0x66a   : > { %v15195_v0 = vmul.f32 %v7369_v49, %v17311_v24  ;;  %v17312_v9 = vld [vmem:[#allocation105_spill] sm:$0xff]  ;;  %v15203_v47 = vmul.f32 %v15113_v48, %v17313_v4  ;;  %v15206_v6 = vmul.f32 %v7370_v13, %v17314_v29  ;;  %v15209_v59 = vmul.f32 %v7370_v13, %v17315_v17  ;;  %v17316_v31 = vld [vmem:[#allocation111_spill] sm:$0xff]  ;;  %v17318_v24 = vld [vmem:[#allocation44_spill] sm:$0xff] }
 0x66b   : > { %v15199_v55 = vmul.f32 %v15113_v48, %v17312_v9  ;;  %v15212_v52 = vmul.f32 %v7371_v42, %v17316_v31  ;;  %v15215_v49 = vmul.f32 %v7371_v42, %v17317_v43  ;;  %v15218_v56 = vmul.f32 %v7372_v19, %v17318_v24  ;;  %v17319_v9 = vld [vmem:[#allocation186_spill] sm:$0xff]  ;;  %v17320_v48 = vld [vmem:[#allocation188_spill] sm:$0xff]  ;;  %v17321_v29 = vld [vmem:[#allocation193_spill] sm:$0xff] }
 0x66c   : > { %v15221_v8 = vmul.f32 %v7372_v19, %v17319_v9  ;;  %v15224_v4 = vmul.f32 %v7373_v30, %v17320_v48  ;;  %v15227_v2 = vmul.f32 %v7373_v30, %v17321_v29  ;;  %v17322_v17 = vld [vmem:[#allocation128_spill] sm:$0xff]  ;;  %v17323_v31 = vld [vmem:[#allocation177_spill] sm:$0xff]  ;;  %v17326_v19 = vld [vmem:[#allocation174_spill] sm:$0xff] }
 0x66d   : > { %v15230_v13 = vmul.f32 %v7374_v3, %v17322_v17  ;;  %v15233_v61 = vmul.f32 %v7374_v3, %v17323_v31  ;;  %v17324_v43 = vld [vmem:[#allocation65_spill] sm:$0xff]  ;;  %v17325_v24 = vld [vmem:[#allocation20_spill] sm:$0xff]  ;;  %v15242_v9 = vmul.f32 %v7376_v1, %v17326_v19  ;;  %v17327_v48 = vld [vmem:[#allocation130_spill] sm:$0xff] }
 0x66e   : > { %v15236_v42 = vmul.f32 %v7375_v50, %v17324_v43  ;;  %v15239_v28 = vmul.f32 %v7375_v50, %v17325_v24  ;;  %v15245_v54 = vmul.f32 %v7376_v1, %v17327_v48  ;;  %v17328_v30 = vld [vmem:[#allocation54_spill] sm:$0xff]  ;;  %v17329_v17 = vld [vmem:[#allocation8_spill] sm:$0xff]  ;;  %v15259_v50 = vmul.f32 %v7377_v27, %v17331_v57  ;;  %v17338_v57 = vld [vmem:[#allocation135_spill] sm:$0xff] }
 0x66f   : > { %v15249_v29 = vmul.f32 %v15115_v15, %v17328_v30  ;;  %v15253_v3 = vmul.f32 %v15115_v15, %v17329_v17  ;;  %v17330_v31 = vld [vmem:[#allocation120_spill] sm:$0xff]  ;;  %v17332_v24 = vld [vmem:[#allocation10_spill] sm:$0xff]  ;;  %v15265_v1 = vmul.f32 %v7378_v41, %v17333_v40  ;;  %v17335_v30 = vld [vmem:[#allocation15_spill] sm:$0xff] }
 0x670   : > { %v15256_v43 = vmul.f32 %v7377_v27, %v17330_v31  ;;  %v15262_v19 = vmul.f32 %v7378_v41, %v17332_v24  ;;  %v17334_v48 = vld [vmem:[#allocation14_spill] sm:$0xff]  ;;  %v15271_v26 = vmul.f32 %v7379_v63, %v17335_v30  ;;  %v17336_v15 = vld [vmem:[#allocation127_spill] sm:$0xff]  ;;  %v17337_v31 = vld [vmem:[#allocation16_spill] sm:$0xff]  ;;  %v15280_v27 = vmul.f32 %v7381_v51, %v17338_v57 }
 0x671   : > { %v15268_v5 = vmul.f32 %v7379_v63, %v17334_v48  ;;  %v15274_v17 = vmul.f32 %v7380_v12, %v17336_v15  ;;  %v15277_v18 = vmul.f32 %v7380_v12, %v17337_v31  ;;  %v17339_v24 = vld [vmem:[#allocation69_spill] sm:$0xff]  ;;  %v17340_v40 = vld [vmem:[#allocation187_spill] sm:$0xff]  ;;  %v17341_v48 = vld [vmem:[#allocation28_spill] sm:$0xff] }
 0x672   : > { %v15283_v14 = vmul.f32 %v7381_v51, %v17339_v24  ;;  %v15286_v41 = vmul.f32 %v7382_v16, %v17340_v40  ;;  %v15289_v60 = vmul.f32 %v7382_v16, %v17341_v48  ;;  %v17342_v63 = vld [vmem:[#allocation26_spill] sm:$0xff]  ;;  %v17343_v15 = vld [vmem:[#allocation29_spill] sm:$0xff]  ;;  %v17345_v12 = vld [vmem:[#allocation179_spill] sm:$0xff]  ;;  %v17350_v40 = vrot.slane %v15119_v34, 1 }
 0x673   : > { %v15292_v30 = vmul.f32 %v7383_v22, %v17342_v63  ;;  %v15295_v10 = vmul.f32 %v7383_v22, %v17343_v15  ;;  %v15299_v31 = vmul.f32 %v15119_v34, %v17345_v12  ;;  %v17347_v57 = vld [vmem:[#allocation98_spill] sm:$0xff]  ;;  %v17349_v24 = vld [vmem:[#allocation100_spill] sm:$0xff]  ;;  %v17355_v15 = vrot.slane %v15119_v34, 2 }
 0x674   : > { %v15303_v51 = vmul.f32 %v15119_v34, %v17347_v57  ;;  %v15308_v39 = vmul.f32 %v17350_v40, %v17349_v24  ;;  %v17351_v16 = vld [vmem:[#allocation172_spill] sm:$0xff]  ;;  %v17352_v48 = vmov %v17350_v40  ;;  %v17354_v22 = vld [vmem:[#allocation182_spill] sm:$0xff] }
 0x675   : > { %17344 = vst [vmem:[#allocation70_spill] sm:$0xff] %v15295_v10  ;;  %17346 = vst [vmem:[#allocation137_spill] sm:$0xff] %v15299_v31  ;;  %v15313_v63 = vmul.f32 %v17352_v48, %v17351_v16  ;;  %v15318_v7 = vmul.f32 %v17355_v15, %v17354_v22  ;;  %v17357_v12 = vld [vmem:[#allocation132_spill] sm:$0xff]  ;;  %v17358_v33 = vmov %v17355_v15  ;;  %v17361_v31 = vrot.slane %v15119_v34, 3  ;;  %v17363_v40 = vld [vmem:[#allocation66_spill] sm:$0xff] }
 0x676   : > { %17348 = vst [vmem:[#allocation58_spill] sm:$0xff] %v15303_v51  ;;  %v15323_v57 = vmul.f32 %v17358_v33, %v17357_v12  ;;  %v17360_v51 = vld [vmem:[#allocation101_spill] sm:$0xff]  ;;  %v17366_v48 = vld [vmem:[#allocation24_spill] sm:$0xff] }
 0x677   : > { %17353 = vst [vmem:[#allocation17_spill] sm:$0xff] %v15313_v63  ;;  %17356 = vst [vmem:[#allocation204_spill] sm:$0xff] %v15318_v7  ;;  %v15328_v24 = vmul.f32 %v17361_v31, %v17360_v51  ;;  %v17364_v10 = vmov %v17361_v31  ;;  %v17367_v63 = vrot.slane %v15119_v34, 4  ;;  %v17369_v15 = vld [vmem:[#allocation64_spill] sm:$0xff]  ;;  %v17375_v51 = vld [vmem:[#allocation175_spill] sm:$0xff] }
 0x678   : > { %17359 = vst [vmem:[#allocation72_spill] sm:$0xff] %v15323_v57  ;;  %v15333_v16 = vmul.f32 %v17364_v10, %v17363_v40  ;;  %v17372_v12 = vld [vmem:[#allocation192_spill] sm:$0xff]  ;;  %v17373_v57 = vrot.slane %v15119_v34, 5  ;;  %v17378_v40 = vld [vmem:[#allocation195_spill] sm:$0xff] }
 0x679   : > { %17362 = vst [vmem:[#allocation209_spill] sm:$0xff] %v15328_v24  ;;  %v15338_v22 = vmul.f32 %v17367_v63, %v17366_v48  ;;  %v17370_v7 = vmov %v17367_v63  ;;  %v17380_v48 = vld [vmem:[#allocation194_spill] sm:$0xff] }
 0x67a   : > { %17365 = vst [vmem:[#allocation31_spill] sm:$0xff] %v15333_v16  ;;  %v15343_v33 = vmul.f32 %v17370_v7, %v17369_v15  ;;  %v15348_v31 = vmul.f32 %v17373_v57, %v17372_v12  ;;  %v17376_v24 = vmov %v17373_v57  ;;  %v17379_v16 = vrot.slane %v15119_v34, 6  ;;  %v17383_v15 = vld [vmem:[#allocation68_spill] sm:$0xff]  ;;  %v17386_v12 = vld [vmem:[#allocation45_spill] sm:$0xff] }
 0x67b   : > { %17368 = vst [vmem:[#allocation207_spill] sm:$0xff] %v15338_v22  ;;  %v15353_v10 = vmul.f32 %v17376_v24, %v17375_v51  ;;  %v17389_v51 = vld [vmem:[#allocation19_spill] sm:$0xff] }
 0x67c   : > { %17371 = vst [vmem:[#allocation145_spill] sm:$0xff] %v15343_v33  ;;  %17374 = vst [vmem:[#allocation206_spill] sm:$0xff] %v15348_v31  ;;  %v15358_v63 = vmul.f32 %v17379_v16, %v17378_v40  ;;  %v17381_v22 = vmov %v17379_v16  ;;  %v17384_v33 = vrot.slane %v15119_v34, 7  ;;  %v15377_v16 = vmul.f32 %v15125_v37, %v17389_v51  ;;  %v17391_v40 = vld [vmem:[#allocation30_spill] sm:$0xff] }
 0x67d   : > { %17377 = vst [vmem:[#allocation32_spill] sm:$0xff] %v15353_v10  ;;  %v15363_v7 = vmul.f32 %v17381_v22, %v17380_v48  ;;  %v15381_v10 = vmul.f32 %v15125_v37, %v17391_v40  ;;  %v17393_v22 = vld [vmem:[#allocation133_spill] sm:$0xff]  ;;  %v17394_v48 = vrot.slane %v15125_v37, 1  ;;  %v17402_v51 = vld [vmem:[#allocation46_spill] sm:$0xff] }
 0x67e   : > { %v15368_v57 = vmul.f32 %v17384_v33, %v17383_v15  ;;  %v17387_v31 = vmov %v17384_v33  ;;  %17390 = vst [vmem:[#allocation71_spill] sm:$0xff] %v15377_v16  ;;  %v17396_v33 = vld [vmem:[#allocation131_spill] sm:$0xff] }
 0x67f   : > { %17382 = vst [vmem:[#allocation95_spill] sm:$0xff] %v15363_v7  ;;  %v15373_v24 = vmul.f32 %v17387_v31, %v17386_v12  ;;  %17392 = vst [vmem:[#allocation197_spill] sm:$0xff] %v15381_v10  ;;  %v15386_v7 = vmul.f32 %v17394_v48, %v17393_v22  ;;  %v17397_v15 = vmov %v17394_v48  ;;  %v17399_v31 = vld [vmem:[#allocation142_spill] sm:$0xff]  ;;  %v17400_v12 = vrot.slane %v15125_v37, 2  ;;  %v17405_v10 = vld [vmem:[#allocation149_spill] sm:$0xff] }
 0x680   : > { %17385 = vst [vmem:[#allocation180_spill] sm:$0xff] %v15368_v57  ;;  %v15391_v34 = vmul.f32 %v17397_v15, %v17396_v33  ;;  %v17406_v57 = vrot.slane %v15125_v37, 3  ;;  %v17408_v48 = vld [vmem:[#allocation75_spill] sm:$0xff]  ;;  %v17411_v15 = vld [vmem:[#allocation22_spill] sm:$0xff] }
 0x681   : > { %17388 = vst [vmem:[#allocation102_spill] sm:$0xff] %v15373_v24  ;;  %17395 = vst [vmem:[#allocation140_spill] sm:$0xff] %v15386_v7  ;;  %v15396_v24 = vmul.f32 %v17400_v12, %v17399_v31  ;;  %v17403_v16 = vmov %v17400_v12  ;;  %v17413_v12 = vld [vmem:[#allocation147_spill] sm:$0xff] }
 0x682   : > { %17398 = vst [vmem:[#allocation208_spill] sm:$0xff] %v15391_v34  ;;  %v15401_v40 = vmul.f32 %v17403_v16, %v17402_v51  ;;  %v15406_v22 = vmul.f32 %v17406_v57, %v17405_v10  ;;  %v17409_v7 = vmov %v17406_v57  ;;  %v17412_v34 = vrot.slane %v15125_v37, 4  ;;  %v17416_v51 = vld [vmem:[#allocation115_spill] sm:$0xff]  ;;  %v17418_v57 = vld [vmem:[#allocation41_spill] sm:$0xff] }
 0x683   : > { %17401 = vst [vmem:[#allocation143_spill] sm:$0xff] %v15396_v24  ;;  %v15411_v33 = vmul.f32 %v17409_v7, %v17408_v48  ;;  %v17421_v48 = vld [vmem:[#allocation161_spill] sm:$0xff] }
 0x684   : > { %17404 = vst [vmem:[#allocation213_spill] sm:$0xff] %v15401_v40  ;;  %17407 = vst [vmem:[#allocation144_spill] sm:$0xff] %v15406_v22  ;;  %v15416_v31 = vmul.f32 %v17412_v34, %v17411_v15  ;;  %v17414_v24 = vmov %v17412_v34  ;;  %v17417_v40 = vrot.slane %v15125_v37, 5  ;;  %v17424_v15 = vld [vmem:[#allocation83_spill] sm:$0xff] }
 0x685   : > { %17410 = vst [vmem:[#allocation211_spill] sm:$0xff] %v15411_v33  ;;  %v15421_v16 = vmul.f32 %v17414_v24, %v17413_v12  ;;  %v17422_v33 = vrot.slane %v15125_v37, 6 }
 0x686   : > { %v15426_v10 = vmul.f32 %v17417_v40, %v17416_v51  ;;  %v17419_v22 = vmov %v17417_v40  ;;  %v17427_v40 = vrot.slane %v15125_v37, 7 }
 0x687   : > { %17415 = vst [vmem:[#allocation74_spill] sm:$0xff] %v15421_v16  ;;  %v15431_v7 = vmul.f32 %v17419_v22, %v17418_v57  ;;  %v15436_v34 = vmul.f32 %v17422_v33, %v17421_v48  ;;  %v17425_v24 = vmov %v17422_v33  ;;  %v17426_v16 = vld [vmem:[#allocation82_spill] sm:$0xff]  ;;  %v7739_v22 = vrot.slane %v15156_v38, 7 }
 0x688   : > { %v15441_v12 = vmul.f32 %v17425_v24, %v17424_v15  ;;  %v15447_v51 = vmul.f32 %v17427_v40, %v17426_v16  ;;  %v7741_v57 = vrot.slane %v15162_v53, 6  ;;  %v7745_v33 = vrot.slane %v15174_v20, 4 }
 0x689   : > { %17420 = vst [vmem:[#allocation104_spill] sm:$0xff] %v15431_v7  ;;  %17423 = vst [vmem:[#allocation210_spill] sm:$0xff] %v15436_v34  ;;  %v7743_v7 = vrot.slane %v15168_v21, 5  ;;  %v7747_v48 = vrot.slane %v15180_v23, 3  ;;  %v7749_v34 = vrot.slane %v15186_v44, 2  ;;  %v7753_v15 = vrot.slane %v15159_v35, 7 }
 0x68a   : > { %v7740_v24 = vsel %vm7180_vm1, %v7739_v22, %v15150_v11  ;;  %v7751_v16 = vrot.slane %v15192_v36, 1  ;;  %v7755_v40 = vrot.slane %v15165_v62, 6  ;;  %v7757_v38 = vrot.slane %v15171_v32, 5 }
 0x68b   : > { %v7742_v21 = vsel %vm7182_vm2, %v7741_v57, %v7740_v24  ;;  %v7754_v53 = vsel %vm7180_vm1, %v7753_v15, %v15153_v58  ;;  %v7759_v20 = vrot.slane %v15177_v45, 4  ;;  %v7761_v35 = vrot.slane %v15183_v46, 3 }
 0x68c   : > { %v7744_v23 = vsel %vm7184_vm3, %v7743_v7, %v7742_v21  ;;  %v7756_v11 = vsel %vm7182_vm2, %v7755_v40, %v7754_v53  ;;  %v7763_v44 = vrot.slane %v15189_v25, 2  ;;  %v7767_v62 = vrot.slane %v15206_v6, 7 }
 0x68d   : > { %v7746_v32 = vsel %vm7186_vm4, %v7745_v33, %v7744_v23  ;;  %v7758_v36 = vsel %vm7184_vm3, %v7757_v38, %v7756_v11  ;;  %v7765_v22 = vrot.slane %v15195_v0, 1  ;;  %v7769_v58 = vrot.slane %v15212_v52, 6 }
 0x68e   : > { %v7748_v45 = vsel %vm7188_vm5, %v7747_v48, %v7746_v32  ;;  %v7760_v46 = vsel %vm7186_vm4, %v7759_v20, %v7758_v36  ;;  %v7768_v7 = vsel %vm7180_vm1, %v7767_v62, %v15199_v55  ;;  %v7771_v57 = vrot.slane %v15218_v56, 5 }
 0x68f   : > { %v7750_v25 = vsel %vm7190_vm6, %v7749_v34, %v7748_v45  ;;  %v7762_v6 = vsel %vm7188_vm5, %v7761_v35, %v7760_v46  ;;  %v7770_v33 = vsel %vm7182_vm2, %v7769_v58, %v7768_v7  ;;  %v7773_v15 = vrot.slane %v15224_v4, 4  ;;  %v17428_v4 = vld [vmem:[#allocation84_spill] sm:$0xff] }
 0x690   : > { %v7752_v0 = vsel %vm7192_vm7, %v7751_v16, %v7750_v25  ;;  %v7764_v52 = vsel %vm7190_vm6, %v7763_v44, %v7762_v6  ;;  %v7772_v48 = vsel %vm7184_vm3, %v7771_v57, %v7770_v33  ;;  %v7775_v24 = vrot.slane %v15230_v13, 3  ;;  %v17430_v33 = vld [vmem:[#allocation204_spill] sm:$0xff] }
 0x691   : > { %v7766_v55 = vsel %vm7192_vm7, %v7765_v22, %v7764_v52  ;;  %v7774_v56 = vsel %vm7186_vm4, %v7773_v15, %v7772_v48  ;;  %v7777_v34 = vrot.slane %v15236_v42, 2  ;;  %v7781_v40 = vrot.slane %v15209_v59, 7  ;;  %7979 = vst [vmem:[%s15493_s30] sm:$0xff] %v7752_v0  ;;  %v17432_v48 = vld [vmem:[#allocation137_spill] sm:$0xff] }
 0x692   : > { %v17429_v16 = vrot.slane %v15125_v37, 7  ;;  %v7776_v13 = vsel %vm7188_vm5, %v7775_v24, %v7774_v56  ;;  %v7779_v21 = vrot.slane %v15242_v9, 1  ;;  %v7783_v53 = vrot.slane %v15215_v49, 6  ;;  %7980 = vst [vmem:[%s15493_s30 + $0x8] sm:$0xff] %v7766_v55  ;;  %v17433_v55 = vld [vmem:[#allocation209_spill] sm:$0xff] }
 0x693   : > { %v7778_v59 = vsel %vm7190_vm6, %v7777_v34, %v7776_v13  ;;  %v7782_v42 = vsel %vm7180_vm1, %v7781_v40, %v15203_v47  ;;  %v7785_v20 = vrot.slane %v15221_v8, 5  ;;  %v7787_v35 = vrot.slane %v15227_v2, 4  ;;  %v17434_v34 = vld [vmem:[#allocation207_spill] sm:$0xff] }
 0x694   : > { %v15499_v38 = vmul.f32 %v17429_v16, %v17428_v4  ;;  %v7780_v37 = vsel %vm7192_vm7, %v7779_v21, %v7778_v59  ;;  %v7784_v23 = vsel %vm7182_vm2, %v7783_v53, %v7782_v42  ;;  %v7789_v11 = vrot.slane %v15233_v61, 3  ;;  %v17436_v21 = vld [vmem:[#allocation17_spill] sm:$0xff]  ;;  %v17437_v59 = vld [vmem:[#allocation72_spill] sm:$0xff] }
 0x695   : > { %v7795_v9 = vrot.slane %v15256_v43, 7  ;;  %v7786_v49 = vsel %vm7184_vm3, %v7785_v20, %v7784_v23  ;;  %v7791_v44 = vrot.slane %v15239_v28, 2  ;;  %v7793_v62 = vrot.slane %v15245_v54, 1  ;;  %7981 = vst [vmem:[%s15493_s30 + $0x10] sm:$0xff] %v7780_v37  ;;  %v17438_v37 = vld [vmem:[#allocation180_spill] sm:$0xff] }
 0x696   : > { %v7797_v47 = vrot.slane %v15262_v19, 6  ;;  %v7788_v8 = vsel %vm7186_vm4, %v7787_v35, %v7786_v49  ;;  %v7799_v32 = vrot.slane %v15268_v5, 5  ;;  %v7801_v61 = vrot.slane %v15274_v17, 4 }
 0x697   : > { %v7796_v2 = vsel %vm7180_vm1, %v7795_v9, %v15249_v29  ;;  %v7790_v43 = vsel %vm7188_vm5, %v7789_v11, %v7788_v8  ;;  %v7803_v28 = vrot.slane %v15280_v27, 3  ;;  %v7809_v54 = vrot.slane %v15259_v50, 7  ;;  %v17439_v11 = vld [vmem:[#allocation31_spill] sm:$0xff] }
 0x698   : > { %v7798_v36 = vsel %vm7182_vm2, %v7797_v47, %v7796_v2  ;;  %v7792_v19 = vsel %vm7190_vm6, %v7791_v44, %v7790_v43  ;;  %v7805_v58 = vrot.slane %v15286_v41, 2  ;;  %v7811_v29 = vrot.slane %v15265_v1, 6  ;;  %v17440_v44 = vld [vmem:[#allocation58_spill] sm:$0xff]  ;;  %v17441_v47 = vld [vmem:[#allocation145_spill] sm:$0xff]  ;;  %v17442_v2 = vld [vmem:[#allocation32_spill] sm:$0xff] }
 0x699   : > { %v7800_v22 = vsel %vm7184_vm3, %v7799_v32, %v7798_v36  ;;  %v7794_v5 = vsel %vm7192_vm7, %v7793_v62, %v7792_v19  ;;  %v7810_v45 = vsel %vm7180_vm1, %v7809_v54, %v15253_v3  ;;  %v7813_v46 = vrot.slane %v15271_v26, 5 }
 0x69a   : > { %v7802_v17 = vsel %vm7186_vm4, %v7801_v61, %v7800_v22  ;;  %v7807_v50 = vrot.slane %v15292_v30, 1  ;;  %v7812_v7 = vsel %vm7182_vm2, %v7811_v29, %v7810_v45  ;;  %v7815_v41 = vrot.slane %v15277_v18, 4  ;;  %7982 = vst [vmem:[%s15493_s30 + $0x18] sm:$0xff] %v7794_v5  ;;  %v17431_v18 = vld [vmem:[#allocation70_spill] sm:$0xff]  ;;  %v17445_v29 = vld [vmem:[#allocation95_spill] sm:$0xff] }
 0x69b   : > { %v7804_v27 = vsel %vm7188_vm5, %v7803_v28, %v7802_v17  ;;  %v7814_v57 = vsel %vm7184_vm3, %v7813_v46, %v7812_v7  ;;  %v7817_v25 = vrot.slane %v15283_v14, 3  ;;  %v7823_v3 = vrot.slane %v15308_v39, 7  ;;  %v17444_v28 = vld [vmem:[#allocation143_spill] sm:$0xff]  ;;  %v17446_v17 = vld [vmem:[#allocation102_spill] sm:$0xff] }
 0x69c   : > { %v7806_v1 = vsel %vm7190_vm6, %v7805_v58, %v7804_v27  ;;  %v7816_v6 = vsel %vm7186_vm4, %v7815_v41, %v7814_v57  ;;  %v7819_v30 = vrot.slane %v15289_v60, 2  ;;  %v7825_v15 = vrot.slane %v17430_v33, 6  ;;  %v17435_v60 = vld [vmem:[#allocation206_spill] sm:$0xff]  ;;  %v17448_v41 = vld [vmem:[#allocation144_spill] sm:$0xff] }
 0x69d   : > { %v7808_v26 = vsel %vm7192_vm7, %v7807_v50, %v7806_v1  ;;  %v7818_v0 = vsel %vm7188_vm5, %v7817_v25, %v7816_v6  ;;  %v7821_v52 = vrot.slane %v17431_v18, 1  ;;  %v7824_v24 = vsel %vm7180_vm1, %v7823_v3, %v17432_v48  ;;  %v17447_v50 = vld [vmem:[#allocation71_spill] sm:$0xff]  ;;  %v17449_v33 = vld [vmem:[#allocation208_spill] sm:$0xff] }
 0x69e   : > { %v7827_v14 = vrot.slane %v17433_v55, 5  ;;  %7983 = vst [vmem:[%s15493_s30 + $0x20] sm:$0xff] %v7808_v26  ;;  %v7820_v39 = vsel %vm7190_vm6, %v7819_v30, %v7818_v0  ;;  %v7826_v56 = vsel %vm7182_vm2, %v7825_v15, %v7824_v24  ;;  %v7829_v40 = vrot.slane %v17434_v34, 4  ;;  %v17451_v24 = vld [vmem:[#allocation213_spill] sm:$0xff] }
 0x69f   : > { %v7831_v4 = vrot.slane %v17435_v60, 3  ;;  %v7822_v16 = vsel %vm7192_vm7, %v7821_v52, %v7820_v39  ;;  %v7837_v53 = vrot.slane %v17436_v21, 7  ;;  %v7839_v42 = vrot.slane %v17437_v59, 6  ;;  %v17450_v52 = vld [vmem:[#allocation210_spill] sm:$0xff] }
 0x6a0   : > { %v7828_v13 = vsel %vm7184_vm3, %v7827_v14, %v7826_v56  ;;  %v7833_v35 = vrot.slane %v15358_v63, 2  ;;  %v7835_v23 = vrot.slane %v17438_v37, 1  ;;  %v7841_v9 = vrot.slane %v17439_v11, 5  ;;  %7984 = vst [vmem:[%s15493_s30 + $0x28] sm:$0xff] %v7822_v16  ;;  %v17443_v63 = vld [vmem:[#allocation140_spill] sm:$0xff]  ;;  %v17452_v14 = vld [vmem:[#allocation197_spill] sm:$0xff] }
 0x6a1   : > { %v7830_v20 = vsel %vm7186_vm4, %v7829_v40, %v7828_v13  ;;  %v7838_v62 = vsel %vm7180_vm1, %v7837_v53, %v17440_v44  ;;  %v7843_v8 = vrot.slane %v17441_v47, 4  ;;  %v7845_v32 = vrot.slane %v17442_v2, 3  ;;  %v17453_v56 = vld [vmem:[#allocation211_spill] sm:$0xff]  ;;  %v17455_v53 = vld [vmem:[#allocation104_spill] sm:$0xff] }
 0x6a2   : > { %v7832_v49 = vsel %vm7188_vm5, %v7831_v4, %v7830_v20  ;;  %v7840_v43 = vsel %vm7182_vm2, %v7839_v42, %v7838_v62  ;;  %v7851_v36 = vrot.slane %v17443_v63, 7  ;;  %v7853_v54 = vrot.slane %v17444_v28, 6  ;;  %v17454_v4 = vld [vmem:[#allocation74_spill] sm:$0xff]  ;;  %v17456_v2 = vld [vmem:[#allocation103_spill] sm:$0xff] }
 0x6a3   : > { %v7834_v61 = vsel %vm7190_vm6, %v7833_v35, %v7832_v49  ;;  %v7842_v58 = vsel %vm7184_vm3, %v7841_v9, %v7840_v43  ;;  %v7847_v5 = vrot.slane %v17445_v29, 2  ;;  %v7849_v45 = vrot.slane %v17446_v17, 1  ;;  %v17458_v63 = vld [vmem:[#allocation34_spill] sm:$0xff]  ;;  %v17463_v17 = vld [vmem:[#allocation36_spill] sm:$0xff] }
 0x6a4   : > { %v7836_v22 = vsel %vm7192_vm7, %v7835_v23, %v7834_v61  ;;  %v7844_v27 = vsel %vm7186_vm4, %v7843_v8, %v7842_v58  ;;  %v7852_v7 = vsel %vm7180_vm1, %v7851_v36, %v17447_v50  ;;  %v7855_v1 = vrot.slane %v17448_v41, 5  ;;  %v17462_v29 = vld [vmem:[#allocation114_spill] sm:$0xff]  ;;  %v17465_v50 = vld [vmem:[#allocation37_spill] sm:$0xff] }
 0x6a5   : > { %7985 = vst [vmem:[%s15493_s30 + $0x30] sm:$0xff] %v7836_v22  ;;  %v7846_v57 = vsel %vm7188_vm5, %v7845_v32, %v7844_v27  ;;  %v7854_v25 = vsel %vm7182_vm2, %v7853_v54, %v7852_v7  ;;  %v7857_v3 = vrot.slane %v15416_v31, 4  ;;  %v7859_v26 = vrot.slane %v15426_v10, 3  ;;  %v17460_v54 = vld [vmem:[#allocation146_spill] sm:$0xff]  ;;  %v17461_v22 = vld [vmem:[#allocation33_spill] sm:$0xff] }
 0x6a6   : > { %v7848_v6 = vsel %vm7190_vm6, %v7847_v5, %v7846_v57  ;;  %v7856_v30 = vsel %vm7184_vm3, %v7855_v1, %v7854_v25  ;;  %v7865_v15 = vrot.slane %v17449_v33, 7  ;;  %v7861_v48 = vrot.slane %v17450_v52, 2  ;;  %v17466_v41 = vld [vmem:[#allocation97_spill] sm:$0xff]  ;;  %v17467_v25 = vld [vmem:[#allocation178_spill] sm:$0xff] }
 0x6a7   : > { %v7850_v0 = vsel %vm7192_vm7, %v7849_v45, %v7848_v6  ;;  %v7858_v18 = vsel %vm7186_vm4, %v7857_v3, %v7856_v30  ;;  %v7867_v55 = vrot.slane %v17451_v24, 6  ;;  %v7863_v10 = vrot.slane %v15447_v51, 1  ;;  %v17469_v30 = vld [vmem:[#allocation87_spill] sm:$0xff] }
 0x6a8   : > { %v7860_v31 = vsel %vm7188_vm5, %v7859_v26, %v7858_v18  ;;  %v7866_v39 = vsel %vm7180_vm1, %v7865_v15, %v17452_v14  ;;  %v7869_v34 = vrot.slane %v17453_v56, 5  ;;  %7986 = vst [vmem:[%s15493_s30 + $0x38] sm:$0xff] %v7850_v0  ;;  %v7871_v16 = vrot.slane %v17454_v4, 4  ;;  %v17468_v26 = vld [vmem:[#allocation63_spill] sm:$0xff]  ;;  %v17470_v0 = vld [vmem:[#allocation48_spill] sm:$0xff] }
 0x6a9   : > { %v7862_v40 = vsel %vm7190_vm6, %v7861_v48, %v7860_v31  ;;  %v7868_v60 = vsel %vm7182_vm2, %v7867_v55, %v7866_v39  ;;  %v7873_v59 = vrot.slane %v17455_v53, 3  ;;  %v7875_v42 = vrot.slane %v15441_v12, 2  ;;  %v17457_v12 = vld [vmem:[#allocation5_spill] sm:$0xff]  ;;  %v17471_v55 = vld [vmem:[#allocation88_spill] sm:$0xff] }
 0x6aa   : > { %v7332_v19 = vpop.xlane.xlu0 %7331  ;;  %v7864_v13 = vsel %vm7192_vm7, %v7863_v10, %v7862_v40  ;;  %v7870_v21 = vsel %vm7184_vm3, %v7869_v34, %v7868_v60  ;;  %v7877_v35 = vrot.slane %v15499_v38, 1  ;;  %v17459_v38 = vld [vmem:[#allocation107_spill] sm:$0xff] }
 0x6ab   : > { %v7344_v46 = vmax.f32 %v7332_v19, 1e-38  ;;  %v7872_v51 = vsel %vm7186_vm4, %v7871_v16, %v7870_v21  ;;  %7987 = vst [vmem:[%s15493_s30 + $0x40] sm:$0xff] %v7864_v13 }
 0x6ac   : > { %v7874_v20 = vsel %vm7188_vm5, %v7873_v59, %v7872_v51 }
 0x6ad   : > { %8929 = vrcp.f32 %v7344_v46  ;;  %v7876_v37 = vsel %vm7190_vm6, %v7875_v42, %v7874_v20  ;;  %v17464_v46 = vld [vmem:[#allocation152_spill] sm:$0xff] }
 0x6ae   : > { %v7878_v23 = vsel %vm7192_vm7, %v7877_v35, %v7876_v37 }
 0x6af   : > { %7988 = vst [vmem:[%s15493_s30 + $0x48] sm:$0xff] %v7878_v23 }
 0x6b7   : > { %v8930_v11 = vpop.eup %8929 }
 0x6b8   : > { %v7398_v9 = vrot.slane %v8930_v11, 1  ;;  %v7399_v49 = vrot.slane %v8930_v11, 2  ;;  %v7400_v44 = vrot.slane %v8930_v11, 3  ;;  %v7401_v62 = vrot.slane %v8930_v11, 4 }
 0x6b9   : > { %v7402_v47 = vrot.slane %v8930_v11, 5  ;;  %v7403_v8 = vrot.slane %v8930_v11, 6  ;;  %v7404_v43 = vrot.slane %v8930_v11, 7  ;;  %v7563_v19 = vmul.f32 %v8930_v11, %v17460_v54 }
 0x6ba   : > { %v7565_v32 = vmul.f32 %v7398_v9, %v17456_v2  ;;  %v7567_v61 = vmul.f32 %v7399_v49, %v17457_v12  ;;  %v7566_v36 = vmul.f32 %v7398_v9, %v17458_v63  ;;  %v7569_v28 = vmul.f32 %v7400_v44, %v17459_v38 }
 0x6bb   : > { %v7564_v58 = vmul.f32 %v8930_v11, %v17461_v22  ;;  %v7568_v5 = vmul.f32 %v7399_v49, %v17462_v29  ;;  %v7571_v45 = vmul.f32 %v7401_v62, %v17463_v17  ;;  %v7570_v27 = vmul.f32 %v7400_v44, %v17464_v46  ;;  %v17474_v22 = vld [vmem:[#allocation118_spill] sm:$0xff]  ;;  %v17475_v29 = vld [vmem:[#allocation129_spill] sm:$0xff] }
 0x6bc   : > { %v7572_v7 = vmul.f32 %v7401_v62, %v17465_v50  ;;  %v7573_v1 = vmul.f32 %v7402_v47, %v17466_v41  ;;  %v7879_v57 = vrot.slane %v7565_v32, 7  ;;  %v7574_v3 = vmul.f32 %v7402_v47, %v17467_v25  ;;  %v17476_v17 = vld [vmem:[#allocation61_spill] sm:$0xff]  ;;  %v17477_v46 = vld [vmem:[#allocation190_spill] sm:$0xff] }
 0x6bd   : > { %v7575_v6 = vmul.f32 %v7403_v8, %v17468_v26  ;;  %v7576_v33 = vmul.f32 %v7403_v8, %v17469_v30  ;;  %v7881_v15 = vrot.slane %v7567_v61, 6  ;;  %v7577_v18 = vmul.f32 %v7404_v43, %v17470_v0  ;;  %v17478_v50 = vld [vmem:[#allocation86_spill] sm:$0xff] }
 0x6be   : > { %v7880_v52 = vsel %vm7180_vm1, %v7879_v57, %v7563_v19  ;;  %v7883_v48 = vrot.slane %v7569_v28, 5  ;;  %v7893_v24 = vrot.slane %v7566_v36, 7  ;;  %v7578_v31 = vmul.f32 %v7404_v43, %v17471_v55  ;;  %v17472_v36 = vld [vmem:[#allocation13_spill] sm:$0xff]  ;;  %v17473_v28 = vld [vmem:[#allocation124_spill] sm:$0xff]  ;;  %v17479_v41 = vld [vmem:[#allocation126_spill] sm:$0xff] }
 0x6bf   : > { %v7882_v10 = vsel %vm7182_vm2, %v7881_v15, %v7880_v52  ;;  %v7885_v14 = vrot.slane %v7571_v45, 4  ;;  %v7895_v39 = vrot.slane %v7568_v5, 6  ;;  %v7887_v34 = vrot.slane %v7573_v1, 3  ;;  %v17480_v57 = vld [vmem:[#allocation116_spill] sm:$0xff]  ;;  %v17483_v0 = vld [vmem:[#allocation6_spill] sm:$0xff] }
 0x6c0   : > { %v7884_v56 = vsel %vm7184_vm3, %v7883_v48, %v7882_v10  ;;  %v7894_v40 = vsel %vm7180_vm1, %v7893_v24, %v7564_v58  ;;  %v7897_v60 = vrot.slane %v7570_v27, 5  ;;  %v7889_v16 = vrot.slane %v7575_v6, 2  ;;  %v17482_v6 = vld [vmem:[#allocation12_spill] sm:$0xff] }
 0x6c1   : > { %v7886_v4 = vsel %vm7186_vm4, %v7885_v14, %v7884_v56  ;;  %v7896_v13 = vsel %vm7182_vm2, %v7895_v39, %v7894_v40  ;;  %v7899_v21 = vrot.slane %v7572_v7, 4  ;;  %v7891_v59 = vrot.slane %v7577_v18, 1  ;;  %v17484_v52 = vld [vmem:[#allocation60_spill] sm:$0xff]  ;;  %v17486_v14 = vld [vmem:[#allocation199_spill] sm:$0xff] }
 0x6c2   : > { %v7888_v53 = vsel %vm7188_vm5, %v7887_v34, %v7886_v4  ;;  %v7898_v51 = vsel %vm7184_vm3, %v7897_v60, %v7896_v13  ;;  %v7901_v42 = vrot.slane %v7574_v3, 3  ;;  %v7903_v37 = vrot.slane %v7576_v33, 2  ;;  %v17481_v3 = vld [vmem:[#allocation62_spill] sm:$0xff]  ;;  %v17485_v24 = vld [vmem:[#allocation136_spill] sm:$0xff] }
 0x6c3   : > { %v7890_v20 = vsel %vm7190_vm6, %v7889_v16, %v7888_v53  ;;  %v7900_v35 = vsel %vm7186_vm4, %v7899_v21, %v7898_v51  ;;  %v7905_v9 = vrot.slane %v7578_v31, 1  ;;  %v17487_v13 = vld [vmem:[#allocation198_spill] sm:$0xff] }
 0x6c4   : > { %v7892_v23 = vsel %vm7192_vm7, %v7891_v59, %v7890_v20  ;;  %v7902_v11 = vsel %vm7188_vm5, %v7901_v42, %v7900_v35 }
 0x6c5   : > { %v7904_v49 = vsel %vm7190_vm6, %v7903_v37, %v7902_v11  ;;  %7989 = vst [vmem:[%s15493_s30 + $0x50] sm:$0xff] %v7892_v23 }
 0x6c6   : > { %v7906_v44 = vsel %vm7192_vm7, %v7905_v9, %v7904_v49 }
 0x6c7   : > { %7990 = vst [vmem:[%s15493_s30 + $0x58] sm:$0xff] %v7906_v44 }
 0x6d8   : > { %v7335_v62 = vpop.xlane.xlu1 %7334 }
 0x6d9   : > { %v7345_v47 = vmax.f32 %v7335_v62, 1e-38 }
 0x6db   : > { %8931 = vrcp.f32 %v7345_v47 }
 0x6e5   : > { %v8932_v8 = vpop.eup %8931 }
 0x6e6   : > { %v7405_v2 = vrot.slane %v8932_v8, 1  ;;  %v7406_v32 = vrot.slane %v8932_v8, 2  ;;  %v7407_v12 = vrot.slane %v8932_v8, 3  ;;  %v7408_v61 = vrot.slane %v8932_v8, 4 }
 0x6e7   : > { %v7409_v43 = vrot.slane %v8932_v8, 5  ;;  %v7410_v63 = vrot.slane %v8932_v8, 6  ;;  %v7411_v19 = vrot.slane %v8932_v8, 7  ;;  %v7579_v58 = vmul.f32 %v8932_v8, %v17474_v22 }
 0x6e8   : > { %v7581_v38 = vmul.f32 %v7405_v2, %v17472_v36  ;;  %v7583_v54 = vmul.f32 %v7406_v32, %v17473_v28  ;;  %v7585_v5 = vmul.f32 %v7407_v12, %v17475_v29  ;;  %v7580_v45 = vmul.f32 %v8932_v8, %v17476_v17 }
 0x6e9   : > { %v7582_v27 = vmul.f32 %v7405_v2, %v17477_v46  ;;  %v7584_v7 = vmul.f32 %v7406_v32, %v17478_v50  ;;  %v7587_v1 = vmul.f32 %v7408_v61, %v17479_v41  ;;  %v7586_v25 = vmul.f32 %v7407_v12, %v17480_v57  ;;  %v17490_v46 = vld [vmem:[#allocation185_spill] sm:$0xff]  ;;  %v17491_v50 = vld [vmem:[#allocation167_spill] sm:$0xff]  ;;  %v17492_v41 = vld [vmem:[#allocation164_spill] sm:$0xff] }
 0x6ea   : > { %v7588_v26 = vmul.f32 %v7408_v61, %v17481_v3  ;;  %v7589_v30 = vmul.f32 %v7409_v43, %v17482_v6  ;;  %v7907_v33 = vrot.slane %v7581_v38, 7  ;;  %v7590_v18 = vmul.f32 %v7409_v43, %v17483_v0  ;;  %v17493_v57 = vld [vmem:[#allocation59_spill] sm:$0xff]  ;;  %v17494_v3 = vld [vmem:[#allocation121_spill] sm:$0xff]  ;;  %v17497_v0 = vld [vmem:[#allocation200_spill] sm:$0xff] }
 0x6eb   : > { %v7591_v48 = vmul.f32 %v7410_v63, %v17484_v52  ;;  %v7592_v55 = vmul.f32 %v7410_v63, %v17485_v24  ;;  %v7909_v31 = vrot.slane %v7583_v54, 6  ;;  %v7593_v39 = vmul.f32 %v7411_v19, %v17486_v14  ;;  %v17495_v6 = vld [vmem:[#allocation183_spill] sm:$0xff]  ;;  %v17498_v52 = vld [vmem:[#allocation141_spill] sm:$0xff] }
 0x6ec   : > { %v7338_v15 = vpop.xlane.xlu0 %7337  ;;  %v7908_v56 = vsel %vm7180_vm1, %v7907_v33, %v7579_v58  ;;  %v7911_v34 = vrot.slane %v7585_v5, 5  ;;  %v7913_v60 = vrot.slane %v7587_v1, 4  ;;  %v7921_v4 = vrot.slane %v7582_v27, 7  ;;  %v17488_v58 = vld [vmem:[#allocation89_spill] sm:$0xff]  ;;  %v17489_v5 = vld [vmem:[#allocation27_spill] sm:$0xff]  ;;  %v17496_v33 = vld [vmem:[#allocation168_spill] sm:$0xff] }
 0x6ed   : > { %v7346_v10 = vmax.f32 %v7338_v15, 1e-38  ;;  %v7910_v40 = vsel %vm7182_vm2, %v7909_v31, %v7908_v56  ;;  %v7923_v16 = vrot.slane %v7584_v7, 6  ;;  %v7594_v21 = vmul.f32 %v7411_v19, %v17487_v13 }
 0x6ee   : > { %v7912_v53 = vsel %vm7184_vm3, %v7911_v34, %v7910_v40  ;;  %v7915_v59 = vrot.slane %v7589_v30, 3  ;;  %v7917_v42 = vrot.slane %v7591_v48, 2  ;;  %v7922_v20 = vsel %vm7180_vm1, %v7921_v4, %v7580_v45  ;;  %v17502_v40 = vld [vmem:[#allocation138_spill] sm:$0xff] }
 0x6ef   : > { %8933 = vrcp.f32 %v7346_v10  ;;  %v7914_v51 = vsel %vm7186_vm4, %v7913_v60, %v7912_v53  ;;  %v7925_v35 = vrot.slane %v7586_v25, 5  ;;  %v7919_v23 = vrot.slane %v7593_v39, 1  ;;  %v17500_v10 = vld [vmem:[#allocation205_spill] sm:$0xff]  ;;  %v17501_v39 = vld [vmem:[#allocation203_spill] sm:$0xff] }
 0x6f0   : > { %v7916_v37 = vsel %vm7188_vm5, %v7915_v59, %v7914_v51  ;;  %v7924_v11 = vsel %vm7182_vm2, %v7923_v16, %v7922_v20  ;;  %v7927_v9 = vrot.slane %v7588_v26, 4  ;;  %v7929_v62 = vrot.slane %v7590_v18, 3 }
 0x6f1   : > { %v7918_v49 = vsel %vm7190_vm6, %v7917_v42, %v7916_v37  ;;  %v7926_v44 = vsel %vm7184_vm3, %v7925_v35, %v7924_v11  ;;  %v7931_v2 = vrot.slane %v7592_v55, 2  ;;  %v7933_v12 = vrot.slane %v7594_v21, 1  ;;  %v17499_v55 = vld [vmem:[#allocation139_spill] sm:$0xff]  ;;  %v17503_v21 = vld [vmem:[#allocation202_spill] sm:$0xff] }
 0x6f2   : > { %v7920_v47 = vsel %vm7192_vm7, %v7919_v23, %v7918_v49  ;;  %v7928_v8 = vsel %vm7186_vm4, %v7927_v9, %v7926_v44 }
 0x6f3   : > { %v7930_v32 = vsel %vm7188_vm5, %v7929_v62, %v7928_v8  ;;  %7991 = vst [vmem:[%s15493_s30 + $0x60] sm:$0xff] %v7920_v47 }
 0x6f4   : > { %v7932_v61 = vsel %vm7190_vm6, %v7931_v2, %v7930_v32 }
 0x6f5   : > { %v7934_v43 = vsel %vm7192_vm7, %v7933_v12, %v7932_v61 }
 0x6f6   : > { %7992 = vst [vmem:[%s15493_s30 + $0x68] sm:$0xff] %v7934_v43 }
 0x6f9   : > { %v8934_v63 = vpop.eup %8933 }
 0x6fa   : > { %v7412_v36 = vrot.slane %v8934_v63, 1  ;;  %v7413_v38 = vrot.slane %v8934_v63, 2  ;;  %v7414_v28 = vrot.slane %v8934_v63, 3  ;;  %v7415_v54 = vrot.slane %v8934_v63, 4 }
 0x6fb   : > { %v7416_v19 = vrot.slane %v8934_v63, 5  ;;  %v7417_v22 = vrot.slane %v8934_v63, 6  ;;  %v7418_v45 = vrot.slane %v8934_v63, 7  ;;  %v7595_v1 = vmul.f32 %v8934_v63, %v17492_v41 }
 0x6fc   : > { %v7597_v29 = vmul.f32 %v7412_v36, %v17488_v58  ;;  %v7599_v17 = vmul.f32 %v7413_v38, %v17489_v5  ;;  %v7598_v27 = vmul.f32 %v7412_v36, %v17490_v46  ;;  %v7601_v7 = vmul.f32 %v7414_v28, %v17491_v50 }
 0x6fd   : > { %v7596_v25 = vmul.f32 %v8934_v63, %v17493_v57  ;;  %v7600_v26 = vmul.f32 %v7413_v38, %v17494_v3  ;;  %v7603_v30 = vmul.f32 %v7415_v54, %v17495_v6  ;;  %v7602_v15 = vmul.f32 %v7414_v28, %v17496_v33 }
 0x6fe   : > { %v7604_v18 = vmul.f32 %v7415_v54, %v17497_v0  ;;  %v7605_v48 = vmul.f32 %v7416_v19, %v17498_v52  ;;  %v7935_v24 = vrot.slane %v7597_v29, 7  ;;  %v7606_v31 = vmul.f32 %v7416_v19, %v17499_v55 }
 0x6ff   : > { %v7607_v14 = vmul.f32 %v7417_v22, %v17500_v10  ;;  %v7608_v56 = vmul.f32 %v7417_v22, %v17501_v39  ;;  %v7937_v34 = vrot.slane %v7599_v17, 6  ;;  %v7609_v60 = vmul.f32 %v7418_v45, %v17502_v40 }
 0x700   : > { %v7936_v4 = vsel %vm7180_vm1, %v7935_v24, %v7595_v1  ;;  %v7939_v16 = vrot.slane %v7601_v7, 5  ;;  %v7949_v13 = vrot.slane %v7598_v27, 7  ;;  %v7610_v53 = vmul.f32 %v7418_v45, %v17503_v21 }
 0x701   : > { %v7938_v59 = vsel %vm7182_vm2, %v7937_v34, %v7936_v4  ;;  %v7941_v51 = vrot.slane %v7603_v30, 4  ;;  %v7951_v42 = vrot.slane %v7600_v26, 6  ;;  %v7943_v35 = vrot.slane %v7605_v48, 3 }
 0x702   : > { %v7940_v20 = vsel %vm7184_vm3, %v7939_v16, %v7938_v59  ;;  %v7950_v37 = vsel %vm7180_vm1, %v7949_v13, %v7596_v25  ;;  %v7953_v23 = vrot.slane %v7602_v15, 5  ;;  %v7945_v9 = vrot.slane %v7607_v14, 2 }
 0x703   : > { %v7942_v11 = vsel %vm7186_vm4, %v7941_v51, %v7940_v20  ;;  %v7952_v49 = vsel %vm7182_vm2, %v7951_v42, %v7950_v37  ;;  %v7955_v44 = vrot.slane %v7604_v18, 4  ;;  %v7947_v47 = vrot.slane %v7609_v60, 1 }
 0x704   : > { %v7944_v62 = vsel %vm7188_vm5, %v7943_v35, %v7942_v11  ;;  %v7954_v8 = vsel %vm7184_vm3, %v7953_v23, %v7952_v49  ;;  %v7957_v2 = vrot.slane %v7606_v31, 3  ;;  %v7959_v61 = vrot.slane %v7608_v56, 2 }
 0x705   : > { %v7946_v32 = vsel %vm7190_vm6, %v7945_v9, %v7944_v62  ;;  %v7956_v12 = vsel %vm7186_vm4, %v7955_v44, %v7954_v8  ;;  %v7961_v36 = vrot.slane %v7610_v53, 1 }
 0x706   : > { %v7948_v43 = vsel %vm7192_vm7, %v7947_v47, %v7946_v32  ;;  %v7958_v63 = vsel %vm7188_vm5, %v7957_v2, %v7956_v12 }
 0x707   : > { %v7960_v38 = vsel %vm7190_vm6, %v7959_v61, %v7958_v63  ;;  %7993 = vst [vmem:[%s15493_s30 + $0x70] sm:$0xff] %v7948_v43 }
 0x708   : > { %v7962_v28 = vsel %vm7192_vm7, %v7961_v36, %v7960_v38 }
 0x709   : > { %7994 = vst [vmem:[%s15493_s30 + $0x78] sm:$0xff] %v7962_v28 }
 0x70a   : > { %8953 = shalt.err (!%p8950_p3)
}
 0x70b   : > { %s8954_s28 = scalar_lea.hbm %s15715_s20, 2048  ;;  %s8958_s17 = scalar_lea.hbm %s15776_s10, 8192 }
 0x70c   : > { %p8955_p4 = scmp.ne.s32.totalorder %s15715_s20, %s8954_s28  ;;  %p8959_p9 = scmp.lt.u32.totalorder %s15715_s20, %s15776_s10 }
 0x70d   : > { %p8960_p10 = scmp.lt.u32.totalorder %s8958_s17, %s8954_s28  ;;  %p8962_p12 = scmp.lt.u32.totalorder %s8954_s28, %s15715_s20 }
 0x70e   : > { %p8956_p7 = pnand %p8955_p4, %p9101_p5 }
 0x70f   : > { %p8961_p11 = por %p8960_p10, %p8959_p9 }
 0x710   : > { %p8957_p8 = pneg %p8956_p7 }
 0x711   : > { %p8963_p13 = por %p8962_p12, %p8961_p11 }
 0x713   : > { %p8964_p0 = pnand %p8963_p13, %p8957_p8 }
 0x715   : > { %8967 = shalt.err (!%p8964_p0)
}
 0x716   : > { %s9006_s26 = smov 256   ;;  %s9007_s27 = smov 16  }
 0x717   : > { %8291 = dma.vmem_to_hbm [thread:$0]  (%p9101_p5), %s15717_s11, 2048, %s15715_s20, %s15725_s25, %s9006_s26, %s9006_s26, %s9007_s27  }
 0x718 PF: > { %p8297_p1 = scmp.ge.s32.totalorder %s9002_s16, 2  ;;  %s8025_s29 = sand.u32 1, %s8990_s13  }
 0x719   : > { %s8026_s28 = scalar_lea.sflag [#allocation3], %s8025_s29 }
 0x71a   : > { %p8294_p2 = pnand %p8297_p1, %p9105_p6 }
 0x71c   : > { %8985 = dma.done.wait (!%p8294_p2), %s8026_s28, 2048  }
 0x71d   : > { %8987 = vsyncadd (!%p8294_p2), %s8026_s28, 4294965248  ;;  %p20_p3 = scmp.ge.s32.totalorder %s9088_s19, 6   ;;  %s17504_s13 = smov %s8994_s14 }
 0x71e   : > { %s17505_s14 = smov %s8998_s15  ;;  %s17506_s15 = smov %s9099_s22 }
 0x71f   : > { %s17507_s16 = smov %s9088_s19  ;;  %22 = sbr.rel (!%p20_p3) target bundleno = 3 (0x3), region = 101 }
 0x726   :  { %8031 = vsyncpa [#allocation3], 1 }
 0x727   :  { %8033 = vsyncpa [#allocation3 + $0x1], 1 }

</bundles_post_ra>
